<compile_context>
chip_gen: v7x
topology: tpu7x:2x2x1
jax: 0.10.0
libtpu: 0.0.40
codegen_flags: <defaults>
</compile_context>

<pallas_src>
import inspect

import jax
import jax.numpy as jnp
from jax.experimental import pallas as pl
from jax.experimental.pallas import tpu as pltpu


def _round_up(x, m):
    return ((x + m - 1) // m) * m


def _supports_single_buffering():
    """pipeline_mode=pl.Buffered(1) is a newer BlockSpec knob; detect it so we
    can fall back to default double buffering on older jax versions."""
    if not hasattr(pl, "Buffered"):
        return False
    try:
        return "pipeline_mode" in inspect.signature(pl.BlockSpec).parameters
    except (TypeError, ValueError):
        return True


_HAS_BUFFERED = _supports_single_buffering()


# --------------------------- recurrent kernel -------------------------------
def fused_decoder_kernel(h0_ref, enc_ref, emb_ref,
                         attn_w_h_ref, attn_w_e_ref, v_ref,
                         attn_b_ref, b_ih_ref, b_hh_ref,
                         w_ih_h_ref, w_ih_x_ref, w_hh_ref,
                         h_out_ref,
                         h_sc, encp_sc):
    """One grid step == one chunk of T_CHUNK decode timesteps for one batch
    block.  The GRU hidden state is carried in VMEM scratch across the
    sequential ("arbitrary") time-chunk axis."""
    B, S, H = enc_ref.shape
    Tc = emb_ref.shape[0]
    c = pl.program_id(1)                      # time-chunk index (sequential)

    # First chunk of this batch block: load h0 and hoist the loop-invariant
    # encoder side of the attention linear (enc @ W_e) into VMEM scratch.
    @pl.when(c == 0)
    def _init():
        h_sc[...] = h0_ref[...]
        enc2 = enc_ref[...].reshape(B * S, H)
        encp_sc[...] = jnp.dot(
            enc2, attn_w_e_ref[...],
            preferred_element_type=jnp.float32).reshape(B, S, H)

    # Hoist all loop-invariant loads out of the per-timestep loop.
    enc = enc_ref[...]                        # (B, S, H)
    encp = encp_sc[...]                       # (B, S, H)
    attn_w_h = attn_w_h_ref[...]              # (H, H)
    v_row = v_ref[...]                        # (1, H)
    attn_b = attn_b_ref[...]                  # (1, H)
    b_ih = b_ih_ref[...]                      # (1, 3H)
    b_hh = b_hh_ref[...]                      # (1, 3H)
    w_ih_h = w_ih_h_ref[...]                  # (H, 3H)  weighted-context half
    w_ih_x = w_ih_x_ref[...]                  # (W, 3H)  word-embedding half
    w_hh = w_hh_ref[...]                      # (H, 3H)

    def step(i, h):
        x = emb_ref[i]                        # (B, W) teacher-forced word emb

        # ---- attention: softmax_s( v . tanh(W_h h + W_e enc + b) ) --------
        hp = jnp.dot(h, attn_w_h, preferred_element_type=jnp.float32) + attn_b
        energy = jnp.tanh(encp + hp[:, None, :])               # (B, S, H) EUP
        # Score / weighted context stay OFF the MXU (VPU mul + XLU reduce):
        # an (H,1) matvec / q=1 bmm wastes MXU lanes, and VPU/XLU slots
        # co-issue with the fused gate GEMMs below.
        score = jnp.sum(energy * v_row, axis=-1)                # (B, S)
        score = score - jnp.max(score, axis=-1, keepdims=True)  # stable
        p = jnp.exp(score)
        attn = p / jnp.sum(p, axis=-1, keepdims=True)           # exact softmax
        weighted = jnp.sum(attn[:, :, None] * enc, axis=1)      # (B, H)

        # ---- GRU cell (PyTorch gate order [r, z, n]), fused 3-gate GEMMs --
        gi = (jnp.dot(weighted, w_ih_h, preferred_element_type=jnp.float32)
              + jnp.dot(x, w_ih_x, preferred_element_type=jnp.float32)
              + b_ih)                                            # (B, 3H)
        gh = jnp.dot(h, w_hh, preferred_element_type=jnp.float32) + b_hh
        # NOTE: pad H to a multiple of 128 at production sizes so these gate
        # slices are lane-aligned (free); at H=32 the relayout cost is tiny.
        r = jax.nn.sigmoid(gi[:, 0:H] + gh[:, 0:H])
        z = jax.nn.sigmoid(gi[:, H:2 * H] + gh[:, H:2 * H])
        n = jnp.tanh(gi[:, 2 * H:3 * H] + r * gh[:, 2 * H:3 * H])
        h_new = (1.0 - z) * n + z * h                            # (B, H)

        h_out_ref[i] = h_new.astype(h_out_ref.dtype)             # stream h_t out
        return h_new

    h_sc[...] = jax.lax.fori_loop(0, Tc, step, h_sc[...], unroll=True)


# ------------------------ vocab projection kernel ---------------------------
def output_projection_kernel(h_ref, w_ref, b_ref, o_ref):
    o_ref[...] = (jnp.dot(h_ref[...], w_ref[...],
                          preferred_element_type=jnp.float32)
                  + b_ref[...]).astype(o_ref.dtype)


# ------------------------------ parameters ----------------------------------
def init_params(key, hidden_size, output_size, vocab_size, word_dim):
    ks = jax.random.split(key, 9)
    s = 0.1
    f32 = jnp.float32
    return {
        # embedding table (vocab, W)
        "embedding": jax.random.normal(ks[0], (vocab_size, word_dim), f32) * s,
        # Attention.attn: Linear(2H -> H), stored transposed for x @ W
        "attn_w": jax.random.normal(ks[1], (2 * hidden_size, hidden_size), f32) * s,
        "attn_b": jax.random.normal(ks[2], (1, hidden_size), f32) * s,
        # Attention.v: Linear(H -> 1, bias=False), stored as (1, H)
        "v": jax.random.normal(ks[3], (1, hidden_size), f32) * s,
        # GRU: input size H + W ([weighted ; word]), hidden H; stored (in, 3H)
        "w_ih": jax.random.normal(ks[4], (hidden_size + word_dim, 3 * hidden_size), f32) * s,
        "w_hh": jax.random.normal(ks[5], (hidden_size, 3 * hidden_size), f32) * s,
        "b_ih": jax.random.normal(ks[6], (1, 3 * hidden_size), f32) * s,
        "b_hh": jax.random.normal(ks[7], (1, 3 * hidden_size), f32) * s,
        # to_final_output: Linear(H -> O), stored transposed
        "w_out": jax.random.normal(ks[8], (hidden_size, output_size), f32) * s,
        "b_out": jnp.zeros((1, output_size), f32),
    }


def _prepare_kernel_params(params, H, W, O_pad):
    """Split / pad PyTorch-layout params into the kernel layout (gates fused)."""
    attn_w_h = params["attn_w"][:H, :]          # (H, H)  hidden side
    attn_w_e = params["attn_w"][H:, :]          # (H, H)  encoder side
    v_row = params["v"]                         # (1, H)
    attn_b = params["attn_b"]                   # (1, H)
    w_ih_h = params["w_ih"][:H, :]              # (H, 3H) weighted-context half
    w_ih_x = params["w_ih"][H:, :]              # (W, 3H) word half
    w_hh = params["w_hh"]                       # (H, 3H)
    b_ih = params["b_ih"]                       # (1, 3H)
    b_hh = params["b_hh"]                       # (1, 3H)
    O = params["w_out"].shape[1]
    w_out = jnp.pad(params["w_out"], ((0, 0), (0, O_pad - O)))   # (H, O_pad)
    b_out = jnp.pad(params["b_out"], ((0, 0), (0, O_pad - O)))   # (1, O_pad)
    return (attn_w_h, attn_w_e, v_row, attn_b, b_ih, b_hh,
            w_ih_h, w_ih_x, w_hh, w_out, b_out)


# ------------------------------ pallas_call glue ----------------------------
def _recurrent_call(B_blk, S, H, W, Tc, n_bblk, n_chunks,
                    n_steps_pad, B_pad, single_buffer):
    def spec(shape, imap):
        # Resident operands: block index never changes along the inner time
        # axis, so one VMEM buffer suffices (halves resident VMEM on v7x).
        if single_buffer:
            return pl.BlockSpec(shape, imap, pipeline_mode=pl.Buffered(1))
        return pl.BlockSpec(shape, imap)

    const2 = lambda b, c: (0, 0)

    # VMEM budget (f32 bytes): resident enc + weights, streaming blocks
    # (double buffered), scratch; 2x headroom, floored at the default scoped
    # limit and capped below v7x's 64 MiB physical VMEM.
    nbuf = 1 if single_buffer else 2
    f = 4
    resident = f * nbuf * (B_blk * S * H + 2 * H * H + 2 * H + 2 * 3 * H
                           + (2 * H + W) * 3 * H)
    streaming = f * 2 * (B_blk * H + Tc * B_blk * W + Tc * B_blk * H)
    scratch = f * (B_blk * H + B_blk * S * H)
    vmem_limit = int(min(max(2 * (resident + streaming + scratch), 32 << 20),
                         56 << 20))

    return pl.pallas_call(
        fused_decoder_kernel,
        out_shape=jax.ShapeDtypeStruct((n_steps_pad, B_pad, H), jnp.float32),
        grid_spec=pltpu.PrefetchScalarGridSpec(
            num_scalar_prefetch=0,
            grid=(n_bblk, n_chunks),
            in_specs=[
                pl.BlockSpec((B_blk, H), lambda b, c: (b, 0)),          # h0
                spec((B_blk, S, H), lambda b, c: (b, 0, 0)),            # enc
                pl.BlockSpec((Tc, B_blk, W), lambda b, c: (c, b, 0)),   # emb chunk
                spec((H, H), const2),                                   # attn_w_h
                spec((H, H), const2),                                   # attn_w_e
                spec((1, H), const2),                                   # v
                spec((1, H), const2),                                   # attn_b
                spec((1, 3 * H), const2),                               # b_ih
                spec((1, 3 * H), const2),                               # b_hh
                spec((H, 3 * H), const2),                               # w_ih (weighted)
                spec((W, 3 * H), const2),                               # w_ih (word)
                spec((H, 3 * H), const2),                               # w_hh
            ],
            out_specs=pl.BlockSpec((Tc, B_blk, H), lambda b, c: (c, b, 0)),
            scratch_shapes=[
                pltpu.VMEM((B_blk, H), jnp.float32),       # hidden-state carry
                pltpu.VMEM((B_blk, S, H), jnp.float32),    # enc @ W_e (hoisted)
            ]),
        compiler_params=pltpu.CompilerParams(
            # batch blocks are independent (v7x second TensorCore); the time
            # chunk axis is a true recurrence.
            dimension_semantics=("parallel", "arbitrary"),
            vmem_limit_bytes=vmem_limit),
    )


def _project_to_vocab(h_flat, w_out, b_out):
    """logits = H_all @ w_out + b_out over all timesteps at once (M = B*T)."""
    M, H = h_flat.shape
    O_pad = w_out.shape[1]
    tn = 128
    while tn * 2 <= min(O_pad, 512) and O_pad % (tn * 2) == 0:
        tn *= 2
    # TODO(synk): at production B*T, also tile M (e.g. 256-row blocks).
    return pl.pallas_call(
        output_projection_kernel,
        out_shape=jax.ShapeDtypeStruct((M, O_pad), jnp.float32),
        grid_spec=pltpu.PrefetchScalarGridSpec(
            num_scalar_prefetch=0,
            grid=(O_pad // tn,),
            in_specs=[pl.BlockSpec((M, H), lambda j: (0, 0)),
                      pl.BlockSpec((H, tn), lambda j: (0, j)),
                      pl.BlockSpec((1, tn), lambda j: (0, j))],
            out_specs=pl.BlockSpec((M, tn), lambda j: (0, j))),
        compiler_params=pltpu.CompilerParams(
            dimension_semantics=("parallel",)),
    )(h_flat, w_out, b_out)


def decoder_forward(params, encoder_last_hidden_state, encoder_output,
                    processed_captions, t_chunk=4):
    """
    encoder_last_hidden_state: (1, B, H)
    encoder_output:            (B, S, H)
    processed_captions:        (B, T) int32 token ids
    returns (seq_logProb (B, T-1, O), seq_predictions (B, T-1))
    """
    h0 = encoder_last_hidden_state[0]                   # (B, H)
    B, S, H = encoder_output.shape
    W = params["embedding"].shape[1]
    O = params["w_out"].shape[1]
    T = processed_captions.shape[1]
    n_steps = T - 1

    # TODO(synk): raise B_blk toward 128/256 when the real batch allows (MXU
    # row fill) while keeping >=2 batch blocks so v7x's second core is used.
    B_blk = 8
    B_pad = _round_up(max(B, B_blk), B_blk)
    n_bblk = B_pad // B_blk
    Tc = max(1, min(t_chunk, n_steps))                  # decode steps / grid step
    n_steps_pad = _round_up(n_steps, Tc)
    n_chunks = n_steps_pad // Tc
    O_pad = _round_up(O, 128)                           # lane-dense projection

    # TODO(synk): the reference uses Python-RNG scheduled sampling; we use
    # deterministic teacher forcing (ground-truth embedding) every step.
    emb = jnp.take(params["embedding"], processed_captions[:, :n_steps], axis=0)
    emb = jnp.transpose(emb, (1, 0, 2))                 # (T-1, B, W)
    emb = jnp.pad(emb, ((0, n_steps_pad - n_steps), (0, B_pad - B), (0, 0)))
    h0_p = jnp.pad(h0, ((0, B_pad - B), (0, 0)))
    enc_p = jnp.pad(encoder_output, ((0, B_pad - B), (0, 0), (0, 0)))

    (attn_w_h, attn_w_e, v_row, attn_b, b_ih, b_hh,
     w_ih_h, w_ih_x, w_hh, w_out, b_out) = _prepare_kernel_params(params, H, W, O_pad)

    ops = (h0_p, enc_p, emb, attn_w_h, attn_w_e, v_row, attn_b, b_ih, b_hh,
           w_ih_h, w_ih_x, w_hh)

    def run(single_buffer):
        return _recurrent_call(B_blk, S, H, W, Tc, n_bblk, n_chunks,
                               n_steps_pad, B_pad, single_buffer)(*ops)

    if _HAS_BUFFERED:
        try:
            h_all = run(True)
        except Exception:
            # pl.Buffered(1) not accepted by this jax/libtpu combination;
            # fall back to the default double-buffered pipeline.
            h_all = run(False)
    else:
        h_all = run(False)

    # Hoisted vocab projection over all timesteps at once.
    logits = _project_to_vocab(h_all.reshape(n_steps_pad * B_pad, H), w_out, b_out)
    logits = logits.reshape(n_steps_pad, B_pad, O_pad)
    seq_logprob = jnp.transpose(logits[:n_steps, :B, :O], (1, 0, 2))  # (B,T-1,O)
    seq_predictions = jnp.argmax(seq_logprob, axis=2)                 # (B,T-1)
    return seq_logprob, seq_predictions


# ---------------- pure-JAX reference (verification only) --------------------
def _step_ref(h, enc, x, p):
    B, S, H = enc.shape
    cat = jnp.concatenate([jnp.broadcast_to(h[:, None, :], (B, S, H)), enc], -1)
    energy = jnp.tanh(cat @ p["attn_w"] + p["attn_b"])
    score = jnp.sum(energy * p["v"], -1)
    attn = jax.nn.softmax(score, axis=1)
    weighted = jnp.einsum("bs,bsh->bh", attn, enc)
    dec_in = jnp.concatenate([weighted, x], -1)
    gi = dec_in @ p["w_ih"] + p["b_ih"]
    gh = h @ p["w_hh"] + p["b_hh"]
    r = jax.nn.sigmoid(gi[:, :H] + gh[:, :H])
    z = jax.nn.sigmoid(gi[:, H:2 * H] + gh[:, H:2 * H])
    n = jnp.tanh(gi[:, 2 * H:] + r * gh[:, 2 * H:])
    h_new = (1 - z) * n + z * h
    return h_new @ p["w_out"] + p["b_out"], h_new


if __name__ == "__main__":
    B, S, H, W = 2, 8, 32, 16          # batch, src_len, hidden, word_dim
    vocab_size = output_size = 40
    T = 8                              # tgt_len

    key = jax.random.PRNGKey(0)
    kp, k1, k2, k3 = jax.random.split(key, 4)
    params = init_params(kp, H, output_size, vocab_size, W)

    encoder_last_hidden_state = jax.random.normal(k1, (1, B, H), jnp.float32)
    encoder_output = jax.random.normal(k2, (B, S, H), jnp.float32)
    processed_captions = jax.random.randint(k3, (B, T), 0, vocab_size,
                                            dtype=jnp.int32)

    seq_logprob, seq_pred = decoder_forward(
        params, encoder_last_hidden_state, encoder_output, processed_captions)
    jax.block_until_ready((seq_logprob, seq_pred))

    # Full-sequence check against the pure-JAX reference.
    emb_all = jnp.take(params["embedding"], processed_captions, axis=0)
    h_ref = encoder_last_hidden_state[0]
    ref_seq = []
    for i in range(T - 1):
        lg, h_ref = _step_ref(h_ref, encoder_output, emb_all[:, i, :], params)
        ref_seq.append(lg)
    ref_seq = jnp.stack(ref_seq, axis=1)

    assert seq_logprob.shape == (B, T - 1, output_size)
    assert seq_pred.shape == (B, T - 1)
    assert jnp.allclose(seq_logprob, ref_seq, atol=2e-3, rtol=2e-3), \
        float(jnp.max(jnp.abs(seq_logprob - ref_seq)))

    pred_ref = jnp.argmax(ref_seq, axis=2)
    if not bool(jnp.array_equal(seq_pred, pred_ref)):
        # Allow argmax flips only where the reference top-2 gap is within the
        # numerical tolerance (near-ties).
        top2 = jnp.sort(ref_seq, axis=2)[..., -2:]
        gap = top2[..., 1] - top2[..., 0]
        ok = jnp.where(seq_pred != pred_ref, gap < 5e-3, True)
        assert bool(jnp.all(ok)), "argmax mismatch beyond numerical tolerance"

    print("KERNEL_OK")
</pallas_src>

<mosaic_0001>
module attributes {stable_mosaic.version = 11 : i64} {
  func.func @fused_decoder_kernel(%arg0: i32, %arg1: i32, %arg2: memref<8x32xf32, #tpu.memory_space<vmem>>, %arg3: memref<8x8x32xf32, #tpu.memory_space<vmem>>, %arg4: memref<4x8x16xf32, #tpu.memory_space<vmem>>, %arg5: memref<32x32xf32, #tpu.memory_space<vmem>>, %arg6: memref<32x32xf32, #tpu.memory_space<vmem>>, %arg7: memref<1x32xf32, #tpu.memory_space<vmem>>, %arg8: memref<1x32xf32, #tpu.memory_space<vmem>>, %arg9: memref<1x96xf32, #tpu.memory_space<vmem>>, %arg10: memref<1x96xf32, #tpu.memory_space<vmem>>, %arg11: memref<32x96xf32, #tpu.memory_space<vmem>>, %arg12: memref<16x96xf32, #tpu.memory_space<vmem>>, %arg13: memref<32x96xf32, #tpu.memory_space<vmem>>, %arg14: memref<4x8x32xf32, #tpu.memory_space<vmem>>, %arg15: memref<8x32xf32, #tpu.memory_space<vmem>>, %arg16: memref<8x8x32xf32, #tpu.memory_space<vmem>>) attributes {dimension_semantics = [#tpu.dimension_semantics<parallel>, #tpu.dimension_semantics<arbitrary>], iteration_bounds = array<i64: 1, 2>, scalar_prefetch = 0 : i64, scratch_operands = 2 : i64, tpu.core_type = #tpu.core_type<tc>, window_params = [{transform_indices = @transform_0, window_bounds = array<i64: 8, 32>}, {pipeline_mode = #tpu.pipeline_mode<synchronous>, transform_indices = @transform_1, window_bounds = array<i64: 8, 8, 32>}, {transform_indices = @transform_2, window_bounds = array<i64: 4, 8, 16>}, {pipeline_mode = #tpu.pipeline_mode<synchronous>, transform_indices = @transform_3, window_bounds = array<i64: 32, 32>}, {pipeline_mode = #tpu.pipeline_mode<synchronous>, transform_indices = @transform_4, window_bounds = array<i64: 32, 32>}, {pipeline_mode = #tpu.pipeline_mode<synchronous>, transform_indices = @transform_5, window_bounds = array<i64: 1, 32>}, {pipeline_mode = #tpu.pipeline_mode<synchronous>, transform_indices = @transform_6, window_bounds = array<i64: 1, 32>}, {pipeline_mode = #tpu.pipeline_mode<synchronous>, transform_indices = @transform_7, window_bounds = array<i64: 1, 96>}, {pipeline_mode = #tpu.pipeline_mode<synchronous>, transform_indices = @transform_8, window_bounds = array<i64: 1, 96>}, {pipeline_mode = #tpu.pipeline_mode<synchronous>, transform_indices = @transform_9, window_bounds = array<i64: 32, 96>}, {pipeline_mode = #tpu.pipeline_mode<synchronous>, transform_indices = @transform_10, window_bounds = array<i64: 16, 96>}, {pipeline_mode = #tpu.pipeline_mode<synchronous>, transform_indices = @transform_11, window_bounds = array<i64: 32, 96>}, {transform_indices = @transform_12, window_bounds = array<i64: 4, 8, 32>}]} {
    %c0_i32 = arith.constant 0 : i32
    %0 = arith.cmpi eq, %arg1, %c0_i32 : i32
    %1 = arith.extui %0 : i1 to i32
    %c0_i32_0 = arith.constant 0 : i32
    %2 = arith.cmpi ne, %1, %c0_i32_0 : i32
    scf.if %2 {
      %c0_86 = arith.constant 0 : index
      %c0_87 = arith.constant 0 : index
      %275 = vector.load %arg2[%c0_86, %c0_87] : memref<8x32xf32, #tpu.memory_space<vmem>>, vector<8x32xf32>
      %c0_88 = arith.constant 0 : index
      %c0_89 = arith.constant 0 : index
      %276 = vector.load %arg15[%c0_88, %c0_89] : memref<8x32xf32, #tpu.memory_space<vmem>>, vector<8x32xf32>
      tpu.vector_store %arg15[%c0_88, %c0_89], %275 {strides = array<i32>} : memref<8x32xf32, #tpu.memory_space<vmem>>, vector<8x32xf32>,
      %c0_90 = arith.constant 0 : index
      %c0_91 = arith.constant 0 : index
      %c0_92 = arith.constant 0 : index
      %277 = vector.load %arg3[%c0_90, %c0_91, %c0_92] : memref<8x8x32xf32, #tpu.memory_space<vmem>>, vector<8x8x32xf32>
      %278 = vector.shape_cast %277 : vector<8x8x32xf32> to vector<64x32xf32>
      %c0_93 = arith.constant 0 : index
      %c0_94 = arith.constant 0 : index
      %279 = vector.load %arg6[%c0_93, %c0_94] : memref<32x32xf32, #tpu.memory_space<vmem>>, vector<32x32xf32>
      %cst_95 = arith.constant dense<0.000000e+00> : vector<64x32xf32>
      %280 = tpu.matmul %278, %279, %cst_95 {dimension_numbers = #tpu.dot_dimension_numbers<[1], [0], [0], [1], [0, 0, 1, 1], [], []>} : vector<64x32xf32>, vector<32x32xf32>, vector<64x32xf32> -> vector<64x32xf32>
      %281 = vector.shape_cast %280 : vector<64x32xf32> to vector<8x8x32xf32>
      %c0_96 = arith.constant 0 : index
      %c0_97 = arith.constant 0 : index
      %c0_98 = arith.constant 0 : index
      %282 = vector.load %arg16[%c0_96, %c0_97, %c0_98] : memref<8x8x32xf32, #tpu.memory_space<vmem>>, vector<8x8x32xf32>
      tpu.vector_store %arg16[%c0_96, %c0_97, %c0_98], %281 {strides = array<i32>} : memref<8x8x32xf32, #tpu.memory_space<vmem>>, vector<8x8x32xf32>,
    } else {
    }
    %c0 = arith.constant 0 : index
    %c0_1 = arith.constant 0 : index
    %c0_2 = arith.constant 0 : index
    %3 = vector.load %arg3[%c0, %c0_1, %c0_2] : memref<8x8x32xf32, #tpu.memory_space<vmem>>, vector<8x8x32xf32>
    %c0_3 = arith.constant 0 : index
    %c0_4 = arith.constant 0 : index
    %c0_5 = arith.constant 0 : index
    %4 = vector.load %arg16[%c0_3, %c0_4, %c0_5] : memref<8x8x32xf32, #tpu.memory_space<vmem>>, vector<8x8x32xf32>
    %c0_6 = arith.constant 0 : index
    %c0_7 = arith.constant 0 : index
    %5 = vector.load %arg5[%c0_6, %c0_7] : memref<32x32xf32, #tpu.memory_space<vmem>>, vector<32x32xf32>
    %c0_8 = arith.constant 0 : index
    %c0_9 = arith.constant 0 : index
    %6 = vector.load %arg7[%c0_8, %c0_9] : memref<1x32xf32, #tpu.memory_space<vmem>>, vector<1x32xf32>
    %c0_10 = arith.constant 0 : index
    %c0_11 = arith.constant 0 : index
    %7 = vector.load %arg8[%c0_10, %c0_11] : memref<1x32xf32, #tpu.memory_space<vmem>>, vector<1x32xf32>
    %c0_12 = arith.constant 0 : index
    %c0_13 = arith.constant 0 : index
    %8 = vector.load %arg9[%c0_12, %c0_13] : memref<1x96xf32, #tpu.memory_space<vmem>>, vector<1x96xf32>
    %c0_14 = arith.constant 0 : index
    %c0_15 = arith.constant 0 : index
    %9 = vector.load %arg10[%c0_14, %c0_15] : memref<1x96xf32, #tpu.memory_space<vmem>>, vector<1x96xf32>
    %c0_16 = arith.constant 0 : index
    %c0_17 = arith.constant 0 : index
    %10 = vector.load %arg11[%c0_16, %c0_17] : memref<32x96xf32, #tpu.memory_space<vmem>>, vector<32x96xf32>
    %c0_18 = arith.constant 0 : index
    %c0_19 = arith.constant 0 : index
    %11 = vector.load %arg12[%c0_18, %c0_19] : memref<16x96xf32, #tpu.memory_space<vmem>>, vector<16x96xf32>
    %c0_20 = arith.constant 0 : index
    %c0_21 = arith.constant 0 : index
    %12 = vector.load %arg13[%c0_20, %c0_21] : memref<32x96xf32, #tpu.memory_space<vmem>>, vector<32x96xf32>
    %c0_22 = arith.constant 0 : index
    %c0_23 = arith.constant 0 : index
    %13 = vector.load %arg15[%c0_22, %c0_23] : memref<8x32xf32, #tpu.memory_space<vmem>>, vector<8x32xf32>
    %c0_i32_24 = arith.constant 0 : i32
    %14 = arith.index_cast %c0_i32_24 : i32 to index
    %c0_25 = arith.constant 0 : index
    %c0_26 = arith.constant 0 : index
    %15 = vector.load %arg4[%14, %c0_25, %c0_26] : memref<4x8x16xf32, #tpu.memory_space<vmem>>, vector<1x8x16xf32>
    %16 = vector.shape_cast %15 : vector<1x8x16xf32> to vector<8x16xf32>
    %cst = arith.constant dense<0.000000e+00> : vector<8x32xf32>
    %17 = tpu.matmul %13, %5, %cst {dimension_numbers = #tpu.dot_dimension_numbers<[1], [0], [0], [1], [0, 0, 1, 1], [], []>} : vector<8x32xf32>, vector<32x32xf32>, vector<8x32xf32> -> vector<8x32xf32>
    %18 = vector.broadcast %7 : vector<1x32xf32> to vector<8x32xf32>
    %19 = arith.addf %17, %18 : vector<8x32xf32>
    %20 = vector.shape_cast %19 : vector<8x32xf32> to vector<8x1x32xf32>
    %21 = vector.broadcast %20 : vector<8x1x32xf32> to vector<8x8x32xf32>
    %22 = arith.addf %4, %21 : vector<8x8x32xf32>
    %23 = math.tanh %22 : vector<8x8x32xf32>
    %24 = vector.shape_cast %6 : vector<1x32xf32> to vector<1x1x32xf32>
    %25 = vector.broadcast %24 : vector<1x1x32xf32> to vector<8x8x32xf32>
    %26 = arith.mulf %23, %25 : vector<8x8x32xf32>
    %cst_27 = arith.constant dense<0.000000e+00> : vector<8x8xf32>
    %27 = vector.multi_reduction <add>, %26, %cst_27 [2] : vector<8x8x32xf32> to vector<8x8xf32>
    %cst_28 = arith.constant dense<0xFF800000> : vector<8xf32>
    %28 = vector.multi_reduction <maximumf>, %27, %cst_28 [1] : vector<8x8xf32> to vector<8xf32>
    %29 = vector.shape_cast %28 : vector<8xf32> to vector<8x1xf32>
    %30 = vector.broadcast %29 : vector<8x1xf32> to vector<8x8xf32>
    %31 = arith.subf %27, %30 : vector<8x8xf32>
    %32 = math.exp %31 : vector<8x8xf32>
    %cst_29 = arith.constant dense<0.000000e+00> : vector<8xf32>
    %33 = vector.multi_reduction <add>, %32, %cst_29 [1] : vector<8x8xf32> to vector<8xf32>
    %34 = vector.shape_cast %33 : vector<8xf32> to vector<8x1xf32>
    %35 = vector.broadcast %34 : vector<8x1xf32> to vector<8x8xf32>
    %36 = arith.divf %32, %35 : vector<8x8xf32>
    %37 = vector.shape_cast %36 : vector<8x8xf32> to vector<8x8x1xf32>
    %38 = vector.broadcast %37 : vector<8x8x1xf32> to vector<8x8x32xf32>
    %39 = arith.mulf %38, %3 : vector<8x8x32xf32>
    %cst_30 = arith.constant dense<0.000000e+00> : vector<8x32xf32>
    %40 = vector.multi_reduction <add>, %39, %cst_30 [1] : vector<8x8x32xf32> to vector<8x32xf32>
    %cst_31 = arith.constant dense<0.000000e+00> : vector<8x96xf32>
    %41 = tpu.matmul %40, %10, %cst_31 {dimension_numbers = #tpu.dot_dimension_numbers<[1], [0], [0], [1], [0, 0, 1, 1], [], []>} : vector<8x32xf32>, vector<32x96xf32>, vector<8x96xf32> -> vector<8x96xf32>
    %cst_32 = arith.constant dense<0.000000e+00> : vector<8x96xf32>
    %42 = tpu.matmul %16, %11, %cst_32 {dimension_numbers = #tpu.dot_dimension_numbers<[1], [0], [0], [1], [0, 0, 1, 1], [], []>} : vector<8x16xf32>, vector<16x96xf32>, vector<8x96xf32> -> vector<8x96xf32>
    %43 = arith.addf %41, %42 : vector<8x96xf32>
    %44 = vector.broadcast %8 : vector<1x96xf32> to vector<8x96xf32>
    %45 = arith.addf %43, %44 : vector<8x96xf32>
    %cst_33 = arith.constant dense<0.000000e+00> : vector<8x96xf32>
    %46 = tpu.matmul %13, %12, %cst_33 {dimension_numbers = #tpu.dot_dimension_numbers<[1], [0], [0], [1], [0, 0, 1, 1], [], []>} : vector<8x32xf32>, vector<32x96xf32>, vector<8x96xf32> -> vector<8x96xf32>
    %47 = vector.broadcast %9 : vector<1x96xf32> to vector<8x96xf32>
    %48 = arith.addf %46, %47 : vector<8x96xf32>
    %49 = vector.extract_strided_slice %45 {offsets = [0, 0], sizes = [8, 32], strides = [1, 1]} : vector<8x96xf32> to vector<8x32xf32>
    %50 = vector.extract_strided_slice %48 {offsets = [0, 0], sizes = [8, 32], strides = [1, 1]} : vector<8x96xf32> to vector<8x32xf32>
    %51 = arith.addf %49, %50 : vector<8x32xf32>
    %52 = arith.negf %51 : vector<8x32xf32>
    %53 = math.exp %52 : vector<8x32xf32>
    %cst_34 = arith.constant 1.000000e+00 : f32
    %54 = vector.broadcast %cst_34 : f32 to vector<8x32xf32>
    %55 = arith.addf %54, %53 : vector<8x32xf32>
    %56 = arith.divf %54, %55 : vector<8x32xf32>
    %57 = vector.extract_strided_slice %45 {offsets = [0, 32], sizes = [8, 32], strides = [1, 1]} : vector<8x96xf32> to vector<8x32xf32>
    %58 = vector.extract_strided_slice %48 {offsets = [0, 32], sizes = [8, 32], strides = [1, 1]} : vector<8x96xf32> to vector<8x32xf32>
    %59 = arith.addf %57, %58 : vector<8x32xf32>
    %60 = arith.negf %59 : vector<8x32xf32>
    %61 = math.exp %60 : vector<8x32xf32>
    %cst_35 = arith.constant 1.000000e+00 : f32
    %62 = vector.broadcast %cst_35 : f32 to vector<8x32xf32>
    %63 = arith.addf %62, %61 : vector<8x32xf32>
    %64 = arith.divf %62, %63 : vector<8x32xf32>
    %65 = vector.extract_strided_slice %45 {offsets = [0, 64], sizes = [8, 32], strides = [1, 1]} : vector<8x96xf32> to vector<8x32xf32>
    %66 = vector.extract_strided_slice %48 {offsets = [0, 64], sizes = [8, 32], strides = [1, 1]} : vector<8x96xf32> to vector<8x32xf32>
    %67 = arith.mulf %56, %66 : vector<8x32xf32>
    %68 = arith.addf %65, %67 : vector<8x32xf32>
    %69 = math.tanh %68 : vector<8x32xf32>
    %cst_36 = arith.constant 1.000000e+00 : f32
    %70 = vector.broadcast %cst_36 : f32 to vector<8x32xf32>
    %71 = arith.subf %70, %64 : vector<8x32xf32>
    %72 = arith.mulf %71, %69 : vector<8x32xf32>
    %73 = arith.mulf %64, %13 : vector<8x32xf32>
    %74 = arith.addf %72, %73 : vector<8x32xf32>
    %75 = arith.index_cast %c0_i32_24 : i32 to index
    %c0_37 = arith.constant 0 : index
    %c0_38 = arith.constant 0 : index
    %76 = vector.load %arg14[%75, %c0_37, %c0_38] : memref<4x8x32xf32, #tpu.memory_space<vmem>>, vector<1x8x32xf32>
    %77 = vector.shape_cast %76 : vector<1x8x32xf32> to vector<8x32xf32>
    %78 = vector.shape_cast %74 : vector<8x32xf32> to vector<1x8x32xf32>
    tpu.vector_store %arg14[%75, %c0_37, %c0_38], %78 {strides = array<i32>} : memref<4x8x32xf32, #tpu.memory_space<vmem>>, vector<1x8x32xf32>,
    %c1_i32 = arith.constant 1 : i32
    %79 = arith.index_cast %c1_i32 : i32 to index
    %c0_39 = arith.constant 0 : index
    %c0_40 = arith.constant 0 : index
    %80 = vector.load %arg4[%79, %c0_39, %c0_40] : memref<4x8x16xf32, #tpu.memory_space<vmem>>, vector<1x8x16xf32>
    %81 = vector.shape_cast %80 : vector<1x8x16xf32> to vector<8x16xf32>
    %cst_41 = arith.constant dense<0.000000e+00> : vector<8x32xf32>
    %82 = tpu.matmul %74, %5, %cst_41 {dimension_numbers = #tpu.dot_dimension_numbers<[1], [0], [0], [1], [0, 0, 1, 1], [], []>} : vector<8x32xf32>, vector<32x32xf32>, vector<8x32xf32> -> vector<8x32xf32>
    %83 = vector.broadcast %7 : vector<1x32xf32> to vector<8x32xf32>
    %84 = arith.addf %82, %83 : vector<8x32xf32>
    %85 = vector.shape_cast %84 : vector<8x32xf32> to vector<8x1x32xf32>
    %86 = vector.broadcast %85 : vector<8x1x32xf32> to vector<8x8x32xf32>
    %87 = arith.addf %4, %86 : vector<8x8x32xf32>
    %88 = math.tanh %87 : vector<8x8x32xf32>
    %89 = vector.shape_cast %6 : vector<1x32xf32> to vector<1x1x32xf32>
    %90 = vector.broadcast %89 : vector<1x1x32xf32> to vector<8x8x32xf32>
    %91 = arith.mulf %88, %90 : vector<8x8x32xf32>
    %cst_42 = arith.constant dense<0.000000e+00> : vector<8x8xf32>
    %92 = vector.multi_reduction <add>, %91, %cst_42 [2] : vector<8x8x32xf32> to vector<8x8xf32>
    %cst_43 = arith.constant dense<0xFF800000> : vector<8xf32>
    %93 = vector.multi_reduction <maximumf>, %92, %cst_43 [1] : vector<8x8xf32> to vector<8xf32>
    %94 = vector.shape_cast %93 : vector<8xf32> to vector<8x1xf32>
    %95 = vector.broadcast %94 : vector<8x1xf32> to vector<8x8xf32>
    %96 = arith.subf %92, %95 : vector<8x8xf32>
    %97 = math.exp %96 : vector<8x8xf32>
    %cst_44 = arith.constant dense<0.000000e+00> : vector<8xf32>
    %98 = vector.multi_reduction <add>, %97, %cst_44 [1] : vector<8x8xf32> to vector<8xf32>
    %99 = vector.shape_cast %98 : vector<8xf32> to vector<8x1xf32>
    %100 = vector.broadcast %99 : vector<8x1xf32> to vector<8x8xf32>
    %101 = arith.divf %97, %100 : vector<8x8xf32>
    %102 = vector.shape_cast %101 : vector<8x8xf32> to vector<8x8x1xf32>
    %103 = vector.broadcast %102 : vector<8x8x1xf32> to vector<8x8x32xf32>
    %104 = arith.mulf %103, %3 : vector<8x8x32xf32>
    %cst_45 = arith.constant dense<0.000000e+00> : vector<8x32xf32>
    %105 = vector.multi_reduction <add>, %104, %cst_45 [1] : vector<8x8x32xf32> to vector<8x32xf32>
    %cst_46 = arith.constant dense<0.000000e+00> : vector<8x96xf32>
    %106 = tpu.matmul %105, %10, %cst_46 {dimension_numbers = #tpu.dot_dimension_numbers<[1], [0], [0], [1], [0, 0, 1, 1], [], []>} : vector<8x32xf32>, vector<32x96xf32>, vector<8x96xf32> -> vector<8x96xf32>
    %cst_47 = arith.constant dense<0.000000e+00> : vector<8x96xf32>
    %107 = tpu.matmul %81, %11, %cst_47 {dimension_numbers = #tpu.dot_dimension_numbers<[1], [0], [0], [1], [0, 0, 1, 1], [], []>} : vector<8x16xf32>, vector<16x96xf32>, vector<8x96xf32> -> vector<8x96xf32>
    %108 = arith.addf %106, %107 : vector<8x96xf32>
    %109 = vector.broadcast %8 : vector<1x96xf32> to vector<8x96xf32>
    %110 = arith.addf %108, %109 : vector<8x96xf32>
    %cst_48 = arith.constant dense<0.000000e+00> : vector<8x96xf32>
    %111 = tpu.matmul %74, %12, %cst_48 {dimension_numbers = #tpu.dot_dimension_numbers<[1], [0], [0], [1], [0, 0, 1, 1], [], []>} : vector<8x32xf32>, vector<32x96xf32>, vector<8x96xf32> -> vector<8x96xf32>
    %112 = vector.broadcast %9 : vector<1x96xf32> to vector<8x96xf32>
    %113 = arith.addf %111, %112 : vector<8x96xf32>
    %114 = vector.extract_strided_slice %110 {offsets = [0, 0], sizes = [8, 32], strides = [1, 1]} : vector<8x96xf32> to vector<8x32xf32>
    %115 = vector.extract_strided_slice %113 {offsets = [0, 0], sizes = [8, 32], strides = [1, 1]} : vector<8x96xf32> to vector<8x32xf32>
    %116 = arith.addf %114, %115 : vector<8x32xf32>
    %117 = arith.negf %116 : vector<8x32xf32>
    %118 = math.exp %117 : vector<8x32xf32>
    %cst_49 = arith.constant 1.000000e+00 : f32
    %119 = vector.broadcast %cst_49 : f32 to vector<8x32xf32>
    %120 = arith.addf %119, %118 : vector<8x32xf32>
    %121 = arith.divf %119, %120 : vector<8x32xf32>
    %122 = vector.extract_strided_slice %110 {offsets = [0, 32], sizes = [8, 32], strides = [1, 1]} : vector<8x96xf32> to vector<8x32xf32>
    %123 = vector.extract_strided_slice %113 {offsets = [0, 32], sizes = [8, 32], strides = [1, 1]} : vector<8x96xf32> to vector<8x32xf32>
    %124 = arith.addf %122, %123 : vector<8x32xf32>
    %125 = arith.negf %124 : vector<8x32xf32>
    %126 = math.exp %125 : vector<8x32xf32>
    %cst_50 = arith.constant 1.000000e+00 : f32
    %127 = vector.broadcast %cst_50 : f32 to vector<8x32xf32>
    %128 = arith.addf %127, %126 : vector<8x32xf32>
    %129 = arith.divf %127, %128 : vector<8x32xf32>
    %130 = vector.extract_strided_slice %110 {offsets = [0, 64], sizes = [8, 32], strides = [1, 1]} : vector<8x96xf32> to vector<8x32xf32>
    %131 = vector.extract_strided_slice %113 {offsets = [0, 64], sizes = [8, 32], strides = [1, 1]} : vector<8x96xf32> to vector<8x32xf32>
    %132 = arith.mulf %121, %131 : vector<8x32xf32>
    %133 = arith.addf %130, %132 : vector<8x32xf32>
    %134 = math.tanh %133 : vector<8x32xf32>
    %cst_51 = arith.constant 1.000000e+00 : f32
    %135 = vector.broadcast %cst_51 : f32 to vector<8x32xf32>
    %136 = arith.subf %135, %129 : vector<8x32xf32>
    %137 = arith.mulf %136, %134 : vector<8x32xf32>
    %138 = arith.mulf %129, %74 : vector<8x32xf32>
    %139 = arith.addf %137, %138 : vector<8x32xf32>
    %140 = arith.index_cast %c1_i32 : i32 to index
    %c0_52 = arith.constant 0 : index
    %c0_53 = arith.constant 0 : index
    %141 = vector.load %arg14[%140, %c0_52, %c0_53] : memref<4x8x32xf32, #tpu.memory_space<vmem>>, vector<1x8x32xf32>
    %142 = vector.shape_cast %141 : vector<1x8x32xf32> to vector<8x32xf32>
    %143 = vector.shape_cast %139 : vector<8x32xf32> to vector<1x8x32xf32>
    tpu.vector_store %arg14[%140, %c0_52, %c0_53], %143 {strides = array<i32>} : memref<4x8x32xf32, #tpu.memory_space<vmem>>, vector<1x8x32xf32>,
    %c2_i32 = arith.constant 2 : i32
    %144 = arith.index_cast %c2_i32 : i32 to index
    %c0_54 = arith.constant 0 : index
    %c0_55 = arith.constant 0 : index
    %145 = vector.load %arg4[%144, %c0_54, %c0_55] : memref<4x8x16xf32, #tpu.memory_space<vmem>>, vector<1x8x16xf32>
    %146 = vector.shape_cast %145 : vector<1x8x16xf32> to vector<8x16xf32>
    %cst_56 = arith.constant dense<0.000000e+00> : vector<8x32xf32>
    %147 = tpu.matmul %139, %5, %cst_56 {dimension_numbers = #tpu.dot_dimension_numbers<[1], [0], [0], [1], [0, 0, 1, 1], [], []>} : vector<8x32xf32>, vector<32x32xf32>, vector<8x32xf32> -> vector<8x32xf32>
    %148 = vector.broadcast %7 : vector<1x32xf32> to vector<8x32xf32>
    %149 = arith.addf %147, %148 : vector<8x32xf32>
    %150 = vector.shape_cast %149 : vector<8x32xf32> to vector<8x1x32xf32>
    %151 = vector.broadcast %150 : vector<8x1x32xf32> to vector<8x8x32xf32>
    %152 = arith.addf %4, %151 : vector<8x8x32xf32>
    %153 = math.tanh %152 : vector<8x8x32xf32>
    %154 = vector.shape_cast %6 : vector<1x32xf32> to vector<1x1x32xf32>
    %155 = vector.broadcast %154 : vector<1x1x32xf32> to vector<8x8x32xf32>
    %156 = arith.mulf %153, %155 : vector<8x8x32xf32>
    %cst_57 = arith.constant dense<0.000000e+00> : vector<8x8xf32>
    %157 = vector.multi_reduction <add>, %156, %cst_57 [2] : vector<8x8x32xf32> to vector<8x8xf32>
    %cst_58 = arith.constant dense<0xFF800000> : vector<8xf32>
    %158 = vector.multi_reduction <maximumf>, %157, %cst_58 [1] : vector<8x8xf32> to vector<8xf32>
    %159 = vector.shape_cast %158 : vector<8xf32> to vector<8x1xf32>
    %160 = vector.broadcast %159 : vector<8x1xf32> to vector<8x8xf32>
    %161 = arith.subf %157, %160 : vector<8x8xf32>
    %162 = math.exp %161 : vector<8x8xf32>
    %cst_59 = arith.constant dense<0.000000e+00> : vector<8xf32>
    %163 = vector.multi_reduction <add>, %162, %cst_59 [1] : vector<8x8xf32> to vector<8xf32>
    %164 = vector.shape_cast %163 : vector<8xf32> to vector<8x1xf32>
    %165 = vector.broadcast %164 : vector<8x1xf32> to vector<8x8xf32>
    %166 = arith.divf %162, %165 : vector<8x8xf32>
    %167 = vector.shape_cast %166 : vector<8x8xf32> to vector<8x8x1xf32>
    %168 = vector.broadcast %167 : vector<8x8x1xf32> to vector<8x8x32xf32>
    %169 = arith.mulf %168, %3 : vector<8x8x32xf32>
    %cst_60 = arith.constant dense<0.000000e+00> : vector<8x32xf32>
    %170 = vector.multi_reduction <add>, %169, %cst_60 [1] : vector<8x8x32xf32> to vector<8x32xf32>
    %cst_61 = arith.constant dense<0.000000e+00> : vector<8x96xf32>
    %171 = tpu.matmul %170, %10, %cst_61 {dimension_numbers = #tpu.dot_dimension_numbers<[1], [0], [0], [1], [0, 0, 1, 1], [], []>} : vector<8x32xf32>, vector<32x96xf32>, vector<8x96xf32> -> vector<8x96xf32>
    %cst_62 = arith.constant dense<0.000000e+00> : vector<8x96xf32>
    %172 = tpu.matmul %146, %11, %cst_62 {dimension_numbers = #tpu.dot_dimension_numbers<[1], [0], [0], [1], [0, 0, 1, 1], [], []>} : vector<8x16xf32>, vector<16x96xf32>, vector<8x96xf32> -> vector<8x96xf32>
    %173 = arith.addf %171, %172 : vector<8x96xf32>
    %174 = vector.broadcast %8 : vector<1x96xf32> to vector<8x96xf32>
    %175 = arith.addf %173, %174 : vector<8x96xf32>
    %cst_63 = arith.constant dense<0.000000e+00> : vector<8x96xf32>
    %176 = tpu.matmul %139, %12, %cst_63 {dimension_numbers = #tpu.dot_dimension_numbers<[1], [0], [0], [1], [0, 0, 1, 1], [], []>} : vector<8x32xf32>, vector<32x96xf32>, vector<8x96xf32> -> vector<8x96xf32>
    %177 = vector.broadcast %9 : vector<1x96xf32> to vector<8x96xf32>
    %178 = arith.addf %176, %177 : vector<8x96xf32>
    %179 = vector.extract_strided_slice %175 {offsets = [0, 0], sizes = [8, 32], strides = [1, 1]} : vector<8x96xf32> to vector<8x32xf32>
    %180 = vector.extract_strided_slice %178 {offsets = [0, 0], sizes = [8, 32], strides = [1, 1]} : vector<8x96xf32> to vector<8x32xf32>
    %181 = arith.addf %179, %180 : vector<8x32xf32>
    %182 = arith.negf %181 : vector<8x32xf32>
    %183 = math.exp %182 : vector<8x32xf32>
    %cst_64 = arith.constant 1.000000e+00 : f32
    %184 = vector.broadcast %cst_64 : f32 to vector<8x32xf32>
    %185 = arith.addf %184, %183 : vector<8x32xf32>
    %186 = arith.divf %184, %185 : vector<8x32xf32>
    %187 = vector.extract_strided_slice %175 {offsets = [0, 32], sizes = [8, 32], strides = [1, 1]} : vector<8x96xf32> to vector<8x32xf32>
    %188 = vector.extract_strided_slice %178 {offsets = [0, 32], sizes = [8, 32], strides = [1, 1]} : vector<8x96xf32> to vector<8x32xf32>
    %189 = arith.addf %187, %188 : vector<8x32xf32>
    %190 = arith.negf %189 : vector<8x32xf32>
    %191 = math.exp %190 : vector<8x32xf32>
    %cst_65 = arith.constant 1.000000e+00 : f32
    %192 = vector.broadcast %cst_65 : f32 to vector<8x32xf32>
    %193 = arith.addf %192, %191 : vector<8x32xf32>
    %194 = arith.divf %192, %193 : vector<8x32xf32>
    %195 = vector.extract_strided_slice %175 {offsets = [0, 64], sizes = [8, 32], strides = [1, 1]} : vector<8x96xf32> to vector<8x32xf32>
    %196 = vector.extract_strided_slice %178 {offsets = [0, 64], sizes = [8, 32], strides = [1, 1]} : vector<8x96xf32> to vector<8x32xf32>
    %197 = arith.mulf %186, %196 : vector<8x32xf32>
    %198 = arith.addf %195, %197 : vector<8x32xf32>
    %199 = math.tanh %198 : vector<8x32xf32>
    %cst_66 = arith.constant 1.000000e+00 : f32
    %200 = vector.broadcast %cst_66 : f32 to vector<8x32xf32>
    %201 = arith.subf %200, %194 : vector<8x32xf32>
    %202 = arith.mulf %201, %199 : vector<8x32xf32>
    %203 = arith.mulf %194, %139 : vector<8x32xf32>
    %204 = arith.addf %202, %203 : vector<8x32xf32>
    %205 = arith.index_cast %c2_i32 : i32 to index
    %c0_67 = arith.constant 0 : index
    %c0_68 = arith.constant 0 : index
    %206 = vector.load %arg14[%205, %c0_67, %c0_68] : memref<4x8x32xf32, #tpu.memory_space<vmem>>, vector<1x8x32xf32>
    %207 = vector.shape_cast %206 : vector<1x8x32xf32> to vector<8x32xf32>
    %208 = vector.shape_cast %204 : vector<8x32xf32> to vector<1x8x32xf32>
    tpu.vector_store %arg14[%205, %c0_67, %c0_68], %208 {strides = array<i32>} : memref<4x8x32xf32, #tpu.memory_space<vmem>>, vector<1x8x32xf32>,
    %c3_i32 = arith.constant 3 : i32
    %209 = arith.index_cast %c3_i32 : i32 to index
    %c0_69 = arith.constant 0 : index
    %c0_70 = arith.constant 0 : index
    %210 = vector.load %arg4[%209, %c0_69, %c0_70] : memref<4x8x16xf32, #tpu.memory_space<vmem>>, vector<1x8x16xf32>
    %211 = vector.shape_cast %210 : vector<1x8x16xf32> to vector<8x16xf32>
    %cst_71 = arith.constant dense<0.000000e+00> : vector<8x32xf32>
    %212 = tpu.matmul %204, %5, %cst_71 {dimension_numbers = #tpu.dot_dimension_numbers<[1], [0], [0], [1], [0, 0, 1, 1], [], []>} : vector<8x32xf32>, vector<32x32xf32>, vector<8x32xf32> -> vector<8x32xf32>
    %213 = vector.broadcast %7 : vector<1x32xf32> to vector<8x32xf32>
    %214 = arith.addf %212, %213 : vector<8x32xf32>
    %215 = vector.shape_cast %214 : vector<8x32xf32> to vector<8x1x32xf32>
    %216 = vector.broadcast %215 : vector<8x1x32xf32> to vector<8x8x32xf32>
    %217 = arith.addf %4, %216 : vector<8x8x32xf32>
    %218 = math.tanh %217 : vector<8x8x32xf32>
    %219 = vector.shape_cast %6 : vector<1x32xf32> to vector<1x1x32xf32>
    %220 = vector.broadcast %219 : vector<1x1x32xf32> to vector<8x8x32xf32>
    %221 = arith.mulf %218, %220 : vector<8x8x32xf32>
    %cst_72 = arith.constant dense<0.000000e+00> : vector<8x8xf32>
    %222 = vector.multi_reduction <add>, %221, %cst_72 [2] : vector<8x8x32xf32> to vector<8x8xf32>
    %cst_73 = arith.constant dense<0xFF800000> : vector<8xf32>
    %223 = vector.multi_reduction <maximumf>, %222, %cst_73 [1] : vector<8x8xf32> to vector<8xf32>
    %224 = vector.shape_cast %223 : vector<8xf32> to vector<8x1xf32>
    %225 = vector.broadcast %224 : vector<8x1xf32> to vector<8x8xf32>
    %226 = arith.subf %222, %225 : vector<8x8xf32>
    %227 = math.exp %226 : vector<8x8xf32>
    %cst_74 = arith.constant dense<0.000000e+00> : vector<8xf32>
    %228 = vector.multi_reduction <add>, %227, %cst_74 [1] : vector<8x8xf32> to vector<8xf32>
    %229 = vector.shape_cast %228 : vector<8xf32> to vector<8x1xf32>
    %230 = vector.broadcast %229 : vector<8x1xf32> to vector<8x8xf32>
    %231 = arith.divf %227, %230 : vector<8x8xf32>
    %232 = vector.shape_cast %231 : vector<8x8xf32> to vector<8x8x1xf32>
    %233 = vector.broadcast %232 : vector<8x8x1xf32> to vector<8x8x32xf32>
    %234 = arith.mulf %233, %3 : vector<8x8x32xf32>
    %cst_75 = arith.constant dense<0.000000e+00> : vector<8x32xf32>
    %235 = vector.multi_reduction <add>, %234, %cst_75 [1] : vector<8x8x32xf32> to vector<8x32xf32>
    %cst_76 = arith.constant dense<0.000000e+00> : vector<8x96xf32>
    %236 = tpu.matmul %235, %10, %cst_76 {dimension_numbers = #tpu.dot_dimension_numbers<[1], [0], [0], [1], [0, 0, 1, 1], [], []>} : vector<8x32xf32>, vector<32x96xf32>, vector<8x96xf32> -> vector<8x96xf32>
    %cst_77 = arith.constant dense<0.000000e+00> : vector<8x96xf32>
    %237 = tpu.matmul %211, %11, %cst_77 {dimension_numbers = #tpu.dot_dimension_numbers<[1], [0], [0], [1], [0, 0, 1, 1], [], []>} : vector<8x16xf32>, vector<16x96xf32>, vector<8x96xf32> -> vector<8x96xf32>
    %238 = arith.addf %236, %237 : vector<8x96xf32>
    %239 = vector.broadcast %8 : vector<1x96xf32> to vector<8x96xf32>
    %240 = arith.addf %238, %239 : vector<8x96xf32>
    %cst_78 = arith.constant dense<0.000000e+00> : vector<8x96xf32>
    %241 = tpu.matmul %204, %12, %cst_78 {dimension_numbers = #tpu.dot_dimension_numbers<[1], [0], [0], [1], [0, 0, 1, 1], [], []>} : vector<8x32xf32>, vector<32x96xf32>, vector<8x96xf32> -> vector<8x96xf32>
    %242 = vector.broadcast %9 : vector<1x96xf32> to vector<8x96xf32>
    %243 = arith.addf %241, %242 : vector<8x96xf32>
    %244 = vector.extract_strided_slice %240 {offsets = [0, 0], sizes = [8, 32], strides = [1, 1]} : vector<8x96xf32> to vector<8x32xf32>
    %245 = vector.extract_strided_slice %243 {offsets = [0, 0], sizes = [8, 32], strides = [1, 1]} : vector<8x96xf32> to vector<8x32xf32>
    %246 = arith.addf %244, %245 : vector<8x32xf32>
    %247 = arith.negf %246 : vector<8x32xf32>
    %248 = math.exp %247 : vector<8x32xf32>
    %cst_79 = arith.constant 1.000000e+00 : f32
    %249 = vector.broadcast %cst_79 : f32 to vector<8x32xf32>
    %250 = arith.addf %249, %248 : vector<8x32xf32>
    %251 = arith.divf %249, %250 : vector<8x32xf32>
    %252 = vector.extract_strided_slice %240 {offsets = [0, 32], sizes = [8, 32], strides = [1, 1]} : vector<8x96xf32> to vector<8x32xf32>
    %253 = vector.extract_strided_slice %243 {offsets = [0, 32], sizes = [8, 32], strides = [1, 1]} : vector<8x96xf32> to vector<8x32xf32>
    %254 = arith.addf %252, %253 : vector<8x32xf32>
    %255 = arith.negf %254 : vector<8x32xf32>
    %256 = math.exp %255 : vector<8x32xf32>
    %cst_80 = arith.constant 1.000000e+00 : f32
    %257 = vector.broadcast %cst_80 : f32 to vector<8x32xf32>
    %258 = arith.addf %257, %256 : vector<8x32xf32>
    %259 = arith.divf %257, %258 : vector<8x32xf32>
    %260 = vector.extract_strided_slice %240 {offsets = [0, 64], sizes = [8, 32], strides = [1, 1]} : vector<8x96xf32> to vector<8x32xf32>
    %261 = vector.extract_strided_slice %243 {offsets = [0, 64], sizes = [8, 32], strides = [1, 1]} : vector<8x96xf32> to vector<8x32xf32>
    %262 = arith.mulf %251, %261 : vector<8x32xf32>
    %263 = arith.addf %260, %262 : vector<8x32xf32>
    %264 = math.tanh %263 : vector<8x32xf32>
    %cst_81 = arith.constant 1.000000e+00 : f32
    %265 = vector.broadcast %cst_81 : f32 to vector<8x32xf32>
    %266 = arith.subf %265, %259 : vector<8x32xf32>
    %267 = arith.mulf %266, %264 : vector<8x32xf32>
    %268 = arith.mulf %259, %204 : vector<8x32xf32>
    %269 = arith.addf %267, %268 : vector<8x32xf32>
    %270 = arith.index_cast %c3_i32 : i32 to index
    %c0_82 = arith.constant 0 : index
    %c0_83 = arith.constant 0 : index
    %271 = vector.load %arg14[%270, %c0_82, %c0_83] : memref<4x8x32xf32, #tpu.memory_space<vmem>>, vector<1x8x32xf32>
    %272 = vector.shape_cast %271 : vector<1x8x32xf32> to vector<8x32xf32>
    %273 = vector.shape_cast %269 : vector<8x32xf32> to vector<1x8x32xf32>
    tpu.vector_store %arg14[%270, %c0_82, %c0_83], %273 {strides = array<i32>} : memref<4x8x32xf32, #tpu.memory_space<vmem>>, vector<1x8x32xf32>,
    %c4_i32 = arith.constant 4 : i32
    %c0_84 = arith.constant 0 : index
    %c0_85 = arith.constant 0 : index
    %274 = vector.load %arg15[%c0_84, %c0_85] : memref<8x32xf32, #tpu.memory_space<vmem>>, vector<8x32xf32>
    tpu.vector_store %arg15[%c0_84, %c0_85], %269 {strides = array<i32>} : memref<8x32xf32, #tpu.memory_space<vmem>>, vector<8x32xf32>,
    return
  }
  func.func @transform_0(%arg0: i32, %arg1: i32) -> (i32, i32) {
    %c0_i32 = arith.constant 0 : i32
    %c0_i32_0 = arith.constant 0 : i32
    return %arg0, %c0_i32 : i32, i32
  }
  func.func @transform_1(%arg0: i32, %arg1: i32) -> (i32, i32, i32) {
    %c0_i32 = arith.constant 0 : i32
    %c0_i32_0 = arith.constant 0 : i32
    %c0_i32_1 = arith.constant 0 : i32
    return %arg0, %c0_i32, %c0_i32_0 : i32, i32, i32
  }
  func.func @transform_2(%arg0: i32, %arg1: i32) -> (i32, i32, i32) {
    %c0_i32 = arith.constant 0 : i32
    %c0_i32_0 = arith.constant 0 : i32
    return %arg1, %arg0, %c0_i32 : i32, i32, i32
  }
  func.func @transform_3(%arg0: i32, %arg1: i32) -> (i32, i32) {
    %c0_i32 = arith.constant 0 : i32
    %c0_i32_0 = arith.constant 0 : i32
    %c0_i32_1 = arith.constant 0 : i32
    return %c0_i32, %c0_i32_0 : i32, i32
  }
  func.func @transform_4(%arg0: i32, %arg1: i32) -> (i32, i32) {
    %c0_i32 = arith.constant 0 : i32
    %c0_i32_0 = arith.constant 0 : i32
    %c0_i32_1 = arith.constant 0 : i32
    return %c0_i32, %c0_i32_0 : i32, i32
  }
  func.func @transform_5(%arg0: i32, %arg1: i32) -> (i32, i32) {
    %c0_i32 = arith.constant 0 : i32
    %c0_i32_0 = arith.constant 0 : i32
    %c0_i32_1 = arith.constant 0 : i32
    return %c0_i32, %c0_i32_0 : i32, i32
  }
  func.func @transform_6(%arg0: i32, %arg1: i32) -> (i32, i32) {
    %c0_i32 = arith.constant 0 : i32
    %c0_i32_0 = arith.constant 0 : i32
    %c0_i32_1 = arith.constant 0 : i32
    return %c0_i32, %c0_i32_0 : i32, i32
  }
  func.func @transform_7(%arg0: i32, %arg1: i32) -> (i32, i32) {
    %c0_i32 = arith.constant 0 : i32
    %c0_i32_0 = arith.constant 0 : i32
    %c0_i32_1 = arith.constant 0 : i32
    return %c0_i32, %c0_i32_0 : i32, i32
  }
  func.func @transform_8(%arg0: i32, %arg1: i32) -> (i32, i32) {
    %c0_i32 = arith.constant 0 : i32
    %c0_i32_0 = arith.constant 0 : i32
    %c0_i32_1 = arith.constant 0 : i32
    return %c0_i32, %c0_i32_0 : i32, i32
  }
  func.func @transform_9(%arg0: i32, %arg1: i32) -> (i32, i32) {
    %c0_i32 = arith.constant 0 : i32
    %c0_i32_0 = arith.constant 0 : i32
    %c0_i32_1 = arith.constant 0 : i32
    return %c0_i32, %c0_i32_0 : i32, i32
  }
  func.func @transform_10(%arg0: i32, %arg1: i32) -> (i32, i32) {
    %c0_i32 = arith.constant 0 : i32
    %c0_i32_0 = arith.constant 0 : i32
    %c0_i32_1 = arith.constant 0 : i32
    return %c0_i32, %c0_i32_0 : i32, i32
  }
  func.func @transform_11(%arg0: i32, %arg1: i32) -> (i32, i32) {
    %c0_i32 = arith.constant 0 : i32
    %c0_i32_0 = arith.constant 0 : i32
    %c0_i32_1 = arith.constant 0 : i32
    return %c0_i32, %c0_i32_0 : i32, i32
  }
  func.func @transform_12(%arg0: i32, %arg1: i32) -> (i32, i32, i32) {
    %c0_i32 = arith.constant 0 : i32
    %c0_i32_0 = arith.constant 0 : i32
    return %arg1, %arg0, %c0_i32 : i32, i32, i32
  }
}

module attributes {stable_mosaic.version = 11 : i64} {
  func.func @fused_decoder_kernel(%arg0: i32, %arg1: i32, %arg2: memref<8x32xf32, #tpu.memory_space<vmem>>, %arg3: memref<8x8x32xf32, #tpu.memory_space<vmem>>, %arg4: memref<4x8x16xf32, #tpu.memory_space<vmem>>, %arg5: memref<32x32xf32, #tpu.memory_space<vmem>>, %arg6: memref<32x32xf32, #tpu.memory_space<vmem>>, %arg7: memref<1x32xf32, #tpu.memory_space<vmem>>, %arg8: memref<1x32xf32, #tpu.memory_space<vmem>>, %arg9: memref<1x96xf32, #tpu.memory_space<vmem>>, %arg10: memref<1x96xf32, #tpu.memory_space<vmem>>, %arg11: memref<32x96xf32, #tpu.memory_space<vmem>>, %arg12: memref<16x96xf32, #tpu.memory_space<vmem>>, %arg13: memref<32x96xf32, #tpu.memory_space<vmem>>, %arg14: memref<4x8x32xf32, #tpu.memory_space<vmem>>, %arg15: memref<8x32xf32, #tpu.memory_space<vmem>>, %arg16: memref<8x8x32xf32, #tpu.memory_space<vmem>>) attributes {dimension_semantics = [#tpu.dimension_semantics<parallel>, #tpu.dimension_semantics<arbitrary>], iteration_bounds = array<i64: 1, 2>, scalar_prefetch = 0 : i64, scratch_operands = 2 : i64, tpu.core_type = #tpu.core_type<tc>, window_params = [{transform_indices = @transform_0, window_bounds = array<i64: 8, 32>}, {transform_indices = @transform_1, window_bounds = array<i64: 8, 8, 32>}, {transform_indices = @transform_2, window_bounds = array<i64: 4, 8, 16>}, {pipeline_mode = #tpu.pipeline_mode<synchronous>, transform_indices = @transform_3, window_bounds = array<i64: 32, 32>}, {pipeline_mode = #tpu.pipeline_mode<synchronous>, transform_indices = @transform_4, window_bounds = array<i64: 32, 32>}, {pipeline_mode = #tpu.pipeline_mode<synchronous>, transform_indices = @transform_5, window_bounds = array<i64: 1, 32>}, {pipeline_mode = #tpu.pipeline_mode<synchronous>, transform_indices = @transform_6, window_bounds = array<i64: 1, 32>}, {pipeline_mode = #tpu.pipeline_mode<synchronous>, transform_indices = @transform_7, window_bounds = array<i64: 1, 96>}, {pipeline_mode = #tpu.pipeline_mode<synchronous>, transform_indices = @transform_8, window_bounds = array<i64: 1, 96>}, {pipeline_mode = #tpu.pipeline_mode<synchronous>, transform_indices = @transform_9, window_bounds = array<i64: 32, 96>}, {pipeline_mode = #tpu.pipeline_mode<synchronous>, transform_indices = @transform_10, window_bounds = array<i64: 16, 96>}, {pipeline_mode = #tpu.pipeline_mode<synchronous>, transform_indices = @transform_11, window_bounds = array<i64: 32, 96>}, {transform_indices = @transform_12, window_bounds = array<i64: 4, 8, 32>}]} {
    %c0_i32 = arith.constant 0 : i32
    %0 = arith.cmpi eq, %arg1, %c0_i32 : i32
    %1 = arith.extui %0 : i1 to i32
    %c0_i32_0 = arith.constant 0 : i32
    %2 = arith.cmpi ne, %1, %c0_i32_0 : i32
    scf.if %2 {
      %c0_86 = arith.constant 0 : index
      %c0_87 = arith.constant 0 : index
      %275 = vector.load %arg2[%c0_86, %c0_87] : memref<8x32xf32, #tpu.memory_space<vmem>>, vector<8x32xf32>
      %c0_88 = arith.constant 0 : index
      %c0_89 = arith.constant 0 : index
      %276 = vector.load %arg15[%c0_88, %c0_89] : memref<8x32xf32, #tpu.memory_space<vmem>>, vector<8x32xf32>
      tpu.vector_store %arg15[%c0_88, %c0_89], %275 {strides = array<i32>} : memref<8x32xf32, #tpu.memory_space<vmem>>, vector<8x32xf32>,
      %c0_90 = arith.constant 0 : index
      %c0_91 = arith.constant 0 : index
      %c0_92 = arith.constant 0 : index
      %277 = vector.load %arg3[%c0_90, %c0_91, %c0_92] : memref<8x8x32xf32, #tpu.memory_space<vmem>>, vector<8x8x32xf32>
      %278 = vector.shape_cast %277 : vector<8x8x32xf32> to vector<64x32xf32>
      %c0_93 = arith.constant 0 : index
      %c0_94 = arith.constant 0 : index
      %279 = vector.load %arg6[%c0_93, %c0_94] : memref<32x32xf32, #tpu.memory_space<vmem>>, vector<32x32xf32>
      %cst_95 = arith.constant dense<0.000000e+00> : vector<64x32xf32>
      %280 = tpu.matmul %278, %279, %cst_95 {dimension_numbers = #tpu.dot_dimension_numbers<[1], [0], [0], [1], [0, 0, 1, 1], [], []>} : vector<64x32xf32>, vector<32x32xf32>, vector<64x32xf32> -> vector<64x32xf32>
      %281 = vector.shape_cast %280 : vector<64x32xf32> to vector<8x8x32xf32>
      %c0_96 = arith.constant 0 : index
      %c0_97 = arith.constant 0 : index
      %c0_98 = arith.constant 0 : index
      %282 = vector.load %arg16[%c0_96, %c0_97, %c0_98] : memref<8x8x32xf32, #tpu.memory_space<vmem>>, vector<8x8x32xf32>
      tpu.vector_store %arg16[%c0_96, %c0_97, %c0_98], %281 {strides = array<i32>} : memref<8x8x32xf32, #tpu.memory_space<vmem>>, vector<8x8x32xf32>,
    } else {
    }
    %c0 = arith.constant 0 : index
    %c0_1 = arith.constant 0 : index
    %c0_2 = arith.constant 0 : index
    %3 = vector.load %arg3[%c0, %c0_1, %c0_2] : memref<8x8x32xf32, #tpu.memory_space<vmem>>, vector<8x8x32xf32>
    %c0_3 = arith.constant 0 : index
    %c0_4 = arith.constant 0 : index
    %c0_5 = arith.constant 0 : index
    %4 = vector.load %arg16[%c0_3, %c0_4, %c0_5] : memref<8x8x32xf32, #tpu.memory_space<vmem>>, vector<8x8x32xf32>
    %c0_6 = arith.constant 0 : index
    %c0_7 = arith.constant 0 : index
    %5 = vector.load %arg5[%c0_6, %c0_7] : memref<32x32xf32, #tpu.memory_space<vmem>>, vector<32x32xf32>
    %c0_8 = arith.constant 0 : index
    %c0_9 = arith.constant 0 : index
    %6 = vector.load %arg7[%c0_8, %c0_9] : memref<1x32xf32, #tpu.memory_space<vmem>>, vector<1x32xf32>
    %c0_10 = arith.constant 0 : index
    %c0_11 = arith.constant 0 : index
    %7 = vector.load %arg8[%c0_10, %c0_11] : memref<1x32xf32, #tpu.memory_space<vmem>>, vector<1x32xf32>
    %c0_12 = arith.constant 0 : index
    %c0_13 = arith.constant 0 : index
    %8 = vector.load %arg9[%c0_12, %c0_13] : memref<1x96xf32, #tpu.memory_space<vmem>>, vector<1x96xf32>
    %c0_14 = arith.constant 0 : index
    %c0_15 = arith.constant 0 : index
    %9 = vector.load %arg10[%c0_14, %c0_15] : memref<1x96xf32, #tpu.memory_space<vmem>>, vector<1x96xf32>
    %c0_16 = arith.constant 0 : index
    %c0_17 = arith.constant 0 : index
    %10 = vector.load %arg11[%c0_16, %c0_17] : memref<32x96xf32, #tpu.memory_space<vmem>>, vector<32x96xf32>
    %c0_18 = arith.constant 0 : index
    %c0_19 = arith.constant 0 : index
    %11 = vector.load %arg12[%c0_18, %c0_19] : memref<16x96xf32, #tpu.memory_space<vmem>>, vector<16x96xf32>
    %c0_20 = arith.constant 0 : index
    %c0_21 = arith.constant 0 : index
    %12 = vector.load %arg13[%c0_20, %c0_21] : memref<32x96xf32, #tpu.memory_space<vmem>>, vector<32x96xf32>
    %c0_22 = arith.constant 0 : index
    %c0_23 = arith.constant 0 : index
    %13 = vector.load %arg15[%c0_22, %c0_23] : memref<8x32xf32, #tpu.memory_space<vmem>>, vector<8x32xf32>
    %c0_i32_24 = arith.constant 0 : i32
    %14 = arith.index_cast %c0_i32_24 : i32 to index
    %c0_25 = arith.constant 0 : index
    %c0_26 = arith.constant 0 : index
    %15 = vector.load %arg4[%14, %c0_25, %c0_26] : memref<4x8x16xf32, #tpu.memory_space<vmem>>, vector<1x8x16xf32>
    %16 = vector.shape_cast %15 : vector<1x8x16xf32> to vector<8x16xf32>
    %cst = arith.constant dense<0.000000e+00> : vector<8x32xf32>
    %17 = tpu.matmul %13, %5, %cst {dimension_numbers = #tpu.dot_dimension_numbers<[1], [0], [0], [1], [0, 0, 1, 1], [], []>} : vector<8x32xf32>, vector<32x32xf32>, vector<8x32xf32> -> vector<8x32xf32>
    %18 = vector.broadcast %7 : vector<1x32xf32> to vector<8x32xf32>
    %19 = arith.addf %17, %18 : vector<8x32xf32>
    %20 = vector.shape_cast %19 : vector<8x32xf32> to vector<8x1x32xf32>
    %21 = vector.broadcast %20 : vector<8x1x32xf32> to vector<8x8x32xf32>
    %22 = arith.addf %4, %21 : vector<8x8x32xf32>
    %23 = math.tanh %22 : vector<8x8x32xf32>
    %24 = vector.shape_cast %6 : vector<1x32xf32> to vector<1x1x32xf32>
    %25 = vector.broadcast %24 : vector<1x1x32xf32> to vector<8x8x32xf32>
    %26 = arith.mulf %23, %25 : vector<8x8x32xf32>
    %cst_27 = arith.constant dense<0.000000e+00> : vector<8x8xf32>
    %27 = vector.multi_reduction <add>, %26, %cst_27 [2] : vector<8x8x32xf32> to vector<8x8xf32>
    %cst_28 = arith.constant dense<0xFF800000> : vector<8xf32>
    %28 = vector.multi_reduction <maximumf>, %27, %cst_28 [1] : vector<8x8xf32> to vector<8xf32>
    %29 = vector.shape_cast %28 : vector<8xf32> to vector<8x1xf32>
    %30 = vector.broadcast %29 : vector<8x1xf32> to vector<8x8xf32>
    %31 = arith.subf %27, %30 : vector<8x8xf32>
    %32 = math.exp %31 : vector<8x8xf32>
    %cst_29 = arith.constant dense<0.000000e+00> : vector<8xf32>
    %33 = vector.multi_reduction <add>, %32, %cst_29 [1] : vector<8x8xf32> to vector<8xf32>
    %34 = vector.shape_cast %33 : vector<8xf32> to vector<8x1xf32>
    %35 = vector.broadcast %34 : vector<8x1xf32> to vector<8x8xf32>
    %36 = arith.divf %32, %35 : vector<8x8xf32>
    %37 = vector.shape_cast %36 : vector<8x8xf32> to vector<8x8x1xf32>
    %38 = vector.broadcast %37 : vector<8x8x1xf32> to vector<8x8x32xf32>
    %39 = arith.mulf %38, %3 : vector<8x8x32xf32>
    %cst_30 = arith.constant dense<0.000000e+00> : vector<8x32xf32>
    %40 = vector.multi_reduction <add>, %39, %cst_30 [1] : vector<8x8x32xf32> to vector<8x32xf32>
    %cst_31 = arith.constant dense<0.000000e+00> : vector<8x96xf32>
    %41 = tpu.matmul %40, %10, %cst_31 {dimension_numbers = #tpu.dot_dimension_numbers<[1], [0], [0], [1], [0, 0, 1, 1], [], []>} : vector<8x32xf32>, vector<32x96xf32>, vector<8x96xf32> -> vector<8x96xf32>
    %cst_32 = arith.constant dense<0.000000e+00> : vector<8x96xf32>
    %42 = tpu.matmul %16, %11, %cst_32 {dimension_numbers = #tpu.dot_dimension_numbers<[1], [0], [0], [1], [0, 0, 1, 1], [], []>} : vector<8x16xf32>, vector<16x96xf32>, vector<8x96xf32> -> vector<8x96xf32>
    %43 = arith.addf %41, %42 : vector<8x96xf32>
    %44 = vector.broadcast %8 : vector<1x96xf32> to vector<8x96xf32>
    %45 = arith.addf %43, %44 : vector<8x96xf32>
    %cst_33 = arith.constant dense<0.000000e+00> : vector<8x96xf32>
    %46 = tpu.matmul %13, %12, %cst_33 {dimension_numbers = #tpu.dot_dimension_numbers<[1], [0], [0], [1], [0, 0, 1, 1], [], []>} : vector<8x32xf32>, vector<32x96xf32>, vector<8x96xf32> -> vector<8x96xf32>
    %47 = vector.broadcast %9 : vector<1x96xf32> to vector<8x96xf32>
    %48 = arith.addf %46, %47 : vector<8x96xf32>
    %49 = vector.extract_strided_slice %45 {offsets = [0, 0], sizes = [8, 32], strides = [1, 1]} : vector<8x96xf32> to vector<8x32xf32>
    %50 = vector.extract_strided_slice %48 {offsets = [0, 0], sizes = [8, 32], strides = [1, 1]} : vector<8x96xf32> to vector<8x32xf32>
    %51 = arith.addf %49, %50 : vector<8x32xf32>
    %52 = arith.negf %51 : vector<8x32xf32>
    %53 = math.exp %52 : vector<8x32xf32>
    %cst_34 = arith.constant 1.000000e+00 : f32
    %54 = vector.broadcast %cst_34 : f32 to vector<8x32xf32>
    %55 = arith.addf %54, %53 : vector<8x32xf32>
    %56 = arith.divf %54, %55 : vector<8x32xf32>
    %57 = vector.extract_strided_slice %45 {offsets = [0, 32], sizes = [8, 32], strides = [1, 1]} : vector<8x96xf32> to vector<8x32xf32>
    %58 = vector.extract_strided_slice %48 {offsets = [0, 32], sizes = [8, 32], strides = [1, 1]} : vector<8x96xf32> to vector<8x32xf32>
    %59 = arith.addf %57, %58 : vector<8x32xf32>
    %60 = arith.negf %59 : vector<8x32xf32>
    %61 = math.exp %60 : vector<8x32xf32>
    %cst_35 = arith.constant 1.000000e+00 : f32
    %62 = vector.broadcast %cst_35 : f32 to vector<8x32xf32>
    %63 = arith.addf %62, %61 : vector<8x32xf32>
    %64 = arith.divf %62, %63 : vector<8x32xf32>
    %65 = vector.extract_strided_slice %45 {offsets = [0, 64], sizes = [8, 32], strides = [1, 1]} : vector<8x96xf32> to vector<8x32xf32>
    %66 = vector.extract_strided_slice %48 {offsets = [0, 64], sizes = [8, 32], strides = [1, 1]} : vector<8x96xf32> to vector<8x32xf32>
    %67 = arith.mulf %56, %66 : vector<8x32xf32>
    %68 = arith.addf %65, %67 : vector<8x32xf32>
    %69 = math.tanh %68 : vector<8x32xf32>
    %cst_36 = arith.constant 1.000000e+00 : f32
    %70 = vector.broadcast %cst_36 : f32 to vector<8x32xf32>
    %71 = arith.subf %70, %64 : vector<8x32xf32>
    %72 = arith.mulf %71, %69 : vector<8x32xf32>
    %73 = arith.mulf %64, %13 : vector<8x32xf32>
    %74 = arith.addf %72, %73 : vector<8x32xf32>
    %75 = arith.index_cast %c0_i32_24 : i32 to index
    %c0_37 = arith.constant 0 : index
    %c0_38 = arith.constant 0 : index
    %76 = vector.load %arg14[%75, %c0_37, %c0_38] : memref<4x8x32xf32, #tpu.memory_space<vmem>>, vector<1x8x32xf32>
    %77 = vector.shape_cast %76 : vector<1x8x32xf32> to vector<8x32xf32>
    %78 = vector.shape_cast %74 : vector<8x32xf32> to vector<1x8x32xf32>
    tpu.vector_store %arg14[%75, %c0_37, %c0_38], %78 {strides = array<i32>} : memref<4x8x32xf32, #tpu.memory_space<vmem>>, vector<1x8x32xf32>,
    %c1_i32 = arith.constant 1 : i32
    %79 = arith.index_cast %c1_i32 : i32 to index
    %c0_39 = arith.constant 0 : index
    %c0_40 = arith.constant 0 : index
    %80 = vector.load %arg4[%79, %c0_39, %c0_40] : memref<4x8x16xf32, #tpu.memory_space<vmem>>, vector<1x8x16xf32>
    %81 = vector.shape_cast %80 : vector<1x8x16xf32> to vector<8x16xf32>
    %cst_41 = arith.constant dense<0.000000e+00> : vector<8x32xf32>
    %82 = tpu.matmul %74, %5, %cst_41 {dimension_numbers = #tpu.dot_dimension_numbers<[1], [0], [0], [1], [0, 0, 1, 1], [], []>} : vector<8x32xf32>, vector<32x32xf32>, vector<8x32xf32> -> vector<8x32xf32>
    %83 = vector.broadcast %7 : vector<1x32xf32> to vector<8x32xf32>
    %84 = arith.addf %82, %83 : vector<8x32xf32>
    %85 = vector.shape_cast %84 : vector<8x32xf32> to vector<8x1x32xf32>
    %86 = vector.broadcast %85 : vector<8x1x32xf32> to vector<8x8x32xf32>
    %87 = arith.addf %4, %86 : vector<8x8x32xf32>
    %88 = math.tanh %87 : vector<8x8x32xf32>
    %89 = vector.shape_cast %6 : vector<1x32xf32> to vector<1x1x32xf32>
    %90 = vector.broadcast %89 : vector<1x1x32xf32> to vector<8x8x32xf32>
    %91 = arith.mulf %88, %90 : vector<8x8x32xf32>
    %cst_42 = arith.constant dense<0.000000e+00> : vector<8x8xf32>
    %92 = vector.multi_reduction <add>, %91, %cst_42 [2] : vector<8x8x32xf32> to vector<8x8xf32>
    %cst_43 = arith.constant dense<0xFF800000> : vector<8xf32>
    %93 = vector.multi_reduction <maximumf>, %92, %cst_43 [1] : vector<8x8xf32> to vector<8xf32>
    %94 = vector.shape_cast %93 : vector<8xf32> to vector<8x1xf32>
    %95 = vector.broadcast %94 : vector<8x1xf32> to vector<8x8xf32>
    %96 = arith.subf %92, %95 : vector<8x8xf32>
    %97 = math.exp %96 : vector<8x8xf32>
    %cst_44 = arith.constant dense<0.000000e+00> : vector<8xf32>
    %98 = vector.multi_reduction <add>, %97, %cst_44 [1] : vector<8x8xf32> to vector<8xf32>
    %99 = vector.shape_cast %98 : vector<8xf32> to vector<8x1xf32>
    %100 = vector.broadcast %99 : vector<8x1xf32> to vector<8x8xf32>
    %101 = arith.divf %97, %100 : vector<8x8xf32>
    %102 = vector.shape_cast %101 : vector<8x8xf32> to vector<8x8x1xf32>
    %103 = vector.broadcast %102 : vector<8x8x1xf32> to vector<8x8x32xf32>
    %104 = arith.mulf %103, %3 : vector<8x8x32xf32>
    %cst_45 = arith.constant dense<0.000000e+00> : vector<8x32xf32>
    %105 = vector.multi_reduction <add>, %104, %cst_45 [1] : vector<8x8x32xf32> to vector<8x32xf32>
    %cst_46 = arith.constant dense<0.000000e+00> : vector<8x96xf32>
    %106 = tpu.matmul %105, %10, %cst_46 {dimension_numbers = #tpu.dot_dimension_numbers<[1], [0], [0], [1], [0, 0, 1, 1], [], []>} : vector<8x32xf32>, vector<32x96xf32>, vector<8x96xf32> -> vector<8x96xf32>
    %cst_47 = arith.constant dense<0.000000e+00> : vector<8x96xf32>
    %107 = tpu.matmul %81, %11, %cst_47 {dimension_numbers = #tpu.dot_dimension_numbers<[1], [0], [0], [1], [0, 0, 1, 1], [], []>} : vector<8x16xf32>, vector<16x96xf32>, vector<8x96xf32> -> vector<8x96xf32>
    %108 = arith.addf %106, %107 : vector<8x96xf32>
    %109 = vector.broadcast %8 : vector<1x96xf32> to vector<8x96xf32>
    %110 = arith.addf %108, %109 : vector<8x96xf32>
    %cst_48 = arith.constant dense<0.000000e+00> : vector<8x96xf32>
    %111 = tpu.matmul %74, %12, %cst_48 {dimension_numbers = #tpu.dot_dimension_numbers<[1], [0], [0], [1], [0, 0, 1, 1], [], []>} : vector<8x32xf32>, vector<32x96xf32>, vector<8x96xf32> -> vector<8x96xf32>
    %112 = vector.broadcast %9 : vector<1x96xf32> to vector<8x96xf32>
    %113 = arith.addf %111, %112 : vector<8x96xf32>
    %114 = vector.extract_strided_slice %110 {offsets = [0, 0], sizes = [8, 32], strides = [1, 1]} : vector<8x96xf32> to vector<8x32xf32>
    %115 = vector.extract_strided_slice %113 {offsets = [0, 0], sizes = [8, 32], strides = [1, 1]} : vector<8x96xf32> to vector<8x32xf32>
    %116 = arith.addf %114, %115 : vector<8x32xf32>
    %117 = arith.negf %116 : vector<8x32xf32>
    %118 = math.exp %117 : vector<8x32xf32>
    %cst_49 = arith.constant 1.000000e+00 : f32
    %119 = vector.broadcast %cst_49 : f32 to vector<8x32xf32>
    %120 = arith.addf %119, %118 : vector<8x32xf32>
    %121 = arith.divf %119, %120 : vector<8x32xf32>
    %122 = vector.extract_strided_slice %110 {offsets = [0, 32], sizes = [8, 32], strides = [1, 1]} : vector<8x96xf32> to vector<8x32xf32>
    %123 = vector.extract_strided_slice %113 {offsets = [0, 32], sizes = [8, 32], strides = [1, 1]} : vector<8x96xf32> to vector<8x32xf32>
    %124 = arith.addf %122, %123 : vector<8x32xf32>
    %125 = arith.negf %124 : vector<8x32xf32>
    %126 = math.exp %125 : vector<8x32xf32>
    %cst_50 = arith.constant 1.000000e+00 : f32
    %127 = vector.broadcast %cst_50 : f32 to vector<8x32xf32>
    %128 = arith.addf %127, %126 : vector<8x32xf32>
    %129 = arith.divf %127, %128 : vector<8x32xf32>
    %130 = vector.extract_strided_slice %110 {offsets = [0, 64], sizes = [8, 32], strides = [1, 1]} : vector<8x96xf32> to vector<8x32xf32>
    %131 = vector.extract_strided_slice %113 {offsets = [0, 64], sizes = [8, 32], strides = [1, 1]} : vector<8x96xf32> to vector<8x32xf32>
    %132 = arith.mulf %121, %131 : vector<8x32xf32>
    %133 = arith.addf %130, %132 : vector<8x32xf32>
    %134 = math.tanh %133 : vector<8x32xf32>
    %cst_51 = arith.constant 1.000000e+00 : f32
    %135 = vector.broadcast %cst_51 : f32 to vector<8x32xf32>
    %136 = arith.subf %135, %129 : vector<8x32xf32>
    %137 = arith.mulf %136, %134 : vector<8x32xf32>
    %138 = arith.mulf %129, %74 : vector<8x32xf32>
    %139 = arith.addf %137, %138 : vector<8x32xf32>
    %140 = arith.index_cast %c1_i32 : i32 to index
    %c0_52 = arith.constant 0 : index
    %c0_53 = arith.constant 0 : index
    %141 = vector.load %arg14[%140, %c0_52, %c0_53] : memref<4x8x32xf32, #tpu.memory_space<vmem>>, vector<1x8x32xf32>
    %142 = vector.shape_cast %141 : vector<1x8x32xf32> to vector<8x32xf32>
    %143 = vector.shape_cast %139 : vector<8x32xf32> to vector<1x8x32xf32>
    tpu.vector_store %arg14[%140, %c0_52, %c0_53], %143 {strides = array<i32>} : memref<4x8x32xf32, #tpu.memory_space<vmem>>, vector<1x8x32xf32>,
    %c2_i32 = arith.constant 2 : i32
    %144 = arith.index_cast %c2_i32 : i32 to index
    %c0_54 = arith.constant 0 : index
    %c0_55 = arith.constant 0 : index
    %145 = vector.load %arg4[%144, %c0_54, %c0_55] : memref<4x8x16xf32, #tpu.memory_space<vmem>>, vector<1x8x16xf32>
    %146 = vector.shape_cast %145 : vector<1x8x16xf32> to vector<8x16xf32>
    %cst_56 = arith.constant dense<0.000000e+00> : vector<8x32xf32>
    %147 = tpu.matmul %139, %5, %cst_56 {dimension_numbers = #tpu.dot_dimension_numbers<[1], [0], [0], [1], [0, 0, 1, 1], [], []>} : vector<8x32xf32>, vector<32x32xf32>, vector<8x32xf32> -> vector<8x32xf32>
    %148 = vector.broadcast %7 : vector<1x32xf32> to vector<8x32xf32>
    %149 = arith.addf %147, %148 : vector<8x32xf32>
    %150 = vector.shape_cast %149 : vector<8x32xf32> to vector<8x1x32xf32>
    %151 = vector.broadcast %150 : vector<8x1x32xf32> to vector<8x8x32xf32>
    %152 = arith.addf %4, %151 : vector<8x8x32xf32>
    %153 = math.tanh %152 : vector<8x8x32xf32>
    %154 = vector.shape_cast %6 : vector<1x32xf32> to vector<1x1x32xf32>
    %155 = vector.broadcast %154 : vector<1x1x32xf32> to vector<8x8x32xf32>
    %156 = arith.mulf %153, %155 : vector<8x8x32xf32>
    %cst_57 = arith.constant dense<0.000000e+00> : vector<8x8xf32>
    %157 = vector.multi_reduction <add>, %156, %cst_57 [2] : vector<8x8x32xf32> to vector<8x8xf32>
    %cst_58 = arith.constant dense<0xFF800000> : vector<8xf32>
    %158 = vector.multi_reduction <maximumf>, %157, %cst_58 [1] : vector<8x8xf32> to vector<8xf32>
    %159 = vector.shape_cast %158 : vector<8xf32> to vector<8x1xf32>
    %160 = vector.broadcast %159 : vector<8x1xf32> to vector<8x8xf32>
    %161 = arith.subf %157, %160 : vector<8x8xf32>
    %162 = math.exp %161 : vector<8x8xf32>
    %cst_59 = arith.constant dense<0.000000e+00> : vector<8xf32>
    %163 = vector.multi_reduction <add>, %162, %cst_59 [1] : vector<8x8xf32> to vector<8xf32>
    %164 = vector.shape_cast %163 : vector<8xf32> to vector<8x1xf32>
    %165 = vector.broadcast %164 : vector<8x1xf32> to vector<8x8xf32>
    %166 = arith.divf %162, %165 : vector<8x8xf32>
    %167 = vector.shape_cast %166 : vector<8x8xf32> to vector<8x8x1xf32>
    %168 = vector.broadcast %167 : vector<8x8x1xf32> to vector<8x8x32xf32>
    %169 = arith.mulf %168, %3 : vector<8x8x32xf32>
    %cst_60 = arith.constant dense<0.000000e+00> : vector<8x32xf32>
    %170 = vector.multi_reduction <add>, %169, %cst_60 [1] : vector<8x8x32xf32> to vector<8x32xf32>
    %cst_61 = arith.constant dense<0.000000e+00> : vector<8x96xf32>
    %171 = tpu.matmul %170, %10, %cst_61 {dimension_numbers = #tpu.dot_dimension_numbers<[1], [0], [0], [1], [0, 0, 1, 1], [], []>} : vector<8x32xf32>, vector<32x96xf32>, vector<8x96xf32> -> vector<8x96xf32>
    %cst_62 = arith.constant dense<0.000000e+00> : vector<8x96xf32>
    %172 = tpu.matmul %146, %11, %cst_62 {dimension_numbers = #tpu.dot_dimension_numbers<[1], [0], [0], [1], [0, 0, 1, 1], [], []>} : vector<8x16xf32>, vector<16x96xf32>, vector<8x96xf32> -> vector<8x96xf32>
    %173 = arith.addf %171, %172 : vector<8x96xf32>
    %174 = vector.broadcast %8 : vector<1x96xf32> to vector<8x96xf32>
    %175 = arith.addf %173, %174 : vector<8x96xf32>
    %cst_63 = arith.constant dense<0.000000e+00> : vector<8x96xf32>
    %176 = tpu.matmul %139, %12, %cst_63 {dimension_numbers = #tpu.dot_dimension_numbers<[1], [0], [0], [1], [0, 0, 1, 1], [], []>} : vector<8x32xf32>, vector<32x96xf32>, vector<8x96xf32> -> vector<8x96xf32>
    %177 = vector.broadcast %9 : vector<1x96xf32> to vector<8x96xf32>
    %178 = arith.addf %176, %177 : vector<8x96xf32>
    %179 = vector.extract_strided_slice %175 {offsets = [0, 0], sizes = [8, 32], strides = [1, 1]} : vector<8x96xf32> to vector<8x32xf32>
    %180 = vector.extract_strided_slice %178 {offsets = [0, 0], sizes = [8, 32], strides = [1, 1]} : vector<8x96xf32> to vector<8x32xf32>
    %181 = arith.addf %179, %180 : vector<8x32xf32>
    %182 = arith.negf %181 : vector<8x32xf32>
    %183 = math.exp %182 : vector<8x32xf32>
    %cst_64 = arith.constant 1.000000e+00 : f32
    %184 = vector.broadcast %cst_64 : f32 to vector<8x32xf32>
    %185 = arith.addf %184, %183 : vector<8x32xf32>
    %186 = arith.divf %184, %185 : vector<8x32xf32>
    %187 = vector.extract_strided_slice %175 {offsets = [0, 32], sizes = [8, 32], strides = [1, 1]} : vector<8x96xf32> to vector<8x32xf32>
    %188 = vector.extract_strided_slice %178 {offsets = [0, 32], sizes = [8, 32], strides = [1, 1]} : vector<8x96xf32> to vector<8x32xf32>
    %189 = arith.addf %187, %188 : vector<8x32xf32>
    %190 = arith.negf %189 : vector<8x32xf32>
    %191 = math.exp %190 : vector<8x32xf32>
    %cst_65 = arith.constant 1.000000e+00 : f32
    %192 = vector.broadcast %cst_65 : f32 to vector<8x32xf32>
    %193 = arith.addf %192, %191 : vector<8x32xf32>
    %194 = arith.divf %192, %193 : vector<8x32xf32>
    %195 = vector.extract_strided_slice %175 {offsets = [0, 64], sizes = [8, 32], strides = [1, 1]} : vector<8x96xf32> to vector<8x32xf32>
    %196 = vector.extract_strided_slice %178 {offsets = [0, 64], sizes = [8, 32], strides = [1, 1]} : vector<8x96xf32> to vector<8x32xf32>
    %197 = arith.mulf %186, %196 : vector<8x32xf32>
    %198 = arith.addf %195, %197 : vector<8x32xf32>
    %199 = math.tanh %198 : vector<8x32xf32>
    %cst_66 = arith.constant 1.000000e+00 : f32
    %200 = vector.broadcast %cst_66 : f32 to vector<8x32xf32>
    %201 = arith.subf %200, %194 : vector<8x32xf32>
    %202 = arith.mulf %201, %199 : vector<8x32xf32>
    %203 = arith.mulf %194, %139 : vector<8x32xf32>
    %204 = arith.addf %202, %203 : vector<8x32xf32>
    %205 = arith.index_cast %c2_i32 : i32 to index
    %c0_67 = arith.constant 0 : index
    %c0_68 = arith.constant 0 : index
    %206 = vector.load %arg14[%205, %c0_67, %c0_68] : memref<4x8x32xf32, #tpu.memory_space<vmem>>, vector<1x8x32xf32>
    %207 = vector.shape_cast %206 : vector<1x8x32xf32> to vector<8x32xf32>
    %208 = vector.shape_cast %204 : vector<8x32xf32> to vector<1x8x32xf32>
    tpu.vector_store %arg14[%205, %c0_67, %c0_68], %208 {strides = array<i32>} : memref<4x8x32xf32, #tpu.memory_space<vmem>>, vector<1x8x32xf32>,
    %c3_i32 = arith.constant 3 : i32
    %209 = arith.index_cast %c3_i32 : i32 to index
    %c0_69 = arith.constant 0 : index
    %c0_70 = arith.constant 0 : index
    %210 = vector.load %arg4[%209, %c0_69, %c0_70] : memref<4x8x16xf32, #tpu.memory_space<vmem>>, vector<1x8x16xf32>
    %211 = vector.shape_cast %210 : vector<1x8x16xf32> to vector<8x16xf32>
    %cst_71 = arith.constant dense<0.000000e+00> : vector<8x32xf32>
    %212 = tpu.matmul %204, %5, %cst_71 {dimension_numbers = #tpu.dot_dimension_numbers<[1], [0], [0], [1], [0, 0, 1, 1], [], []>} : vector<8x32xf32>, vector<32x32xf32>, vector<8x32xf32> -> vector<8x32xf32>
    %213 = vector.broadcast %7 : vector<1x32xf32> to vector<8x32xf32>
    %214 = arith.addf %212, %213 : vector<8x32xf32>
    %215 = vector.shape_cast %214 : vector<8x32xf32> to vector<8x1x32xf32>
    %216 = vector.broadcast %215 : vector<8x1x32xf32> to vector<8x8x32xf32>
    %217 = arith.addf %4, %216 : vector<8x8x32xf32>
    %218 = math.tanh %217 : vector<8x8x32xf32>
    %219 = vector.shape_cast %6 : vector<1x32xf32> to vector<1x1x32xf32>
    %220 = vector.broadcast %219 : vector<1x1x32xf32> to vector<8x8x32xf32>
    %221 = arith.mulf %218, %220 : vector<8x8x32xf32>
    %cst_72 = arith.constant dense<0.000000e+00> : vector<8x8xf32>
    %222 = vector.multi_reduction <add>, %221, %cst_72 [2] : vector<8x8x32xf32> to vector<8x8xf32>
    %cst_73 = arith.constant dense<0xFF800000> : vector<8xf32>
    %223 = vector.multi_reduction <maximumf>, %222, %cst_73 [1] : vector<8x8xf32> to vector<8xf32>
    %224 = vector.shape_cast %223 : vector<8xf32> to vector<8x1xf32>
    %225 = vector.broadcast %224 : vector<8x1xf32> to vector<8x8xf32>
    %226 = arith.subf %222, %225 : vector<8x8xf32>
    %227 = math.exp %226 : vector<8x8xf32>
    %cst_74 = arith.constant dense<0.000000e+00> : vector<8xf32>
    %228 = vector.multi_reduction <add>, %227, %cst_74 [1] : vector<8x8xf32> to vector<8xf32>
    %229 = vector.shape_cast %228 : vector<8xf32> to vector<8x1xf32>
    %230 = vector.broadcast %229 : vector<8x1xf32> to vector<8x8xf32>
    %231 = arith.divf %227, %230 : vector<8x8xf32>
    %232 = vector.shape_cast %231 : vector<8x8xf32> to vector<8x8x1xf32>
    %233 = vector.broadcast %232 : vector<8x8x1xf32> to vector<8x8x32xf32>
    %234 = arith.mulf %233, %3 : vector<8x8x32xf32>
    %cst_75 = arith.constant dense<0.000000e+00> : vector<8x32xf32>
    %235 = vector.multi_reduction <add>, %234, %cst_75 [1] : vector<8x8x32xf32> to vector<8x32xf32>
    %cst_76 = arith.constant dense<0.000000e+00> : vector<8x96xf32>
    %236 = tpu.matmul %235, %10, %cst_76 {dimension_numbers = #tpu.dot_dimension_numbers<[1], [0], [0], [1], [0, 0, 1, 1], [], []>} : vector<8x32xf32>, vector<32x96xf32>, vector<8x96xf32> -> vector<8x96xf32>
    %cst_77 = arith.constant dense<0.000000e+00> : vector<8x96xf32>
    %237 = tpu.matmul %211, %11, %cst_77 {dimension_numbers = #tpu.dot_dimension_numbers<[1], [0], [0], [1], [0, 0, 1, 1], [], []>} : vector<8x16xf32>, vector<16x96xf32>, vector<8x96xf32> -> vector<8x96xf32>
    %238 = arith.addf %236, %237 : vector<8x96xf32>
    %239 = vector.broadcast %8 : vector<1x96xf32> to vector<8x96xf32>
    %240 = arith.addf %238, %239 : vector<8x96xf32>
    %cst_78 = arith.constant dense<0.000000e+00> : vector<8x96xf32>
    %241 = tpu.matmul %204, %12, %cst_78 {dimension_numbers = #tpu.dot_dimension_numbers<[1], [0], [0], [1], [0, 0, 1, 1], [], []>} : vector<8x32xf32>, vector<32x96xf32>, vector<8x96xf32> -> vector<8x96xf32>
    %242 = vector.broadcast %9 : vector<1x96xf32> to vector<8x96xf32>
    %243 = arith.addf %241, %242 : vector<8x96xf32>
    %244 = vector.extract_strided_slice %240 {offsets = [0, 0], sizes = [8, 32], strides = [1, 1]} : vector<8x96xf32> to vector<8x32xf32>
    %245 = vector.extract_strided_slice %243 {offsets = [0, 0], sizes = [8, 32], strides = [1, 1]} : vector<8x96xf32> to vector<8x32xf32>
    %246 = arith.addf %244, %245 : vector<8x32xf32>
    %247 = arith.negf %246 : vector<8x32xf32>
    %248 = math.exp %247 : vector<8x32xf32>
    %cst_79 = arith.constant 1.000000e+00 : f32
    %249 = vector.broadcast %cst_79 : f32 to vector<8x32xf32>
    %250 = arith.addf %249, %248 : vector<8x32xf32>
    %251 = arith.divf %249, %250 : vector<8x32xf32>
    %252 = vector.extract_strided_slice %240 {offsets = [0, 32], sizes = [8, 32], strides = [1, 1]} : vector<8x96xf32> to vector<8x32xf32>
    %253 = vector.extract_strided_slice %243 {offsets = [0, 32], sizes = [8, 32], strides = [1, 1]} : vector<8x96xf32> to vector<8x32xf32>
    %254 = arith.addf %252, %253 : vector<8x32xf32>
    %255 = arith.negf %254 : vector<8x32xf32>
    %256 = math.exp %255 : vector<8x32xf32>
    %cst_80 = arith.constant 1.000000e+00 : f32
    %257 = vector.broadcast %cst_80 : f32 to vector<8x32xf32>
    %258 = arith.addf %257, %256 : vector<8x32xf32>
    %259 = arith.divf %257, %258 : vector<8x32xf32>
    %260 = vector.extract_strided_slice %240 {offsets = [0, 64], sizes = [8, 32], strides = [1, 1]} : vector<8x96xf32> to vector<8x32xf32>
    %261 = vector.extract_strided_slice %243 {offsets = [0, 64], sizes = [8, 32], strides = [1, 1]} : vector<8x96xf32> to vector<8x32xf32>
    %262 = arith.mulf %251, %261 : vector<8x32xf32>
    %263 = arith.addf %260, %262 : vector<8x32xf32>
    %264 = math.tanh %263 : vector<8x32xf32>
    %cst_81 = arith.constant 1.000000e+00 : f32
    %265 = vector.broadcast %cst_81 : f32 to vector<8x32xf32>
    %266 = arith.subf %265, %259 : vector<8x32xf32>
    %267 = arith.mulf %266, %264 : vector<8x32xf32>
    %268 = arith.mulf %259, %204 : vector<8x32xf32>
    %269 = arith.addf %267, %268 : vector<8x32xf32>
    %270 = arith.index_cast %c3_i32 : i32 to index
    %c0_82 = arith.constant 0 : index
    %c0_83 = arith.constant 0 : index
    %271 = vector.load %arg14[%270, %c0_82, %c0_83] : memref<4x8x32xf32, #tpu.memory_space<vmem>>, vector<1x8x32xf32>
    %272 = vector.shape_cast %271 : vector<1x8x32xf32> to vector<8x32xf32>
    %273 = vector.shape_cast %269 : vector<8x32xf32> to vector<1x8x32xf32>
    tpu.vector_store %arg14[%270, %c0_82, %c0_83], %273 {strides = array<i32>} : memref<4x8x32xf32, #tpu.memory_space<vmem>>, vector<1x8x32xf32>,
    %c4_i32 = arith.constant 4 : i32
    %c0_84 = arith.constant 0 : index
    %c0_85 = arith.constant 0 : index
    %274 = vector.load %arg15[%c0_84, %c0_85] : memref<8x32xf32, #tpu.memory_space<vmem>>, vector<8x32xf32>
    tpu.vector_store %arg15[%c0_84, %c0_85], %269 {strides = array<i32>} : memref<8x32xf32, #tpu.memory_space<vmem>>, vector<8x32xf32>,
    return
  }
  func.func @transform_0(%arg0: i32, %arg1: i32) -> (i32, i32) {
    %c0_i32 = arith.constant 0 : i32
    %c0_i32_0 = arith.constant 0 : i32
    return %arg0, %c0_i32 : i32, i32
  }
  func.func @transform_1(%arg0: i32, %arg1: i32) -> (i32, i32, i32) {
    %c0_i32 = arith.constant 0 : i32
    %c0_i32_0 = arith.constant 0 : i32
    %c0_i32_1 = arith.constant 0 : i32
    return %arg0, %c0_i32, %c0_i32_0 : i32, i32, i32
  }
  func.func @transform_2(%arg0: i32, %arg1: i32) -> (i32, i32, i32) {
    %c0_i32 = arith.constant 0 : i32
    %c0_i32_0 = arith.constant 0 : i32
    return %arg1, %arg0, %c0_i32 : i32, i32, i32
  }
  func.func @transform_3(%arg0: i32, %arg1: i32) -> (i32, i32) {
    %c0_i32 = arith.constant 0 : i32
    %c0_i32_0 = arith.constant 0 : i32
    %c0_i32_1 = arith.constant 0 : i32
    return %c0_i32, %c0_i32_0 : i32, i32
  }
  func.func @transform_4(%arg0: i32, %arg1: i32) -> (i32, i32) {
    %c0_i32 = arith.constant 0 : i32
    %c0_i32_0 = arith.constant 0 : i32
    %c0_i32_1 = arith.constant 0 : i32
    return %c0_i32, %c0_i32_0 : i32, i32
  }
  func.func @transform_5(%arg0: i32, %arg1: i32) -> (i32, i32) {
    %c0_i32 = arith.constant 0 : i32
    %c0_i32_0 = arith.constant 0 : i32
    %c0_i32_1 = arith.constant 0 : i32
    return %c0_i32, %c0_i32_0 : i32, i32
  }
  func.func @transform_6(%arg0: i32, %arg1: i32) -> (i32, i32) {
    %c0_i32 = arith.constant 0 : i32
    %c0_i32_0 = arith.constant 0 : i32
    %c0_i32_1 = arith.constant 0 : i32
    return %c0_i32, %c0_i32_0 : i32, i32
  }
  func.func @transform_7(%arg0: i32, %arg1: i32) -> (i32, i32) {
    %c0_i32 = arith.constant 0 : i32
    %c0_i32_0 = arith.constant 0 : i32
    %c0_i32_1 = arith.constant 0 : i32
    return %c0_i32, %c0_i32_0 : i32, i32
  }
  func.func @transform_8(%arg0: i32, %arg1: i32) -> (i32, i32) {
    %c0_i32 = arith.constant 0 : i32
    %c0_i32_0 = arith.constant 0 : i32
    %c0_i32_1 = arith.constant 0 : i32
    return %c0_i32, %c0_i32_0 : i32, i32
  }
  func.func @transform_9(%arg0: i32, %arg1: i32) -> (i32, i32) {
    %c0_i32 = arith.constant 0 : i32
    %c0_i32_0 = arith.constant 0 : i32
    %c0_i32_1 = arith.constant 0 : i32
    return %c0_i32, %c0_i32_0 : i32, i32
  }
  func.func @transform_10(%arg0: i32, %arg1: i32) -> (i32, i32) {
    %c0_i32 = arith.constant 0 : i32
    %c0_i32_0 = arith.constant 0 : i32
    %c0_i32_1 = arith.constant 0 : i32
    return %c0_i32, %c0_i32_0 : i32, i32
  }
  func.func @transform_11(%arg0: i32, %arg1: i32) -> (i32, i32) {
    %c0_i32 = arith.constant 0 : i32
    %c0_i32_0 = arith.constant 0 : i32
    %c0_i32_1 = arith.constant 0 : i32
    return %c0_i32, %c0_i32_0 : i32, i32
  }
  func.func @transform_12(%arg0: i32, %arg1: i32) -> (i32, i32, i32) {
    %c0_i32 = arith.constant 0 : i32
    %c0_i32_0 = arith.constant 0 : i32
    return %arg1, %arg0, %c0_i32 : i32, i32, i32
  }
}

</mosaic_0001>

<bundles_post_ra>
// kernel: tpu_custom_call.1
= control target key start
LH: loop header
LB: loop body
LE: loop exit
PB: predicated region body
PF: predicated region fallthrough
CT: control target
= control target key end

     0   :  { %s6842_s0 = inlined_call_operand.hbm [shape: f32[8,32], index: 0, kind: input, shape index: {}]   ;;  %s6843_s1 = inlined_call_operand.hbm [shape: f32[8,8,32], index: 1, kind: input, shape index: {}]   ;;  %s6844_s2 = inlined_call_operand.hbm [shape: f32[8,8,16], index: 2, kind: input, shape index: {}]   ;;  %s6845_s3 = inlined_call_operand.hbm [shape: f32[32,32], index: 3, kind: input, shape index: {}]   ;;  %s6846_s4 = inlined_call_operand.hbm [shape: f32[32,32], index: 4, kind: input, shape index: {}]   ;;  %s6847_s5 = inlined_call_operand.vmem [shape: f32[1,32], index: 5, kind: input, shape index: {}]   ;;  %s6848_s6 = inlined_call_operand.vmem [shape: f32[1,32], index: 6, kind: input, shape index: {}]   ;;  %s6849_s7 = inlined_call_operand.hbm [shape: f32[1,96], index: 7, kind: input, shape index: {}]   ;;  %s6850_s8 = inlined_call_operand.hbm [shape: f32[1,96], index: 8, kind: input, shape index: {}]   ;;  %s6851_s9 = inlined_call_operand.vmem [shape: f32[32,96], index: 9, kind: input, shape index: {}]   ;;  %s6852_s10 = inlined_call_operand.hbm [shape: f32[16,96], index: 10, kind: input, shape index: {}]   ;;  %s6853_s11 = inlined_call_operand.hbm [shape: f32[32,96], index: 11, kind: input, shape index: {}]   ;;  %s6854_s12 = inlined_call_operand.hbm [shape: f32[8,8,32], index: 12, kind: output, shape index: {}]  }
   0x1   :  { %6880 = sst [smem:[#allocation36_spill]] %s6842_s0 }
   0x2   :  { %6881 = sst [smem:[#allocation37_spill]] %s6843_s1 }
   0x3   :  { %6882 = sst [smem:[#allocation38_spill]] %s6847_s5 }
   0x4   :  { %6883 = sst [smem:[#allocation39_spill]] %s6848_s6 }
   0x5   :  { %6884 = sst [smem:[#allocation40_spill]] %s6851_s9 }
   0x6   :  { %6885 = sst [smem:[#allocation41_spill]] %s6854_s12 }
   0x7   :  { %17 = vsyncpa [#allocation5], 0 }
   0x8   :  { %18 = vsyncpa [#allocation8], 0 }
   0x9   :  { %19 = vsyncpa [#allocation12], 0 }
   0xa   :  { %20 = vsyncpa [#allocation15], 0 }
   0xb   :  { %21 = vsyncpa [#allocation18], 0 }
   0xc   :  { %22 = vsyncpa [#allocation6], 0 }
   0xd   :  { %24 = vsyncpa [#allocation6 + $0x1], 0  ;;  %s5567_s21 = smov 0   ;;  %s5569_s22 = smov 0  }
   0xe   :  { %s5571_s23 = smov 0   ;;  %s5573_s24 = smov 0  }
   0xf   :  { %s5575_s25 = smov 0   ;;  %s5577_s26 = smov 0  }
  0x10 LB: > { %6886 = sst [smem:[#allocation28_spill]] %s5470_s24  ;;  %s5598_s27 = sadd.s32 4294967295, %s5478_s26   ;;  %s5478_s26 = sphi %s5577_s26, %s30_s26   ;;  %s5474_s25 = sphi %s5575_s25, %s6953_s25   ;;  %s5470_s24 = sphi %s5573_s24, %s6952_s24   ;;  %s5466_s23 = sphi %s5571_s23, %s6951_s23   ;;  %s5462_s22 = sphi %s5569_s22, %s6950_s22   ;;  %s5458_s21 = sphi %s5567_s21, %s6949_s21  }
  0x11   : > { %p4295_p0 = scmp.ge.s32.totalorder %s5478_s26, 1  ;;  %p6857_p1 = scmp.eq.s32.totalorder %s5598_s27, 0 }
  0x12   : > { %p344_p2 = scmp.lt.s32.totalorder %s5478_s26, 3  ;;  %s5480_s29 = smov [#allocation4]  }
  0x13   : > { %s359_s30 = sshll.u32 %s5480_s29, 4  ;;  %s5481_s13 = smov [#allocation7]   ;;  %s360_s30 = int_to_ptr.vmem [resolvable:$true] %s359_s30 }
  0x14   : > { %p5603_p3 = pnand %p4295_p0, %p344_p2  ;;  %s372_s14 = sshll.u32 %s5481_s13, 4  ;;  %s5616_s14 = int_to_ptr.vmem [resolvable:$true] %s372_s14 }
  0x15   : > { %s5482_s16 = smov [#allocation11]   ;;  %s6889_s0 = sld [smem:[#allocation36_spill]] }
  0x16   : > { %s6887_s28 = scalar_select %p5603_p3, 1, 0 }
  0x17   : > { %p4761_p5 = pneg %p5603_p3  ;;  %s5618_s17 = sshll.u32 %s5482_s16, 4  ;;  %s399_s17 = int_to_ptr.vmem [resolvable:$true] %s5618_s17 }
  0x19   : > { %p5612_p6 = pnand %p4761_p5, %p6857_p1 }
  0x1b   : > { %s5118_s20 = scalar_lea.hbm %s6889_s0, 128  ;;  %p5628_p8 = pneg %p5612_p6 }
  0x1c   : > { %p5119_p7 = scmp.ne.s32.totalorder %s6889_s0, %s5118_s20  ;;  %p5125_p11 = scmp.lt.u32.totalorder %s5118_s20, %s6889_s0 }
  0x1e   : > { %p5121_p9 = pnand %p5628_p8, %p5119_p7 }
  0x20   : > { %p5122_p10 = pneg %p5121_p9 }
  0x22   : > { %p5127_p12 = pnand %p5125_p11, %p5122_p10 }
  0x24   : > { %5130 = shalt.err (!%p5127_p12)
}
  0x25   : > { %s5131_s18 = scalar_lea.vmem %s360_s30, 128  ;;  %p5139_p5 = scmp.lt.s32.totalorder %s360_s30, %s360_s30 }
  0x26   : > { %p5132_p13 = scmp.ne.s32.totalorder %s360_s30, %s5131_s18  ;;  %p5140_p4 = scmp.lt.s32.totalorder %s5131_s18, %s5131_s18 }
  0x28   : > { %p5134_p0 = pnand %p5132_p13, %p5628_p8  ;;  %p5141_p1 = por %p5140_p4, %p5139_p5 }
  0x2a   : > { %p5135_p2 = pneg %p5134_p0 }
  0x2c   : > { %p5142_p3 = pnand %p5141_p1, %p5135_p2 }
  0x2e   : > { %5145 = shalt.err (!%p5142_p3)
}
  0x2f   : > { %4764 = dma.hbm_to_vmem [thread:$0]  (!%p5612_p6), %s6889_s0, 128, %s360_s30, [#allocation5]  }
  0x30   : > { %s6891_s1 = sld [smem:[#allocation37_spill]] }
  0x36   : > { %s5146_s29 = scalar_lea.hbm %s6891_s1, 1024 }
  0x37   : > { %p5147_p7 = scmp.ne.s32.totalorder %s6891_s1, %s5146_s29  ;;  %p5153_p1 = scmp.lt.u32.totalorder %s5146_s29, %s6891_s1 }
  0x39   : > { %p5149_p9 = pnand %p5147_p7, %p5628_p8 }
  0x3b   : > { %p5150_p4 = pneg %p5149_p9 }
  0x3d   : > { %p5155_p3 = pnand %p5153_p1, %p5150_p4 }
  0x3f   : > { %5158 = shalt.err (!%p5155_p3)
}
  0x40   : > { %s5159_s30 = scalar_lea.vmem %s5616_s14, 1024  ;;  %p5167_p13 = scmp.lt.s32.totalorder %s5616_s14, %s5616_s14 }
  0x41   : > { %p5160_p10 = scmp.ne.s32.totalorder %s5616_s14, %s5159_s30  ;;  %p5168_p0 = scmp.lt.s32.totalorder %s5159_s30, %s5159_s30 }
  0x43   : > { %p5162_p11 = pnand %p5160_p10, %p5628_p8  ;;  %p5169_p2 = por %p5168_p0, %p5167_p13 }
  0x45   : > { %p5163_p12 = pneg %p5162_p11 }
  0x47   : > { %p5170_p5 = pnand %p5169_p2, %p5163_p12 }
  0x49   : > { %5173 = shalt.err (!%p5170_p5)
}
  0x4a   : > { %s6861_s5 = smov 128   ;;  %s5484_s6 = smov 8  }
  0x4b   : > { %4767 = dma.hbm_to_vmem [thread:$0]  (!%p5612_p6), %s6891_s1, 1024, %s5616_s14, [#allocation8], %s6861_s5, %s6861_s5, %s5484_s6  }
  0x4c   : > { %s5174_s29 = scalar_lea.hbm %s6846_s4, 512 }
  0x4d   : > { %p5175_p7 = scmp.ne.s32.totalorder %s6846_s4, %s5174_s29  ;;  %p5181_p1 = scmp.lt.u32.totalorder %s5174_s29, %s6846_s4 }
  0x4f   : > { %p5177_p9 = pnand %p5175_p7, %p5628_p8 }
  0x51   : > { %p5178_p4 = pneg %p5177_p9 }
  0x53   : > { %p5183_p3 = pnand %p5181_p1, %p5178_p4 }
  0x55   : > { %5186 = shalt.err (!%p5183_p3)
}
  0x56   : > { %s5187_s12 = scalar_lea.vmem %s399_s17, 512  ;;  %p5195_p13 = scmp.lt.s32.totalorder %s399_s17, %s399_s17 }
  0x57   : > { %p5188_p10 = scmp.ne.s32.totalorder %s399_s17, %s5187_s12  ;;  %p5196_p0 = scmp.lt.s32.totalorder %s5187_s12, %s5187_s12 }
  0x59   : > { %p5190_p11 = pnand %p5188_p10, %p5628_p8  ;;  %p5197_p2 = por %p5196_p0, %p5195_p13 }
  0x5b   : > { %p5191_p12 = pneg %p5190_p11 }
  0x5d   : > { %p5198_p5 = pnand %p5197_p2, %p5191_p12 }
  0x5f   : > { %5201 = shalt.err (!%p5198_p5)
}
  0x60   : > { %4773 = dma.hbm_to_vmem [thread:$0]  (!%p5612_p6), %s6846_s4, 512, %s399_s17, [#allocation12], %s6861_s5, %s6861_s5, %s5484_s6  }
  0x61   : > { %s5485_s19 = smov [#allocation14]   ;;  %s5486_s20 = smov [#allocation10]  }
  0x62   : > { %s429_s9 = sshll.u32 %s5485_s19, 4  ;;  %s385_s29 = sshll.u32 %s5486_s20, 4  ;;  %s430_s9 = int_to_ptr.vmem [resolvable:$true] %s429_s9  ;;  %s386_s29 = int_to_ptr.vmem [resolvable:$true] %s385_s29 }
  0x63   : > { %s5202_s30 = scalar_lea.hbm %s6850_s8, 16 }
  0x64   : > { %p5203_p7 = scmp.ne.s32.totalorder %s6850_s8, %s5202_s30  ;;  %p5209_p1 = scmp.lt.u32.totalorder %s5202_s30, %s6850_s8 }
  0x66   : > { %p5205_p9 = pnand %p5203_p7, %p5628_p8 }
  0x68   : > { %p5206_p4 = pneg %p5205_p9 }
  0x6a   : > { %p5211_p3 = pnand %p5209_p1, %p5206_p4 }
  0x6c   : > { %5214 = shalt.err (!%p5211_p3)
}
  0x6d   : > { %s5215_s17 = scalar_lea.vmem %s430_s9, 16  ;;  %s5222_s14 = scalar_lea.vmem %s430_s9, 32 }
  0x6e   : > { %p5216_p10 = scmp.ne.s32.totalorder %s430_s9, %s5215_s17  ;;  %p5223_p13 = scmp.lt.s32.totalorder %s430_s9, %s430_s9 }
  0x6f   : > { %p5224_p0 = scmp.lt.s32.totalorder %s5222_s14, %s5215_s17 }
  0x70   : > { %p5218_p11 = pnand %p5216_p10, %p5628_p8 }
  0x71   : > { %p5225_p2 = por %p5224_p0, %p5223_p13 }
  0x72   : > { %p5219_p12 = pneg %p5218_p11 }
  0x74   : > { %p5226_p5 = pnand %p5225_p2, %p5219_p12 }
  0x76   : > { %5229 = shalt.err (!%p5226_p5)
}
  0x77   : > { %4779 = dma.hbm_to_vmem [thread:$0]  (!%p5612_p6), %s6850_s8, 16, %s430_s9, [#allocation15]  }
  0x78   : > { %s5230_s16 = scalar_lea.hbm %s6845_s3, 512 }
  0x79   : > { %p5231_p7 = scmp.ne.s32.totalorder %s6845_s3, %s5230_s16  ;;  %p5237_p1 = scmp.lt.u32.totalorder %s5230_s16, %s6845_s3 }
  0x7b   : > { %p5233_p9 = pnand %p5231_p7, %p5628_p8 }
  0x7d   : > { %p5234_p4 = pneg %p5233_p9 }
  0x7f   : > { %p5239_p3 = pnand %p5237_p1, %p5234_p4 }
  0x81   : > { %5242 = shalt.err (!%p5239_p3)
}
  0x82   : > { %s5243_s17 = scalar_lea.vmem %s386_s29, 512  ;;  %p5251_p13 = scmp.lt.s32.totalorder %s386_s29, %s386_s29 }
  0x83   : > { %p5244_p10 = scmp.ne.s32.totalorder %s386_s29, %s5243_s17  ;;  %p5252_p0 = scmp.lt.s32.totalorder %s5243_s17, %s5243_s17 }
  0x85   : > { %p5246_p11 = pnand %p5244_p10, %p5628_p8  ;;  %p5253_p2 = por %p5252_p0, %p5251_p13 }
  0x87   : > { %p5247_p12 = pneg %p5246_p11 }
  0x89   : > { %p5254_p5 = pnand %p5253_p2, %p5247_p12 }
  0x8b   : > { %5257 = shalt.err (!%p5254_p5)
}
  0x8c   : > { %4770 = dma.hbm_to_vmem [thread:$0]  (!%p5612_p6), %s6845_s3, 512, %s386_s29, [#allocation8], %s6861_s5, %s6861_s5, %s5484_s6  }
  0x8d   : > { %s5487_s1 = smov [#allocation13]   ;;  %s5488_s24 = smov [#allocation16]  }
  0x8e   : > { %s418_s19 = sshll.u32 %s5487_s1, 4  ;;  %s442_s20 = sshll.u32 %s5488_s24, 4  ;;  %s419_s19 = int_to_ptr.vmem [resolvable:$true] %s418_s19  ;;  %s443_s20 = int_to_ptr.vmem [resolvable:$true] %s442_s20 }
  0x8f   : > { %s5258_s30 = scalar_lea.hbm %s6849_s7, 16 }
  0x90   : > { %p5259_p7 = scmp.ne.s32.totalorder %s6849_s7, %s5258_s30  ;;  %p5265_p1 = scmp.lt.u32.totalorder %s5258_s30, %s6849_s7 }
  0x92   : > { %p5261_p9 = pnand %p5259_p7, %p5628_p8 }
  0x94   : > { %p5262_p4 = pneg %p5261_p9 }
  0x96   : > { %p5267_p3 = pnand %p5265_p1, %p5262_p4 }
  0x98   : > { %5270 = shalt.err (!%p5267_p3)
}
  0x99   : > { %s5271_s29 = scalar_lea.vmem %s419_s19, 16  ;;  %s5278_s14 = scalar_lea.vmem %s419_s19, 32 }
  0x9a   : > { %p5272_p10 = scmp.ne.s32.totalorder %s419_s19, %s5271_s29  ;;  %p5279_p13 = scmp.lt.s32.totalorder %s419_s19, %s419_s19 }
  0x9b   : > { %p5280_p0 = scmp.lt.s32.totalorder %s5278_s14, %s5271_s29 }
  0x9c   : > { %p5274_p11 = pnand %p5272_p10, %p5628_p8 }
  0x9d   : > { %p5281_p2 = por %p5280_p0, %p5279_p13 }
  0x9e   : > { %p5275_p12 = pneg %p5274_p11 }
  0xa0   : > { %p5282_p5 = pnand %p5281_p2, %p5275_p12 }
  0xa2   : > { %5285 = shalt.err (!%p5282_p5)
}
  0xa3   : > { %4776 = dma.hbm_to_vmem [thread:$0]  (!%p5612_p6), %s6849_s7, 16, %s419_s19, [#allocation12]  }
  0xa4   : > { %s5286_s30 = scalar_lea.hbm %s6852_s10, 256 }
  0xa5   : > { %p5287_p7 = scmp.ne.s32.totalorder %s6852_s10, %s5286_s30  ;;  %p5293_p1 = scmp.lt.u32.totalorder %s5286_s30, %s6852_s10 }
  0xa7   : > { %p5289_p9 = pnand %p5287_p7, %p5628_p8 }
  0xa9   : > { %p5290_p4 = pneg %p5289_p9 }
  0xab   : > { %p5295_p3 = pnand %p5293_p1, %p5290_p4 }
  0xad   : > { %5298 = shalt.err (!%p5295_p3)
}
  0xae   : > { %s5299_s29 = scalar_lea.vmem %s443_s20, 256  ;;  %p5307_p13 = scmp.lt.s32.totalorder %s443_s20, %s443_s20 }
  0xaf   : > { %p5300_p10 = scmp.ne.s32.totalorder %s443_s20, %s5299_s29  ;;  %p5308_p0 = scmp.lt.s32.totalorder %s5299_s29, %s5299_s29 }
  0xb1   : > { %p5302_p11 = pnand %p5300_p10, %p5628_p8  ;;  %p5309_p2 = por %p5308_p0, %p5307_p13 }
  0xb3   : > { %p5303_p12 = pneg %p5302_p11 }
  0xb5   : > { %p5310_p5 = pnand %p5309_p2, %p5303_p12 }
  0xb7   : > { %5313 = shalt.err (!%p5310_p5)
}
  0xb8   : > { %4782 = dma.hbm_to_vmem [thread:$0]  (!%p5612_p6), %s6852_s10, 256, %s443_s20, [#allocation15], %s6861_s5, %s6861_s5, %s5484_s6  }
  0xb9   : > { %s5489_s1 = smov [#allocation17]   ;;  %s5314_s30 = scalar_lea.hbm %s6853_s11, 512 }
  0xba   : > { %s455_s24 = sshll.u32 %s5489_s1, 4  ;;  %p5315_p7 = scmp.ne.s32.totalorder %s6853_s11, %s5314_s30  ;;  %s456_s24 = int_to_ptr.vmem [resolvable:$true] %s455_s24 }
  0xbb   : > { %p5321_p1 = scmp.lt.u32.totalorder %s5314_s30, %s6853_s11 }
  0xbc   : > { %p5317_p9 = pnand %p5315_p7, %p5628_p8 }
  0xbe   : > { %p5318_p4 = pneg %p5317_p9 }
  0xc0   : > { %p5323_p3 = pnand %p5321_p1, %p5318_p4 }
  0xc2   : > { %5326 = shalt.err (!%p5323_p3)
}
  0xc3   : > { %s5327_s20 = scalar_lea.vmem %s456_s24, 512  ;;  %p5335_p13 = scmp.lt.s32.totalorder %s456_s24, %s456_s24 }
  0xc4   : > { %p5328_p10 = scmp.ne.s32.totalorder %s456_s24, %s5327_s20  ;;  %p5336_p0 = scmp.lt.s32.totalorder %s5327_s20, %s5327_s20 }
  0xc6   : > { %p5330_p11 = pnand %p5328_p10, %p5628_p8  ;;  %p5337_p2 = por %p5336_p0, %p5335_p13 }
  0xc8   : > { %p5331_p12 = pneg %p5330_p11 }
  0xca   : > { %p5338_p5 = pnand %p5337_p2, %p5331_p12 }
  0xcc   : > { %5341 = shalt.err (!%p5338_p5)
}
  0xcd   : > { %4785 = dma.hbm_to_vmem [thread:$0]  (!%p5612_p6), %s6853_s11, 512, %s456_s24, [#allocation18], %s6861_s5, %s6861_s5, %s5484_s6  }
  0xce   : > { %s4294_s15 = sadd.s32 4294967294, %s5478_s26   ;;  %s39_s13 = sadd.s32 1, %s5474_s25 }
  0xcf   : > { %p40_p8 = scmp.ge.s32.totalorder %s39_s13, 2  ;;  %s103_s14 = sadd.s32 1, %s5466_s23 }
  0xd0   : > { %p110_p7 = scmp.ne.s32.totalorder %s5466_s23, %s5462_s22  ;;  %p111_p9 = scmp.eq.s32.totalorder %s5478_s26, 0 }
  0xd1   : > { %s6955_s13 = smov (%p40_p8, %s39_s13), 0  ;;  %p116_p1 = scmp.ne.s32.totalorder %s5462_s22, %s5458_s21 }
  0xd2   : > { %p5799_p4 = por %p111_p9, %p110_p7  ;;  %s98_s24 = ssub.s32 %s5474_s25, %s6955_s13 }
  0xd3   : > { %p331_p6 = scmp.eq.s32.totalorder %s5598_s27, 1  ;;  %p101_p3 = scmp.eq.s32.totalorder %s98_s24, 0 }
  0xd4   : > { %p6893_p10 = scmp.eq.s32.totalorder %s5598_s27, 0  ;;  %p337_p13 = scmp.eq.s32.totalorder %s4294_s15, 1 }
  0xd5   : > { %p5814_p12 = por %p331_p6, %p110_p7  ;;  %p4802_p2 = scmp.lt.s32.totalorder %s5478_s26, 2 }
  0xd6   : > { %p5810_p11 = por %p6893_p10, %p116_p1  ;;  %p5821_p0 = por %p337_p13, %p116_p1 }
  0xd7   : > { %s6895_s18 = scalar_select %p5814_p12, 1, 0 }
  0xd8   : > { %s5819_s30 = scalar_select %p101_p3, %s5466_s23, %s103_s14  }
  0xd9   : > { %s6896_s12 = scalar_select %p5821_p0, 1, 0 }
  0xda   : > { %s469_s0 = sand.u32 1, %s5478_s26   ;;  %s471_s17 = sand.u32 1, %s5466_s23  }
  0xdb   : > { %s4305_s9 = sshll.u32 %s471_s17, 5  ;;  %s4363_s20 = sshll.u32 %s5474_s25, 9 }
  0xdc   : > { %s5832_s24 = scalar_lea.hbm %s6844_s2, %s4363_s20  ;;  %s473_s15 = scalar_lea.vmem [#allocation9], %s4305_s9 }
  0xdd   : > { %s481_s14 = sshll.u32 %s473_s15, 4  ;;  %p5838_p5 = pnand %p4802_p2, %p5799_p4  ;;  %s5834_s14 = int_to_ptr.vmem [resolvable:$true] %s481_s14 }
  0xde   : > { %s5842_s17 = scalar_lea.sflag [#allocation5], %s469_s0  ;;  %s5342_s29 = scalar_lea.hbm %s5832_s24, 512 }
  0xdf   : > { %p5343_p8 = scmp.ne.s32.totalorder %s5832_s24, %s5342_s29  ;;  %p5344_p7 = pneg %p5838_p5 }
  0xe0   : > { %s5347_s1 = scalar_lea.hbm %s6844_s2, 1024  ;;  %p5348_p4 = scmp.lt.u32.totalorder %s5832_s24, %s6844_s2 }
  0xe1   : > { %p5345_p9 = pnand %p5344_p7, %p5343_p8  ;;  %p5349_p6 = scmp.lt.u32.totalorder %s5347_s1, %s5342_s29 }
  0xe2   : > { %p5351_p10 = scmp.lt.u32.totalorder %s5342_s29, %s5832_s24 }
  0xe3   : > { %p5346_p1 = pneg %p5345_p9  ;;  %p5350_p3 = por %p5349_p6, %p5348_p4 }
  0xe5   : > { %p5352_p13 = por %p5351_p10, %p5350_p3 }
  0xe7   : > { %p5353_p2 = pnand %p5352_p13, %p5346_p1 }
  0xe9   : > { %5356 = shalt.err (!%p5353_p2)
}
  0xea   : > { %s5357_s0 = scalar_lea.vmem %s5834_s14, 512  ;;  %s5490_s9 = smov [#allocation9]  }
  0xeb   : > { %p5358_p8 = scmp.ne.s32.totalorder %s5834_s14, %s5357_s0  ;;  %s5362_s20 = sshll.u32 %s5490_s9, 4  ;;  %s5363_s20 = int_to_ptr.vmem [resolvable:$false] %s5362_s20 }
  0xec   : > { %s5364_s19 = scalar_lea.vmem %s5363_s20, 1024  ;;  %p5365_p12 = scmp.lt.s32.totalorder %s5834_s14, %s5363_s20 }
  0xed   : > { %p5360_p9 = pnand %p5358_p8, %p5344_p7  ;;  %p5366_p4 = scmp.lt.s32.totalorder %s5364_s19, %s5357_s0 }
  0xef   : > { %p5361_p0 = pneg %p5360_p9  ;;  %p5367_p6 = por %p5366_p4, %p5365_p12 }
  0xf1   : > { %p5368_p3 = pnand %p5367_p6, %p5361_p0 }
  0xf3   : > { %5371 = shalt.err (!%p5368_p3)
}
  0xf4   : > { %s6898_s29 = smov 128   ;;  %p6899_p7 = scmp.ne.s32.totalorder %s6887_s28, 0 }
  0xf5   : > { %4789 = dma.hbm_to_vmem [thread:$0]  (!%p5838_p5), %s5832_s24, 512, %s5834_s14, %s5842_s17, %s6898_s29, %s6898_s29, %s5484_s6  }
  0xf6   : > { %493 = sbr.rel (%p6899_p7) target bundleno = 7115 (0x1bcb), region = 68 }
  0xfd   : > { %p6900_p1 = scmp.eq.s32.totalorder %s5598_s27, 0 }
  0xff   : > { %5425 = dma.done.wait (%p6900_p1), [#allocation5], 128   ;;  %p6901_p10 = pmov %p6900_p1 }
 0x100   : > { %p6902_p12 = pmov %p6900_p1 }
 0x101   : > { %5427 = vsyncadd (%p6901_p10), [#allocation5], 4294967168 }
 0x102   : > { %5429 = dma.done.wait (%p6902_p12), [#allocation8], 1024   ;;  %p6903_p0 = pmov %p6900_p1 }
 0x103   : > { %s503_s5 = sand.u32 1, %s5598_s27   ;;  %s505_s6 = sand.u32 1, %s5462_s22  }
 0x104   : > { %5431 = vsyncadd (%p6903_p0), [#allocation8], 4294966272  ;;  %s4311_s28 = sshll.u32 %s505_s6, 5  ;;  %s504_s24 = scalar_lea.sflag [#allocation5], %s503_s5 }
 0x105   : > { %s5887_s14 = scalar_lea.vmem [#allocation9], %s4311_s28 }
 0x106   : > { %5433 = dma.done.wait (%p5810_p11), %s504_s24, 512  }
 0x107   : > { %5435 = vsyncadd (%p5810_p11), %s504_s24, 4294966784  ;;  %p6904_p5 = pmov %p6903_p0 }
 0x108   : > { %p6905_p13 = pmov %p6903_p0 }
 0x109   : > { %5437 = dma.done.wait (%p6904_p5), [#allocation8], 512  }
 0x10a   : > { %5439 = vsyncadd (%p6905_p13), [#allocation8], 4294966784  ;;  %p6906_p2 = pmov %p6903_p0 }
 0x10b   : > { %p6907_p8 = pmov %p6903_p0 }
 0x10c   : > { %5441 = dma.done.wait (%p6906_p2), [#allocation12], 528  }
 0x10d   : > { %5443 = vsyncadd (%p6907_p8), [#allocation12], 4294966768  ;;  %p6908_p9 = pmov %p6903_p0 }
 0x10e   : > { %p6909_p4 = pmov %p6903_p0 }
 0x10f   : > { %5445 = dma.done.wait (%p6908_p9), [#allocation15], 272  }
 0x110   : > { %5447 = vsyncadd (%p6909_p4), [#allocation15], 4294967024  ;;  %p6910_p11 = pmov %p6903_p0 }
 0x111   : > { %p6911_p6 = pmov %p6903_p0 }
 0x112   : > { %5449 = dma.done.wait (%p6910_p11), [#allocation18], 512  }
 0x113   : > { %5451 = vsyncadd (%p6911_p6), [#allocation18], 4294966784  ;;  %s5909_s16 = scalar_lea.vmem [#allocation19], %s4311_s28  ;;  %s6912_s17 = sld [smem:[#allocation28_spill]] }
 0x119   : > { %p4319_p3 = scmp.ne.s32.totalorder %s6912_s17, 0 }
 0x11a   : > { %v590_v0 = vld [vmem:[#allocation11] sm:$0xff] (!%p4319_p3)  ;;  %v591_v1 = vld [vmem:[#allocation11 + $0x8] sm:$0xff] (!%p4319_p3)  ;;  %v592_v2 = vld [vmem:[#allocation11 + $0x10] sm:$0xff] (!%p4319_p3)  ;;  %vm580_vm0 = vcmask (!%p4319_p3), 261120  }
 0x11b   : > { %578 = sbr.rel (%p4319_p3) target bundleno = 511 (0x1ff), region = 108  ;;  %v4629_v3 = vpack.c.bf16 (!%p4319_p3), %v591_v1, %v590_v0  ;;  %v593_v4 = vld [vmem:[#allocation11 + $0x18] sm:$0xff] (!%p4319_p3)  ;;  %v582_v6 = vld [vmem:[#allocation7] sm:$0xff] (!%p4319_p3)  ;;  %v583_v9 = vld [vmem:[#allocation7 + $0x8] sm:$0xff] (!%p4319_p3) }
 0x11c   : > { %v579_v5 = vld [vmem:[#allocation4] sm:$0xff] (!%p4319_p3)  ;;  %v4633_v7 = vpack.c.bf16 (!%p4319_p3), %v593_v4, %v592_v2  ;;  %4457 = vmatprep.mubr.msk.f32.mxu0 (!%p4319_p3), %vm580_vm0, %v582_v6  ;;  %v586_v8 = vld [vmem:[#allocation7 + $0x20] sm:$0xff] (!%p4319_p3)  ;;  %v587_v10 = vld [vmem:[#allocation7 + $0x28] sm:$0xff] (!%p4319_p3) }
 0x11d   : > { %581 = vst.msk [vmem:[#allocation2] sm:$0xff] (!%p4319_p3), %vm580_vm0, %v579_v5  ;;  %4630 = vmatprep.subr.bf16.mxu0 (!%p4319_p3), %v4629_v3  ;;  %4721 = vmatprep.subr.bf16.mxu1 (!%p4319_p3), %v4629_v3  ;;  %v584_v11 = vld [vmem:[#allocation7 + $0x10] sm:$0xff] (!%p4319_p3)  ;;  %v585_v13 = vld [vmem:[#allocation7 + $0x18] sm:$0xff] (!%p4319_p3) }
 0x11e   : > { %4632 = vmatpush3.bf16.msra.mxu0 (!%p4319_p3), %v4629_v3  ;;  %4723 = vmatpush3.bf16.msra.mxu1 (!%p4319_p3), %v4629_v3  ;;  %v588_v12 = vld [vmem:[#allocation7 + $0x30] sm:$0xff] (!%p4319_p3)  ;;  %v589_v14 = vld [vmem:[#allocation7 + $0x38] sm:$0xff] (!%p4319_p3) }
 0x11f   : > { %4634 = vmatprep.subr.bf16.mxu0 (!%p4319_p3), %v4633_v7  ;;  %4722 = vmatprep.subr.bf16.mxu1 (!%p4319_p3), %v4633_v7 }
 0x120   : > { %4463 = vmatprep.mubr.msk.f32.mxu1 (!%p4319_p3), %vm580_vm0, %v586_v8 }
 0x122   : > { %4636 = vmatpush3.bf16.msra.mxu0 %v4633_v7  ;;  %4724 = vmatpush3.bf16.msra.mxu1 %v4633_v7 }
 0x125   : > { %4458 = vmatmul.mubr.msk.f32.vlgmr.msra.gmra.mrb[0].mxu0 %vm580_vm0, %v583_v9  ;;  %4464 = vmatmul.mubr.msk.f32.vlgmr.msra.gmra.mrb[0].mxu1 %vm580_vm0, %v587_v10 }
 0x126   : > { %4460 = vmatprep.mubr.msk.f32.mxu0 %vm580_vm0, %v584_v11  ;;  %4466 = vmatprep.mubr.msk.f32.mxu1 %vm580_vm0, %v588_v12 }
 0x129   : > { %4461 = vmatmul.mubr.msk.f32.gmra.mrb[2].mxu0 %vm580_vm0, %v585_v13  ;;  %4467 = vmatmul.mubr.msk.f32.gmra.mrb[2].mxu1 %vm580_vm0, %v589_v14 }
 0x1f8   : > { %v4459_v15 = vpop.f32.mrb[0].mxu0  ;;  %v4465_v16 = vpop.f32.mrb[0].mxu1 }
 0x1f9   : > { %724 = vst.msk [vmem:[#allocation3 + $0x8] sm:$0xff] %vm580_vm0, %v4459_v15  ;;  %728 = vst.msk [vmem:[#allocation3 + $0x28] sm:$0xff] %vm580_vm0, %v4465_v16  ;;  %v684_v17 = vpop.f32.mrb[1].mxu0  ;;  %v704_v18 = vpop.f32.mrb[1].mxu1 }
 0x1fa   : > { %723 = vst.msk [vmem:[#allocation3] sm:$0xff] %vm580_vm0, %v684_v17  ;;  %727 = vst.msk [vmem:[#allocation3 + $0x20] sm:$0xff] %vm580_vm0, %v704_v18 }
 0x1fc   : > { %v4462_v19 = vpop.f32.mrb[2].mxu0  ;;  %v4468_v20 = vpop.f32.mrb[2].mxu1 }
 0x1fd   : > { %726 = vst.msk [vmem:[#allocation3 + $0x18] sm:$0xff] %vm580_vm0, %v4462_v19  ;;  %730 = vst.msk [vmem:[#allocation3 + $0x38] sm:$0xff] %vm580_vm0, %v4468_v20  ;;  %v694_v21 = vpop.f32.mrb[3].mxu0  ;;  %v714_v22 = vpop.f32.mrb[3].mxu1 }
 0x1fe   : > { %725 = vst.msk [vmem:[#allocation3 + $0x10] sm:$0xff] %vm580_vm0, %v694_v21  ;;  %729 = vst.msk [vmem:[#allocation3 + $0x30] sm:$0xff] %vm580_vm0, %v714_v22 }
 0x1ff PF: > { %v747_v23 = vld [vmem:[#allocation10] sm:$0xff]  ;;  %v748_v24 = vld [vmem:[#allocation10 + $0x8] sm:$0xff]  ;;  %v749_v25 = vld [vmem:[#allocation10 + $0x10] sm:$0xff]  ;;  %v6863_v26 = vmov 0.0|0.0   ;;  %vm5492_vm1 = vmmov 0   ;;  %v6865_v29 = vmov 0.0   ;;  %v852_v34 = vlaneseq }
 0x200   : > { %4637 = vmatprep.subr.bf16.mxu0 %v6863_v26  ;;  %v5930_v27 = vpack.c.bf16 %v748_v24, %v747_v23  ;;  %v750_v28 = vld [vmem:[#allocation10 + $0x18] sm:$0xff]  ;;  %4477 = vmatprep.mubr.msk.f32.mxu0 %vm5492_vm1, %v6865_v29  ;;  %vm773_vm2 = vcmask 261120   ;;  %v5494_v32 = vmov 1966171168   ;;  %s6913_s15 = sld [smem:[#allocation39_spill]]  ;;  %v5972_v54 = vld [vmem:[#allocation3 + $0x8] sm:$0xff] }
 0x201   : > { %4643 = vmatprep.subr.bf16.mxu1 %v6863_v26  ;;  %4484 = vmatprep.mubr.msk.f32.mxu1 %vm5492_vm1, %v6865_v29  ;;  %v5938_v30 = vpack.c.bf16 %v750_v28, %v749_v25  ;;  %v5942_v31 = vld [vmem:[#allocation2] sm:$0xff]  ;;  %v850_v33 = vunpack.c.l.s4 %v5494_v32  ;;  %v5950_v36 = vshrl.u32 %v852_v34, 7  ;;  %v5967_v48 = vld [vmem:[#allocation3] sm:$0xff]  ;;  %v5987_v4 = vld [vmem:[#allocation3 + $0x28] sm:$0xff]  ;;  %s6914_s20 = sld [smem:[#allocation38_spill]]  ;;  %vm1033_vm3 = vcmask 1041409  }
 0x202   : > { %4639 = vmatpush3.bf16.msra.mxu0 %v5930_v27  ;;  %v5980_v61 = vld [vmem:[#allocation3 + $0x20] sm:$0xff]  ;;  %vm1035_vm4 = vcmask 1042434   ;;  %vm1037_vm5 = vcmask 1043459   ;;  %vm1039_vm6 = vcmask 1044484   ;;  %vm1041_vm7 = vcmask 1045509   ;;  %s6915_s5 = sld [smem:[#allocation40_spill]] }
 0x203   : > { %4640 = vmatprep.subr.bf16.mxu0 %v6863_v26  ;;  %v851_v35 = vunpack.c.0.s8 %v850_v33  ;;  %v5963_v44 = vsub.s32 0, %v5950_v36  ;;  %vm1043_vm8 = vcmask 1046534   ;;  %vm1045_vm9 = vcmask 1047559   ;;  %s5496_s9 = smov 64   ;;  %s5497_s19 = smov 96  }
 0x204   : > { %v5978_v60 = vld [vmem:[#allocation3 + $0x18] sm:$0xff]  ;;  %vm1048_vm10 = vcmask 64512   ;;  %vm1353_vm11 = vcmask 130048   ;;  %s5498_s29 = smov 32   ;;  %s4128_s0 = sshll.u32 %s5909_s16, 4  ;;  %s6788_s0 = int_to_ptr.vmem [resolvable:$true] %s4128_s0 }
 0x205   : > { %v5958_v38 = vsub.s32 %v851_v35, %v5950_v36  ;;  %v5974_v55 = vld [vmem:[#allocation3 + $0x10] sm:$0xff]  ;;  %v5999_v14 = vld [vmem:[#allocation3 + $0x38] sm:$0xff]  ;;  %s6945_s28 = sld [smem:[#allocation41_spill]]  ;;  %s6795_s17 = scalar_lea.sflag [#allocation6], %s505_s6 }
 0x206   : > { %4642 = vmatpush3.bf16.msra.mxu0 %v5938_v30  ;;  %v5955_v37 = vld [vmem:[%s6913_s15] ss:$0 sm:$0xff]  ;;  %v5992_v8 = vld [vmem:[#allocation3 + $0x30] sm:$0xff]  ;;  %p6946_p1 = scmp.ne.s32.totalorder %s6895_s18, 0  ;;  %s5499_s27 = smov [#allocation19]  }
 0x207   : > { %4652 = vmatprep.subr.bf16.mxu0 %v6863_v26  ;;  %v6005_v16 = vld [vmem:[%s6914_s20] ss:$0 sm:$0xff] }
 0x209   : > { %4478 = vmatmul.mubr.msk.f32.vlgmr.msra.gmra.mrb[0].mxu0 %vm773_vm2, %v5942_v31 }
 0x20a   : > { %4506 = vmatprep.mubr.msk.f32.mxu0 %vm5492_vm1, %v6865_v29 }
 0x2dc   : > { %v843_v39 = vpop.f32.mrb[0].mxu0 }
 0x2dd   : > { %v844_v40 = vadd.f32 %v5955_v37, %v843_v39  ;;  %v4479_v41 = vpop.f32.mrb[1].mxu0 }
 0x2df   : > { %v848_v42 = vcombine.high %v844_v40, %v844_v40  ;;  %v855_v43 = vrot.slane %v844_v40, %v5958_v38 }
 0x2e1   : > { %v862_v45 = vrot.slane %v848_v42, %v5958_v38  ;;  %v863_v46 = vcombine.high %v855_v43, %v855_v43  ;;  %v871_v47 = vrot.slane %v855_v43, %v5958_v38 }
 0x2e3   : > { %v864_v49 = vcombine.high %v862_v45, %v862_v45  ;;  %v878_v50 = vrot.slane %v862_v45, %v5958_v38  ;;  %v885_v51 = vrot.slane %v863_v46, %v5958_v38  ;;  %v893_v52 = vcombine.high %v871_v47, %v871_v47 }
 0x2e4   : > { %v900_v53 = vrot.slane %v871_v47, %v5963_v44 }
 0x2e5   : > { %v892_v56 = vrot.slane %v864_v49, %v5958_v38  ;;  %v894_v57 = vcombine.high %v878_v50, %v878_v50  ;;  %v895_v58 = vcombine.high %v885_v51, %v885_v51  ;;  %v904_v59 = vrot.slane %v885_v51, %v5963_v44 }
 0x2e6   : > { %v908_v62 = vrot.slane %v893_v52, %v5963_v44  ;;  %v916_v63 = vrot.slane %v878_v50, %v5963_v44  ;;  %v937_v0 = vadd.f32 %v900_v53, %v5967_v48  ;;  %v1000_v52 = vand.u32 127, %v852_v34 }
 0x2e7   : > { %v896_v1 = vcombine.high %v892_v56, %v892_v56  ;;  %v912_v2 = vrot.slane %v895_v58, %v5963_v44  ;;  %v920_v3 = vrot.slane %v892_v56, %v5963_v44  ;;  %v924_v5 = vrot.slane %v894_v57, %v5963_v44 }
 0x2e8   : > { %v938_v6 = vadd.f32 %v904_v59, %v5972_v54  ;;  %v939_v7 = vadd.f32 %v908_v62, %v5974_v55  ;;  %4882 = vtanh.f32 %v937_v0  ;;  %v941_v10 = vadd.f32 %v916_v63, %v5980_v61 }
 0x2e9   : > { %v940_v9 = vadd.f32 %v912_v2, %v5978_v60  ;;  %v928_v11 = vrot.slane %v896_v1, %v5963_v44  ;;  %v942_v12 = vadd.f32 %v920_v3, %v5987_v4  ;;  %v943_v13 = vadd.f32 %v924_v5, %v5992_v8 }
 0x2ea   : > { %4884 = vtanh.f32 %v938_v6  ;;  %v6025_v56 = vsub.s32 %v1000_v52, %v5950_v36 }
 0x2eb   : > { %4886 = vtanh.f32 %v939_v7  ;;  %v944_v15 = vadd.f32 %v928_v11, %v5999_v14 }
 0x2ec   : > { %4888 = vtanh.f32 %v940_v9 }
 0x2ed   : > { %4890 = vtanh.f32 %v941_v10 }
 0x2ee   : > { %4892 = vtanh.f32 %v942_v12 }
 0x2ef   : > { %4894 = vtanh.f32 %v943_v13 }
 0x2f0   : > { %4896 = vtanh.f32 %v944_v15 }
 0x2f2   : > { %v4883_v17 = vpop.eup %4882 }
 0x2f3   : > { %v959_v18 = vmul.f32 %v4883_v17, %v6005_v16 }
 0x2f4   : > { %v4885_v19 = vpop.eup %4884 }
 0x2f5   : > { %v4887_v20 = vpop.eup %4886  ;;  %v967_v21 = vsel %vm773_vm2, %v959_v18, 0.0  ;;  %v960_v22 = vmul.f32 %v4885_v19, %v6005_v16 }
 0x2f6   : > { %v4889_v23 = vpop.eup %4888  ;;  %968 = vadd.xlane.f32.xlu0 %v967_v21  ;;  %v961_v24 = vmul.f32 %v4887_v20, %v6005_v16  ;;  %v5495_v21 = vmov 0  }
 0x2f7   : > { %v4891_v25 = vpop.eup %4890  ;;  %v962_v32 = vmul.f32 %v4889_v23, %v6005_v16  ;;  %v970_v35 = vsel %vm773_vm2, %v960_v22, 0.0  ;;  %4881 = vset.pattern.permute.xlu0 %v5495_v21  ;;  %4880 = vset.pattern.permute.xlu1 %v5495_v21  ;;  %v6044_v22 = vsub.s32 1, %v5950_v36  ;;  %v6047_v23 = vsub.s32 2, %v5950_v36 }
 0x2f8   : > { %v973_v28 = vsel %vm773_vm2, %v961_v24, 0.0  ;;  %v4893_v33 = vpop.eup %4892  ;;  %v963_v39 = vmul.f32 %v4891_v25, %v6005_v16  ;;  %v6050_v24 = vsub.s32 3, %v5950_v36 }
 0x2f9   : > { %974 = vadd.xlane.f32.xlu1 %v973_v28  ;;  %v4895_v40 = vpop.eup %4894  ;;  %v976_v41 = vsel %vm773_vm2, %v962_v32, 0.0  ;;  %v964_v42 = vmul.f32 %v4893_v33, %v6005_v16 }
 0x2fa   : > { %971 = vadd.xlane.f32.xlu0 %v970_v35  ;;  %v4897_v43 = vpop.eup %4896  ;;  %v979_v45 = vsel %vm773_vm2, %v963_v39, 0.0  ;;  %v965_v46 = vmul.f32 %v4895_v40, %v6005_v16  ;;  %v6056_v40 = vsub.s32 4, %v5950_v36 }
 0x2fb   : > { %v982_v47 = vsel %vm773_vm2, %v964_v42, 0.0  ;;  %v966_v49 = vmul.f32 %v4897_v43, %v6005_v16 }
 0x2fc   : > { %v985_v50 = vsel %vm773_vm2, %v965_v46, 0.0  ;;  %v6060_v46 = vsub.s32 5, %v5950_v36 }
 0x2fd   : > { %977 = vadd.xlane.f32.xlu1 %v976_v41  ;;  %v988_v51 = vsel %vm773_vm2, %v966_v49, 0.0 }
 0x2fe   : > { %980 = vadd.xlane.f32.xlu0 %v979_v45 }
 0x301   : > { %983 = vadd.xlane.f32.xlu1 %v982_v47 }
 0x302   : > { %986 = vadd.xlane.f32.xlu0 %v985_v50 }
 0x305   : > { %989 = vadd.xlane.f32.xlu1 %v988_v51  ;;  %v6064_v51 = vsub.s32 6, %v5950_v36 }
 0x383   : > { %v969_v53 = vpop.xlane.xlu0 %968 }
 0x384   : > { %v1004_v59 = vrot.slane %v969_v53, %v6025_v56 }
 0x386   : > { %v975_v57 = vpop.xlane.xlu1 %974 }
 0x387   : > { %v972_v58 = vpop.xlane.xlu0 %971  ;;  %v1012_v63 = vrot.slane %v975_v57, %v6025_v56 }
 0x388   : > { %v1008_v62 = vrot.slane %v972_v58, %v6025_v56 }
 0x38a   : > { %v1034_v0 = vsel %vm1033_vm3, %v1008_v62, %v1004_v59  ;;  %v978_v1 = vpop.xlane.xlu1 %977 }
 0x38b   : > { %v1016_v34 = vrot.slane %v978_v1, %v6025_v56  ;;  %v1036_v2 = vsel %vm1035_vm4, %v1012_v63, %v1034_v0  ;;  %v981_v3 = vpop.xlane.xlu0 %980 }
 0x38c   : > { %v1020_v5 = vrot.slane %v981_v3, %v6025_v56 }
 0x38d   : > { %v1038_v6 = vsel %vm1037_vm5, %v1016_v34, %v1036_v2 }
 0x38e   : > { %v1040_v7 = vsel %vm1039_vm6, %v1020_v5, %v1038_v6  ;;  %v984_v9 = vpop.xlane.xlu1 %983 }
 0x38f   : > { %v1024_v10 = vrot.slane %v984_v9, %v6025_v56  ;;  %v987_v11 = vpop.xlane.xlu0 %986 }
 0x390   : > { %v1028_v12 = vrot.slane %v987_v11, %v6025_v56 }
 0x391   : > { %v1042_v13 = vsel %vm1041_vm7, %v1024_v10, %v1040_v7 }
 0x392   : > { %v990_v15 = vpop.xlane.xlu1 %989  ;;  %v1044_v17 = vsel %vm1043_vm8, %v1028_v12, %v1042_v13 }
 0x393   : > { %v1032_v18 = vrot.slane %v990_v15, %v6025_v56 }
 0x395   : > { %v1046_v19 = vsel %vm1045_vm9, %v1032_v18, %v1044_v17 }
 0x396   : > { %v1049_v20 = vsel %vm1048_vm10, %v1046_v19, -inf }
 0x397   : > { %1050 = vmax.xlane.f32.xlu0 %v1049_v20 }
 0x424   : > { %v1051_v25 = vpop.xlane.xlu0 %1050 }
 0x425   : > { %v1056_v28 = vrot.slane %v1051_v25, %v5963_v44  ;;  %v1060_v32 = vrot.slane %v1051_v25, %v6044_v22  ;;  %v1064_v33 = vrot.slane %v1051_v25, %v6047_v23  ;;  %v1068_v41 = vrot.slane %v1051_v25, %v6050_v24 }
 0x426   : > { %v1072_v47 = vrot.slane %v1051_v25, %v6056_v40  ;;  %v1076_v52 = vrot.slane %v1051_v25, %v6060_v46  ;;  %v1080_v59 = vrot.slane %v1051_v25, %v6064_v51 }
 0x427   : > { %v1094_v35 = vsub.f32 %v972_v58, %v1060_v32  ;;  %v1093_v39 = vsub.f32 %v969_v53, %v1056_v28  ;;  %v1095_v42 = vsub.f32 %v975_v57, %v1064_v33  ;;  %v1096_v50 = vsub.f32 %v978_v1, %v1068_v41 }
 0x428   : > { %v1097_v58 = vsub.f32 %v981_v3, %v1072_v47  ;;  %v6068_v57 = vsub.s32 7, %v5950_v36  ;;  %v1098_v63 = vsub.f32 %v984_v9, %v1076_v52  ;;  %v1099_v3 = vsub.f32 %v987_v11, %v1080_v59 }
 0x429   : > { %v1103_v43 = vmul.f32 1.442695, %v1094_v35  ;;  %v1101_v45 = vmul.f32 1.442695, %v1093_v39  ;;  %v1105_v49 = vmul.f32 1.442695, %v1095_v42 }
 0x42a   : > { %v1107_v53 = vmul.f32 1.442695, %v1096_v50  ;;  %v1109_v62 = vmul.f32 1.442695, %v1097_v58  ;;  %v1084_v1 = vrot.slane %v1051_v25, %v6068_v57  ;;  %v1111_v2 = vmul.f32 1.442695, %v1098_v63 }
 0x42b   : > { %4898 = vpow2.f32 %v1103_v43  ;;  %v1113_v5 = vmul.f32 1.442695, %v1099_v3  ;;  %v761_v63 = vld [vmem:[#allocation17] sm:$0xff] }
 0x42c   : > { %4900 = vpow2.f32 %v1101_v45  ;;  %v1100_v6 = vsub.f32 %v990_v15, %v1084_v1  ;;  %v762_v1 = vld [vmem:[#allocation17 + $0x8] sm:$0xff] }
 0x42d   : > { %4902 = vpow2.f32 %v1105_v49  ;;  %v6112_v3 = vpack.c.bf16 %v762_v1, %v761_v63  ;;  %v758_v63 = vld [vmem:[%s6915_s5 + $0x18] sm:$0xff] }
 0x42e   : > { %4904 = vpow2.f32 %v1107_v53  ;;  %v1115_v9 = vmul.f32 1.442695, %v1100_v6 }
 0x42f   : > { %4906 = vpow2.f32 %v1109_v62  ;;  %4654 = vmatpush3.bf16.msra.mxu0 %v6112_v3 }
 0x430   : > { %4908 = vpow2.f32 %v1111_v2  ;;  %v763_v2 = vld [vmem:[#allocation17 + $0x10] sm:$0xff]  ;;  %4655 = vmatprep.subr.bf16.mxu0 %v6863_v26 }
 0x431   : > { %4910 = vpow2.f32 %v1113_v5  ;;  %v764_v5 = vld [vmem:[#allocation17 + $0x18] sm:$0xff] }
 0x432   : > { %4912 = vpow2.f32 %v1115_v9  ;;  %v6115_v6 = vpack.c.bf16 %v764_v5, %v763_v2  ;;  %v6170_v2 = vld [vmem:[#allocation14] ss:$0 sm:$0xff] }
 0x434   : > { %4657 = vmatpush3.bf16.msra.mxu0 %v6115_v6 }
 0x435   : > { %v6071_v0 = vpop.eup %4898  ;;  %4664 = vmatprep.subr.bf16.mxu0 %v6863_v26 }
 0x436   : > { %v6073_v34 = vpop.eup %4900  ;;  %1129 = vperm.xlu0 %4881, %v6071_v0  }
 0x437   : > { %1126 = vperm.xlu1 %4880, %v6073_v34   ;;  %v6078_v36 = vpop.eup %4902  ;;  %4507 = vmatmul.mubr.msk.f32.vlgmr.msra.gmra.mrb[2].mxu0 %vm773_vm2, %v5942_v31 }
 0x438   : > { %v6081_v7 = vpop.eup %4904  ;;  %4524 = vmatprep.mubr.msk.f32.mxu0 %vm5492_vm1, %v6865_v29 }
 0x439   : > { %v6084_v10 = vpop.eup %4906 }
 0x43a   : > { %v6087_v12 = vpop.eup %4908 }
 0x43b   : > { %1132 = vperm.xlu1 %4880, %v6078_v36   ;;  %v6090_v11 = vpop.eup %4910 }
 0x43c   : > { %v6093_v13 = vpop.eup %4912 }
 0x43f   : > { %1135 = vperm.xlu1 %4880, %v6081_v7  }
 0x443   : > { %1138 = vperm.xlu1 %4880, %v6084_v10  }
 0x447   : > { %1141 = vperm.xlu1 %4880, %v6087_v12  }
 0x44b   : > { %1144 = vperm.xlu1 %4880, %v6090_v11  }
 0x44f   : > { %1147 = vperm.xlu1 %4880, %v6093_v13  }
 0x4b5   : > { %v1130_v20 = vpop.permute.xlu0 %1129 }
 0x4b6   : > { %v1127_v15 = vpop.permute.xlu1 %1126  ;;  %v1156_v25 = vrot.slane %v1130_v20, %v6025_v56 }
 0x4b7   : > { %v1152_v28 = vrot.slane %v1127_v15, %v6025_v56 }
 0x4b9   : > { %v1181_v41 = vsel %vm1033_vm3, %v1156_v25, %v1152_v28 }
 0x4ba   : > { %v1133_v17 = vpop.permute.xlu1 %1132 }
 0x4bb   : > { %v1160_v32 = vrot.slane %v1133_v17, %v6025_v56 }
 0x4bd   : > { %v1182_v43 = vsel %vm1035_vm4, %v1160_v32, %v1181_v41 }
 0x4be   : > { %v1136_v18 = vpop.permute.xlu1 %1135 }
 0x4bf   : > { %v1164_v33 = vrot.slane %v1136_v18, %v6025_v56 }
 0x4c1   : > { %v1183_v47 = vsel %vm1037_vm5, %v1164_v33, %v1182_v43 }
 0x4c2   : > { %v1139_v19 = vpop.permute.xlu1 %1138 }
 0x4c3   : > { %v1168_v35 = vrot.slane %v1139_v19, %v6025_v56 }
 0x4c5   : > { %v1184_v49 = vsel %vm1039_vm6, %v1168_v35, %v1183_v47 }
 0x4c6   : > { %v1142_v21 = vpop.permute.xlu1 %1141 }
 0x4c7   : > { %v1172_v42 = vrot.slane %v1142_v21, %v6025_v56 }
 0x4c9   : > { %v1185_v53 = vsel %vm1041_vm7, %v1172_v42, %v1184_v49 }
 0x4ca   : > { %v1145_v39 = vpop.permute.xlu1 %1144 }
 0x4cb   : > { %v1176_v45 = vrot.slane %v1145_v39, %v6025_v56 }
 0x4cd   : > { %v1186_v58 = vsel %vm1043_vm8, %v1176_v45, %v1185_v53 }
 0x4ce   : > { %v1148_v50 = vpop.permute.xlu1 %1147 }
 0x4cf   : > { %v1180_v52 = vrot.slane %v1148_v50, %v6025_v56 }
 0x4d1   : > { %v1187_v59 = vsel %vm1045_vm9, %v1180_v52, %v1186_v58  ;;  %v760_v58 = vld [vmem:[#allocation16 + $0x8] sm:$0xff] }
 0x4d2   : > { %v1189_v62 = vsel %vm1048_vm10, %v1187_v59, 0.0 }
 0x4d3   : > { %1190 = vadd.xlane.f32.xlu1 %v1189_v62  ;;  %v757_v62 = vld [vmem:[%s6915_s5 + $0x10] sm:$0xff] }
 0x4d4   : > { %v6163_v1 = vpack.c.bf16 %v758_v63, %v757_v62 }
 0x50a   : > { %v1593_v5 = vpop.f32.mrb[2].mxu0 }
 0x560   : > { %v1191_v9 = vpop.xlane.xlu1 %1190 }
 0x561   : > { %v1196_v15 = vrot.slane %v1191_v9, %v5963_v44  ;;  %v1200_v17 = vrot.slane %v1191_v9, %v6044_v22  ;;  %v1204_v18 = vrot.slane %v1191_v9, %v6047_v23  ;;  %v1208_v19 = vrot.slane %v1191_v9, %v6050_v24 }
 0x562   : > { %v1212_v21 = vrot.slane %v1191_v9, %v6056_v40  ;;  %v1216_v32 = vrot.slane %v1191_v9, %v6060_v46  ;;  %v1220_v39 = vrot.slane %v1191_v9, %v6064_v51  ;;  %v1224_v43 = vrot.slane %v1191_v9, %v6068_v57 }
 0x563   : > { %4914 = vrcp.f32 %v1196_v15  ;;  %v6173_v9 = vadd.f32 %v6170_v2, %v1593_v5  ;;  %v4508_v15 = vpop.f32.mrb[3].mxu0 }
 0x564   : > { %4916 = vrcp.f32 %v1200_v17 }
 0x565   : > { %4918 = vrcp.f32 %v1204_v18  ;;  %1605 = vrot.lane.b32.xlu1 %v6173_v9, %s5496_s9 }
 0x566   : > { %4920 = vrcp.f32 %v1208_v19  ;;  %v6177_v19 = vld [vmem:[#allocation7 + $0x8] sm:$0xff] }
 0x567   : > { %4922 = vrcp.f32 %v1212_v21  ;;  %v6181_v21 = vld [vmem:[#allocation7 + $0x10] sm:$0xff] }
 0x568   : > { %4924 = vrcp.f32 %v1216_v32  ;;  %6916 = vst [vmem:[#allocation29_spill] sm:$0xff] %v6181_v21 }
 0x569   : > { %4926 = vrcp.f32 %v1220_v39 }
 0x56a   : > { %4928 = vrcp.f32 %v1224_v43 }
 0x56d   : > { %v4915_v20 = vpop.eup %4914 }
 0x56e   : > { %v1234_v25 = vmul.f32 %v4915_v20, %v6073_v34  ;;  %v4917_v28 = vpop.eup %4916  ;;  %v6179_v20 = vld [vmem:[#allocation7] sm:$0xff] }
 0x56f   : > { %v1236_v33 = vmul.f32 %v4917_v28, %v6071_v0  ;;  %v4919_v35 = vpop.eup %4918 }
 0x570   : > { %1251 = vperm.xlu0 %4881, %v1234_v25   ;;  %v1238_v41 = vmul.f32 %v4919_v35, %v6078_v36  ;;  %v4921_v42 = vpop.eup %4920  ;;  %v6186_v35 = vld [vmem:[#allocation7 + $0x18] sm:$0xff] }
 0x571   : > { %v1240_v34 = vmul.f32 %v4921_v42, %v6081_v7  ;;  %v4923_v45 = vpop.eup %4922  ;;  %v759_v7 = vld [vmem:[#allocation16] sm:$0xff]  ;;  %6917 = vst [vmem:[#allocation30_spill] sm:$0xff] %v6186_v35 }
 0x572   : > { %v1242_v47 = vmul.f32 %v4923_v45, %v6084_v10  ;;  %v4925_v0 = vpop.eup %4924  ;;  %v6140_v59 = vpack.c.bf16 %v760_v58, %v759_v7  ;;  %v766_v10 = vld [vmem:[%s5887_s14] sm:$0xff]  ;;  %v6196_v58 = vld [vmem:[#allocation7 + $0x28] sm:$0xff] }
 0x573   : > { %v1244_v49 = vmul.f32 %v4925_v0, %v6087_v12  ;;  %v4927_v50 = vpop.eup %4926  ;;  %v755_v12 = vld [vmem:[%s6915_s5] sm:$0xff]  ;;  %6919 = vst [vmem:[#allocation32_spill] sm:$0xff] %v6196_v58 }
 0x574   : > { %1256 = vperm.xlu0 %4881, %v1236_v33   ;;  %v1246_v36 = vmul.f32 %v4927_v50, %v6090_v11  ;;  %v4929_v52 = vpop.eup %4928  ;;  %4645 = vmatpush3.bf16.msra.mxu1 %v6140_v59  ;;  %v756_v11 = vld [vmem:[%s6915_s5 + $0x8] sm:$0xff] }
 0x575   : > { %v1248_v53 = vmul.f32 %v4929_v52, %v6093_v13  ;;  %4666 = vmatpush3.bf16.msra.mxu0 %v6140_v59  ;;  %4646 = vmatprep.subr.bf16.mxu1 %v6863_v26  ;;  %v6153_v13 = vpack.c.bf16 %v756_v11, %v755_v12 }
 0x576   : > { %4667 = vmatprep.subr.bf16.mxu0 %v6863_v26 }
 0x577   : > { %4485 = vmatmul.mubr.msk.f32.vlgmr.msra.gmra.mrb[0].mxu1 %vm1353_vm11, %v766_v10 }
 0x578   : > { %1261 = vperm.xlu0 %4881, %v1238_v41   ;;  %4648 = vmatpush3.bf16.msra.mxu1 %v6153_v13 }
 0x579   : > { %4495 = vmatprep.mubr.msk.f32.mxu1 %vm5492_vm1, %v6865_v29  ;;  %4649 = vmatprep.subr.bf16.mxu1 %v6863_v26 }
 0x57c   : > { %1266 = vperm.xlu0 %4881, %v1240_v34   ;;  %4651 = vmatpush3.bf16.msra.mxu1 %v6163_v1 }
 0x57d   : > { %4658 = vmatprep.subr.bf16.mxu1 %v6863_v26 }
 0x580   : > { %1271 = vperm.xlu0 %4881, %v1242_v47   ;;  %v6192_v47 = vld [vmem:[#allocation7 + $0x20] sm:$0xff] }
 0x581   : > { %6918 = vst [vmem:[#allocation31_spill] sm:$0xff] %v6192_v47 }
 0x584   : > { %1276 = vperm.xlu0 %4881, %v1244_v49  }
 0x588   : > { %1281 = vperm.xlu0 %4881, %v1246_v36  }
 0x58c   : > { %1286 = vperm.xlu0 %4881, %v1248_v53  }
 0x5ef   : > { %v1252_v17 = vpop.permute.xlu0 %1251 }
 0x5f0   : > { %v1289_v32 = vmul.f32 %v1252_v17, %v6179_v20 }
 0x5f2   : > { %v1297_v43 = vsel %vm773_vm2, %v1289_v32, 0.0 }
 0x5f3   : > { %v1257_v18 = vpop.permute.xlu0 %1256  ;;  %v1298_v50 = vrot.slane %v1297_v43, 4 }
 0x5f4   : > { %v1290_v25 = vmul.f32 %v1257_v18, %v6177_v19 }
 0x5f5   : > { %v1299_v11 = vadd.f32 %v1298_v50, %v1297_v43 }
 0x5f6   : > { %v1304_v39 = vsel %vm773_vm2, %v1290_v25, 0.0  ;;  %v6200_v25 = vld [vmem:[#allocation7 + $0x30] sm:$0xff] }
 0x5f7   : > { %v1262_v28 = vpop.permute.xlu0 %1261  ;;  %v1305_v45 = vrot.slane %v1304_v39, 4  ;;  %6920 = vst [vmem:[#allocation33_spill] sm:$0xff] %v6200_v25 }
 0x5f8   : > { %v1291_v33 = vmul.f32 %v1262_v28, %v6181_v21 }
 0x5f9   : > { %v1306_v7 = vadd.f32 %v1305_v45, %v1304_v39 }
 0x5fa   : > { %v1311_v41 = vsel %vm773_vm2, %v1291_v33, 0.0  ;;  %v1300_v33 = vrot.slane %v1299_v11, 2 }
 0x5fb   : > { %v1267_v42 = vpop.permute.xlu0 %1266  ;;  %v1312_v0 = vrot.slane %v1311_v41, 4  ;;  %v1307_v17 = vrot.slane %v1306_v7, 2 }
 0x5fc   : > { %v1292_v34 = vmul.f32 %v1267_v42, %v6186_v35 }
 0x5fd   : > { %v1313_v10 = vadd.f32 %v1312_v0, %v1311_v41  ;;  %v1308_v43 = vadd.f32 %v1307_v17, %v1306_v7 }
 0x5fe   : > { %v1318_v49 = vsel %vm773_vm2, %v1292_v34, 0.0 }
 0x5ff   : > { %v1319_v36 = vrot.slane %v1318_v49, 4  ;;  %v1272_v52 = vpop.permute.xlu0 %1271  ;;  %v1314_v28 = vrot.slane %v1313_v10, 2  ;;  %v1309_v29 = vrot.slane %v1308_v43, 1 }
 0x600   : > { %v1293_v53 = vmul.f32 %v1272_v52, %v6192_v47  ;;  %v1301_v52 = vadd.f32 %v1300_v33, %v1299_v11 }
 0x601   : > { %v1320_v62 = vadd.f32 %v1319_v36, %v1318_v49  ;;  %v6204_v49 = vld [vmem:[#allocation7 + $0x38] sm:$0xff]  ;;  %v1315_v50 = vadd.f32 %v1314_v28, %v1313_v10 }
 0x602   : > { %v1325_v12 = vsel %vm773_vm2, %v1293_v53, 0.0  ;;  %6921 = vst [vmem:[#allocation34_spill] sm:$0xff] %v6204_v49  ;;  %v1302_v17 = vrot.slane %v1301_v52, 1 }
 0x603   : > { %v1326_v63 = vrot.slane %v1325_v12, 4  ;;  %v1277_v5 = vpop.permute.xlu0 %1276  ;;  %v1321_v39 = vrot.slane %v1320_v62, 2  ;;  %v1316_v35 = vrot.slane %v1315_v50, 1 }
 0x604   : > { %v1294_v15 = vmul.f32 %v1277_v5, %v6196_v58 }
 0x605   : > { %v1327_v18 = vadd.f32 %v1326_v63, %v1325_v12  ;;  %v1322_v53 = vadd.f32 %v1321_v39, %v1320_v62  ;;  %v1317_v39 = vadd.f32 %v1316_v35, %v1315_v50 }
 0x606   : > { %v1332_v32 = vsel %vm773_vm2, %v1294_v15, 0.0 }
 0x607   : > { %v1333_v42 = vrot.slane %v1332_v32, 4  ;;  %v1282_v34 = vpop.permute.xlu0 %1281  ;;  %v1328_v41 = vrot.slane %v1327_v18, 2 }
 0x608   : > { %v1295_v45 = vmul.f32 %v1282_v34, %v6200_v25  ;;  %v1310_v34 = vadd.f32 %v1309_v29, %v1308_v43 }
 0x609   : > { %v1334_v0 = vadd.f32 %v1333_v42, %v1332_v32  ;;  %v1329_v15 = vadd.f32 %v1328_v41, %v1327_v18  ;;  %v1323_v32 = vrot.slane %v1322_v53, 1 }
 0x60a   : > { %v1339_v36 = vsel %vm773_vm2, %v1295_v45, 0.0  ;;  %v1303_v45 = vadd.f32 %v1302_v17, %v1301_v52  ;;  %v6923_v52 = vmov 0.0|0.0  }
 0x60b   : > { %v1335_v12 = vrot.slane %v1334_v0, 2  ;;  %v1340_v63 = vrot.slane %v1339_v36, 4  ;;  %v1287_v5 = vpop.permute.xlu0 %1286  ;;  %v1330_v28 = vrot.slane %v1329_v15, 1  ;;  %v1324_v18 = vadd.f32 %v1323_v32, %v1322_v53 }
 0x60c   : > { %v1296_v26 = vmul.f32 %v1287_v5, %v6204_v49 }
 0x60d   : > { %v1336_v58 = vadd.f32 %v1335_v12, %v1334_v0  ;;  %v1341_v47 = vadd.f32 %v1340_v63, %v1339_v36  ;;  %v1331_v49 = vadd.f32 %v1330_v28, %v1329_v15  ;;  %v1435_v0 = vsel %vm1033_vm3, %v1310_v34, %v1303_v45  ;;  %v1606_v34 = vpop.permute.xlu1 %1605 }
 0x60e   : > { %v1346_v7 = vsel %vm773_vm2, %v1296_v26, 0.0  ;;  %v1436_v26 = vsel %vm1035_vm4, %v1317_v39, %v1435_v0 }
 0x60f   : > { %v1342_v42 = vrot.slane %v1341_v47, 2  ;;  %v1347_v10 = vrot.slane %v1346_v7, 4  ;;  %v1337_v11 = vrot.slane %v1336_v58, 1  ;;  %v1437_v25 = vsel %vm1037_vm5, %v1324_v18, %v1436_v26 }
 0x610   : > { %v1438_v29 = vsel %vm1039_vm6, %v1331_v49, %v1437_v25  ;;  %v6223_v49 = vld [vmem:[#allocation13] ss:$0 sm:$0xff] }
 0x611   : > { %v1343_v62 = vadd.f32 %v1342_v42, %v1341_v47  ;;  %v1348_v33 = vadd.f32 %v1347_v10, %v1346_v7  ;;  %v1338_v36 = vadd.f32 %v1337_v11, %v1336_v58  ;;  %v6922_v58 = vmov 0.0  }
 0x613   : > { %v1344_v41 = vrot.slane %v1343_v62, 1  ;;  %v1349_v5 = vrot.slane %v1348_v33, 2  ;;  %v1439_v35 = vsel %vm1041_vm7, %v1338_v36, %v1438_v29 }
 0x615   : > { %v1350_v12 = vadd.f32 %v1349_v5, %v1348_v33  ;;  %v1345_v63 = vadd.f32 %v1344_v41, %v1343_v62 }
 0x617   : > { %v1351_v21 = vrot.slane %v1350_v12, 1  ;;  %v1440_v43 = vsel %vm1043_vm8, %v1345_v63, %v1439_v35 }
 0x619   : > { %v1352_v47 = vadd.f32 %v1351_v21, %v1350_v12 }
 0x61b   : > { %v1441_v50 = vsel %vm1045_vm9, %v1352_v47, %v1440_v43 }
 0x61c   : > { %4496 = vmatmul.mubr.msk.f32.vlgmr.msra.gmra.mrb[2].mxu1 %vm773_vm2, %v1441_v50 }
 0x61d   : > { %4660 = vmatpush3.bf16.msra.mxu1 %v5930_v27  ;;  %4517 = vmatprep.mubr.msk.f32.mxu1 %vm5492_vm1, %v6922_v58 }
 0x61e   : > { %4661 = vmatprep.subr.bf16.mxu1 %v6923_v52 }
 0x621   : > { %4663 = vmatpush3.bf16.msra.mxu1 %v5938_v30 }
 0x622   : > { %4673 = vmatprep.subr.bf16.mxu1 %v6923_v52 }
 0x64a   : > { %v1423_v21 = vpop.f32.mrb[0].mxu1 }
 0x64b   : > { %v4486_v25 = vpop.f32.mrb[1].mxu1 }
 0x6ef   : > { %v1510_v53 = vpop.f32.mrb[2].mxu1 }
 0x6f0   : > { %v1511_v15 = vadd.f32 %v1510_v53, %v1423_v21  ;;  %v4497_v7 = vpop.f32.mrb[3].mxu1 }
 0x6f2   : > { %v1520_v17 = vadd.f32 %v6223_v49, %v1511_v15 }
 0x6f4   : > { %v1597_v32 = vadd.f32 %v6173_v9, %v1520_v17 }
 0x6f6   : > { %v4336_v42 = vmul.f32 -1.442695, %v1597_v32 }
 0x6f8   : > { %4930 = vpow2.f32 %v4336_v42 }
 0x702   : > { %v4931_v10 = vpop.eup %4930 }
 0x703   : > { %v1601_v28 = vadd.f32 1.0, %v4931_v10 }
 0x705   : > { %4932 = vrcp.f32 %v1601_v28 }
 0x70f   : > { %v4933_v11 = vpop.eup %4932 }
 0x710   : > { %v1608_v62 = vmul.f32 %v4933_v11, %v1606_v34  ;;  %v1615_v18 = vsub.f32 1.0, %v4933_v11 }
 0x712   : > { %1610 = vrot.lane.b32.xlu0 %v1608_v62, %s5496_s9 }
 0x784   : > { %v1611_v33 = vpop.permute.xlu0 %1610 }
 0x785   : > { %v1613_v39 = vadd.f32 %v1611_v33, %v1520_v17 }
 0x787   : > { %4934 = vtanh.f32 %v1613_v39 }
 0x791   : > { %v4935_v45 = vpop.eup %4934 }
 0x792   : > { %1617 = vrot.lane.b32.xlu0 %v4935_v45, %s5497_s19 }
 0x796   : > { %1621 = vrot.lane.b32.xlu0 %v5942_v31, %s5498_s29 }
 0x804   : > { %v1618_v9 = vpop.permute.xlu0 %1617 }
 0x805   : > { %v1620_v5 = vmul.f32 %v1618_v9, %v1615_v18 }
 0x808   : > { %v1622_v41 = vpop.permute.xlu0 %1621 }
 0x809   : > { %v1624_v0 = vmul.f32 %v4933_v11, %v1622_v41 }
 0x80b   : > { %v6230_v36 = vadd.f32 %v1624_v0, %v1620_v5 }
 0x80d   : > { %1627 = vrot.lane.b32.xlu0 %v6230_v36, %s5497_s19 }
 0x87f   : > { %v1628_v12 = vpop.permute.xlu0 %1627 }
 0x880   : > { %1630 = vst.msk [vmem:[%s5909_s16] sm:$0xff] %vm773_vm2, %v1628_v12  ;;  %4518 = vmatmul.mubr.msk.f32.vlgmr.msra.gmra.mrb[4].mxu1 %vm773_vm2, %v1628_v12 }
 0x881   : > { %4675 = vmatpush3.bf16.msra.mxu1 %v6112_v3  ;;  %4546 = vmatprep.mubr.msk.f32.mxu1 %vm5492_vm1, %v6922_v58 }
 0x882   : > { %4676 = vmatprep.subr.bf16.mxu1 %v6923_v52 }
 0x885   : > { %4678 = vmatpush3.bf16.msra.mxu1 %v6115_v6 }
 0x886   : > { %4685 = vmatprep.subr.bf16.mxu1 %v6923_v52 }
 0x888   : > { %4547 = vmatmul.mubr.msk.f32.vlgmr.msra.gmra.mrb[6].mxu1 %vm773_vm2, %v1628_v12 }
 0x889   : > { %4687 = vmatpush3.bf16.msra.mxu1 %v6140_v59  ;;  %4564 = vmatprep.mubr.msk.f32.mxu1 %vm5492_vm1, %v6922_v58 }
 0x88a   : > { %4688 = vmatprep.subr.bf16.mxu1 %v6923_v52 }
 0x953   : > { %v1701_v31 = vpop.f32.mrb[4].mxu1 }
 0x954   : > { %v1702_v26 = vadd.f32 %v5955_v37, %v1701_v31  ;;  %v4519_v63 = vpop.f32.mrb[5].mxu1 }
 0x956   : > { %v1706_v29 = vcombine.high %v1702_v26, %v1702_v26  ;;  %v1713_v47 = vrot.slane %v1702_v26, %v5958_v38 }
 0x958   : > { %v1720_v35 = vrot.slane %v1706_v29, %v5958_v38  ;;  %v1721_v43 = vcombine.high %v1713_v47, %v1713_v47  ;;  %v1729_v50 = vrot.slane %v1713_v47, %v5958_v38 }
 0x95a   : > { %v1722_v21 = vcombine.high %v1720_v35, %v1720_v35  ;;  %v1736_v25 = vrot.slane %v1720_v35, %v5958_v38  ;;  %v1743_v53 = vrot.slane %v1721_v43, %v5958_v38  ;;  %v1751_v15 = vcombine.high %v1729_v50, %v1729_v50 }
 0x95b   : > { %v1758_v7 = vrot.slane %v1729_v50, %v5963_v44  ;;  %v6255_v17 = vpop.f32.mrb[6].mxu1 }
 0x95c   : > { %v1750_v37 = vrot.slane %v1722_v21, %v5958_v38  ;;  %v1753_v32 = vcombine.high %v1743_v53, %v1743_v53  ;;  %v1762_v42 = vrot.slane %v1743_v53, %v5963_v44  ;;  %v4548_v10 = vpop.f32.mrb[7].mxu1  ;;  %v1752_v28 = vcombine.high %v1736_v25, %v1736_v25 }
 0x95d   : > { %v1766_v34 = vrot.slane %v1751_v15, %v5963_v44  ;;  %v1774_v11 = vrot.slane %v1736_v25, %v5963_v44  ;;  %v1795_v62 = vadd.f32 %v1758_v7, %v5967_v48 }
 0x95e   : > { %v1754_v33 = vcombine.high %v1750_v37, %v1750_v37  ;;  %v1770_v39 = vrot.slane %v1753_v32, %v5963_v44  ;;  %v1778_v45 = vrot.slane %v1750_v37, %v5963_v44  ;;  %v1796_v9 = vadd.f32 %v1762_v42, %v5972_v54 }
 0x95f   : > { %v1797_v18 = vadd.f32 %v1766_v34, %v5974_v55  ;;  %4936 = vtanh.f32 %v1795_v62  ;;  %v1799_v0 = vadd.f32 %v1774_v11, %v5980_v61  ;;  %v1782_v12 = vrot.slane %v1752_v28, %v5963_v44 }
 0x960   : > { %v1786_v41 = vrot.slane %v1754_v33, %v5963_v44  ;;  %v1798_v5 = vadd.f32 %v1770_v39, %v5978_v60  ;;  %v1800_v48 = vadd.f32 %v1778_v45, %v5987_v4  ;;  %4938 = vtanh.f32 %v1796_v9 }
 0x961   : > { %4940 = vtanh.f32 %v1797_v18  ;;  %v1801_v54 = vadd.f32 %v1782_v12, %v5992_v8 }
 0x962   : > { %4942 = vtanh.f32 %v1798_v5  ;;  %v1802_v31 = vadd.f32 %v1786_v41, %v5999_v14 }
 0x963   : > { %4944 = vtanh.f32 %v1799_v0 }
 0x964   : > { %4946 = vtanh.f32 %v1800_v48 }
 0x965   : > { %4948 = vtanh.f32 %v1802_v31 }
 0x966   : > { %4950 = vtanh.f32 %v1801_v54 }
 0x969   : > { %v4937_v55 = vpop.eup %4936 }
 0x96a   : > { %v1811_v60 = vmul.f32 %v4937_v55, %v6005_v16  ;;  %v4939_v26 = vpop.eup %4938 }
 0x96b   : > { %v4941_v61 = vpop.eup %4940  ;;  %v1812_v4 = vmul.f32 %v4939_v26, %v6005_v16 }
 0x96c   : > { %v1819_v63 = vsel %vm773_vm2, %v1811_v60, 0.0  ;;  %v4943_v29 = vpop.eup %4942  ;;  %v1813_v8 = vmul.f32 %v4941_v61, %v6005_v16 }
 0x96d   : > { %1820 = vadd.xlane.f32.xlu1 %v1819_v63  ;;  %v4945_v47 = vpop.eup %4944  ;;  %v1822_v14 = vsel %vm773_vm2, %v1812_v4, 0.0  ;;  %v1814_v35 = vmul.f32 %v4943_v29, %v6005_v16 }
 0x96e   : > { %v4947_v43 = vpop.eup %4946  ;;  %1823 = vadd.xlane.f32.xlu0 %v1822_v14  ;;  %v1825_v53 = vsel %vm773_vm2, %v1813_v8, 0.0  ;;  %v1815_v15 = vmul.f32 %v4945_v47, %v6005_v16 }
 0x96f   : > { %v1828_v50 = vsel %vm773_vm2, %v1814_v35, 0.0  ;;  %v1816_v21 = vmul.f32 %v4947_v43, %v6005_v16  ;;  %v4949_v25 = vpop.eup %4948 }
 0x970   : > { %v4951_v7 = vpop.eup %4950  ;;  %v1818_v32 = vmul.f32 %v4949_v25, %v6005_v16  ;;  %v1831_v42 = vsel %vm773_vm2, %v1815_v15, 0.0 }
 0x971   : > { %1829 = vadd.xlane.f32.xlu1 %v1828_v50  ;;  %v1834_v37 = vsel %vm773_vm2, %v1816_v21, 0.0  ;;  %v1817_v10 = vmul.f32 %v4951_v7, %v6005_v16 }
 0x972   : > { %1826 = vadd.xlane.f32.xlu0 %v1825_v53  ;;  %v1840_v28 = vsel %vm773_vm2, %v1818_v32, 0.0 }
 0x973   : > { %v1837_v34 = vsel %vm773_vm2, %v1817_v10, 0.0 }
 0x975   : > { %1835 = vadd.xlane.f32.xlu1 %v1834_v37 }
 0x976   : > { %1832 = vadd.xlane.f32.xlu0 %v1831_v42 }
 0x979   : > { %1841 = vadd.xlane.f32.xlu1 %v1840_v28 }
 0x97a   : > { %1838 = vadd.xlane.f32.xlu0 %v1837_v34 }
 0x9fa   : > { %v1821_v11 = vpop.xlane.xlu1 %1820 }
 0x9fb   : > { %v1824_v62 = vpop.xlane.xlu0 %1823  ;;  %v1854_v45 = vrot.slane %v1821_v11, %v6025_v56 }
 0x9fc   : > { %v1858_v33 = vrot.slane %v1824_v62, %v6025_v56 }
 0x9fe   : > { %v1830_v39 = vpop.xlane.xlu1 %1829  ;;  %v1883_v41 = vsel %vm1033_vm3, %v1858_v33, %v1854_v45 }
 0x9ff   : > { %v1827_v9 = vpop.xlane.xlu0 %1826  ;;  %v1866_v0 = vrot.slane %v1830_v39, %v6025_v56 }
 0xa00   : > { %v1862_v18 = vrot.slane %v1827_v9, %v6025_v56 }
 0xa02   : > { %v1836_v16 = vpop.xlane.xlu1 %1835  ;;  %v1884_v5 = vsel %vm1035_vm4, %v1862_v18, %v1883_v41 }
 0xa03   : > { %v1833_v12 = vpop.xlane.xlu0 %1832  ;;  %v1885_v31 = vsel %vm1037_vm5, %v1866_v0, %v1884_v5  ;;  %v1874_v60 = vrot.slane %v1836_v16, %v6025_v56 }
 0xa04   : > { %v1870_v48 = vrot.slane %v1833_v12, %v6025_v56 }
 0xa06   : > { %v1886_v54 = vsel %vm1039_vm6, %v1870_v48, %v1885_v31  ;;  %v1842_v55 = vpop.xlane.xlu1 %1841 }
 0xa07   : > { %v1839_v26 = vpop.xlane.xlu0 %1838  ;;  %v1882_v63 = vrot.slane %v1842_v55, %v6025_v56  ;;  %v1887_v4 = vsel %vm1041_vm7, %v1874_v60, %v1886_v54 }
 0xa08   : > { %v1878_v61 = vrot.slane %v1839_v26, %v6025_v56 }
 0xa0a   : > { %v1888_v29 = vsel %vm1043_vm8, %v1878_v61, %v1887_v4 }
 0xa0b   : > { %v1889_v47 = vsel %vm1045_vm9, %v1882_v63, %v1888_v29 }
 0xa0c   : > { %v1891_v14 = vsel %vm1048_vm10, %v1889_v47, -inf }
 0xa0d   : > { %1892 = vmax.xlane.f32.xlu0 %v1891_v14 }
 0xa9a   : > { %v1893_v35 = vpop.xlane.xlu0 %1892 }
 0xa9b   : > { %v1898_v8 = vrot.slane %v1893_v35, %v5963_v44  ;;  %v1902_v43 = vrot.slane %v1893_v35, %v6044_v22  ;;  %v1906_v50 = vrot.slane %v1893_v35, %v6047_v23  ;;  %v1914_v21 = vrot.slane %v1893_v35, %v6056_v40 }
 0xa9c   : > { %v1910_v25 = vrot.slane %v1893_v35, %v6050_v24  ;;  %v1922_v37 = vrot.slane %v1893_v35, %v6064_v51  ;;  %v1918_v28 = vrot.slane %v1893_v35, %v6060_v46  ;;  %v1926_v41 = vrot.slane %v1893_v35, %v6068_v57 }
 0xa9d   : > { %v1935_v53 = vsub.f32 %v1821_v11, %v1898_v8  ;;  %v1936_v15 = vsub.f32 %v1824_v62, %v1902_v43  ;;  %v1937_v7 = vsub.f32 %v1827_v9, %v1906_v50  ;;  %v1939_v32 = vsub.f32 %v1833_v12, %v1914_v21 }
 0xa9e   : > { %v1938_v34 = vsub.f32 %v1830_v39, %v1910_v25  ;;  %v1941_v45 = vsub.f32 %v1839_v26, %v1922_v37  ;;  %v1940_v5 = vsub.f32 %v1836_v16, %v1918_v28  ;;  %v1942_v9 = vsub.f32 %v1842_v55, %v1926_v41 }
 0xa9f   : > { %v1943_v42 = vmul.f32 1.442695, %v1935_v53  ;;  %v1945_v10 = vmul.f32 1.442695, %v1936_v15  ;;  %v1947_v33 = vmul.f32 1.442695, %v1937_v7  ;;  %v6343_v41 = vadd.f32 %v6170_v2, %v6255_v17 }
 0xaa0   : > { %v1951_v18 = vmul.f32 1.442695, %v1939_v32  ;;  %v1949_v11 = vmul.f32 1.442695, %v1938_v34  ;;  %v1955_v62 = vmul.f32 1.442695, %v1941_v45 }
 0xaa1   : > { %4952 = vpow2.f32 %v1943_v42  ;;  %v1953_v0 = vmul.f32 1.442695, %v1940_v5  ;;  %v1957_v39 = vmul.f32 1.442695, %v1942_v9 }
 0xaa2   : > { %4954 = vpow2.f32 %v1945_v10 }
 0xaa3   : > { %4956 = vpow2.f32 %v1947_v33 }
 0xaa4   : > { %4958 = vpow2.f32 %v1951_v18 }
 0xaa5   : > { %4960 = vpow2.f32 %v1949_v11 }
 0xaa6   : > { %4962 = vpow2.f32 %v1955_v62 }
 0xaa7   : > { %4964 = vpow2.f32 %v1953_v0 }
 0xaa8   : > { %4966 = vpow2.f32 %v1957_v39 }
 0xaab   : > { %v4953_v12 = vpop.eup %4952 }
 0xaac   : > { %v4955_v48 = vpop.eup %4954  ;;  %1968 = vperm.xlu1 %4880, %v4953_v12  }
 0xaad   : > { %1971 = vperm.xlu0 %4881, %v4955_v48   ;;  %v4957_v31 = vpop.eup %4956 }
 0xaae   : > { %v6313_v54 = vpop.eup %4958 }
 0xaaf   : > { %v4961_v16 = vpop.eup %4960 }
 0xab0   : > { %1974 = vperm.xlu1 %4880, %v4957_v31   ;;  %v6316_v60 = vpop.eup %4962 }
 0xab1   : > { %1980 = vperm.xlu0 %4881, %v6313_v54   ;;  %v6319_v55 = vpop.eup %4964 }
 0xab2   : > { %v6322_v26 = vpop.eup %4966 }
 0xab4   : > { %1977 = vperm.xlu1 %4880, %v4961_v16  }
 0xab5   : > { %1986 = vperm.xlu0 %4881, %v6316_v60  }
 0xab8   : > { %1983 = vperm.xlu1 %4880, %v6319_v55  }
 0xabc   : > { %1989 = vperm.xlu1 %4880, %v6322_v26  }
 0xb2b   : > { %v1969_v61 = vpop.permute.xlu1 %1968 }
 0xb2c   : > { %v1972_v63 = vpop.permute.xlu0 %1971  ;;  %v1994_v47 = vrot.slane %v1969_v61, %v6025_v56 }
 0xb2d   : > { %v1998_v29 = vrot.slane %v1972_v63, %v6025_v56 }
 0xb2f   : > { %v1975_v4 = vpop.permute.xlu1 %1974  ;;  %v2023_v43 = vsel %vm1033_vm3, %v1998_v29, %v1994_v47 }
 0xb30   : > { %v2002_v14 = vrot.slane %v1975_v4, %v6025_v56  ;;  %v1981_v35 = vpop.permute.xlu0 %1980 }
 0xb31   : > { %v2010_v53 = vrot.slane %v1981_v35, %v6025_v56 }
 0xb32   : > { %v2024_v21 = vsel %vm1035_vm4, %v2002_v14, %v2023_v43 }
 0xb33   : > { %v1978_v8 = vpop.permute.xlu1 %1977 }
 0xb34   : > { %v2006_v50 = vrot.slane %v1978_v8, %v6025_v56  ;;  %v1987_v7 = vpop.permute.xlu0 %1986 }
 0xb35   : > { %v2018_v10 = vrot.slane %v1987_v7, %v6025_v56  ;;  %v4337_v7 = vld [vmem:[%s5887_s14 + $0x8] sm:$0xff] }
 0xb36   : > { %v2025_v25 = vsel %vm1037_vm5, %v2006_v50, %v2024_v21  ;;  %4525 = vmatmul.mubr.msk.f32.vlgmr.msra.gmra.mrb[4].mxu0 %vm1353_vm11, %v4337_v7 }
 0xb37   : > { %v1984_v15 = vpop.permute.xlu1 %1983  ;;  %v2026_v32 = vsel %vm1039_vm6, %v2010_v53, %v2025_v25  ;;  %4669 = vmatpush3.bf16.msra.mxu0 %v6153_v13  ;;  %4535 = vmatprep.mubr.msk.f32.mxu0 %vm5492_vm1, %v6922_v58 }
 0xb38   : > { %v2014_v37 = vrot.slane %v1984_v15, %v6025_v56  ;;  %4670 = vmatprep.subr.bf16.mxu0 %v6923_v52 }
 0xb3a   : > { %v2027_v42 = vsel %vm1041_vm7, %v2014_v37, %v2026_v32  ;;  %v6924_v37 = vld [vmem:[#allocation29_spill] sm:$0xff] }
 0xb3b   : > { %v1990_v28 = vpop.permute.xlu1 %1989  ;;  %v2028_v33 = vsel %vm1043_vm8, %v2018_v10, %v2027_v42  ;;  %4672 = vmatpush3.bf16.msra.mxu0 %v6163_v1 }
 0xb3c   : > { %v2022_v34 = vrot.slane %v1990_v28, %v6025_v56  ;;  %4679 = vmatprep.subr.bf16.mxu0 %v6923_v52 }
 0xb3e   : > { %v2029_v45 = vsel %vm1045_vm9, %v2022_v34, %v2028_v33  ;;  %v6925_v33 = vld [vmem:[#allocation30_spill] sm:$0xff] }
 0xb3f   : > { %v2031_v18 = vsel %vm1048_vm10, %v2029_v45, 0.0 }
 0xb40   : > { %2032 = vadd.xlane.f32.xlu0 %v2031_v18 }
 0xb56   : > { %2434 = vrot.lane.b32.xlu0 %v6343_v41, %s5496_s9 }
 0xbcd   : > { %v2033_v5 = vpop.xlane.xlu0 %2032 }
 0xbce   : > { %v2038_v11 = vrot.slane %v2033_v5, %v5963_v44  ;;  %v2042_v62 = vrot.slane %v2033_v5, %v6044_v22  ;;  %v2046_v9 = vrot.slane %v2033_v5, %v6047_v23  ;;  %v2050_v0 = vrot.slane %v2033_v5, %v6050_v24 }
 0xbcf   : > { %v2054_v2 = vrot.slane %v2033_v5, %v6056_v40  ;;  %v2058_v63 = vrot.slane %v2033_v5, %v6060_v46  ;;  %v2062_v47 = vrot.slane %v2033_v5, %v6064_v51  ;;  %v2066_v8 = vrot.slane %v2033_v5, %v6068_v57 }
 0xbd0   : > { %4968 = vrcp.f32 %v2038_v11 }
 0xbd1   : > { %4970 = vrcp.f32 %v2042_v62 }
 0xbd2   : > { %4972 = vrcp.f32 %v2046_v9 }
 0xbd3   : > { %4974 = vrcp.f32 %v2050_v0  ;;  %v6926_v0 = vld [vmem:[#allocation31_spill] sm:$0xff] }
 0xbd4   : > { %4976 = vrcp.f32 %v2054_v2 }
 0xbd5   : > { %4978 = vrcp.f32 %v2058_v63 }
 0xbd6   : > { %4980 = vrcp.f32 %v2062_v47  ;;  %v6927_v47 = vld [vmem:[#allocation32_spill] sm:$0xff] }
 0xbd7   : > { %4982 = vrcp.f32 %v2066_v8 }
 0xbda   : > { %v4969_v39 = vpop.eup %4968 }
 0xbdb   : > { %v2076_v17 = vmul.f32 %v4969_v39, %v4953_v12  ;;  %v4971_v61 = vpop.eup %4970 }
 0xbdc   : > { %v2078_v4 = vmul.f32 %v4971_v61, %v4955_v48  ;;  %v4973_v29 = vpop.eup %4972 }
 0xbdd   : > { %2093 = vperm.xlu1 %4880, %v2076_v17   ;;  %v2080_v14 = vmul.f32 %v4973_v29, %v4957_v31  ;;  %v4975_v35 = vpop.eup %4974 }
 0xbde   : > { %v2082_v43 = vmul.f32 %v4975_v35, %v4961_v16  ;;  %v4977_v12 = vpop.eup %4976 }
 0xbdf   : > { %v2084_v50 = vmul.f32 %v4977_v12, %v6313_v54  ;;  %v4979_v21 = vpop.eup %4978 }
 0xbe0   : > { %v2086_v48 = vmul.f32 %v4979_v21, %v6319_v55  ;;  %v4981_v25 = vpop.eup %4980 }
 0xbe1   : > { %2098 = vperm.xlu1 %4880, %v2078_v4   ;;  %v2088_v31 = vmul.f32 %v4981_v25, %v6316_v60  ;;  %v4983_v53 = vpop.eup %4982 }
 0xbe2   : > { %v2090_v15 = vmul.f32 %v4983_v53, %v6322_v26  ;;  %v6928_v53 = vld [vmem:[#allocation33_spill] sm:$0xff] }
 0xbe5   : > { %2103 = vperm.xlu1 %4880, %v2080_v14  }
 0xbe9   : > { %2108 = vperm.xlu1 %4880, %v2082_v43  }
 0xbed   : > { %2113 = vperm.xlu1 %4880, %v2084_v50  }
 0xbf1   : > { %2118 = vperm.xlu1 %4880, %v2086_v48  }
 0xbf5   : > { %2123 = vperm.xlu1 %4880, %v2088_v31  }
 0xbf9   : > { %2128 = vperm.xlu1 %4880, %v2090_v15  }
 0xc5c   : > { %v2094_v54 = vpop.permute.xlu1 %2093 }
 0xc5d   : > { %v2131_v26 = vmul.f32 %v2094_v54, %v6179_v20 }
 0xc5f   : > { %v2139_v34 = vsel %vm773_vm2, %v2131_v26, 0.0 }
 0xc60   : > { %v2099_v16 = vpop.permute.xlu1 %2098  ;;  %v2140_v62 = vrot.slane %v2139_v34, 4 }
 0xc61   : > { %v2132_v60 = vmul.f32 %v2099_v16, %v6177_v19 }
 0xc62   : > { %v2141_v61 = vadd.f32 %v2140_v62, %v2139_v34 }
 0xc63   : > { %v2146_v42 = vsel %vm773_vm2, %v2132_v60, 0.0 }
 0xc64   : > { %v2104_v55 = vpop.permute.xlu1 %2103  ;;  %v2147_v18 = vrot.slane %v2146_v42, 4  ;;  %v2142_v50 = vrot.slane %v2141_v61, 2 }
 0xc65   : > { %v2133_v32 = vmul.f32 %v2104_v55, %v6924_v37 }
 0xc66   : > { %v2148_v39 = vadd.f32 %v2147_v18, %v2146_v42  ;;  %v2143_v55 = vadd.f32 %v2142_v50, %v2141_v61 }
 0xc67   : > { %v2153_v10 = vsel %vm773_vm2, %v2133_v32, 0.0 }
 0xc68   : > { %v2109_v28 = vpop.permute.xlu1 %2108  ;;  %v2154_v5 = vrot.slane %v2153_v10, 4  ;;  %v2149_v35 = vrot.slane %v2148_v39, 2  ;;  %v2144_v62 = vrot.slane %v2143_v55, 1 }
 0xc69   : > { %v2134_v45 = vmul.f32 %v2109_v28, %v6925_v33  ;;  %v6929_v28 = vld [vmem:[#allocation34_spill] sm:$0xff] }
 0xc6a   : > { %v2155_v2 = vadd.f32 %v2154_v5, %v2153_v10  ;;  %v2150_v7 = vadd.f32 %v2149_v35, %v2148_v39 }
 0xc6b   : > { %v2160_v11 = vsel %vm773_vm2, %v2134_v45, 0.0 }
 0xc6c   : > { %v2161_v19 = vrot.slane %v2160_v11, 4  ;;  %v2114_v9 = vpop.permute.xlu1 %2113  ;;  %v2156_v43 = vrot.slane %v2155_v2, 2  ;;  %v2151_v33 = vrot.slane %v2150_v7, 1 }
 0xc6d   : > { %v2135_v20 = vmul.f32 %v2114_v9, %v6926_v0 }
 0xc6e   : > { %v2162_v63 = vadd.f32 %v2161_v19, %v2160_v11  ;;  %v2157_v16 = vadd.f32 %v2156_v43, %v2155_v2  ;;  %v2152_v39 = vadd.f32 %v2151_v33, %v2150_v7 }
 0xc6f   : > { %v2167_v17 = vsel %vm773_vm2, %v2135_v20, 0.0 }
 0xc70   : > { %v2168_v4 = vrot.slane %v2167_v17, 4  ;;  %v2119_v29 = vpop.permute.xlu1 %2118  ;;  %v2163_v21 = vrot.slane %v2162_v63, 2  ;;  %v2158_v5 = vrot.slane %v2157_v16, 1 }
 0xc71   : > { %v2136_v14 = vmul.f32 %v2119_v29, %v6927_v47 }
 0xc72   : > { %v2169_v8 = vadd.f32 %v2168_v4, %v2167_v17  ;;  %v2164_v26 = vadd.f32 %v2163_v21, %v2162_v63  ;;  %v2159_v63 = vadd.f32 %v2158_v5, %v2157_v16  ;;  %v2145_v4 = vadd.f32 %v2144_v62, %v2143_v55  ;;  %v2264_v16 = vpop.f32.mrb[4].mxu0 }
 0xc73   : > { %v2174_v12 = vsel %vm773_vm2, %v2136_v14, 0.0 }
 0xc74   : > { %v2175_v48 = vrot.slane %v2174_v12, 4  ;;  %v2124_v25 = vpop.permute.xlu1 %2123  ;;  %v2170_v31 = vrot.slane %v2169_v8, 2  ;;  %v2165_v19 = vrot.slane %v2164_v26, 1 }
 0xc75   : > { %v2137_v15 = vmul.f32 %v2124_v25, %v6928_v53 }
 0xc76   : > { %v2176_v54 = vadd.f32 %v2175_v48, %v2174_v12  ;;  %v2171_v10 = vadd.f32 %v2170_v31, %v2169_v8  ;;  %v2166_v29 = vadd.f32 %v2165_v19, %v2164_v26  ;;  %v2276_v8 = vsel %vm1033_vm3, %v2152_v39, %v2145_v4  ;;  %v6423_v39 = vld [vmem:[%s6913_s15] ss:$0 sm:$0xff] }
 0xc77   : > { %v2181_v60 = vsel %vm773_vm2, %v2137_v15, 0.0  ;;  %v2277_v50 = vsel %vm1035_vm4, %v2159_v63, %v2276_v8 }
 0xc78   : > { %v2177_v37 = vrot.slane %v2176_v54, 2  ;;  %v2182_v32 = vrot.slane %v2181_v60, 4  ;;  %v2129_v42 = vpop.permute.xlu1 %2128  ;;  %v2172_v20 = vrot.slane %v2171_v10, 1  ;;  %v2278_v48 = vsel %vm1037_vm5, %v2166_v29, %v2277_v50 }
 0xc79   : > { %v2138_v34 = vmul.f32 %v2129_v42, %v6929_v28 }
 0xc7a   : > { %v2178_v45 = vadd.f32 %v2177_v37, %v2176_v54  ;;  %v2183_v18 = vadd.f32 %v2182_v32, %v2181_v60  ;;  %v2173_v35 = vadd.f32 %v2172_v20, %v2171_v10  ;;  %v4526_v60 = vpop.f32.mrb[5].mxu0 }
 0xc7b   : > { %v2188_v11 = vsel %vm773_vm2, %v2138_v34, 0.0 }
 0xc7c   : > { %v2184_v9 = vrot.slane %v2183_v18, 2  ;;  %v2189_v0 = vrot.slane %v2188_v11, 4  ;;  %v2179_v2 = vrot.slane %v2178_v45, 1  ;;  %v2279_v31 = vsel %vm1039_vm6, %v2173_v35, %v2278_v48 }
 0xc7e   : > { %v2185_v17 = vadd.f32 %v2184_v9, %v2183_v18  ;;  %v2190_v61 = vadd.f32 %v2189_v0, %v2188_v11  ;;  %v2180_v43 = vadd.f32 %v2179_v2, %v2178_v45  ;;  %v2435_v45 = vpop.permute.xlu0 %2434 }
 0xc80   : > { %v2186_v47 = vrot.slane %v2185_v17, 1  ;;  %v2191_v14 = vrot.slane %v2190_v61, 2  ;;  %v2280_v15 = vsel %vm1041_vm7, %v2180_v43, %v2279_v31 }
 0xc82   : > { %v2192_v12 = vadd.f32 %v2191_v14, %v2190_v61  ;;  %v2187_v21 = vadd.f32 %v2186_v47, %v2185_v17 }
 0xc84   : > { %v2193_v25 = vrot.slane %v2192_v12, 1  ;;  %v2281_v7 = vsel %vm1043_vm8, %v2187_v21, %v2280_v15 }
 0xc86   : > { %v2194_v53 = vadd.f32 %v2193_v25, %v2192_v12 }
 0xc88   : > { %v2282_v54 = vsel %vm1045_vm9, %v2194_v53, %v2281_v7  ;;  %v6438_v7 = vld [vmem:[#allocation3] sm:$0xff] }
 0xc89   : > { %4536 = vmatmul.mubr.msk.f32.vlgmr.msra.gmra.mrb[6].mxu0 %vm773_vm2, %v2282_v54 }
 0xc8a   : > { %4681 = vmatpush3.bf16.msra.mxu0 %v5930_v27  ;;  %4557 = vmatprep.mubr.msk.f32.mxu0 %vm5492_vm1, %v6922_v58 }
 0xc8b   : > { %4682 = vmatprep.subr.bf16.mxu0 %v6923_v52 }
 0xc8e   : > { %4684 = vmatpush3.bf16.msra.mxu0 %v5938_v30 }
 0xc8f   : > { %4694 = vmatprep.subr.bf16.mxu0 %v6923_v52 }
 0xd5c   : > { %v2351_v55 = vpop.f32.mrb[6].mxu0 }
 0xd5d   : > { %v2352_v26 = vadd.f32 %v2351_v55, %v2264_v16  ;;  %v4537_v37 = vpop.f32.mrb[7].mxu0 }
 0xd5e   : > { %v6444_v37 = vld [vmem:[#allocation3 + $0x8] sm:$0xff] }
 0xd5f   : > { %v2355_v32 = vadd.f32 %v6223_v49, %v2352_v26 }
 0xd61   : > { %v2426_v42 = vadd.f32 %v6343_v41, %v2355_v32 }
 0xd63   : > { %v4342_v10 = vmul.f32 -1.442695, %v2426_v42  ;;  %v6447_v42 = vld [vmem:[#allocation3 + $0x10] sm:$0xff] }
 0xd65   : > { %4984 = vpow2.f32 %v4342_v10 }
 0xd6f   : > { %v4985_v28 = vpop.eup %4984 }
 0xd70   : > { %v2430_v34 = vadd.f32 1.0, %v4985_v28  ;;  %v6450_v28 = vld [vmem:[#allocation3 + $0x18] sm:$0xff] }
 0xd72   : > { %4986 = vrcp.f32 %v2430_v34 }
 0xd7c   : > { %v4987_v33 = vpop.eup %4986 }
 0xd7d   : > { %v2437_v18 = vmul.f32 %v4987_v33, %v2435_v45  ;;  %v2444_v49 = vsub.f32 1.0, %v4987_v33  ;;  %v2450_v41 = vmul.f32 %v4987_v33, %v6230_v36  ;;  %v6453_v33 = vld [vmem:[#allocation3 + $0x20] sm:$0xff] }
 0xd7f   : > { %2439 = vrot.lane.b32.xlu1 %v2437_v18, %s5496_s9 }
 0xdf1   : > { %v2440_v5 = vpop.permute.xlu1 %2439 }
 0xdf2   : > { %v2442_v11 = vadd.f32 %v2440_v5, %v2355_v32  ;;  %v6457_v5 = vld [vmem:[#allocation3 + $0x28] sm:$0xff] }
 0xdf4   : > { %4988 = vtanh.f32 %v2442_v11 }
 0xdfe   : > { %v4989_v62 = vpop.eup %4988 }
 0xdff   : > { %2446 = vrot.lane.b32.xlu1 %v4989_v62, %s5497_s19  ;;  %v6460_v62 = vld [vmem:[#allocation3 + $0x30] sm:$0xff] }
 0xe71   : > { %v2447_v19 = vpop.permute.xlu1 %2446 }
 0xe72   : > { %v2449_v9 = vmul.f32 %v2447_v19, %v2444_v49  ;;  %v6463_v19 = vld [vmem:[#allocation3 + $0x38] sm:$0xff] }
 0xe74   : > { %v6402_v0 = vadd.f32 %v2450_v41, %v2449_v9 }
 0xe76   : > { %2453 = vrot.lane.b32.xlu1 %v6402_v0, %s5497_s19 }
 0xee8   : > { %v2454_v20 = vpop.permute.xlu1 %2453 }
 0xee9   : > { %4343 = vst.msk [vmem:[%s5909_s16 + $0x8] sm:$0xff] %vm773_vm2, %v2454_v20  ;;  %4558 = vmatmul.mubr.msk.f32.vlgmr.msra.gmra.mrb[8].mxu0 %vm773_vm2, %v2454_v20 }
 0xeea   : > { %4696 = vmatpush3.bf16.msra.mxu0 %v6112_v3  ;;  %4586 = vmatprep.mubr.msk.f32.mxu0 %vm5492_vm1, %v6922_v58 }
 0xeeb   : > { %4697 = vmatprep.subr.bf16.mxu0 %v6923_v52 }
 0xeee   : > { %4699 = vmatpush3.bf16.msra.mxu0 %v6115_v6 }
 0xeef   : > { %4706 = vmatprep.subr.bf16.mxu0 %v6923_v52 }
 0xef1   : > { %4587 = vmatmul.mubr.msk.f32.vlgmr.msra.gmra.mrb[10].mxu0 %vm773_vm2, %v2454_v20  ;;  %v6469_v20 = vld [vmem:[%s6914_s20] ss:$0 sm:$0xff] }
 0xef2   : > { %4708 = vmatpush3.bf16.msra.mxu0 %v6140_v59  ;;  %4604 = vmatprep.mubr.msk.f32.mxu0 %vm5492_vm1, %v6922_v58 }
 0xef3   : > { %4709 = vmatprep.subr.bf16.mxu0 %v6923_v52 }
 0xfbc   : > { %v2528_v36 = vpop.f32.mrb[8].mxu0 }
 0xfbd   : > { %v2529_v2 = vadd.f32 %v6423_v39, %v2528_v36  ;;  %v4559_v17 = vpop.f32.mrb[9].mxu0 }
 0xfbf   : > { %v2533_v61 = vcombine.high %v2529_v2, %v2529_v2  ;;  %v2540_v63 = vrot.slane %v2529_v2, %v5958_v38 }
 0xfc1   : > { %v2547_v4 = vrot.slane %v2533_v61, %v5958_v38  ;;  %v2548_v59 = vcombine.high %v2540_v63, %v2540_v63  ;;  %v2556_v29 = vrot.slane %v2540_v63, %v5958_v38 }
 0xfc3   : > { %v2549_v47 = vcombine.high %v2547_v4, %v2547_v4  ;;  %v2563_v14 = vrot.slane %v2547_v4, %v5958_v38  ;;  %v2570_v35 = vrot.slane %v2548_v59, %v5958_v38  ;;  %v2578_v8 = vcombine.high %v2556_v29, %v2556_v29 }
 0xfc4   : > { %v2585_v43 = vrot.slane %v2556_v29, %v5963_v44  ;;  %v6432_v12 = vpop.f32.mrb[10].mxu0 }
 0xfc5   : > { %v2577_v50 = vrot.slane %v2549_v47, %v5958_v38  ;;  %v2579_v21 = vcombine.high %v2563_v14, %v2563_v14  ;;  %v2580_v48 = vcombine.high %v2570_v35, %v2570_v35  ;;  %v2589_v25 = vrot.slane %v2570_v35, %v5963_v44  ;;  %v4588_v31 = vpop.f32.mrb[11].mxu0 }
 0xfc6   : > { %v2593_v53 = vrot.slane %v2578_v8, %v5963_v44  ;;  %v2601_v15 = vrot.slane %v2563_v14, %v5963_v44  ;;  %v2622_v54 = vadd.f32 %v6438_v7, %v2585_v43 }
 0xfc7   : > { %v2581_v16 = vcombine.high %v2577_v50, %v2577_v50  ;;  %v2597_v60 = vrot.slane %v2580_v48, %v5963_v44  ;;  %v2605_v55 = vrot.slane %v2577_v50, %v5963_v44  ;;  %v2609_v26 = vrot.slane %v2579_v21, %v5963_v44 }
 0xfc8   : > { %v2623_v32 = vadd.f32 %v6444_v37, %v2589_v25  ;;  %v2624_v10 = vadd.f32 %v6447_v42, %v2593_v53  ;;  %4990 = vtanh.f32 %v2622_v54  ;;  %v2626_v45 = vadd.f32 %v6453_v33, %v2601_v15 }
 0xfc9   : > { %v2625_v34 = vadd.f32 %v6450_v28, %v2597_v60  ;;  %v2613_v18 = vrot.slane %v2581_v16, %v5963_v44  ;;  %v2627_v11 = vadd.f32 %v6457_v5, %v2605_v55  ;;  %v2628_v49 = vadd.f32 %v6460_v62, %v2609_v26 }
 0xfca   : > { %4992 = vtanh.f32 %v2623_v32 }
 0xfcb   : > { %4994 = vtanh.f32 %v2624_v10  ;;  %v2629_v41 = vadd.f32 %v6463_v19, %v2613_v18 }
 0xfcc   : > { %4996 = vtanh.f32 %v2625_v34 }
 0xfcd   : > { %4998 = vtanh.f32 %v2626_v45 }
 0xfce   : > { %5000 = vtanh.f32 %v2627_v11 }
 0xfcf   : > { %5002 = vtanh.f32 %v2628_v49 }
 0xfd0   : > { %5004 = vtanh.f32 %v2629_v41 }
 0xfd2   : > { %v4991_v9 = vpop.eup %4990 }
 0xfd3   : > { %v2638_v36 = vmul.f32 %v6469_v20, %v4991_v9 }
 0xfd4   : > { %v4993_v2 = vpop.eup %4992 }
 0xfd5   : > { %v4995_v17 = vpop.eup %4994  ;;  %v2646_v61 = vsel %vm773_vm2, %v2638_v36, 0.0  ;;  %v2639_v63 = vmul.f32 %v6469_v20, %v4993_v2 }
 0xfd6   : > { %v4997_v4 = vpop.eup %4996  ;;  %2647 = vadd.xlane.f32.xlu1 %v2646_v61  ;;  %v2640_v59 = vmul.f32 %v6469_v20, %v4995_v17 }
 0xfd7   : > { %v4999_v29 = vpop.eup %4998  ;;  %v2649_v47 = vsel %vm773_vm2, %v2639_v63, 0.0  ;;  %v2641_v14 = vmul.f32 %v6469_v20, %v4997_v4 }
 0xfd8   : > { %v5001_v35 = vpop.eup %5000  ;;  %2650 = vadd.xlane.f32.xlu0 %v2649_v47  ;;  %v2652_v8 = vsel %vm773_vm2, %v2640_v59, 0.0  ;;  %v2642_v43 = vmul.f32 %v6469_v20, %v4999_v29 }
 0xfd9   : > { %v5003_v50 = vpop.eup %5002  ;;  %v2655_v21 = vsel %vm773_vm2, %v2641_v14, 0.0  ;;  %v2643_v48 = vmul.f32 %v6469_v20, %v5001_v35 }
 0xfda   : > { %2653 = vadd.xlane.f32.xlu1 %v2652_v8  ;;  %v5005_v25 = vpop.eup %5004  ;;  %v2658_v31 = vsel %vm773_vm2, %v2642_v43, 0.0  ;;  %v2644_v53 = vmul.f32 %v6469_v20, %v5003_v50 }
 0xfdb   : > { %v2661_v15 = vsel %vm773_vm2, %v2643_v48, 0.0  ;;  %v2645_v54 = vmul.f32 %v6469_v20, %v5005_v25 }
 0xfdc   : > { %2656 = vadd.xlane.f32.xlu0 %v2655_v21  ;;  %v2664_v16 = vsel %vm773_vm2, %v2644_v53, 0.0 }
 0xfdd   : > { %v2667_v60 = vsel %vm773_vm2, %v2645_v54, 0.0 }
 0xfde   : > { %2659 = vadd.xlane.f32.xlu1 %v2658_v31 }
 0xfe0   : > { %2662 = vadd.xlane.f32.xlu0 %v2661_v15 }
 0xfe2   : > { %2665 = vadd.xlane.f32.xlu1 %v2664_v16 }
 0xfe4   : > { %2668 = vadd.xlane.f32.xlu0 %v2667_v60 }
0x1063   : > { %v2648_v55 = vpop.xlane.xlu1 %2647 }
0x1064   : > { %v2681_v32 = vrot.slane %v2648_v55, %v6025_v56 }
0x1065   : > { %v2651_v26 = vpop.xlane.xlu0 %2650 }
0x1066   : > { %v2685_v10 = vrot.slane %v2651_v26, %v6025_v56 }
0x1067   : > { %v2654_v34 = vpop.xlane.xlu1 %2653 }
0x1068   : > { %v2710_v45 = vsel %vm1033_vm3, %v2685_v10, %v2681_v32  ;;  %v2689_v18 = vrot.slane %v2654_v34, %v6025_v56 }
0x1069   : > { %v2657_v11 = vpop.xlane.xlu0 %2656 }
0x106a   : > { %v2711_v49 = vsel %vm1035_vm4, %v2689_v18, %v2710_v45  ;;  %v2693_v41 = vrot.slane %v2657_v11, %v6025_v56 }
0x106b   : > { %v2660_v9 = vpop.xlane.xlu1 %2659 }
0x106c   : > { %v2712_v36 = vsel %vm1037_vm5, %v2693_v41, %v2711_v49  ;;  %v2697_v2 = vrot.slane %v2660_v9, %v6025_v56 }
0x106d   : > { %v2663_v17 = vpop.xlane.xlu0 %2662 }
0x106e   : > { %v2713_v61 = vsel %vm1039_vm6, %v2697_v2, %v2712_v36  ;;  %v2701_v63 = vrot.slane %v2663_v17, %v6025_v56 }
0x106f   : > { %v2666_v4 = vpop.xlane.xlu1 %2665 }
0x1070   : > { %v2705_v59 = vrot.slane %v2666_v4, %v6025_v56  ;;  %v2714_v29 = vsel %vm1041_vm7, %v2701_v63, %v2713_v61 }
0x1071   : > { %v2669_v47 = vpop.xlane.xlu0 %2668 }
0x1072   : > { %v2709_v14 = vrot.slane %v2669_v47, %v6025_v56  ;;  %v2715_v35 = vsel %vm1043_vm8, %v2705_v59, %v2714_v29 }
0x1074   : > { %v2716_v8 = vsel %vm1045_vm9, %v2709_v14, %v2715_v35 }
0x1075   : > { %v2718_v43 = vsel %vm1048_vm10, %v2716_v8, -inf }
0x1076   : > { %2719 = vmax.xlane.f32.xlu1 %v2718_v43 }
0x1103   : > { %v2720_v50 = vpop.xlane.xlu1 %2719 }
0x1104   : > { %v2725_v21 = vrot.slane %v2720_v50, %v5963_v44  ;;  %v2729_v48 = vrot.slane %v2720_v50, %v6044_v22  ;;  %v2733_v25 = vrot.slane %v2720_v50, %v6047_v23  ;;  %v2737_v31 = vrot.slane %v2720_v50, %v6050_v24 }
0x1105   : > { %v2745_v53 = vrot.slane %v2720_v50, %v6060_v46  ;;  %v2741_v60 = vrot.slane %v2720_v50, %v6056_v40  ;;  %v2753_v18 = vrot.slane %v2720_v50, %v6068_v57  ;;  %v2749_v36 = vrot.slane %v2720_v50, %v6064_v51 }
0x1106   : > { %v2762_v15 = vsub.f32 %v2648_v55, %v2725_v21  ;;  %v2763_v54 = vsub.f32 %v2651_v26, %v2729_v48  ;;  %v2765_v16 = vsub.f32 %v2657_v11, %v2737_v31  ;;  %v2764_v32 = vsub.f32 %v2654_v34, %v2733_v25 }
0x1107   : > { %v2767_v49 = vsub.f32 %v2663_v17, %v2745_v53  ;;  %v2766_v2 = vsub.f32 %v2660_v9, %v2741_v60  ;;  %v2769_v63 = vsub.f32 %v2669_v47, %v2753_v18  ;;  %v2768_v26 = vsub.f32 %v2666_v4, %v2749_v36 }
0x1108   : > { %v2770_v10 = vmul.f32 1.442695, %v2762_v15  ;;  %v2772_v45 = vmul.f32 1.442695, %v2763_v54  ;;  %v2776_v41 = vmul.f32 1.442695, %v2765_v16 }
0x1109   : > { %v2774_v61 = vmul.f32 1.442695, %v2764_v32  ;;  %v2780_v55 = vmul.f32 1.442695, %v2767_v49  ;;  %v2778_v11 = vmul.f32 1.442695, %v2766_v2 }
0x110a   : > { %5006 = vpow2.f32 %v2770_v10  ;;  %v2784_v34 = vmul.f32 1.442695, %v2769_v63  ;;  %v2782_v59 = vmul.f32 1.442695, %v2768_v26 }
0x110b   : > { %5008 = vpow2.f32 %v2772_v45 }
0x110c   : > { %5010 = vpow2.f32 %v2776_v41 }
0x110d   : > { %5012 = vpow2.f32 %v2774_v61 }
0x110e   : > { %5014 = vpow2.f32 %v2780_v55 }
0x110f   : > { %5016 = vpow2.f32 %v2778_v11 }
0x1110   : > { %5018 = vpow2.f32 %v2784_v34 }
0x1111   : > { %5020 = vpow2.f32 %v2782_v59 }
0x1114   : > { %v5007_v29 = vpop.eup %5006 }
0x1115   : > { %v5009_v14 = vpop.eup %5008  ;;  %2795 = vperm.xlu0 %4881, %v5007_v29  }
0x1116   : > { %2798 = vperm.xlu1 %4880, %v5009_v14   ;;  %v6511_v17 = vpop.eup %5010 }
0x1117   : > { %v5013_v9 = vpop.eup %5012 }
0x1118   : > { %v6514_v47 = vpop.eup %5014 }
0x1119   : > { %2804 = vperm.xlu0 %4881, %v6511_v17   ;;  %v5017_v4 = vpop.eup %5016 }
0x111a   : > { %2801 = vperm.xlu1 %4880, %v5013_v9   ;;  %v6517_v35 = vpop.eup %5018 }
0x111b   : > { %v6519_v8 = vpop.eup %5020 }
0x111d   : > { %2810 = vperm.xlu0 %4881, %v6514_v47  }
0x111e   : > { %2807 = vperm.xlu1 %4880, %v5017_v4  }
0x1121   : > { %2816 = vperm.xlu0 %4881, %v6517_v35  }
0x1122   : > { %2813 = vperm.xlu1 %4880, %v6519_v8  }
0x1194   : > { %v2796_v43 = vpop.permute.xlu0 %2795 }
0x1195   : > { %v2799_v50 = vpop.permute.xlu1 %2798  ;;  %v2821_v48 = vrot.slane %v2796_v43, %v6025_v56 }
0x1196   : > { %v2825_v21 = vrot.slane %v2799_v50, %v6025_v56 }
0x1198   : > { %v2805_v25 = vpop.permute.xlu0 %2804  ;;  %v2850_v15 = vsel %vm1033_vm3, %v2825_v21, %v2821_v48 }
0x1199   : > { %v2802_v31 = vpop.permute.xlu1 %2801  ;;  %v2833_v54 = vrot.slane %v2805_v25, %v6025_v56 }
0x119a   : > { %v2829_v53 = vrot.slane %v2802_v31, %v6025_v56 }
0x119c   : > { %v2851_v16 = vsel %vm1035_vm4, %v2829_v53, %v2850_v15  ;;  %v2811_v60 = vpop.permute.xlu0 %2810 }
0x119d   : > { %v2808_v32 = vpop.permute.xlu1 %2807  ;;  %v2852_v45 = vsel %vm1037_vm5, %v2833_v54, %v2851_v16  ;;  %v2841_v18 = vrot.slane %v2811_v60, %v6025_v56 }
0x119e   : > { %v2837_v10 = vrot.slane %v2808_v32, %v6025_v56 }
0x11a0   : > { %v2853_v49 = vsel %vm1039_vm6, %v2837_v10, %v2852_v45  ;;  %v2817_v41 = vpop.permute.xlu0 %2816 }
0x11a1   : > { %v2814_v36 = vpop.permute.xlu1 %2813  ;;  %v2849_v2 = vrot.slane %v2817_v41, %v6025_v56  ;;  %v2854_v63 = vsel %vm1041_vm7, %v2841_v18, %v2853_v49 }
0x11a2   : > { %v2845_v61 = vrot.slane %v2814_v36, %v6025_v56 }
0x11a4   : > { %v2855_v55 = vsel %vm1043_vm8, %v2845_v61, %v2854_v63  ;;  %v6551_v63 = vld [vmem:[#allocation14] ss:$0 sm:$0xff] }
0x11a5   : > { %v2856_v26 = vsel %vm1045_vm9, %v2849_v2, %v2855_v55 }
0x11a6   : > { %v2858_v11 = vsel %vm1048_vm10, %v2856_v26, 0.0  ;;  %v6570_v26 = vld [vmem:[#allocation7] sm:$0xff] }
0x11a7   : > { %2859 = vadd.xlane.f32.xlu1 %v2858_v11  ;;  %6930 = vst [vmem:[#allocation29_spill] sm:$0xff] %v6570_v26 }
0x1234   : > { %v2860_v34 = vpop.xlane.xlu1 %2859 }
0x1235   : > { %v2865_v59 = vrot.slane %v2860_v34, %v5963_v44  ;;  %v2869_v43 = vrot.slane %v2860_v34, %v6044_v22  ;;  %v2873_v50 = vrot.slane %v2860_v34, %v6047_v23  ;;  %v2877_v21 = vrot.slane %v2860_v34, %v6050_v24 }
0x1236   : > { %v2881_v25 = vrot.slane %v2860_v34, %v6056_v40  ;;  %v2885_v15 = vrot.slane %v2860_v34, %v6060_v46  ;;  %v2889_v60 = vrot.slane %v2860_v34, %v6064_v51  ;;  %v2893_v45 = vrot.slane %v2860_v34, %v6068_v57  ;;  %v6573_v34 = vld [vmem:[#allocation7 + $0x10] sm:$0xff] }
0x1237   : > { %5022 = vrcp.f32 %v2865_v59  ;;  %6931 = vst [vmem:[#allocation30_spill] sm:$0xff] %v6573_v34 }
0x1238   : > { %5024 = vrcp.f32 %v2869_v43 }
0x1239   : > { %5026 = vrcp.f32 %v2873_v50 }
0x123a   : > { %5028 = vrcp.f32 %v2877_v21 }
0x123b   : > { %5030 = vrcp.f32 %v2881_v25  ;;  %v6579_v25 = vld [vmem:[#allocation7 + $0x18] sm:$0xff] }
0x123c   : > { %5032 = vrcp.f32 %v2885_v15  ;;  %6932 = vst [vmem:[#allocation31_spill] sm:$0xff] %v6579_v25 }
0x123d   : > { %5034 = vrcp.f32 %v2889_v60 }
0x123e   : > { %5036 = vrcp.f32 %v2893_v45 }
0x1241   : > { %v5023_v48 = vpop.eup %5022 }
0x1242   : > { %v2903_v31 = vmul.f32 %v5023_v48, %v5007_v29  ;;  %v5025_v53 = vpop.eup %5024 }
0x1243   : > { %v2905_v54 = vmul.f32 %v5025_v53, %v5009_v14  ;;  %v5027_v16 = vpop.eup %5026 }
0x1244   : > { %2920 = vperm.xlu0 %4881, %v2903_v31   ;;  %v2907_v32 = vmul.f32 %v5027_v16, %v5013_v9  ;;  %v5029_v10 = vpop.eup %5028 }
0x1245   : > { %v2909_v18 = vmul.f32 %v5029_v10, %v6511_v17  ;;  %v5031_v29 = vpop.eup %5030  ;;  %v6555_v17 = vadd.f32 %v6551_v63, %v6432_v12  ;;  %v6583_v10 = vld [vmem:[#allocation7 + $0x20] sm:$0xff] }
0x1246   : > { %v2911_v49 = vmul.f32 %v5031_v29, %v5017_v4  ;;  %v5033_v41 = vpop.eup %5032  ;;  %v4344_v4 = vld [vmem:[%s5887_s14 + $0x10] sm:$0xff]  ;;  %6933 = vst [vmem:[#allocation32_spill] sm:$0xff] %v6583_v10 }
0x1247   : > { %v2913_v14 = vmul.f32 %v5033_v41, %v6514_v47  ;;  %v5035_v36 = vpop.eup %5034  ;;  %4565 = vmatmul.mubr.msk.f32.vlgmr.msra.gmra.mrb[8].mxu1 %vm1353_vm11, %v4344_v4 }
0x1248   : > { %2925 = vperm.xlu0 %4881, %v2905_v54   ;;  %v2915_v9 = vmul.f32 %v5035_v36, %v6519_v8  ;;  %v5037_v2 = vpop.eup %5036  ;;  %4690 = vmatpush3.bf16.msra.mxu1 %v6153_v13 }
0x1249   : > { %v2917_v61 = vmul.f32 %v5037_v2, %v6517_v35  ;;  %4575 = vmatprep.mubr.msk.f32.mxu1 %vm5492_vm1, %v6922_v58  ;;  %4691 = vmatprep.subr.bf16.mxu1 %v6923_v52  ;;  %v6567_v35 = vld [vmem:[#allocation7 + $0x8] sm:$0xff] }
0x124a   : > { %v6587_v2 = vld [vmem:[#allocation7 + $0x28] sm:$0xff] }
0x124b   : > { %6934 = vst [vmem:[#allocation33_spill] sm:$0xff] %v6587_v2 }
0x124c   : > { %2930 = vperm.xlu0 %4881, %v2907_v32   ;;  %4693 = vmatpush3.bf16.msra.mxu1 %v6163_v1 }
0x124d   : > { %4700 = vmatprep.subr.bf16.mxu1 %v6923_v52 }
0x1250   : > { %2935 = vperm.xlu0 %4881, %v2909_v18  }
0x1254   : > { %2940 = vperm.xlu0 %4881, %v2911_v49  }
0x1258   : > { %2945 = vperm.xlu0 %4881, %v2913_v14  }
0x125c   : > { %2950 = vperm.xlu0 %4881, %v2915_v9  }
0x1260   : > { %2955 = vperm.xlu0 %4881, %v2917_v61  }
0x1264   : > { %3261 = vrot.lane.b32.xlu0 %v6555_v17, %s5496_s9 }
0x12c3   : > { %v2921_v47 = vpop.permute.xlu0 %2920 }
0x12c4   : > { %v2958_v11 = vmul.f32 %v6570_v26, %v2921_v47 }
0x12c6   : > { %v2966_v48 = vsel %vm773_vm2, %v2958_v11, 0.0 }
0x12c7   : > { %v2926_v12 = vpop.permute.xlu0 %2925  ;;  %v2967_v16 = vrot.slane %v2966_v48, 4 }
0x12c8   : > { %v2959_v8 = vmul.f32 %v6567_v35, %v2926_v12 }
0x12c9   : > { %v2968_v41 = vadd.f32 %v2967_v16, %v2966_v48 }
0x12ca   : > { %v2973_v43 = vsel %vm773_vm2, %v2959_v8, 0.0 }
0x12cb   : > { %v2931_v55 = vpop.permute.xlu0 %2930  ;;  %v2974_v53 = vrot.slane %v2973_v43, 4 }
0x12cc   : > { %v2960_v59 = vmul.f32 %v6573_v34, %v2931_v55  ;;  %v2969_v55 = vrot.slane %v2968_v41, 2 }
0x12cd   : > { %v2975_v18 = vadd.f32 %v2974_v53, %v2973_v43 }
0x12ce   : > { %v2980_v50 = vsel %vm773_vm2, %v2960_v59, 0.0  ;;  %v2970_v16 = vadd.f32 %v2969_v55, %v2968_v41 }
0x12cf   : > { %v2936_v21 = vpop.permute.xlu0 %2935  ;;  %v2981_v15 = vrot.slane %v2980_v50, 4  ;;  %v2976_v4 = vrot.slane %v2975_v18, 2 }
0x12d0   : > { %v2961_v31 = vmul.f32 %v6579_v25, %v2936_v21  ;;  %v6591_v21 = vld [vmem:[#allocation7 + $0x30] sm:$0xff] }
0x12d1   : > { %v2982_v29 = vadd.f32 %v2981_v15, %v2980_v50  ;;  %6935 = vst [vmem:[#allocation34_spill] sm:$0xff] %v6591_v21 }
0x12d2   : > { %v2987_v54 = vsel %vm773_vm2, %v2961_v31, 0.0  ;;  %v2977_v31 = vadd.f32 %v2976_v4, %v2975_v18  ;;  %v2971_v4 = vrot.slane %v2970_v16, 1 }
0x12d3   : > { %v2988_v60 = vrot.slane %v2987_v54, 4  ;;  %v2941_v32 = vpop.permute.xlu0 %2940  ;;  %v2983_v12 = vrot.slane %v2982_v29, 2 }
0x12d4   : > { %v2962_v45 = vmul.f32 %v6583_v10, %v2941_v32 }
0x12d5   : > { %v2989_v14 = vadd.f32 %v2988_v60, %v2987_v54  ;;  %v2984_v15 = vadd.f32 %v2983_v12, %v2982_v29 }
0x12d6   : > { %v2994_v49 = vsel %vm773_vm2, %v2962_v45, 0.0 }
0x12d7   : > { %v2995_v36 = vrot.slane %v2994_v49, 4  ;;  %v2946_v9 = vpop.permute.xlu0 %2945  ;;  %v2990_v11 = vrot.slane %v2989_v14, 2  ;;  %v2985_v34 = vrot.slane %v2984_v15, 1 }
0x12d8   : > { %v2963_v61 = vmul.f32 %v6587_v2, %v2946_v9  ;;  %v6595_v9 = vld [vmem:[#allocation7 + $0x38] sm:$0xff]  ;;  %v2978_v2 = vrot.slane %v2977_v31, 1 }
0x12d9   : > { %v2996_v47 = vadd.f32 %v2995_v36, %v2994_v49  ;;  %v2991_v60 = vadd.f32 %v2990_v11, %v2989_v14  ;;  %6936 = vst [vmem:[#allocation35_spill] sm:$0xff] %v6595_v9 }
0x12da   : > { %v3001_v8 = vsel %vm773_vm2, %v2963_v61, 0.0  ;;  %v2979_v14 = vadd.f32 %v2978_v2, %v2977_v31 }
0x12db   : > { %v3002_v59 = vrot.slane %v3001_v8, 4  ;;  %v2951_v43 = vpop.permute.xlu0 %2950  ;;  %v2997_v50 = vrot.slane %v2996_v47, 2  ;;  %v2992_v29 = vrot.slane %v2991_v60, 1 }
0x12dc   : > { %v2964_v48 = vmul.f32 %v6591_v21, %v2951_v43  ;;  %v2972_v43 = vadd.f32 %v2971_v4, %v2970_v16 }
0x12dd   : > { %v3003_v53 = vadd.f32 %v3002_v59, %v3001_v8  ;;  %v2998_v36 = vadd.f32 %v2997_v50, %v2996_v47  ;;  %v2986_v47 = vadd.f32 %v2985_v34, %v2984_v15  ;;  %v2993_v50 = vadd.f32 %v2992_v29, %v2991_v60 }
0x12de   : > { %v3008_v54 = vsel %vm773_vm2, %v2964_v48, 0.0 }
0x12df   : > { %v3004_v32 = vrot.slane %v3003_v53, 2  ;;  %v3009_v45 = vrot.slane %v3008_v54, 4  ;;  %v2956_v49 = vpop.permute.xlu0 %2955  ;;  %v2999_v41 = vrot.slane %v2998_v36, 1 }
0x12e0   : > { %v2965_v61 = vmul.f32 %v6595_v9, %v2956_v49 }
0x12e1   : > { %v3005_v10 = vadd.f32 %v3004_v32, %v3003_v53  ;;  %v3010_v25 = vadd.f32 %v3009_v45, %v3008_v54  ;;  %v3000_v9 = vadd.f32 %v2999_v41, %v2998_v36  ;;  %v3103_v53 = vsel %vm1033_vm3, %v2979_v14, %v2972_v43  ;;  %v6613_v36 = vld [vmem:[#allocation13] ss:$0 sm:$0xff] }
0x12e2   : > { %v3015_v18 = vsel %vm773_vm2, %v2965_v61, 0.0  ;;  %v3104_v45 = vsel %vm1035_vm4, %v2986_v47, %v3103_v53 }
0x12e3   : > { %v3011_v12 = vrot.slane %v3010_v25, 2  ;;  %v3016_v8 = vrot.slane %v3015_v18, 4  ;;  %v3006_v55 = vrot.slane %v3005_v10, 1  ;;  %v3105_v21 = vsel %vm1037_vm5, %v2993_v50, %v3104_v45 }
0x12e4   : > { %v3106_v2 = vsel %vm1039_vm6, %v3000_v9, %v3105_v21 }
0x12e5   : > { %v3012_v11 = vadd.f32 %v3011_v12, %v3010_v25  ;;  %v3017_v59 = vadd.f32 %v3016_v8, %v3015_v18  ;;  %v3007_v54 = vadd.f32 %v3006_v55, %v3005_v10 }
0x12e7   : > { %v3013_v48 = vrot.slane %v3012_v11, 1  ;;  %v3018_v49 = vrot.slane %v3017_v59, 2  ;;  %v3107_v34 = vsel %vm1041_vm7, %v3007_v54, %v3106_v2 }
0x12e9   : > { %v3019_v32 = vadd.f32 %v3018_v49, %v3017_v59  ;;  %v3014_v61 = vadd.f32 %v3013_v48, %v3012_v11 }
0x12eb   : > { %v3020_v26 = vrot.slane %v3019_v32, 1  ;;  %v3108_v31 = vsel %vm1043_vm8, %v3014_v61, %v3107_v34 }
0x12ed   : > { %v3021_v25 = vadd.f32 %v3020_v26, %v3019_v32 }
0x12ef   : > { %v3109_v15 = vsel %vm1045_vm9, %v3021_v25, %v3108_v31 }
0x12f0   : > { %4576 = vmatmul.mubr.msk.f32.vlgmr.msra.gmra.mrb[10].mxu1 %vm773_vm2, %v3109_v15 }
0x12f1   : > { %4702 = vmatpush3.bf16.msra.mxu1 %v5930_v27  ;;  %4597 = vmatprep.mubr.msk.f32.mxu1 %vm5492_vm1, %v6922_v58 }
0x12f2   : > { %4703 = vmatprep.subr.bf16.mxu1 %v6923_v52 }
0x12f5   : > { %4705 = vmatpush3.bf16.msra.mxu1 %v5938_v30  ;;  %v3262_v30 = vpop.permute.xlu0 %3261 }
0x12f6   : > { %4715 = vmatprep.subr.bf16.mxu1 %v6923_v52 }
0x131a   : > { %v3091_v26 = vpop.f32.mrb[8].mxu1 }
0x131b   : > { %v4566_v10 = vpop.f32.mrb[9].mxu1 }
0x13c3   : > { %v3178_v21 = vpop.f32.mrb[10].mxu1 }
0x13c4   : > { %v3179_v16 = vadd.f32 %v3178_v21, %v3091_v26  ;;  %v4577_v60 = vpop.f32.mrb[11].mxu1 }
0x13c6   : > { %v3182_v9 = vadd.f32 %v6613_v36, %v3179_v16 }
0x13c8   : > { %v3253_v27 = vadd.f32 %v6555_v17, %v3182_v9 }
0x13ca   : > { %v4349_v18 = vmul.f32 -1.442695, %v3253_v27 }
0x13cc   : > { %5038 = vpow2.f32 %v4349_v18 }
0x13d6   : > { %v5039_v4 = vpop.eup %5038 }
0x13d7   : > { %v3257_v29 = vadd.f32 1.0, %v5039_v4 }
0x13d9   : > { %5040 = vrcp.f32 %v3257_v29 }
0x13e3   : > { %v5041_v12 = vpop.eup %5040 }
0x13e4   : > { %v3264_v8 = vmul.f32 %v5041_v12, %v3262_v30  ;;  %v3271_v11 = vsub.f32 1.0, %v5041_v12  ;;  %v3277_v17 = vmul.f32 %v5041_v12, %v6402_v0 }
0x13e6   : > { %3266 = vrot.lane.b32.xlu1 %v3264_v8, %s5496_s9 }
0x1458   : > { %v3267_v41 = vpop.permute.xlu1 %3266 }
0x1459   : > { %v3269_v14 = vadd.f32 %v3267_v41, %v3182_v9 }
0x145b   : > { %5042 = vtanh.f32 %v3269_v14 }
0x1465   : > { %v5043_v55 = vpop.eup %5042 }
0x1466   : > { %3273 = vrot.lane.b32.xlu0 %v5043_v55, %s5497_s19 }
0x14d8   : > { %v3274_v59 = vpop.permute.xlu0 %3273 }
0x14d9   : > { %v3276_v47 = vmul.f32 %v3274_v59, %v3271_v11 }
0x14db   : > { %v6620_v43 = vadd.f32 %v3277_v17, %v3276_v47 }
0x14dd   : > { %3280 = vrot.lane.b32.xlu0 %v6620_v43, %s5497_s19 }
0x154f   : > { %v3281_v50 = vpop.permute.xlu0 %3280 }
0x1550   : > { %4350 = vst.msk [vmem:[%s5909_s16 + $0x10] sm:$0xff] %vm773_vm2, %v3281_v50  ;;  %4598 = vmatmul.mubr.msk.f32.vlgmr.msra.gmra.mrb[12].mxu1 %vm773_vm2, %v3281_v50 }
0x1551   : > { %4717 = vmatpush3.bf16.msra.mxu1 %v6112_v3  ;;  %4626 = vmatprep.mubr.msk.f32.mxu1 %vm5492_vm1, %v6922_v58 }
0x1552   : > { %4718 = vmatprep.subr.bf16.mxu1 %v6923_v52 }
0x1555   : > { %4720 = vmatpush3.bf16.msra.mxu1 %v6115_v6 }
0x1558   : > { %4627 = vmatmul.mubr.msk.f32.vlgmr.msra.gmra.mrb[14].mxu1 %vm773_vm2, %v3281_v50 }
0x1623   : > { %v3355_v0 = vpop.f32.mrb[12].mxu1 }
0x1624   : > { %v3356_v48 = vadd.f32 %v6423_v39, %v3355_v0  ;;  %v4599_v49 = vpop.f32.mrb[13].mxu1 }
0x1626   : > { %v3360_v53 = vcombine.high %v3356_v48, %v3356_v48  ;;  %v3367_v54 = vrot.slane %v3356_v48, %v5958_v38 }
0x1628   : > { %v3374_v32 = vrot.slane %v3360_v53, %v5958_v38  ;;  %v3375_v45 = vcombine.high %v3367_v54, %v3367_v54  ;;  %v3383_v3 = vrot.slane %v3367_v54, %v5958_v38 }
0x162a   : > { %v3376_v61 = vcombine.high %v3374_v32, %v3374_v32  ;;  %v3390_v2 = vrot.slane %v3374_v32, %v5958_v38  ;;  %v3397_v25 = vrot.slane %v3375_v45, %v5958_v38  ;;  %v3405_v6 = vcombine.high %v3383_v3, %v3383_v3 }
0x162b   : > { %v3412_v34 = vrot.slane %v3383_v3, %v5963_v44  ;;  %v6640_v31 = vpop.f32.mrb[14].mxu1 }
0x162c   : > { %v3404_v39 = vrot.slane %v3376_v61, %v5958_v38  ;;  %v3407_v15 = vcombine.high %v3397_v25, %v3397_v25  ;;  %v3416_v26 = vrot.slane %v3397_v25, %v5963_v44  ;;  %v4628_v10 = vpop.f32.mrb[15].mxu1  ;;  %v3420_v21 = vrot.slane %v3405_v6, %v5963_v44 }
0x162d   : > { %v3428_v16 = vrot.slane %v3390_v2, %v5963_v44  ;;  %v3449_v60 = vadd.f32 %v6438_v7, %v3412_v34  ;;  %v3406_v4 = vcombine.high %v3390_v2, %v3390_v2 }
0x162e   : > { %v3408_v9 = vcombine.high %v3404_v39, %v3404_v39  ;;  %v3424_v27 = vrot.slane %v3407_v15, %v5963_v44  ;;  %v3432_v18 = vrot.slane %v3404_v39, %v5963_v44  ;;  %v3450_v29 = vadd.f32 %v6444_v37, %v3416_v26 }
0x162f   : > { %v3451_v38 = vadd.f32 %v6447_v42, %v3420_v21  ;;  %5044 = vtanh.f32 %v3449_v60  ;;  %v3453_v30 = vadd.f32 %v6453_v33, %v3428_v16  ;;  %v3436_v41 = vrot.slane %v3406_v4, %v5963_v44 }
0x1630   : > { %v3440_v12 = vrot.slane %v3408_v9, %v5963_v44  ;;  %v3454_v8 = vadd.f32 %v6457_v5, %v3432_v18  ;;  %5046 = vtanh.f32 %v3450_v29  ;;  %v3452_v7 = vadd.f32 %v6450_v28, %v3424_v27 }
0x1631   : > { %5048 = vtanh.f32 %v3451_v38  ;;  %v3455_v37 = vadd.f32 %v6460_v62, %v3436_v41 }
0x1632   : > { %v3456_v14 = vadd.f32 %v6463_v19, %v3440_v12  ;;  %5050 = vtanh.f32 %v3453_v30 }
0x1633   : > { %5052 = vtanh.f32 %v3454_v8 }
0x1634   : > { %5054 = vtanh.f32 %v3452_v7 }
0x1635   : > { %5056 = vtanh.f32 %v3456_v14 }
0x1636   : > { %5058 = vtanh.f32 %v3455_v37 }
0x1639   : > { %v5045_v42 = vpop.eup %5044 }
0x163a   : > { %v3465_v55 = vmul.f32 %v6469_v20, %v5045_v42  ;;  %v5047_v33 = vpop.eup %5046 }
0x163b   : > { %v5049_v5 = vpop.eup %5048  ;;  %v3466_v28 = vmul.f32 %v6469_v20, %v5047_v33 }
0x163c   : > { %v3473_v11 = vsel %vm773_vm2, %v3465_v55, 0.0  ;;  %v3467_v59 = vmul.f32 %v6469_v20, %v5049_v5  ;;  %v5051_v19 = vpop.eup %5050 }
0x163d   : > { %3474 = vadd.xlane.f32.xlu0 %v3473_v11  ;;  %v3476_v17 = vsel %vm773_vm2, %v3466_v28, 0.0  ;;  %v5053_v47 = vpop.eup %5052  ;;  %v3469_v48 = vmul.f32 %v6469_v20, %v5051_v19 }
0x163e   : > { %3477 = vadd.xlane.f32.xlu1 %v3476_v17  ;;  %v5055_v62 = vpop.eup %5054  ;;  %v3479_v50 = vsel %vm773_vm2, %v3467_v59, 0.0  ;;  %v3470_v0 = vmul.f32 %v6469_v20, %v5053_v47 }
0x163f   : > { %v5057_v49 = vpop.eup %5056  ;;  %v3485_v32 = vsel %vm773_vm2, %v3469_v48, 0.0  ;;  %v3468_v45 = vmul.f32 %v6469_v20, %v5055_v62 }
0x1640   : > { %v3488_v53 = vsel %vm773_vm2, %v3470_v0, 0.0  ;;  %v3472_v54 = vmul.f32 %v6469_v20, %v5057_v49  ;;  %v5059_v3 = vpop.eup %5058 }
0x1641   : > { %3480 = vadd.xlane.f32.xlu0 %v3479_v50  ;;  %v3482_v2 = vsel %vm773_vm2, %v3468_v45, 0.0  ;;  %v3471_v25 = vmul.f32 %v6469_v20, %v5059_v3 }
0x1642   : > { %3489 = vadd.xlane.f32.xlu1 %v3488_v53  ;;  %v3494_v61 = vsel %vm773_vm2, %v3472_v54, 0.0 }
0x1643   : > { %v3491_v6 = vsel %vm773_vm2, %v3471_v25, 0.0 }
0x1645   : > { %3486 = vadd.xlane.f32.xlu0 %v3485_v32 }
0x1646   : > { %3495 = vadd.xlane.f32.xlu1 %v3494_v61 }
0x1649   : > { %3483 = vadd.xlane.f32.xlu0 %v3482_v2 }
0x164d   : > { %3492 = vadd.xlane.f32.xlu0 %v3491_v6 }
0x16ca   : > { %v3475_v34 = vpop.xlane.xlu0 %3474 }
0x16cb   : > { %v3478_v39 = vpop.xlane.xlu1 %3477  ;;  %v3508_v21 = vrot.slane %v3475_v34, %v6025_v56 }
0x16cc   : > { %v3512_v26 = vrot.slane %v3478_v39, %v6025_v56 }
0x16ce   : > { %v3481_v15 = vpop.xlane.xlu0 %3480  ;;  %v3537_v9 = vsel %vm1033_vm3, %v3512_v26, %v3508_v21 }
0x16cf   : > { %v3490_v16 = vpop.xlane.xlu1 %3489  ;;  %v3516_v60 = vrot.slane %v3481_v15, %v6025_v56 }
0x16d0   : > { %v3528_v29 = vrot.slane %v3490_v16, %v6025_v56 }
0x16d1   : > { %v3538_v18 = vsel %vm1035_vm4, %v3516_v60, %v3537_v9 }
0x16d2   : > { %v3487_v10 = vpop.xlane.xlu0 %3486 }
0x16d3   : > { %v3524_v4 = vrot.slane %v3487_v10, %v6025_v56  ;;  %v3496_v38 = vpop.xlane.xlu1 %3495 }
0x16d4   : > { %v3536_v14 = vrot.slane %v3496_v38, %v6025_v56 }
0x16d6   : > { %v3484_v27 = vpop.xlane.xlu0 %3483 }
0x16d7   : > { %v3520_v20 = vrot.slane %v3484_v27, %v6025_v56 }
0x16d9   : > { %v3539_v12 = vsel %vm1037_vm5, %v3520_v20, %v3538_v18 }
0x16da   : > { %v3540_v30 = vsel %vm1039_vm6, %v3524_v4, %v3539_v12  ;;  %v3493_v8 = vpop.xlane.xlu0 %3492 }
0x16db   : > { %v3532_v7 = vrot.slane %v3493_v8, %v6025_v56  ;;  %v3541_v41 = vsel %vm1041_vm7, %v3528_v29, %v3540_v30 }
0x16dd   : > { %v3542_v37 = vsel %vm1043_vm8, %v3532_v7, %v3541_v41 }
0x16de   : > { %v3543_v42 = vsel %vm1045_vm9, %v3536_v14, %v3542_v37 }
0x16df   : > { %v3545_v55 = vsel %vm1048_vm10, %v3543_v42, -inf }
0x16e0   : > { %3546 = vmax.xlane.f32.xlu0 %v3545_v55 }
0x176d   : > { %v3547_v33 = vpop.xlane.xlu0 %3546 }
0x176e   : > { %v3552_v5 = vrot.slane %v3547_v33, %v5963_v44  ;;  %v3556_v11 = vrot.slane %v3547_v33, %v6044_v22  ;;  %v3560_v28 = vrot.slane %v3547_v33, %v6047_v23  ;;  %v3568_v59 = vrot.slane %v3547_v33, %v6056_v40 }
0x176f   : > { %v3564_v19 = vrot.slane %v3547_v33, %v6050_v24  ;;  %v3576_v50 = vrot.slane %v3547_v33, %v6064_v51  ;;  %v3572_v53 = vrot.slane %v3547_v33, %v6060_v46  ;;  %v3580_v61 = vrot.slane %v3547_v33, %v6068_v57 }
0x1770   : > { %v3589_v17 = vsub.f32 %v3475_v34, %v3552_v5  ;;  %v3590_v47 = vsub.f32 %v3478_v39, %v3556_v11  ;;  %v3591_v62 = vsub.f32 %v3481_v15, %v3560_v28  ;;  %v3593_v0 = vsub.f32 %v3487_v10, %v3568_v59 }
0x1771   : > { %v3592_v54 = vsub.f32 %v3484_v27, %v3564_v19  ;;  %v3595_v45 = vsub.f32 %v3493_v8, %v3576_v50  ;;  %v3594_v2 = vsub.f32 %v3490_v16, %v3572_v53  ;;  %v3596_v34 = vsub.f32 %v3496_v38, %v3580_v61 }
0x1772   : > { %v3597_v48 = vmul.f32 1.442695, %v3589_v17  ;;  %v3599_v49 = vmul.f32 1.442695, %v3590_v47  ;;  %v3601_v32 = vmul.f32 1.442695, %v3591_v62 }
0x1773   : > { %v3605_v3 = vmul.f32 1.442695, %v3593_v0  ;;  %v3603_v25 = vmul.f32 1.442695, %v3592_v54  ;;  %v3609_v6 = vmul.f32 1.442695, %v3595_v45 }
0x1774   : > { %5060 = vpow2.f32 %v3597_v48  ;;  %v3607_v39 = vmul.f32 1.442695, %v3594_v2  ;;  %v3611_v10 = vmul.f32 1.442695, %v3596_v34  ;;  %v6728_v48 = vadd.f32 %v6551_v63, %v6640_v31 }
0x1775   : > { %5062 = vpow2.f32 %v3599_v49 }
0x1776   : > { %5064 = vpow2.f32 %v3601_v32 }
0x1777   : > { %5066 = vpow2.f32 %v3605_v3 }
0x1778   : > { %5068 = vpow2.f32 %v3603_v25 }
0x1779   : > { %5070 = vpow2.f32 %v3609_v6 }
0x177a   : > { %5072 = vpow2.f32 %v3607_v39 }
0x177b   : > { %5074 = vpow2.f32 %v3611_v10 }
0x177e   : > { %v5061_v15 = vpop.eup %5060 }
0x177f   : > { %v5063_v26 = vpop.eup %5062  ;;  %3622 = vperm.xlu1 %4880, %v5061_v15  }
0x1780   : > { %3625 = vperm.xlu0 %4881, %v5063_v26   ;;  %v5065_v21 = vpop.eup %5064 }
0x1781   : > { %v6698_v60 = vpop.eup %5066 }
0x1782   : > { %v5069_v16 = vpop.eup %5068 }
0x1783   : > { %3628 = vperm.xlu1 %4880, %v5065_v21   ;;  %v6701_v9 = vpop.eup %5070 }
0x1784   : > { %3634 = vperm.xlu0 %4881, %v6698_v60   ;;  %v6704_v27 = vpop.eup %5072 }
0x1785   : > { %v6707_v20 = vpop.eup %5074 }
0x1787   : > { %3631 = vperm.xlu1 %4880, %v5069_v16  }
0x1788   : > { %3640 = vperm.xlu0 %4881, %v6701_v9  }
0x178b   : > { %3637 = vperm.xlu1 %4880, %v6704_v27  }
0x178f   : > { %3643 = vperm.xlu1 %4880, %v6707_v20  }
0x17fe   : > { %v3623_v18 = vpop.permute.xlu1 %3622 }
0x17ff   : > { %v3626_v4 = vpop.permute.xlu0 %3625  ;;  %v3648_v12 = vrot.slane %v3623_v18, %v6025_v56  ;;  %v6938_v18 = vld [vmem:[#allocation30_spill] sm:$0xff] }
0x1800   : > { %v3652_v38 = vrot.slane %v3626_v4, %v6025_v56 }
0x1802   : > { %v3629_v29 = vpop.permute.xlu1 %3628  ;;  %v3677_v41 = vsel %vm1033_vm3, %v3652_v38, %v3648_v12  ;;  %v6939_v12 = vld [vmem:[#allocation31_spill] sm:$0xff] }
0x1803   : > { %v3656_v30 = vrot.slane %v3629_v29, %v6025_v56  ;;  %v3635_v8 = vpop.permute.xlu0 %3634 }
0x1804   : > { %v3664_v55 = vrot.slane %v3635_v8, %v6025_v56 }
0x1805   : > { %v3678_v37 = vsel %vm1035_vm4, %v3656_v30, %v3677_v41 }
0x1806   : > { %v3632_v7 = vpop.permute.xlu1 %3631 }
0x1807   : > { %v3660_v14 = vrot.slane %v3632_v7, %v6025_v56  ;;  %v3641_v5 = vpop.permute.xlu0 %3640 }
0x1808   : > { %v3672_v19 = vrot.slane %v3641_v5, %v6025_v56 }
0x1809   : > { %v3679_v42 = vsel %vm1037_vm5, %v3660_v14, %v3678_v37  ;;  %v6940_v14 = vld [vmem:[#allocation32_spill] sm:$0xff] }
0x180a   : > { %v3638_v33 = vpop.permute.xlu1 %3637  ;;  %v3680_v28 = vsel %vm1039_vm6, %v3664_v55, %v3679_v42 }
0x180b   : > { %v3668_v11 = vrot.slane %v3638_v33, %v6025_v56 }
0x180d   : > { %v3681_v59 = vsel %vm1041_vm7, %v3668_v11, %v3680_v28 }
0x180e   : > { %v3644_v17 = vpop.permute.xlu1 %3643  ;;  %v3682_v62 = vsel %vm1043_vm8, %v3672_v19, %v3681_v59  ;;  %v6941_v19 = vld [vmem:[#allocation33_spill] sm:$0xff] }
0x180f   : > { %v3676_v47 = vrot.slane %v3644_v17, %v6025_v56 }
0x1811   : > { %v3683_v50 = vsel %vm1045_vm9, %v3676_v47, %v3682_v62 }
0x1812   : > { %v3685_v0 = vsel %vm1048_vm10, %v3683_v50, 0.0 }
0x1813   : > { %3686 = vadd.xlane.f32.xlu0 %v3685_v0 }
0x1829   : > { %4088 = vrot.lane.b32.xlu0 %v6728_v48, %s5496_s9 }
0x18a0   : > { %v3687_v49 = vpop.xlane.xlu0 %3686 }
0x18a1   : > { %v3692_v53 = vrot.slane %v3687_v49, %v5963_v44  ;;  %v3696_v54 = vrot.slane %v3687_v49, %v6044_v22  ;;  %v3700_v56 = vrot.slane %v3687_v49, %v6047_v23  ;;  %v3704_v32 = vrot.slane %v3687_v49, %v6050_v24 }
0x18a2   : > { %v3708_v63 = vrot.slane %v3687_v49, %v6056_v40  ;;  %v3712_v61 = vrot.slane %v3687_v49, %v6060_v46  ;;  %v3716_v22 = vrot.slane %v3687_v49, %v6064_v51  ;;  %v3720_v24 = vrot.slane %v3687_v49, %v6068_v57  ;;  %v4351_v57 = vld [vmem:[%s5887_s14 + $0x18] sm:$0xff]  ;;  %s6944_s14 = sld [smem:[#allocation28_spill]] }
0x18a3   : > { %5076 = vrcp.f32 %v3692_v53  ;;  %4605 = vmatmul.mubr.msk.f32.vlgmr.msra.gmra.mrb[12].mxu0 %vm1353_vm11, %v4351_v57 }
0x18a4   : > { %5078 = vrcp.f32 %v3696_v54  ;;  %4711 = vmatpush3.bf16.msra.mxu0 %v6153_v13  ;;  %4615 = vmatprep.mubr.msk.f32.mxu0 %vm5492_vm1, %v6922_v58 }
0x18a5   : > { %5080 = vrcp.f32 %v3700_v56  ;;  %4712 = vmatprep.subr.bf16.mxu0 %v6923_v52 }
0x18a6   : > { %5082 = vrcp.f32 %v3704_v32 }
0x18a7   : > { %5084 = vrcp.f32 %v3708_v63 }
0x18a8   : > { %5086 = vrcp.f32 %v3712_v61  ;;  %4714 = vmatpush3.bf16.msra.mxu0 %v6163_v1  ;;  %s4364_s1 = sshll.u32 %s6944_s14, 9  ;;  %s5376_s14 = sshll.u32 %s5499_s27, 4  ;;  %s5377_s14 = int_to_ptr.vmem [resolvable:$false] %s5376_s14 }
0x18a9   : > { %5088 = vrcp.f32 %v3716_v22  ;;  %s6786_s24 = scalar_lea.hbm %s6945_s28, %s4364_s1  ;;  %s5378_s1 = scalar_lea.vmem %s5377_s14, 1024 }
0x18aa   : > { %5090 = vrcp.f32 %v3720_v24  ;;  %p5379_p0 = scmp.lt.s32.totalorder %s6788_s0, %s5377_s14 }
0x18ad   : > { %v5077_v45 = vpop.eup %5076 }
0x18ae   : > { %v3730_v31 = vmul.f32 %v5077_v45, %v5061_v15  ;;  %v5079_v3 = vpop.eup %5078  ;;  %v6942_v45 = vld [vmem:[#allocation34_spill] sm:$0xff] }
0x18af   : > { %v3732_v44 = vmul.f32 %v5079_v3, %v5063_v26  ;;  %v5081_v2 = vpop.eup %5080 }
0x18b0   : > { %3747 = vperm.xlu1 %4880, %v3730_v31   ;;  %v3734_v23 = vmul.f32 %v5081_v2, %v5065_v21  ;;  %v5083_v25 = vpop.eup %5082 }
0x18b1   : > { %v3736_v40 = vmul.f32 %v5083_v25, %v5069_v16  ;;  %v5085_v6 = vpop.eup %5084 }
0x18b2   : > { %v3738_v34 = vmul.f32 %v5085_v6, %v6698_v60  ;;  %v5087_v46 = vpop.eup %5086  ;;  %v6943_v6 = vld [vmem:[#allocation35_spill] sm:$0xff] }
0x18b3   : > { %v3740_v39 = vmul.f32 %v5087_v46, %v6704_v27  ;;  %v5089_v15 = vpop.eup %5088  ;;  %v6937_v27 = vld [vmem:[#allocation29_spill] sm:$0xff] }
0x18b4   : > { %3752 = vperm.xlu1 %4880, %v3732_v44   ;;  %v3742_v51 = vmul.f32 %v5089_v15, %v6701_v9  ;;  %v5091_v26 = vpop.eup %5090 }
0x18b5   : > { %v3744_v10 = vmul.f32 %v5091_v26, %v6707_v20 }
0x18b8   : > { %3757 = vperm.xlu1 %4880, %v3734_v23  }
0x18bc   : > { %3762 = vperm.xlu1 %4880, %v3736_v40  }
0x18c0   : > { %3767 = vperm.xlu1 %4880, %v3738_v34  }
0x18c4   : > { %3772 = vperm.xlu1 %4880, %v3740_v39  }
0x18c8   : > { %3777 = vperm.xlu1 %4880, %v3742_v51  }
0x18cc   : > { %3782 = vperm.xlu1 %4880, %v3744_v10  }
0x192f   : > { %v3748_v21 = vpop.permute.xlu1 %3747 }
0x1930   : > { %v3785_v20 = vmul.f32 %v6937_v27, %v3748_v21 }
0x1932   : > { %v3793_v58 = vsel %vm773_vm2, %v3785_v20, 0.0 }
0x1933   : > { %v3753_v60 = vpop.permute.xlu1 %3752  ;;  %v3794_v7 = vrot.slane %v3793_v58, 4 }
0x1934   : > { %v3786_v16 = vmul.f32 %v6567_v35, %v3753_v60 }
0x1935   : > { %v3795_v5 = vadd.f32 %v3794_v7, %v3793_v58 }
0x1936   : > { %v3800_v29 = vsel %vm773_vm2, %v3786_v16, 0.0 }
0x1937   : > { %v3758_v9 = vpop.permute.xlu1 %3757  ;;  %v3801_v30 = vrot.slane %v3800_v29, 4  ;;  %v3796_v49 = vrot.slane %v3795_v5, 2 }
0x1938   : > { %v3787_v4 = vmul.f32 %v6938_v18, %v3758_v9 }
0x1939   : > { %v3802_v42 = vadd.f32 %v3801_v30, %v3800_v29  ;;  %v3797_v2 = vadd.f32 %v3796_v49, %v3795_v5 }
0x193a   : > { %v3807_v13 = vsel %vm773_vm2, %v3787_v4, 0.0 }
0x193b   : > { %v3763_v38 = vpop.permute.xlu1 %3762  ;;  %v3808_v1 = vrot.slane %v3807_v13, 4  ;;  %v3803_v47 = vrot.slane %v3802_v42, 2  ;;  %v3798_v10 = vrot.slane %v3797_v2, 1 }
0x193c   : > { %v3788_v52 = vmul.f32 %v6939_v12, %v3763_v38 }
0x193d   : > { %v3809_v55 = vadd.f32 %v3808_v1, %v3807_v13  ;;  %v3804_v31 = vadd.f32 %v3803_v47, %v3802_v42  ;;  %v3799_v29 = vadd.f32 %v3798_v10, %v3797_v2 }
0x193e   : > { %v3814_v8 = vsel %vm773_vm2, %v3788_v52, 0.0 }
0x193f   : > { %v3815_v35 = vrot.slane %v3814_v8, 4  ;;  %v3768_v41 = vpop.permute.xlu1 %3767  ;;  %v3810_v50 = vrot.slane %v3809_v55, 2  ;;  %v3805_v46 = vrot.slane %v3804_v31, 1 }
0x1940   : > { %v3789_v37 = vmul.f32 %v6940_v14, %v3768_v41 }
0x1941   : > { %v3816_v11 = vadd.f32 %v3815_v35, %v3814_v8  ;;  %v3811_v61 = vadd.f32 %v3810_v50, %v3809_v55  ;;  %v3806_v9 = vadd.f32 %v3805_v46, %v3804_v31 }
0x1942   : > { %v3821_v33 = vsel %vm773_vm2, %v3789_v37, 0.0 }
0x1943   : > { %v3822_v28 = vrot.slane %v3821_v33, 4  ;;  %v3773_v59 = vpop.permute.xlu1 %3772  ;;  %v3817_v53 = vrot.slane %v3816_v11, 2  ;;  %v3812_v51 = vrot.slane %v3811_v61, 1  ;;  %v3930_v52 = vsel %vm1033_vm3, %v3806_v9, %v3799_v29 }
0x1944   : > { %v3790_v17 = vmul.f32 %v6941_v19, %v3773_v59 }
0x1945   : > { %v3823_v62 = vadd.f32 %v3822_v28, %v3821_v33  ;;  %v3818_v22 = vadd.f32 %v3817_v53, %v3816_v11  ;;  %v3813_v4 = vadd.f32 %v3812_v51, %v3811_v61  ;;  %v4089_v53 = vpop.permute.xlu0 %4088 }
0x1946   : > { %v3828_v0 = vsel %vm773_vm2, %v3790_v17, 0.0 }
0x1947   : > { %v3829_v54 = vrot.slane %v3828_v0, 4  ;;  %v3778_v56 = vpop.permute.xlu1 %3777  ;;  %v3824_v32 = vrot.slane %v3823_v62, 2  ;;  %v3819_v57 = vrot.slane %v3818_v22, 1  ;;  %v3931_v8 = vsel %vm1035_vm4, %v3813_v4, %v3930_v52 }
0x1948   : > { %v3791_v63 = vmul.f32 %v6942_v45, %v3778_v56 }
0x1949   : > { %v3830_v3 = vadd.f32 %v3829_v54, %v3828_v0  ;;  %v3825_v40 = vadd.f32 %v3824_v32, %v3823_v62  ;;  %v3820_v13 = vadd.f32 %v3819_v57, %v3818_v22 }
0x194a   : > { %v3835_v44 = vsel %vm773_vm2, %v3791_v63, 0.0 }
0x194b   : > { %v3831_v23 = vrot.slane %v3830_v3, 2  ;;  %v3836_v25 = vrot.slane %v3835_v44, 4  ;;  %v3783_v24 = vpop.permute.xlu1 %3782  ;;  %v3826_v16 = vrot.slane %v3825_v40, 1  ;;  %v3932_v35 = vsel %vm1037_vm5, %v3820_v13, %v3931_v8 }
0x194c   : > { %v3792_v34 = vmul.f32 %v6943_v6, %v3783_v24 }
0x194d   : > { %v3832_v39 = vadd.f32 %v3831_v23, %v3830_v3  ;;  %v3837_v15 = vadd.f32 %v3836_v25, %v3835_v44  ;;  %v3827_v12 = vadd.f32 %v3826_v16, %v3825_v40 }
0x194e   : > { %v3842_v26 = vsel %vm773_vm2, %v3792_v34, 0.0 }
0x194f   : > { %v3838_v21 = vrot.slane %v3837_v15, 2  ;;  %v3843_v60 = vrot.slane %v3842_v26, 4  ;;  %v3833_v27 = vrot.slane %v3832_v39, 1  ;;  %v3933_v14 = vsel %vm1039_vm6, %v3827_v12, %v3932_v35 }
0x1951   : > { %v3839_v20 = vadd.f32 %v3838_v21, %v3837_v15  ;;  %v3844_v18 = vadd.f32 %v3843_v60, %v3842_v26  ;;  %v3834_v30 = vadd.f32 %v3833_v27, %v3832_v39 }
0x1953   : > { %v3840_v38 = vrot.slane %v3839_v20, 1  ;;  %v3845_v58 = vrot.slane %v3844_v18, 2  ;;  %v3934_v42 = vsel %vm1041_vm7, %v3834_v30, %v3933_v14 }
0x1955   : > { %v3846_v1 = vadd.f32 %v3845_v58, %v3844_v18  ;;  %v3841_v7 = vadd.f32 %v3840_v38, %v3839_v20 }
0x1957   : > { %v3847_v41 = vrot.slane %v3846_v1, 1  ;;  %v3935_v55 = vsel %vm1043_vm8, %v3841_v7, %v3934_v42 }
0x1959   : > { %v3848_v37 = vadd.f32 %v3847_v41, %v3846_v1 }
0x195b   : > { %v3936_v33 = vsel %vm1045_vm9, %v3848_v37, %v3935_v55 }
0x195c   : > { %4616 = vmatmul.mubr.msk.f32.vlgmr.msra.gmra.mrb[14].mxu0 %vm773_vm2, %v3936_v33 }
0x1976   : > { %v3918_v5 = vpop.f32.mrb[12].mxu0 }
0x1977   : > { %v4606_v11 = vpop.f32.mrb[13].mxu0 }
0x1a2f   : > { %v4005_v28 = vpop.f32.mrb[14].mxu0 }
0x1a30   : > { %v4006_v59 = vadd.f32 %v4005_v28, %v3918_v5  ;;  %v4617_v19 = vpop.f32.mrb[15].mxu0 }
0x1a32   : > { %v4009_v17 = vadd.f32 %v6613_v36, %v4006_v59 }
0x1a34   : > { %v4080_v47 = vadd.f32 %v6728_v48, %v4009_v17 }
0x1a36   : > { %v4356_v62 = vmul.f32 -1.442695, %v4080_v47 }
0x1a38   : > { %5092 = vpow2.f32 %v4356_v62 }
0x1a42   : > { %v5093_v50 = vpop.eup %5092 }
0x1a43   : > { %v4084_v0 = vadd.f32 1.0, %v5093_v50 }
0x1a45   : > { %5094 = vrcp.f32 %v4084_v0 }
0x1a4f   : > { %v5095_v49 = vpop.eup %5094 }
0x1a50   : > { %v4091_v54 = vmul.f32 %v5095_v49, %v4089_v53  ;;  %v4098_v48 = vsub.f32 1.0, %v5095_v49  ;;  %v4104_v63 = vmul.f32 %v5095_v49, %v6620_v43 }
0x1a52   : > { %4093 = vrot.lane.b32.xlu1 %v4091_v54, %s5496_s9 }
0x1ac4   : > { %v4094_v56 = vpop.permute.xlu1 %4093 }
0x1ac5   : > { %v4096_v32 = vadd.f32 %v4094_v56, %v4009_v17 }
0x1ac7   : > { %5096 = vtanh.f32 %v4096_v32 }
0x1ad1   : > { %v5097_v36 = vpop.eup %5096 }
0x1ad2   : > { %4100 = vrot.lane.b32.xlu1 %v5097_v36, %s5497_s19 }
0x1b44   : > { %v4101_v45 = vpop.permute.xlu1 %4100 }
0x1b45   : > { %v4103_v31 = vmul.f32 %v4101_v45, %v4098_v48 }
0x1b47   : > { %v4105_v3 = vadd.f32 %v4104_v63, %v4103_v31 }
0x1b49   : > { %4107 = vrot.lane.b32.xlu1 %v4105_v3, %s5497_s19  ;;  %s5372_s19 = scalar_lea.vmem %s6788_s0, 512 }
0x1b4a   : > { %p5373_p7 = scmp.ne.s32.totalorder %s6788_s0, %s5372_s19  ;;  %p5380_p5 = scmp.lt.s32.totalorder %s5378_s1, %s5372_s19 }
0x1b4c   : > { %p5374_p10 = pnand %p5373_p7, %p6946_p1  ;;  %p5381_p13 = por %p5380_p5, %p5379_p0 }
0x1b4e   : > { %p5375_p12 = pneg %p5374_p10 }
0x1b50   : > { %p5382_p2 = pnand %p5381_p13, %p5375_p12 }
0x1bbb   : > { %v4108_v61 = vpop.permute.xlu1 %4107 }
0x1bbc   : > { %4357 = vst.msk [vmem:[%s5909_s16 + $0x18] sm:$0xff] %vm773_vm2, %v4108_v61  ;;  %4112 = vst.msk [vmem:[#allocation2] sm:$0xff] %vm773_vm2, %v4108_v61 }
0x1bbd   : > { %5385 = shalt.err (!%p5382_p2)
}
0x1bbe   : > { %s5386_s6 = scalar_lea.hbm %s6786_s24, 512  ;;  %s5390_s29 = scalar_lea.hbm %s6945_s28, 1024 }
0x1bbf   : > { %p5387_p8 = scmp.ne.s32.totalorder %s6786_s24, %s5386_s6  ;;  %p5391_p11 = scmp.lt.u32.totalorder %s6786_s24, %s6945_s28 }
0x1bc0   : > { %p5392_p6 = scmp.lt.u32.totalorder %s5390_s29, %s5386_s6  ;;  %p5394_p7 = scmp.lt.u32.totalorder %s5386_s6, %s6786_s24 }
0x1bc1   : > { %p5388_p9 = pnand %p5387_p8, %p6946_p1 }
0x1bc2   : > { %p5393_p3 = por %p5392_p6, %p5391_p11 }
0x1bc3   : > { %p5389_p4 = pneg %p5388_p9 }
0x1bc4   : > { %p5395_p10 = por %p5394_p7, %p5393_p3 }
0x1bc6   : > { %p5396_p12 = pnand %p5395_p10, %p5389_p4 }
0x1bc8   : > { %5399 = shalt.err (!%p5396_p12)
}
0x1bc9   : > { %s5500_s19 = smov 128   ;;  %s5501_s1 = smov 8  }
0x1bca   : > { %4759 = dma.vmem_to_hbm [thread:$0]  (%p6946_p1), %s6788_s0, 512, %s6786_s24, %s6795_s17, %s5500_s19, %s5500_s19, %s5501_s1  }
0x1bcb PF: > { %s4143_s16 = sand.u32 1, %s5458_s21   ;;  %p6947_p0 = scmp.ne.s32.totalorder %s6896_s12, 0 }
0x1bcc   : > { %p6948_p5 = scmp.ge.s32.totalorder %s5478_s26, 2  ;;  %s4144_s6 = scalar_lea.sflag [#allocation6], %s4143_s16 }
0x1bce   : > { %p4791_p13 = pnand %p6948_p5, %p6947_p0 }
0x1bd0   : > { %5453 = dma.done.wait (!%p4791_p13), %s4144_s6, 512  }
0x1bd1   : > { %5455 = vsyncadd (!%p4791_p13), %s4144_s6, 4294966784  ;;  %s30_s26 = sadd.s32 1, %s5478_s26   ;;  %s6949_s21 = smov %s5462_s22 }
0x1bd2   : > { %p27_p2 = scmp.ge.s32.totalorder %s30_s26, 4   ;;  %s6950_s22 = smov %s5466_s23 }
0x1bd3   : > { %s6951_s23 = smov %s5819_s30  ;;  %s6952_s24 = smov %s5474_s25 }
0x1bd4   : > { %s6953_s25 = smov %s6955_s13  ;;  %29 = sbr.rel (!%p27_p2) target bundleno = 16 (0x10), region = 156 }
0x1bdb   :  { %4149 = vsyncpa [#allocation5], 1 }
0x1bdc   :  { %4151 = vsyncpa [#allocation5 + $0x1], 1 }
0x1bdd   :  { %4152 = vsyncpa [#allocation8], 1 }
0x1bde   :  { %4153 = vsyncpa [#allocation12], 1 }
0x1bdf   :  { %4154 = vsyncpa [#allocation15], 1 }
0x1be0   :  { %4155 = vsyncpa [#allocation18], 1 }
0x1be1   :  { %4156 = vsyncpa [#allocation6], 1 }
0x1be2   :  { %4158 = vsyncpa [#allocation6 + $0x1], 1 }

// kernel: tpu_custom_call.1
= control target key start
LH: loop header
LB: loop body
LE: loop exit
PB: predicated region body
PF: predicated region fallthrough
CT: control target
= control target key end

     0   :  { %s6842_s0 = inlined_call_operand.hbm [shape: f32[8,32], index: 0, kind: input, shape index: {}]   ;;  %s6843_s1 = inlined_call_operand.hbm [shape: f32[8,8,32], index: 1, kind: input, shape index: {}]   ;;  %s6844_s2 = inlined_call_operand.hbm [shape: f32[8,8,16], index: 2, kind: input, shape index: {}]   ;;  %s6845_s3 = inlined_call_operand.hbm [shape: f32[32,32], index: 3, kind: input, shape index: {}]   ;;  %s6846_s4 = inlined_call_operand.hbm [shape: f32[32,32], index: 4, kind: input, shape index: {}]   ;;  %s6847_s5 = inlined_call_operand.vmem [shape: f32[1,32], index: 5, kind: input, shape index: {}]   ;;  %s6848_s6 = inlined_call_operand.vmem [shape: f32[1,32], index: 6, kind: input, shape index: {}]   ;;  %s6849_s7 = inlined_call_operand.hbm [shape: f32[1,96], index: 7, kind: input, shape index: {}]   ;;  %s6850_s8 = inlined_call_operand.hbm [shape: f32[1,96], index: 8, kind: input, shape index: {}]   ;;  %s6851_s9 = inlined_call_operand.vmem [shape: f32[32,96], index: 9, kind: input, shape index: {}]   ;;  %s6852_s10 = inlined_call_operand.hbm [shape: f32[16,96], index: 10, kind: input, shape index: {}]   ;;  %s6853_s11 = inlined_call_operand.hbm [shape: f32[32,96], index: 11, kind: input, shape index: {}]   ;;  %s6854_s12 = inlined_call_operand.hbm [shape: f32[8,8,32], index: 12, kind: output, shape index: {}]  }
   0x1   :  { %6880 = sst [smem:[#allocation36_spill]] %s6842_s0 }
   0x2   :  { %6881 = sst [smem:[#allocation37_spill]] %s6843_s1 }
   0x3   :  { %6882 = sst [smem:[#allocation38_spill]] %s6847_s5 }
   0x4   :  { %6883 = sst [smem:[#allocation39_spill]] %s6848_s6 }
   0x5   :  { %6884 = sst [smem:[#allocation40_spill]] %s6851_s9 }
   0x6   :  { %6885 = sst [smem:[#allocation41_spill]] %s6854_s12 }
   0x7   :  { %17 = vsyncpa [#allocation5], 0 }
   0x8   :  { %18 = vsyncpa [#allocation8], 0 }
   0x9   :  { %19 = vsyncpa [#allocation12], 0 }
   0xa   :  { %20 = vsyncpa [#allocation15], 0 }
   0xb   :  { %21 = vsyncpa [#allocation18], 0 }
   0xc   :  { %22 = vsyncpa [#allocation6], 0 }
   0xd   :  { %24 = vsyncpa [#allocation6 + $0x1], 0  ;;  %s5567_s21 = smov 0   ;;  %s5569_s22 = smov 0  }
   0xe   :  { %s5571_s23 = smov 0   ;;  %s5573_s24 = smov 0  }
   0xf   :  { %s5575_s25 = smov 0   ;;  %s5577_s26 = smov 0  }
  0x10 LB: > { %6886 = sst [smem:[#allocation28_spill]] %s5470_s24  ;;  %s5598_s27 = sadd.s32 4294967295, %s5478_s26   ;;  %s5478_s26 = sphi %s5577_s26, %s30_s26   ;;  %s5474_s25 = sphi %s5575_s25, %s6953_s25   ;;  %s5470_s24 = sphi %s5573_s24, %s6952_s24   ;;  %s5466_s23 = sphi %s5571_s23, %s6951_s23   ;;  %s5462_s22 = sphi %s5569_s22, %s6950_s22   ;;  %s5458_s21 = sphi %s5567_s21, %s6949_s21  }
  0x11   : > { %p4295_p0 = scmp.ge.s32.totalorder %s5478_s26, 1  ;;  %p6857_p1 = scmp.eq.s32.totalorder %s5598_s27, 0 }
  0x12   : > { %p344_p2 = scmp.lt.s32.totalorder %s5478_s26, 3  ;;  %s5480_s29 = smov [#allocation4]  }
  0x13   : > { %s359_s30 = sshll.u32 %s5480_s29, 4  ;;  %s5481_s13 = smov [#allocation7]   ;;  %s360_s30 = int_to_ptr.vmem [resolvable:$true] %s359_s30 }
  0x14   : > { %p5603_p3 = pnand %p4295_p0, %p344_p2  ;;  %s372_s14 = sshll.u32 %s5481_s13, 4  ;;  %s5616_s14 = int_to_ptr.vmem [resolvable:$true] %s372_s14 }
  0x15   : > { %s5482_s16 = smov [#allocation11]   ;;  %s6889_s0 = sld [smem:[#allocation36_spill]] }
  0x16   : > { %s6887_s28 = scalar_select %p5603_p3, 1, 0 }
  0x17   : > { %p4761_p5 = pneg %p5603_p3  ;;  %s5618_s17 = sshll.u32 %s5482_s16, 4  ;;  %s399_s17 = int_to_ptr.vmem [resolvable:$true] %s5618_s17 }
  0x19   : > { %p5612_p6 = pnand %p4761_p5, %p6857_p1 }
  0x1b   : > { %s5118_s20 = scalar_lea.hbm %s6889_s0, 128  ;;  %p5628_p8 = pneg %p5612_p6 }
  0x1c   : > { %p5119_p7 = scmp.ne.s32.totalorder %s6889_s0, %s5118_s20  ;;  %p5125_p11 = scmp.lt.u32.totalorder %s5118_s20, %s6889_s0 }
  0x1e   : > { %p5121_p9 = pnand %p5628_p8, %p5119_p7 }
  0x20   : > { %p5122_p10 = pneg %p5121_p9 }
  0x22   : > { %p5127_p12 = pnand %p5125_p11, %p5122_p10 }
  0x24   : > { %5130 = shalt.err (!%p5127_p12)
}
  0x25   : > { %s5131_s18 = scalar_lea.vmem %s360_s30, 128  ;;  %p5139_p5 = scmp.lt.s32.totalorder %s360_s30, %s360_s30 }
  0x26   : > { %p5132_p13 = scmp.ne.s32.totalorder %s360_s30, %s5131_s18  ;;  %p5140_p4 = scmp.lt.s32.totalorder %s5131_s18, %s5131_s18 }
  0x28   : > { %p5134_p0 = pnand %p5132_p13, %p5628_p8  ;;  %p5141_p1 = por %p5140_p4, %p5139_p5 }
  0x2a   : > { %p5135_p2 = pneg %p5134_p0 }
  0x2c   : > { %p5142_p3 = pnand %p5141_p1, %p5135_p2 }
  0x2e   : > { %5145 = shalt.err (!%p5142_p3)
}
  0x2f   : > { %4764 = dma.hbm_to_vmem [thread:$0]  (!%p5612_p6), %s6889_s0, 128, %s360_s30, [#allocation5]  }
  0x30   : > { %s6891_s1 = sld [smem:[#allocation37_spill]] }
  0x36   : > { %s5146_s29 = scalar_lea.hbm %s6891_s1, 1024 }
  0x37   : > { %p5147_p7 = scmp.ne.s32.totalorder %s6891_s1, %s5146_s29  ;;  %p5153_p1 = scmp.lt.u32.totalorder %s5146_s29, %s6891_s1 }
  0x39   : > { %p5149_p9 = pnand %p5147_p7, %p5628_p8 }
  0x3b   : > { %p5150_p4 = pneg %p5149_p9 }
  0x3d   : > { %p5155_p3 = pnand %p5153_p1, %p5150_p4 }
  0x3f   : > { %5158 = shalt.err (!%p5155_p3)
}
  0x40   : > { %s5159_s30 = scalar_lea.vmem %s5616_s14, 1024  ;;  %p5167_p13 = scmp.lt.s32.totalorder %s5616_s14, %s5616_s14 }
  0x41   : > { %p5160_p10 = scmp.ne.s32.totalorder %s5616_s14, %s5159_s30  ;;  %p5168_p0 = scmp.lt.s32.totalorder %s5159_s30, %s5159_s30 }
  0x43   : > { %p5162_p11 = pnand %p5160_p10, %p5628_p8  ;;  %p5169_p2 = por %p5168_p0, %p5167_p13 }
  0x45   : > { %p5163_p12 = pneg %p5162_p11 }
  0x47   : > { %p5170_p5 = pnand %p5169_p2, %p5163_p12 }
  0x49   : > { %5173 = shalt.err (!%p5170_p5)
}
  0x4a   : > { %s6861_s5 = smov 128   ;;  %s5484_s6 = smov 8  }
  0x4b   : > { %4767 = dma.hbm_to_vmem [thread:$0]  (!%p5612_p6), %s6891_s1, 1024, %s5616_s14, [#allocation8], %s6861_s5, %s6861_s5, %s5484_s6  }
  0x4c   : > { %s5174_s29 = scalar_lea.hbm %s6846_s4, 512 }
  0x4d   : > { %p5175_p7 = scmp.ne.s32.totalorder %s6846_s4, %s5174_s29  ;;  %p5181_p1 = scmp.lt.u32.totalorder %s5174_s29, %s6846_s4 }
  0x4f   : > { %p5177_p9 = pnand %p5175_p7, %p5628_p8 }
  0x51   : > { %p5178_p4 = pneg %p5177_p9 }
  0x53   : > { %p5183_p3 = pnand %p5181_p1, %p5178_p4 }
  0x55   : > { %5186 = shalt.err (!%p5183_p3)
}
  0x56   : > { %s5187_s12 = scalar_lea.vmem %s399_s17, 512  ;;  %p5195_p13 = scmp.lt.s32.totalorder %s399_s17, %s399_s17 }
  0x57   : > { %p5188_p10 = scmp.ne.s32.totalorder %s399_s17, %s5187_s12  ;;  %p5196_p0 = scmp.lt.s32.totalorder %s5187_s12, %s5187_s12 }
  0x59   : > { %p5190_p11 = pnand %p5188_p10, %p5628_p8  ;;  %p5197_p2 = por %p5196_p0, %p5195_p13 }
  0x5b   : > { %p5191_p12 = pneg %p5190_p11 }
  0x5d   : > { %p5198_p5 = pnand %p5197_p2, %p5191_p12 }
  0x5f   : > { %5201 = shalt.err (!%p5198_p5)
}
  0x60   : > { %4773 = dma.hbm_to_vmem [thread:$0]  (!%p5612_p6), %s6846_s4, 512, %s399_s17, [#allocation12], %s6861_s5, %s6861_s5, %s5484_s6  }
  0x61   : > { %s5485_s19 = smov [#allocation14]   ;;  %s5486_s20 = smov [#allocation10]  }
  0x62   : > { %s429_s9 = sshll.u32 %s5485_s19, 4  ;;  %s385_s29 = sshll.u32 %s5486_s20, 4  ;;  %s430_s9 = int_to_ptr.vmem [resolvable:$true] %s429_s9  ;;  %s386_s29 = int_to_ptr.vmem [resolvable:$true] %s385_s29 }
  0x63   : > { %s5202_s30 = scalar_lea.hbm %s6850_s8, 16 }
  0x64   : > { %p5203_p7 = scmp.ne.s32.totalorder %s6850_s8, %s5202_s30  ;;  %p5209_p1 = scmp.lt.u32.totalorder %s5202_s30, %s6850_s8 }
  0x66   : > { %p5205_p9 = pnand %p5203_p7, %p5628_p8 }
  0x68   : > { %p5206_p4 = pneg %p5205_p9 }
  0x6a   : > { %p5211_p3 = pnand %p5209_p1, %p5206_p4 }
  0x6c   : > { %5214 = shalt.err (!%p5211_p3)
}
  0x6d   : > { %s5215_s17 = scalar_lea.vmem %s430_s9, 16  ;;  %s5222_s14 = scalar_lea.vmem %s430_s9, 32 }
  0x6e   : > { %p5216_p10 = scmp.ne.s32.totalorder %s430_s9, %s5215_s17  ;;  %p5223_p13 = scmp.lt.s32.totalorder %s430_s9, %s430_s9 }
  0x6f   : > { %p5224_p0 = scmp.lt.s32.totalorder %s5222_s14, %s5215_s17 }
  0x70   : > { %p5218_p11 = pnand %p5216_p10, %p5628_p8 }
  0x71   : > { %p5225_p2 = por %p5224_p0, %p5223_p13 }
  0x72   : > { %p5219_p12 = pneg %p5218_p11 }
  0x74   : > { %p5226_p5 = pnand %p5225_p2, %p5219_p12 }
  0x76   : > { %5229 = shalt.err (!%p5226_p5)
}
  0x77   : > { %4779 = dma.hbm_to_vmem [thread:$0]  (!%p5612_p6), %s6850_s8, 16, %s430_s9, [#allocation15]  }
  0x78   : > { %s5230_s16 = scalar_lea.hbm %s6845_s3, 512 }
  0x79   : > { %p5231_p7 = scmp.ne.s32.totalorder %s6845_s3, %s5230_s16  ;;  %p5237_p1 = scmp.lt.u32.totalorder %s5230_s16, %s6845_s3 }
  0x7b   : > { %p5233_p9 = pnand %p5231_p7, %p5628_p8 }
  0x7d   : > { %p5234_p4 = pneg %p5233_p9 }
  0x7f   : > { %p5239_p3 = pnand %p5237_p1, %p5234_p4 }
  0x81   : > { %5242 = shalt.err (!%p5239_p3)
}
  0x82   : > { %s5243_s17 = scalar_lea.vmem %s386_s29, 512  ;;  %p5251_p13 = scmp.lt.s32.totalorder %s386_s29, %s386_s29 }
  0x83   : > { %p5244_p10 = scmp.ne.s32.totalorder %s386_s29, %s5243_s17  ;;  %p5252_p0 = scmp.lt.s32.totalorder %s5243_s17, %s5243_s17 }
  0x85   : > { %p5246_p11 = pnand %p5244_p10, %p5628_p8  ;;  %p5253_p2 = por %p5252_p0, %p5251_p13 }
  0x87   : > { %p5247_p12 = pneg %p5246_p11 }
  0x89   : > { %p5254_p5 = pnand %p5253_p2, %p5247_p12 }
  0x8b   : > { %5257 = shalt.err (!%p5254_p5)
}
  0x8c   : > { %4770 = dma.hbm_to_vmem [thread:$0]  (!%p5612_p6), %s6845_s3, 512, %s386_s29, [#allocation8], %s6861_s5, %s6861_s5, %s5484_s6  }
  0x8d   : > { %s5487_s1 = smov [#allocation13]   ;;  %s5488_s24 = smov [#allocation16]  }
  0x8e   : > { %s418_s19 = sshll.u32 %s5487_s1, 4  ;;  %s442_s20 = sshll.u32 %s5488_s24, 4  ;;  %s419_s19 = int_to_ptr.vmem [resolvable:$true] %s418_s19  ;;  %s443_s20 = int_to_ptr.vmem [resolvable:$true] %s442_s20 }
  0x8f   : > { %s5258_s30 = scalar_lea.hbm %s6849_s7, 16 }
  0x90   : > { %p5259_p7 = scmp.ne.s32.totalorder %s6849_s7, %s5258_s30  ;;  %p5265_p1 = scmp.lt.u32.totalorder %s5258_s30, %s6849_s7 }
  0x92   : > { %p5261_p9 = pnand %p5259_p7, %p5628_p8 }
  0x94   : > { %p5262_p4 = pneg %p5261_p9 }
  0x96   : > { %p5267_p3 = pnand %p5265_p1, %p5262_p4 }
  0x98   : > { %5270 = shalt.err (!%p5267_p3)
}
  0x99   : > { %s5271_s29 = scalar_lea.vmem %s419_s19, 16  ;;  %s5278_s14 = scalar_lea.vmem %s419_s19, 32 }
  0x9a   : > { %p5272_p10 = scmp.ne.s32.totalorder %s419_s19, %s5271_s29  ;;  %p5279_p13 = scmp.lt.s32.totalorder %s419_s19, %s419_s19 }
  0x9b   : > { %p5280_p0 = scmp.lt.s32.totalorder %s5278_s14, %s5271_s29 }
  0x9c   : > { %p5274_p11 = pnand %p5272_p10, %p5628_p8 }
  0x9d   : > { %p5281_p2 = por %p5280_p0, %p5279_p13 }
  0x9e   : > { %p5275_p12 = pneg %p5274_p11 }
  0xa0   : > { %p5282_p5 = pnand %p5281_p2, %p5275_p12 }
  0xa2   : > { %5285 = shalt.err (!%p5282_p5)
}
  0xa3   : > { %4776 = dma.hbm_to_vmem [thread:$0]  (!%p5612_p6), %s6849_s7, 16, %s419_s19, [#allocation12]  }
  0xa4   : > { %s5286_s30 = scalar_lea.hbm %s6852_s10, 256 }
  0xa5   : > { %p5287_p7 = scmp.ne.s32.totalorder %s6852_s10, %s5286_s30  ;;  %p5293_p1 = scmp.lt.u32.totalorder %s5286_s30, %s6852_s10 }
  0xa7   : > { %p5289_p9 = pnand %p5287_p7, %p5628_p8 }
  0xa9   : > { %p5290_p4 = pneg %p5289_p9 }
  0xab   : > { %p5295_p3 = pnand %p5293_p1, %p5290_p4 }
  0xad   : > { %5298 = shalt.err (!%p5295_p3)
}
  0xae   : > { %s5299_s29 = scalar_lea.vmem %s443_s20, 256  ;;  %p5307_p13 = scmp.lt.s32.totalorder %s443_s20, %s443_s20 }
  0xaf   : > { %p5300_p10 = scmp.ne.s32.totalorder %s443_s20, %s5299_s29  ;;  %p5308_p0 = scmp.lt.s32.totalorder %s5299_s29, %s5299_s29 }
  0xb1   : > { %p5302_p11 = pnand %p5300_p10, %p5628_p8  ;;  %p5309_p2 = por %p5308_p0, %p5307_p13 }
  0xb3   : > { %p5303_p12 = pneg %p5302_p11 }
  0xb5   : > { %p5310_p5 = pnand %p5309_p2, %p5303_p12 }
  0xb7   : > { %5313 = shalt.err (!%p5310_p5)
}
  0xb8   : > { %4782 = dma.hbm_to_vmem [thread:$0]  (!%p5612_p6), %s6852_s10, 256, %s443_s20, [#allocation15], %s6861_s5, %s6861_s5, %s5484_s6  }
  0xb9   : > { %s5489_s1 = smov [#allocation17]   ;;  %s5314_s30 = scalar_lea.hbm %s6853_s11, 512 }
  0xba   : > { %s455_s24 = sshll.u32 %s5489_s1, 4  ;;  %p5315_p7 = scmp.ne.s32.totalorder %s6853_s11, %s5314_s30  ;;  %s456_s24 = int_to_ptr.vmem [resolvable:$true] %s455_s24 }
  0xbb   : > { %p5321_p1 = scmp.lt.u32.totalorder %s5314_s30, %s6853_s11 }
  0xbc   : > { %p5317_p9 = pnand %p5315_p7, %p5628_p8 }
  0xbe   : > { %p5318_p4 = pneg %p5317_p9 }
  0xc0   : > { %p5323_p3 = pnand %p5321_p1, %p5318_p4 }
  0xc2   : > { %5326 = shalt.err (!%p5323_p3)
}
  0xc3   : > { %s5327_s20 = scalar_lea.vmem %s456_s24, 512  ;;  %p5335_p13 = scmp.lt.s32.totalorder %s456_s24, %s456_s24 }
  0xc4   : > { %p5328_p10 = scmp.ne.s32.totalorder %s456_s24, %s5327_s20  ;;  %p5336_p0 = scmp.lt.s32.totalorder %s5327_s20, %s5327_s20 }
  0xc6   : > { %p5330_p11 = pnand %p5328_p10, %p5628_p8  ;;  %p5337_p2 = por %p5336_p0, %p5335_p13 }
  0xc8   : > { %p5331_p12 = pneg %p5330_p11 }
  0xca   : > { %p5338_p5 = pnand %p5337_p2, %p5331_p12 }
  0xcc   : > { %5341 = shalt.err (!%p5338_p5)
}
  0xcd   : > { %4785 = dma.hbm_to_vmem [thread:$0]  (!%p5612_p6), %s6853_s11, 512, %s456_s24, [#allocation18], %s6861_s5, %s6861_s5, %s5484_s6  }
  0xce   : > { %s4294_s15 = sadd.s32 4294967294, %s5478_s26   ;;  %s39_s13 = sadd.s32 1, %s5474_s25 }
  0xcf   : > { %p40_p8 = scmp.ge.s32.totalorder %s39_s13, 2  ;;  %s103_s14 = sadd.s32 1, %s5466_s23 }
  0xd0   : > { %p110_p7 = scmp.ne.s32.totalorder %s5466_s23, %s5462_s22  ;;  %p111_p9 = scmp.eq.s32.totalorder %s5478_s26, 0 }
  0xd1   : > { %s6955_s13 = smov (%p40_p8, %s39_s13), 0  ;;  %p116_p1 = scmp.ne.s32.totalorder %s5462_s22, %s5458_s21 }
  0xd2   : > { %p5799_p4 = por %p111_p9, %p110_p7  ;;  %s98_s24 = ssub.s32 %s5474_s25, %s6955_s13 }
  0xd3   : > { %p331_p6 = scmp.eq.s32.totalorder %s5598_s27, 1  ;;  %p101_p3 = scmp.eq.s32.totalorder %s98_s24, 0 }
  0xd4   : > { %p6893_p10 = scmp.eq.s32.totalorder %s5598_s27, 0  ;;  %p337_p13 = scmp.eq.s32.totalorder %s4294_s15, 1 }
  0xd5   : > { %p5814_p12 = por %p331_p6, %p110_p7  ;;  %p4802_p2 = scmp.lt.s32.totalorder %s5478_s26, 2 }
  0xd6   : > { %p5810_p11 = por %p6893_p10, %p116_p1  ;;  %p5821_p0 = por %p337_p13, %p116_p1 }
  0xd7   : > { %s6895_s18 = scalar_select %p5814_p12, 1, 0 }
  0xd8   : > { %s5819_s30 = scalar_select %p101_p3, %s5466_s23, %s103_s14  }
  0xd9   : > { %s6896_s12 = scalar_select %p5821_p0, 1, 0 }
  0xda   : > { %s469_s0 = sand.u32 1, %s5478_s26   ;;  %s471_s17 = sand.u32 1, %s5466_s23  }
  0xdb   : > { %s4305_s9 = sshll.u32 %s471_s17, 5  ;;  %s4363_s20 = sshll.u32 %s5474_s25, 9 }
  0xdc   : > { %s5832_s24 = scalar_lea.hbm %s6844_s2, %s4363_s20  ;;  %s473_s15 = scalar_lea.vmem [#allocation9], %s4305_s9 }
  0xdd   : > { %s481_s14 = sshll.u32 %s473_s15, 4  ;;  %p5838_p5 = pnand %p4802_p2, %p5799_p4  ;;  %s5834_s14 = int_to_ptr.vmem [resolvable:$true] %s481_s14 }
  0xde   : > { %s5842_s17 = scalar_lea.sflag [#allocation5], %s469_s0  ;;  %s5342_s29 = scalar_lea.hbm %s5832_s24, 512 }
  0xdf   : > { %p5343_p8 = scmp.ne.s32.totalorder %s5832_s24, %s5342_s29  ;;  %p5344_p7 = pneg %p5838_p5 }
  0xe0   : > { %s5347_s1 = scalar_lea.hbm %s6844_s2, 1024  ;;  %p5348_p4 = scmp.lt.u32.totalorder %s5832_s24, %s6844_s2 }
  0xe1   : > { %p5345_p9 = pnand %p5344_p7, %p5343_p8  ;;  %p5349_p6 = scmp.lt.u32.totalorder %s5347_s1, %s5342_s29 }
  0xe2   : > { %p5351_p10 = scmp.lt.u32.totalorder %s5342_s29, %s5832_s24 }
  0xe3   : > { %p5346_p1 = pneg %p5345_p9  ;;  %p5350_p3 = por %p5349_p6, %p5348_p4 }
  0xe5   : > { %p5352_p13 = por %p5351_p10, %p5350_p3 }
  0xe7   : > { %p5353_p2 = pnand %p5352_p13, %p5346_p1 }
  0xe9   : > { %5356 = shalt.err (!%p5353_p2)
}
  0xea   : > { %s5357_s0 = scalar_lea.vmem %s5834_s14, 512  ;;  %s5490_s9 = smov [#allocation9]  }
  0xeb   : > { %p5358_p8 = scmp.ne.s32.totalorder %s5834_s14, %s5357_s0  ;;  %s5362_s20 = sshll.u32 %s5490_s9, 4  ;;  %s5363_s20 = int_to_ptr.vmem [resolvable:$false] %s5362_s20 }
  0xec   : > { %s5364_s19 = scalar_lea.vmem %s5363_s20, 1024  ;;  %p5365_p12 = scmp.lt.s32.totalorder %s5834_s14, %s5363_s20 }
  0xed   : > { %p5360_p9 = pnand %p5358_p8, %p5344_p7  ;;  %p5366_p4 = scmp.lt.s32.totalorder %s5364_s19, %s5357_s0 }
  0xef   : > { %p5361_p0 = pneg %p5360_p9  ;;  %p5367_p6 = por %p5366_p4, %p5365_p12 }
  0xf1   : > { %p5368_p3 = pnand %p5367_p6, %p5361_p0 }
  0xf3   : > { %5371 = shalt.err (!%p5368_p3)
}
  0xf4   : > { %s6898_s29 = smov 128   ;;  %p6899_p7 = scmp.ne.s32.totalorder %s6887_s28, 0 }
  0xf5   : > { %4789 = dma.hbm_to_vmem [thread:$0]  (!%p5838_p5), %s5832_s24, 512, %s5834_s14, %s5842_s17, %s6898_s29, %s6898_s29, %s5484_s6  }
  0xf6   : > { %493 = sbr.rel (%p6899_p7) target bundleno = 7115 (0x1bcb), region = 68 }
  0xfd   : > { %p6900_p1 = scmp.eq.s32.totalorder %s5598_s27, 0 }
  0xff   : > { %5425 = dma.done.wait (%p6900_p1), [#allocation5], 128   ;;  %p6901_p10 = pmov %p6900_p1 }
 0x100   : > { %p6902_p12 = pmov %p6900_p1 }
 0x101   : > { %5427 = vsyncadd (%p6901_p10), [#allocation5], 4294967168 }
 0x102   : > { %5429 = dma.done.wait (%p6902_p12), [#allocation8], 1024   ;;  %p6903_p0 = pmov %p6900_p1 }
 0x103   : > { %s503_s5 = sand.u32 1, %s5598_s27   ;;  %s505_s6 = sand.u32 1, %s5462_s22  }
 0x104   : > { %5431 = vsyncadd (%p6903_p0), [#allocation8], 4294966272  ;;  %s4311_s28 = sshll.u32 %s505_s6, 5  ;;  %s504_s24 = scalar_lea.sflag [#allocation5], %s503_s5 }
 0x105   : > { %s5887_s14 = scalar_lea.vmem [#allocation9], %s4311_s28 }
 0x106   : > { %5433 = dma.done.wait (%p5810_p11), %s504_s24, 512  }
 0x107   : > { %5435 = vsyncadd (%p5810_p11), %s504_s24, 4294966784  ;;  %p6904_p5 = pmov %p6903_p0 }
 0x108   : > { %p6905_p13 = pmov %p6903_p0 }
 0x109   : > { %5437 = dma.done.wait (%p6904_p5), [#allocation8], 512  }
 0x10a   : > { %5439 = vsyncadd (%p6905_p13), [#allocation8], 4294966784  ;;  %p6906_p2 = pmov %p6903_p0 }
 0x10b   : > { %p6907_p8 = pmov %p6903_p0 }
 0x10c   : > { %5441 = dma.done.wait (%p6906_p2), [#allocation12], 528  }
 0x10d   : > { %5443 = vsyncadd (%p6907_p8), [#allocation12], 4294966768  ;;  %p6908_p9 = pmov %p6903_p0 }
 0x10e   : > { %p6909_p4 = pmov %p6903_p0 }
 0x10f   : > { %5445 = dma.done.wait (%p6908_p9), [#allocation15], 272  }
 0x110   : > { %5447 = vsyncadd (%p6909_p4), [#allocation15], 4294967024  ;;  %p6910_p11 = pmov %p6903_p0 }
 0x111   : > { %p6911_p6 = pmov %p6903_p0 }
 0x112   : > { %5449 = dma.done.wait (%p6910_p11), [#allocation18], 512  }
 0x113   : > { %5451 = vsyncadd (%p6911_p6), [#allocation18], 4294966784  ;;  %s5909_s16 = scalar_lea.vmem [#allocation19], %s4311_s28  ;;  %s6912_s17 = sld [smem:[#allocation28_spill]] }
 0x119   : > { %p4319_p3 = scmp.ne.s32.totalorder %s6912_s17, 0 }
 0x11a   : > { %v590_v0 = vld [vmem:[#allocation11] sm:$0xff] (!%p4319_p3)  ;;  %v591_v1 = vld [vmem:[#allocation11 + $0x8] sm:$0xff] (!%p4319_p3)  ;;  %v592_v2 = vld [vmem:[#allocation11 + $0x10] sm:$0xff] (!%p4319_p3)  ;;  %vm580_vm0 = vcmask (!%p4319_p3), 261120  }
 0x11b   : > { %578 = sbr.rel (%p4319_p3) target bundleno = 511 (0x1ff), region = 108  ;;  %v4629_v3 = vpack.c.bf16 (!%p4319_p3), %v591_v1, %v590_v0  ;;  %v593_v4 = vld [vmem:[#allocation11 + $0x18] sm:$0xff] (!%p4319_p3)  ;;  %v582_v6 = vld [vmem:[#allocation7] sm:$0xff] (!%p4319_p3)  ;;  %v583_v9 = vld [vmem:[#allocation7 + $0x8] sm:$0xff] (!%p4319_p3) }
 0x11c   : > { %v579_v5 = vld [vmem:[#allocation4] sm:$0xff] (!%p4319_p3)  ;;  %v4633_v7 = vpack.c.bf16 (!%p4319_p3), %v593_v4, %v592_v2  ;;  %4457 = vmatprep.mubr.msk.f32.mxu0 (!%p4319_p3), %vm580_vm0, %v582_v6  ;;  %v586_v8 = vld [vmem:[#allocation7 + $0x20] sm:$0xff] (!%p4319_p3)  ;;  %v587_v10 = vld [vmem:[#allocation7 + $0x28] sm:$0xff] (!%p4319_p3) }
 0x11d   : > { %581 = vst.msk [vmem:[#allocation2] sm:$0xff] (!%p4319_p3), %vm580_vm0, %v579_v5  ;;  %4630 = vmatprep.subr.bf16.mxu0 (!%p4319_p3), %v4629_v3  ;;  %4721 = vmatprep.subr.bf16.mxu1 (!%p4319_p3), %v4629_v3  ;;  %v584_v11 = vld [vmem:[#allocation7 + $0x10] sm:$0xff] (!%p4319_p3)  ;;  %v585_v13 = vld [vmem:[#allocation7 + $0x18] sm:$0xff] (!%p4319_p3) }
 0x11e   : > { %4632 = vmatpush3.bf16.msra.mxu0 (!%p4319_p3), %v4629_v3  ;;  %4723 = vmatpush3.bf16.msra.mxu1 (!%p4319_p3), %v4629_v3  ;;  %v588_v12 = vld [vmem:[#allocation7 + $0x30] sm:$0xff] (!%p4319_p3)  ;;  %v589_v14 = vld [vmem:[#allocation7 + $0x38] sm:$0xff] (!%p4319_p3) }
 0x11f   : > { %4634 = vmatprep.subr.bf16.mxu0 (!%p4319_p3), %v4633_v7  ;;  %4722 = vmatprep.subr.bf16.mxu1 (!%p4319_p3), %v4633_v7 }
 0x120   : > { %4463 = vmatprep.mubr.msk.f32.mxu1 (!%p4319_p3), %vm580_vm0, %v586_v8 }
 0x122   : > { %4636 = vmatpush3.bf16.msra.mxu0 %v4633_v7  ;;  %4724 = vmatpush3.bf16.msra.mxu1 %v4633_v7 }
 0x125   : > { %4458 = vmatmul.mubr.msk.f32.vlgmr.msra.gmra.mrb[0].mxu0 %vm580_vm0, %v583_v9  ;;  %4464 = vmatmul.mubr.msk.f32.vlgmr.msra.gmra.mrb[0].mxu1 %vm580_vm0, %v587_v10 }
 0x126   : > { %4460 = vmatprep.mubr.msk.f32.mxu0 %vm580_vm0, %v584_v11  ;;  %4466 = vmatprep.mubr.msk.f32.mxu1 %vm580_vm0, %v588_v12 }
 0x129   : > { %4461 = vmatmul.mubr.msk.f32.gmra.mrb[2].mxu0 %vm580_vm0, %v585_v13  ;;  %4467 = vmatmul.mubr.msk.f32.gmra.mrb[2].mxu1 %vm580_vm0, %v589_v14 }
 0x1f8   : > { %v4459_v15 = vpop.f32.mrb[0].mxu0  ;;  %v4465_v16 = vpop.f32.mrb[0].mxu1 }
 0x1f9   : > { %724 = vst.msk [vmem:[#allocation3 + $0x8] sm:$0xff] %vm580_vm0, %v4459_v15  ;;  %728 = vst.msk [vmem:[#allocation3 + $0x28] sm:$0xff] %vm580_vm0, %v4465_v16  ;;  %v684_v17 = vpop.f32.mrb[1].mxu0  ;;  %v704_v18 = vpop.f32.mrb[1].mxu1 }
 0x1fa   : > { %723 = vst.msk [vmem:[#allocation3] sm:$0xff] %vm580_vm0, %v684_v17  ;;  %727 = vst.msk [vmem:[#allocation3 + $0x20] sm:$0xff] %vm580_vm0, %v704_v18 }
 0x1fc   : > { %v4462_v19 = vpop.f32.mrb[2].mxu0  ;;  %v4468_v20 = vpop.f32.mrb[2].mxu1 }
 0x1fd   : > { %726 = vst.msk [vmem:[#allocation3 + $0x18] sm:$0xff] %vm580_vm0, %v4462_v19  ;;  %730 = vst.msk [vmem:[#allocation3 + $0x38] sm:$0xff] %vm580_vm0, %v4468_v20  ;;  %v694_v21 = vpop.f32.mrb[3].mxu0  ;;  %v714_v22 = vpop.f32.mrb[3].mxu1 }
 0x1fe   : > { %725 = vst.msk [vmem:[#allocation3 + $0x10] sm:$0xff] %vm580_vm0, %v694_v21  ;;  %729 = vst.msk [vmem:[#allocation3 + $0x30] sm:$0xff] %vm580_vm0, %v714_v22 }
 0x1ff PF: > { %v747_v23 = vld [vmem:[#allocation10] sm:$0xff]  ;;  %v748_v24 = vld [vmem:[#allocation10 + $0x8] sm:$0xff]  ;;  %v749_v25 = vld [vmem:[#allocation10 + $0x10] sm:$0xff]  ;;  %v6863_v26 = vmov 0.0|0.0   ;;  %vm5492_vm1 = vmmov 0   ;;  %v6865_v29 = vmov 0.0   ;;  %v852_v34 = vlaneseq }
 0x200   : > { %4637 = vmatprep.subr.bf16.mxu0 %v6863_v26  ;;  %v5930_v27 = vpack.c.bf16 %v748_v24, %v747_v23  ;;  %v750_v28 = vld [vmem:[#allocation10 + $0x18] sm:$0xff]  ;;  %4477 = vmatprep.mubr.msk.f32.mxu0 %vm5492_vm1, %v6865_v29  ;;  %vm773_vm2 = vcmask 261120   ;;  %v5494_v32 = vmov 1966171168   ;;  %s6913_s15 = sld [smem:[#allocation39_spill]]  ;;  %v5972_v54 = vld [vmem:[#allocation3 + $0x8] sm:$0xff] }
 0x201   : > { %4643 = vmatprep.subr.bf16.mxu1 %v6863_v26  ;;  %4484 = vmatprep.mubr.msk.f32.mxu1 %vm5492_vm1, %v6865_v29  ;;  %v5938_v30 = vpack.c.bf16 %v750_v28, %v749_v25  ;;  %v5942_v31 = vld [vmem:[#allocation2] sm:$0xff]  ;;  %v850_v33 = vunpack.c.l.s4 %v5494_v32  ;;  %v5950_v36 = vshrl.u32 %v852_v34, 7  ;;  %v5967_v48 = vld [vmem:[#allocation3] sm:$0xff]  ;;  %v5987_v4 = vld [vmem:[#allocation3 + $0x28] sm:$0xff]  ;;  %s6914_s20 = sld [smem:[#allocation38_spill]]  ;;  %vm1033_vm3 = vcmask 1041409  }
 0x202   : > { %4639 = vmatpush3.bf16.msra.mxu0 %v5930_v27  ;;  %v5980_v61 = vld [vmem:[#allocation3 + $0x20] sm:$0xff]  ;;  %vm1035_vm4 = vcmask 1042434   ;;  %vm1037_vm5 = vcmask 1043459   ;;  %vm1039_vm6 = vcmask 1044484   ;;  %vm1041_vm7 = vcmask 1045509   ;;  %s6915_s5 = sld [smem:[#allocation40_spill]] }
 0x203   : > { %4640 = vmatprep.subr.bf16.mxu0 %v6863_v26  ;;  %v851_v35 = vunpack.c.0.s8 %v850_v33  ;;  %v5963_v44 = vsub.s32 0, %v5950_v36  ;;  %vm1043_vm8 = vcmask 1046534   ;;  %vm1045_vm9 = vcmask 1047559   ;;  %s5496_s9 = smov 64   ;;  %s5497_s19 = smov 96  }
 0x204   : > { %v5978_v60 = vld [vmem:[#allocation3 + $0x18] sm:$0xff]  ;;  %vm1048_vm10 = vcmask 64512   ;;  %vm1353_vm11 = vcmask 130048   ;;  %s5498_s29 = smov 32   ;;  %s4128_s0 = sshll.u32 %s5909_s16, 4  ;;  %s6788_s0 = int_to_ptr.vmem [resolvable:$true] %s4128_s0 }
 0x205   : > { %v5958_v38 = vsub.s32 %v851_v35, %v5950_v36  ;;  %v5974_v55 = vld [vmem:[#allocation3 + $0x10] sm:$0xff]  ;;  %v5999_v14 = vld [vmem:[#allocation3 + $0x38] sm:$0xff]  ;;  %s6945_s28 = sld [smem:[#allocation41_spill]]  ;;  %s6795_s17 = scalar_lea.sflag [#allocation6], %s505_s6 }
 0x206   : > { %4642 = vmatpush3.bf16.msra.mxu0 %v5938_v30  ;;  %v5955_v37 = vld [vmem:[%s6913_s15] ss:$0 sm:$0xff]  ;;  %v5992_v8 = vld [vmem:[#allocation3 + $0x30] sm:$0xff]  ;;  %p6946_p1 = scmp.ne.s32.totalorder %s6895_s18, 0  ;;  %s5499_s27 = smov [#allocation19]  }
 0x207   : > { %4652 = vmatprep.subr.bf16.mxu0 %v6863_v26  ;;  %v6005_v16 = vld [vmem:[%s6914_s20] ss:$0 sm:$0xff] }
 0x209   : > { %4478 = vmatmul.mubr.msk.f32.vlgmr.msra.gmra.mrb[0].mxu0 %vm773_vm2, %v5942_v31 }
 0x20a   : > { %4506 = vmatprep.mubr.msk.f32.mxu0 %vm5492_vm1, %v6865_v29 }
 0x2dc   : > { %v843_v39 = vpop.f32.mrb[0].mxu0 }
 0x2dd   : > { %v844_v40 = vadd.f32 %v5955_v37, %v843_v39  ;;  %v4479_v41 = vpop.f32.mrb[1].mxu0 }
 0x2df   : > { %v848_v42 = vcombine.high %v844_v40, %v844_v40  ;;  %v855_v43 = vrot.slane %v844_v40, %v5958_v38 }
 0x2e1   : > { %v862_v45 = vrot.slane %v848_v42, %v5958_v38  ;;  %v863_v46 = vcombine.high %v855_v43, %v855_v43  ;;  %v871_v47 = vrot.slane %v855_v43, %v5958_v38 }
 0x2e3   : > { %v864_v49 = vcombine.high %v862_v45, %v862_v45  ;;  %v878_v50 = vrot.slane %v862_v45, %v5958_v38  ;;  %v885_v51 = vrot.slane %v863_v46, %v5958_v38  ;;  %v893_v52 = vcombine.high %v871_v47, %v871_v47 }
 0x2e4   : > { %v900_v53 = vrot.slane %v871_v47, %v5963_v44 }
 0x2e5   : > { %v892_v56 = vrot.slane %v864_v49, %v5958_v38  ;;  %v894_v57 = vcombine.high %v878_v50, %v878_v50  ;;  %v895_v58 = vcombine.high %v885_v51, %v885_v51  ;;  %v904_v59 = vrot.slane %v885_v51, %v5963_v44 }
 0x2e6   : > { %v908_v62 = vrot.slane %v893_v52, %v5963_v44  ;;  %v916_v63 = vrot.slane %v878_v50, %v5963_v44  ;;  %v937_v0 = vadd.f32 %v900_v53, %v5967_v48  ;;  %v1000_v52 = vand.u32 127, %v852_v34 }
 0x2e7   : > { %v896_v1 = vcombine.high %v892_v56, %v892_v56  ;;  %v912_v2 = vrot.slane %v895_v58, %v5963_v44  ;;  %v920_v3 = vrot.slane %v892_v56, %v5963_v44  ;;  %v924_v5 = vrot.slane %v894_v57, %v5963_v44 }
 0x2e8   : > { %v938_v6 = vadd.f32 %v904_v59, %v5972_v54  ;;  %v939_v7 = vadd.f32 %v908_v62, %v5974_v55  ;;  %4882 = vtanh.f32 %v937_v0  ;;  %v941_v10 = vadd.f32 %v916_v63, %v5980_v61 }
 0x2e9   : > { %v940_v9 = vadd.f32 %v912_v2, %v5978_v60  ;;  %v928_v11 = vrot.slane %v896_v1, %v5963_v44  ;;  %v942_v12 = vadd.f32 %v920_v3, %v5987_v4  ;;  %v943_v13 = vadd.f32 %v924_v5, %v5992_v8 }
 0x2ea   : > { %4884 = vtanh.f32 %v938_v6  ;;  %v6025_v56 = vsub.s32 %v1000_v52, %v5950_v36 }
 0x2eb   : > { %4886 = vtanh.f32 %v939_v7  ;;  %v944_v15 = vadd.f32 %v928_v11, %v5999_v14 }
 0x2ec   : > { %4888 = vtanh.f32 %v940_v9 }
 0x2ed   : > { %4890 = vtanh.f32 %v941_v10 }
 0x2ee   : > { %4892 = vtanh.f32 %v942_v12 }
 0x2ef   : > { %4894 = vtanh.f32 %v943_v13 }
 0x2f0   : > { %4896 = vtanh.f32 %v944_v15 }
 0x2f2   : > { %v4883_v17 = vpop.eup %4882 }
 0x2f3   : > { %v959_v18 = vmul.f32 %v4883_v17, %v6005_v16 }
 0x2f4   : > { %v4885_v19 = vpop.eup %4884 }
 0x2f5   : > { %v4887_v20 = vpop.eup %4886  ;;  %v967_v21 = vsel %vm773_vm2, %v959_v18, 0.0  ;;  %v960_v22 = vmul.f32 %v4885_v19, %v6005_v16 }
 0x2f6   : > { %v4889_v23 = vpop.eup %4888  ;;  %968 = vadd.xlane.f32.xlu0 %v967_v21  ;;  %v961_v24 = vmul.f32 %v4887_v20, %v6005_v16  ;;  %v5495_v21 = vmov 0  }
 0x2f7   : > { %v4891_v25 = vpop.eup %4890  ;;  %v962_v32 = vmul.f32 %v4889_v23, %v6005_v16  ;;  %v970_v35 = vsel %vm773_vm2, %v960_v22, 0.0  ;;  %4881 = vset.pattern.permute.xlu0 %v5495_v21  ;;  %4880 = vset.pattern.permute.xlu1 %v5495_v21  ;;  %v6044_v22 = vsub.s32 1, %v5950_v36  ;;  %v6047_v23 = vsub.s32 2, %v5950_v36 }
 0x2f8   : > { %v973_v28 = vsel %vm773_vm2, %v961_v24, 0.0  ;;  %v4893_v33 = vpop.eup %4892  ;;  %v963_v39 = vmul.f32 %v4891_v25, %v6005_v16  ;;  %v6050_v24 = vsub.s32 3, %v5950_v36 }
 0x2f9   : > { %974 = vadd.xlane.f32.xlu1 %v973_v28  ;;  %v4895_v40 = vpop.eup %4894  ;;  %v976_v41 = vsel %vm773_vm2, %v962_v32, 0.0  ;;  %v964_v42 = vmul.f32 %v4893_v33, %v6005_v16 }
 0x2fa   : > { %971 = vadd.xlane.f32.xlu0 %v970_v35  ;;  %v4897_v43 = vpop.eup %4896  ;;  %v979_v45 = vsel %vm773_vm2, %v963_v39, 0.0  ;;  %v965_v46 = vmul.f32 %v4895_v40, %v6005_v16  ;;  %v6056_v40 = vsub.s32 4, %v5950_v36 }
 0x2fb   : > { %v982_v47 = vsel %vm773_vm2, %v964_v42, 0.0  ;;  %v966_v49 = vmul.f32 %v4897_v43, %v6005_v16 }
 0x2fc   : > { %v985_v50 = vsel %vm773_vm2, %v965_v46, 0.0  ;;  %v6060_v46 = vsub.s32 5, %v5950_v36 }
 0x2fd   : > { %977 = vadd.xlane.f32.xlu1 %v976_v41  ;;  %v988_v51 = vsel %vm773_vm2, %v966_v49, 0.0 }
 0x2fe   : > { %980 = vadd.xlane.f32.xlu0 %v979_v45 }
 0x301   : > { %983 = vadd.xlane.f32.xlu1 %v982_v47 }
 0x302   : > { %986 = vadd.xlane.f32.xlu0 %v985_v50 }
 0x305   : > { %989 = vadd.xlane.f32.xlu1 %v988_v51  ;;  %v6064_v51 = vsub.s32 6, %v5950_v36 }
 0x383   : > { %v969_v53 = vpop.xlane.xlu0 %968 }
 0x384   : > { %v1004_v59 = vrot.slane %v969_v53, %v6025_v56 }
 0x386   : > { %v975_v57 = vpop.xlane.xlu1 %974 }
 0x387   : > { %v972_v58 = vpop.xlane.xlu0 %971  ;;  %v1012_v63 = vrot.slane %v975_v57, %v6025_v56 }
 0x388   : > { %v1008_v62 = vrot.slane %v972_v58, %v6025_v56 }
 0x38a   : > { %v1034_v0 = vsel %vm1033_vm3, %v1008_v62, %v1004_v59  ;;  %v978_v1 = vpop.xlane.xlu1 %977 }
 0x38b   : > { %v1016_v34 = vrot.slane %v978_v1, %v6025_v56  ;;  %v1036_v2 = vsel %vm1035_vm4, %v1012_v63, %v1034_v0  ;;  %v981_v3 = vpop.xlane.xlu0 %980 }
 0x38c   : > { %v1020_v5 = vrot.slane %v981_v3, %v6025_v56 }
 0x38d   : > { %v1038_v6 = vsel %vm1037_vm5, %v1016_v34, %v1036_v2 }
 0x38e   : > { %v1040_v7 = vsel %vm1039_vm6, %v1020_v5, %v1038_v6  ;;  %v984_v9 = vpop.xlane.xlu1 %983 }
 0x38f   : > { %v1024_v10 = vrot.slane %v984_v9, %v6025_v56  ;;  %v987_v11 = vpop.xlane.xlu0 %986 }
 0x390   : > { %v1028_v12 = vrot.slane %v987_v11, %v6025_v56 }
 0x391   : > { %v1042_v13 = vsel %vm1041_vm7, %v1024_v10, %v1040_v7 }
 0x392   : > { %v990_v15 = vpop.xlane.xlu1 %989  ;;  %v1044_v17 = vsel %vm1043_vm8, %v1028_v12, %v1042_v13 }
 0x393   : > { %v1032_v18 = vrot.slane %v990_v15, %v6025_v56 }
 0x395   : > { %v1046_v19 = vsel %vm1045_vm9, %v1032_v18, %v1044_v17 }
 0x396   : > { %v1049_v20 = vsel %vm1048_vm10, %v1046_v19, -inf }
 0x397   : > { %1050 = vmax.xlane.f32.xlu0 %v1049_v20 }
 0x424   : > { %v1051_v25 = vpop.xlane.xlu0 %1050 }
 0x425   : > { %v1056_v28 = vrot.slane %v1051_v25, %v5963_v44  ;;  %v1060_v32 = vrot.slane %v1051_v25, %v6044_v22  ;;  %v1064_v33 = vrot.slane %v1051_v25, %v6047_v23  ;;  %v1068_v41 = vrot.slane %v1051_v25, %v6050_v24 }
 0x426   : > { %v1072_v47 = vrot.slane %v1051_v25, %v6056_v40  ;;  %v1076_v52 = vrot.slane %v1051_v25, %v6060_v46  ;;  %v1080_v59 = vrot.slane %v1051_v25, %v6064_v51 }
 0x427   : > { %v1094_v35 = vsub.f32 %v972_v58, %v1060_v32  ;;  %v1093_v39 = vsub.f32 %v969_v53, %v1056_v28  ;;  %v1095_v42 = vsub.f32 %v975_v57, %v1064_v33  ;;  %v1096_v50 = vsub.f32 %v978_v1, %v1068_v41 }
 0x428   : > { %v1097_v58 = vsub.f32 %v981_v3, %v1072_v47  ;;  %v6068_v57 = vsub.s32 7, %v5950_v36  ;;  %v1098_v63 = vsub.f32 %v984_v9, %v1076_v52  ;;  %v1099_v3 = vsub.f32 %v987_v11, %v1080_v59 }
 0x429   : > { %v1103_v43 = vmul.f32 1.442695, %v1094_v35  ;;  %v1101_v45 = vmul.f32 1.442695, %v1093_v39  ;;  %v1105_v49 = vmul.f32 1.442695, %v1095_v42 }
 0x42a   : > { %v1107_v53 = vmul.f32 1.442695, %v1096_v50  ;;  %v1109_v62 = vmul.f32 1.442695, %v1097_v58  ;;  %v1084_v1 = vrot.slane %v1051_v25, %v6068_v57  ;;  %v1111_v2 = vmul.f32 1.442695, %v1098_v63 }
 0x42b   : > { %4898 = vpow2.f32 %v1103_v43  ;;  %v1113_v5 = vmul.f32 1.442695, %v1099_v3  ;;  %v761_v63 = vld [vmem:[#allocation17] sm:$0xff] }
 0x42c   : > { %4900 = vpow2.f32 %v1101_v45  ;;  %v1100_v6 = vsub.f32 %v990_v15, %v1084_v1  ;;  %v762_v1 = vld [vmem:[#allocation17 + $0x8] sm:$0xff] }
 0x42d   : > { %4902 = vpow2.f32 %v1105_v49  ;;  %v6112_v3 = vpack.c.bf16 %v762_v1, %v761_v63  ;;  %v758_v63 = vld [vmem:[%s6915_s5 + $0x18] sm:$0xff] }
 0x42e   : > { %4904 = vpow2.f32 %v1107_v53  ;;  %v1115_v9 = vmul.f32 1.442695, %v1100_v6 }
 0x42f   : > { %4906 = vpow2.f32 %v1109_v62  ;;  %4654 = vmatpush3.bf16.msra.mxu0 %v6112_v3 }
 0x430   : > { %4908 = vpow2.f32 %v1111_v2  ;;  %v763_v2 = vld [vmem:[#allocation17 + $0x10] sm:$0xff]  ;;  %4655 = vmatprep.subr.bf16.mxu0 %v6863_v26 }
 0x431   : > { %4910 = vpow2.f32 %v1113_v5  ;;  %v764_v5 = vld [vmem:[#allocation17 + $0x18] sm:$0xff] }
 0x432   : > { %4912 = vpow2.f32 %v1115_v9  ;;  %v6115_v6 = vpack.c.bf16 %v764_v5, %v763_v2  ;;  %v6170_v2 = vld [vmem:[#allocation14] ss:$0 sm:$0xff] }
 0x434   : > { %4657 = vmatpush3.bf16.msra.mxu0 %v6115_v6 }
 0x435   : > { %v6071_v0 = vpop.eup %4898  ;;  %4664 = vmatprep.subr.bf16.mxu0 %v6863_v26 }
 0x436   : > { %v6073_v34 = vpop.eup %4900  ;;  %1129 = vperm.xlu0 %4881, %v6071_v0  }
 0x437   : > { %1126 = vperm.xlu1 %4880, %v6073_v34   ;;  %v6078_v36 = vpop.eup %4902  ;;  %4507 = vmatmul.mubr.msk.f32.vlgmr.msra.gmra.mrb[2].mxu0 %vm773_vm2, %v5942_v31 }
 0x438   : > { %v6081_v7 = vpop.eup %4904  ;;  %4524 = vmatprep.mubr.msk.f32.mxu0 %vm5492_vm1, %v6865_v29 }
 0x439   : > { %v6084_v10 = vpop.eup %4906 }
 0x43a   : > { %v6087_v12 = vpop.eup %4908 }
 0x43b   : > { %1132 = vperm.xlu1 %4880, %v6078_v36   ;;  %v6090_v11 = vpop.eup %4910 }
 0x43c   : > { %v6093_v13 = vpop.eup %4912 }
 0x43f   : > { %1135 = vperm.xlu1 %4880, %v6081_v7  }
 0x443   : > { %1138 = vperm.xlu1 %4880, %v6084_v10  }
 0x447   : > { %1141 = vperm.xlu1 %4880, %v6087_v12  }
 0x44b   : > { %1144 = vperm.xlu1 %4880, %v6090_v11  }
 0x44f   : > { %1147 = vperm.xlu1 %4880, %v6093_v13  }
 0x4b5   : > { %v1130_v20 = vpop.permute.xlu0 %1129 }
 0x4b6   : > { %v1127_v15 = vpop.permute.xlu1 %1126  ;;  %v1156_v25 = vrot.slane %v1130_v20, %v6025_v56 }
 0x4b7   : > { %v1152_v28 = vrot.slane %v1127_v15, %v6025_v56 }
 0x4b9   : > { %v1181_v41 = vsel %vm1033_vm3, %v1156_v25, %v1152_v28 }
 0x4ba   : > { %v1133_v17 = vpop.permute.xlu1 %1132 }
 0x4bb   : > { %v1160_v32 = vrot.slane %v1133_v17, %v6025_v56 }
 0x4bd   : > { %v1182_v43 = vsel %vm1035_vm4, %v1160_v32, %v1181_v41 }
 0x4be   : > { %v1136_v18 = vpop.permute.xlu1 %1135 }
 0x4bf   : > { %v1164_v33 = vrot.slane %v1136_v18, %v6025_v56 }
 0x4c1   : > { %v1183_v47 = vsel %vm1037_vm5, %v1164_v33, %v1182_v43 }
 0x4c2   : > { %v1139_v19 = vpop.permute.xlu1 %1138 }
 0x4c3   : > { %v1168_v35 = vrot.slane %v1139_v19, %v6025_v56 }
 0x4c5   : > { %v1184_v49 = vsel %vm1039_vm6, %v1168_v35, %v1183_v47 }
 0x4c6   : > { %v1142_v21 = vpop.permute.xlu1 %1141 }
 0x4c7   : > { %v1172_v42 = vrot.slane %v1142_v21, %v6025_v56 }
 0x4c9   : > { %v1185_v53 = vsel %vm1041_vm7, %v1172_v42, %v1184_v49 }
 0x4ca   : > { %v1145_v39 = vpop.permute.xlu1 %1144 }
 0x4cb   : > { %v1176_v45 = vrot.slane %v1145_v39, %v6025_v56 }
 0x4cd   : > { %v1186_v58 = vsel %vm1043_vm8, %v1176_v45, %v1185_v53 }
 0x4ce   : > { %v1148_v50 = vpop.permute.xlu1 %1147 }
 0x4cf   : > { %v1180_v52 = vrot.slane %v1148_v50, %v6025_v56 }
 0x4d1   : > { %v1187_v59 = vsel %vm1045_vm9, %v1180_v52, %v1186_v58  ;;  %v760_v58 = vld [vmem:[#allocation16 + $0x8] sm:$0xff] }
 0x4d2   : > { %v1189_v62 = vsel %vm1048_vm10, %v1187_v59, 0.0 }
 0x4d3   : > { %1190 = vadd.xlane.f32.xlu1 %v1189_v62  ;;  %v757_v62 = vld [vmem:[%s6915_s5 + $0x10] sm:$0xff] }
 0x4d4   : > { %v6163_v1 = vpack.c.bf16 %v758_v63, %v757_v62 }
 0x50a   : > { %v1593_v5 = vpop.f32.mrb[2].mxu0 }
 0x560   : > { %v1191_v9 = vpop.xlane.xlu1 %1190 }
 0x561   : > { %v1196_v15 = vrot.slane %v1191_v9, %v5963_v44  ;;  %v1200_v17 = vrot.slane %v1191_v9, %v6044_v22  ;;  %v1204_v18 = vrot.slane %v1191_v9, %v6047_v23  ;;  %v1208_v19 = vrot.slane %v1191_v9, %v6050_v24 }
 0x562   : > { %v1212_v21 = vrot.slane %v1191_v9, %v6056_v40  ;;  %v1216_v32 = vrot.slane %v1191_v9, %v6060_v46  ;;  %v1220_v39 = vrot.slane %v1191_v9, %v6064_v51  ;;  %v1224_v43 = vrot.slane %v1191_v9, %v6068_v57 }
 0x563   : > { %4914 = vrcp.f32 %v1196_v15  ;;  %v6173_v9 = vadd.f32 %v6170_v2, %v1593_v5  ;;  %v4508_v15 = vpop.f32.mrb[3].mxu0 }
 0x564   : > { %4916 = vrcp.f32 %v1200_v17 }
 0x565   : > { %4918 = vrcp.f32 %v1204_v18  ;;  %1605 = vrot.lane.b32.xlu1 %v6173_v9, %s5496_s9 }
 0x566   : > { %4920 = vrcp.f32 %v1208_v19  ;;  %v6177_v19 = vld [vmem:[#allocation7 + $0x8] sm:$0xff] }
 0x567   : > { %4922 = vrcp.f32 %v1212_v21  ;;  %v6181_v21 = vld [vmem:[#allocation7 + $0x10] sm:$0xff] }
 0x568   : > { %4924 = vrcp.f32 %v1216_v32  ;;  %6916 = vst [vmem:[#allocation29_spill] sm:$0xff] %v6181_v21 }
 0x569   : > { %4926 = vrcp.f32 %v1220_v39 }
 0x56a   : > { %4928 = vrcp.f32 %v1224_v43 }
 0x56d   : > { %v4915_v20 = vpop.eup %4914 }
 0x56e   : > { %v1234_v25 = vmul.f32 %v4915_v20, %v6073_v34  ;;  %v4917_v28 = vpop.eup %4916  ;;  %v6179_v20 = vld [vmem:[#allocation7] sm:$0xff] }
 0x56f   : > { %v1236_v33 = vmul.f32 %v4917_v28, %v6071_v0  ;;  %v4919_v35 = vpop.eup %4918 }
 0x570   : > { %1251 = vperm.xlu0 %4881, %v1234_v25   ;;  %v1238_v41 = vmul.f32 %v4919_v35, %v6078_v36  ;;  %v4921_v42 = vpop.eup %4920  ;;  %v6186_v35 = vld [vmem:[#allocation7 + $0x18] sm:$0xff] }
 0x571   : > { %v1240_v34 = vmul.f32 %v4921_v42, %v6081_v7  ;;  %v4923_v45 = vpop.eup %4922  ;;  %v759_v7 = vld [vmem:[#allocation16] sm:$0xff]  ;;  %6917 = vst [vmem:[#allocation30_spill] sm:$0xff] %v6186_v35 }
 0x572   : > { %v1242_v47 = vmul.f32 %v4923_v45, %v6084_v10  ;;  %v4925_v0 = vpop.eup %4924  ;;  %v6140_v59 = vpack.c.bf16 %v760_v58, %v759_v7  ;;  %v766_v10 = vld [vmem:[%s5887_s14] sm:$0xff]  ;;  %v6196_v58 = vld [vmem:[#allocation7 + $0x28] sm:$0xff] }
 0x573   : > { %v1244_v49 = vmul.f32 %v4925_v0, %v6087_v12  ;;  %v4927_v50 = vpop.eup %4926  ;;  %v755_v12 = vld [vmem:[%s6915_s5] sm:$0xff]  ;;  %6919 = vst [vmem:[#allocation32_spill] sm:$0xff] %v6196_v58 }
 0x574   : > { %1256 = vperm.xlu0 %4881, %v1236_v33   ;;  %v1246_v36 = vmul.f32 %v4927_v50, %v6090_v11  ;;  %v4929_v52 = vpop.eup %4928  ;;  %4645 = vmatpush3.bf16.msra.mxu1 %v6140_v59  ;;  %v756_v11 = vld [vmem:[%s6915_s5 + $0x8] sm:$0xff] }
 0x575   : > { %v1248_v53 = vmul.f32 %v4929_v52, %v6093_v13  ;;  %4666 = vmatpush3.bf16.msra.mxu0 %v6140_v59  ;;  %4646 = vmatprep.subr.bf16.mxu1 %v6863_v26  ;;  %v6153_v13 = vpack.c.bf16 %v756_v11, %v755_v12 }
 0x576   : > { %4667 = vmatprep.subr.bf16.mxu0 %v6863_v26 }
 0x577   : > { %4485 = vmatmul.mubr.msk.f32.vlgmr.msra.gmra.mrb[0].mxu1 %vm1353_vm11, %v766_v10 }
 0x578   : > { %1261 = vperm.xlu0 %4881, %v1238_v41   ;;  %4648 = vmatpush3.bf16.msra.mxu1 %v6153_v13 }
 0x579   : > { %4495 = vmatprep.mubr.msk.f32.mxu1 %vm5492_vm1, %v6865_v29  ;;  %4649 = vmatprep.subr.bf16.mxu1 %v6863_v26 }
 0x57c   : > { %1266 = vperm.xlu0 %4881, %v1240_v34   ;;  %4651 = vmatpush3.bf16.msra.mxu1 %v6163_v1 }
 0x57d   : > { %4658 = vmatprep.subr.bf16.mxu1 %v6863_v26 }
 0x580   : > { %1271 = vperm.xlu0 %4881, %v1242_v47   ;;  %v6192_v47 = vld [vmem:[#allocation7 + $0x20] sm:$0xff] }
 0x581   : > { %6918 = vst [vmem:[#allocation31_spill] sm:$0xff] %v6192_v47 }
 0x584   : > { %1276 = vperm.xlu0 %4881, %v1244_v49  }
 0x588   : > { %1281 = vperm.xlu0 %4881, %v1246_v36  }
 0x58c   : > { %1286 = vperm.xlu0 %4881, %v1248_v53  }
 0x5ef   : > { %v1252_v17 = vpop.permute.xlu0 %1251 }
 0x5f0   : > { %v1289_v32 = vmul.f32 %v1252_v17, %v6179_v20 }
 0x5f2   : > { %v1297_v43 = vsel %vm773_vm2, %v1289_v32, 0.0 }
 0x5f3   : > { %v1257_v18 = vpop.permute.xlu0 %1256  ;;  %v1298_v50 = vrot.slane %v1297_v43, 4 }
 0x5f4   : > { %v1290_v25 = vmul.f32 %v1257_v18, %v6177_v19 }
 0x5f5   : > { %v1299_v11 = vadd.f32 %v1298_v50, %v1297_v43 }
 0x5f6   : > { %v1304_v39 = vsel %vm773_vm2, %v1290_v25, 0.0  ;;  %v6200_v25 = vld [vmem:[#allocation7 + $0x30] sm:$0xff] }
 0x5f7   : > { %v1262_v28 = vpop.permute.xlu0 %1261  ;;  %v1305_v45 = vrot.slane %v1304_v39, 4  ;;  %6920 = vst [vmem:[#allocation33_spill] sm:$0xff] %v6200_v25 }
 0x5f8   : > { %v1291_v33 = vmul.f32 %v1262_v28, %v6181_v21 }
 0x5f9   : > { %v1306_v7 = vadd.f32 %v1305_v45, %v1304_v39 }
 0x5fa   : > { %v1311_v41 = vsel %vm773_vm2, %v1291_v33, 0.0  ;;  %v1300_v33 = vrot.slane %v1299_v11, 2 }
 0x5fb   : > { %v1267_v42 = vpop.permute.xlu0 %1266  ;;  %v1312_v0 = vrot.slane %v1311_v41, 4  ;;  %v1307_v17 = vrot.slane %v1306_v7, 2 }
 0x5fc   : > { %v1292_v34 = vmul.f32 %v1267_v42, %v6186_v35 }
 0x5fd   : > { %v1313_v10 = vadd.f32 %v1312_v0, %v1311_v41  ;;  %v1308_v43 = vadd.f32 %v1307_v17, %v1306_v7 }
 0x5fe   : > { %v1318_v49 = vsel %vm773_vm2, %v1292_v34, 0.0 }
 0x5ff   : > { %v1319_v36 = vrot.slane %v1318_v49, 4  ;;  %v1272_v52 = vpop.permute.xlu0 %1271  ;;  %v1314_v28 = vrot.slane %v1313_v10, 2  ;;  %v1309_v29 = vrot.slane %v1308_v43, 1 }
 0x600   : > { %v1293_v53 = vmul.f32 %v1272_v52, %v6192_v47  ;;  %v1301_v52 = vadd.f32 %v1300_v33, %v1299_v11 }
 0x601   : > { %v1320_v62 = vadd.f32 %v1319_v36, %v1318_v49  ;;  %v6204_v49 = vld [vmem:[#allocation7 + $0x38] sm:$0xff]  ;;  %v1315_v50 = vadd.f32 %v1314_v28, %v1313_v10 }
 0x602   : > { %v1325_v12 = vsel %vm773_vm2, %v1293_v53, 0.0  ;;  %6921 = vst [vmem:[#allocation34_spill] sm:$0xff] %v6204_v49  ;;  %v1302_v17 = vrot.slane %v1301_v52, 1 }
 0x603   : > { %v1326_v63 = vrot.slane %v1325_v12, 4  ;;  %v1277_v5 = vpop.permute.xlu0 %1276  ;;  %v1321_v39 = vrot.slane %v1320_v62, 2  ;;  %v1316_v35 = vrot.slane %v1315_v50, 1 }
 0x604   : > { %v1294_v15 = vmul.f32 %v1277_v5, %v6196_v58 }
 0x605   : > { %v1327_v18 = vadd.f32 %v1326_v63, %v1325_v12  ;;  %v1322_v53 = vadd.f32 %v1321_v39, %v1320_v62  ;;  %v1317_v39 = vadd.f32 %v1316_v35, %v1315_v50 }
 0x606   : > { %v1332_v32 = vsel %vm773_vm2, %v1294_v15, 0.0 }
 0x607   : > { %v1333_v42 = vrot.slane %v1332_v32, 4  ;;  %v1282_v34 = vpop.permute.xlu0 %1281  ;;  %v1328_v41 = vrot.slane %v1327_v18, 2 }
 0x608   : > { %v1295_v45 = vmul.f32 %v1282_v34, %v6200_v25  ;;  %v1310_v34 = vadd.f32 %v1309_v29, %v1308_v43 }
 0x609   : > { %v1334_v0 = vadd.f32 %v1333_v42, %v1332_v32  ;;  %v1329_v15 = vadd.f32 %v1328_v41, %v1327_v18  ;;  %v1323_v32 = vrot.slane %v1322_v53, 1 }
 0x60a   : > { %v1339_v36 = vsel %vm773_vm2, %v1295_v45, 0.0  ;;  %v1303_v45 = vadd.f32 %v1302_v17, %v1301_v52  ;;  %v6923_v52 = vmov 0.0|0.0  }
 0x60b   : > { %v1335_v12 = vrot.slane %v1334_v0, 2  ;;  %v1340_v63 = vrot.slane %v1339_v36, 4  ;;  %v1287_v5 = vpop.permute.xlu0 %1286  ;;  %v1330_v28 = vrot.slane %v1329_v15, 1  ;;  %v1324_v18 = vadd.f32 %v1323_v32, %v1322_v53 }
 0x60c   : > { %v1296_v26 = vmul.f32 %v1287_v5, %v6204_v49 }
 0x60d   : > { %v1336_v58 = vadd.f32 %v1335_v12, %v1334_v0  ;;  %v1341_v47 = vadd.f32 %v1340_v63, %v1339_v36  ;;  %v1331_v49 = vadd.f32 %v1330_v28, %v1329_v15  ;;  %v1435_v0 = vsel %vm1033_vm3, %v1310_v34, %v1303_v45  ;;  %v1606_v34 = vpop.permute.xlu1 %1605 }
 0x60e   : > { %v1346_v7 = vsel %vm773_vm2, %v1296_v26, 0.0  ;;  %v1436_v26 = vsel %vm1035_vm4, %v1317_v39, %v1435_v0 }
 0x60f   : > { %v1342_v42 = vrot.slane %v1341_v47, 2  ;;  %v1347_v10 = vrot.slane %v1346_v7, 4  ;;  %v1337_v11 = vrot.slane %v1336_v58, 1  ;;  %v1437_v25 = vsel %vm1037_vm5, %v1324_v18, %v1436_v26 }
 0x610   : > { %v1438_v29 = vsel %vm1039_vm6, %v1331_v49, %v1437_v25  ;;  %v6223_v49 = vld [vmem:[#allocation13] ss:$0 sm:$0xff] }
 0x611   : > { %v1343_v62 = vadd.f32 %v1342_v42, %v1341_v47  ;;  %v1348_v33 = vadd.f32 %v1347_v10, %v1346_v7  ;;  %v1338_v36 = vadd.f32 %v1337_v11, %v1336_v58  ;;  %v6922_v58 = vmov 0.0  }
 0x613   : > { %v1344_v41 = vrot.slane %v1343_v62, 1  ;;  %v1349_v5 = vrot.slane %v1348_v33, 2  ;;  %v1439_v35 = vsel %vm1041_vm7, %v1338_v36, %v1438_v29 }
 0x615   : > { %v1350_v12 = vadd.f32 %v1349_v5, %v1348_v33  ;;  %v1345_v63 = vadd.f32 %v1344_v41, %v1343_v62 }
 0x617   : > { %v1351_v21 = vrot.slane %v1350_v12, 1  ;;  %v1440_v43 = vsel %vm1043_vm8, %v1345_v63, %v1439_v35 }
 0x619   : > { %v1352_v47 = vadd.f32 %v1351_v21, %v1350_v12 }
 0x61b   : > { %v1441_v50 = vsel %vm1045_vm9, %v1352_v47, %v1440_v43 }
 0x61c   : > { %4496 = vmatmul.mubr.msk.f32.vlgmr.msra.gmra.mrb[2].mxu1 %vm773_vm2, %v1441_v50 }
 0x61d   : > { %4660 = vmatpush3.bf16.msra.mxu1 %v5930_v27  ;;  %4517 = vmatprep.mubr.msk.f32.mxu1 %vm5492_vm1, %v6922_v58 }
 0x61e   : > { %4661 = vmatprep.subr.bf16.mxu1 %v6923_v52 }
 0x621   : > { %4663 = vmatpush3.bf16.msra.mxu1 %v5938_v30 }
 0x622   : > { %4673 = vmatprep.subr.bf16.mxu1 %v6923_v52 }
 0x64a   : > { %v1423_v21 = vpop.f32.mrb[0].mxu1 }
 0x64b   : > { %v4486_v25 = vpop.f32.mrb[1].mxu1 }
 0x6ef   : > { %v1510_v53 = vpop.f32.mrb[2].mxu1 }
 0x6f0   : > { %v1511_v15 = vadd.f32 %v1510_v53, %v1423_v21  ;;  %v4497_v7 = vpop.f32.mrb[3].mxu1 }
 0x6f2   : > { %v1520_v17 = vadd.f32 %v6223_v49, %v1511_v15 }
 0x6f4   : > { %v1597_v32 = vadd.f32 %v6173_v9, %v1520_v17 }
 0x6f6   : > { %v4336_v42 = vmul.f32 -1.442695, %v1597_v32 }
 0x6f8   : > { %4930 = vpow2.f32 %v4336_v42 }
 0x702   : > { %v4931_v10 = vpop.eup %4930 }
 0x703   : > { %v1601_v28 = vadd.f32 1.0, %v4931_v10 }
 0x705   : > { %4932 = vrcp.f32 %v1601_v28 }
 0x70f   : > { %v4933_v11 = vpop.eup %4932 }
 0x710   : > { %v1608_v62 = vmul.f32 %v4933_v11, %v1606_v34  ;;  %v1615_v18 = vsub.f32 1.0, %v4933_v11 }
 0x712   : > { %1610 = vrot.lane.b32.xlu0 %v1608_v62, %s5496_s9 }
 0x784   : > { %v1611_v33 = vpop.permute.xlu0 %1610 }
 0x785   : > { %v1613_v39 = vadd.f32 %v1611_v33, %v1520_v17 }
 0x787   : > { %4934 = vtanh.f32 %v1613_v39 }
 0x791   : > { %v4935_v45 = vpop.eup %4934 }
 0x792   : > { %1617 = vrot.lane.b32.xlu0 %v4935_v45, %s5497_s19 }
 0x796   : > { %1621 = vrot.lane.b32.xlu0 %v5942_v31, %s5498_s29 }
 0x804   : > { %v1618_v9 = vpop.permute.xlu0 %1617 }
 0x805   : > { %v1620_v5 = vmul.f32 %v1618_v9, %v1615_v18 }
 0x808   : > { %v1622_v41 = vpop.permute.xlu0 %1621 }
 0x809   : > { %v1624_v0 = vmul.f32 %v4933_v11, %v1622_v41 }
 0x80b   : > { %v6230_v36 = vadd.f32 %v1624_v0, %v1620_v5 }
 0x80d   : > { %1627 = vrot.lane.b32.xlu0 %v6230_v36, %s5497_s19 }
 0x87f   : > { %v1628_v12 = vpop.permute.xlu0 %1627 }
 0x880   : > { %1630 = vst.msk [vmem:[%s5909_s16] sm:$0xff] %vm773_vm2, %v1628_v12  ;;  %4518 = vmatmul.mubr.msk.f32.vlgmr.msra.gmra.mrb[4].mxu1 %vm773_vm2, %v1628_v12 }
 0x881   : > { %4675 = vmatpush3.bf16.msra.mxu1 %v6112_v3  ;;  %4546 = vmatprep.mubr.msk.f32.mxu1 %vm5492_vm1, %v6922_v58 }
 0x882   : > { %4676 = vmatprep.subr.bf16.mxu1 %v6923_v52 }
 0x885   : > { %4678 = vmatpush3.bf16.msra.mxu1 %v6115_v6 }
 0x886   : > { %4685 = vmatprep.subr.bf16.mxu1 %v6923_v52 }
 0x888   : > { %4547 = vmatmul.mubr.msk.f32.vlgmr.msra.gmra.mrb[6].mxu1 %vm773_vm2, %v1628_v12 }
 0x889   : > { %4687 = vmatpush3.bf16.msra.mxu1 %v6140_v59  ;;  %4564 = vmatprep.mubr.msk.f32.mxu1 %vm5492_vm1, %v6922_v58 }
 0x88a   : > { %4688 = vmatprep.subr.bf16.mxu1 %v6923_v52 }
 0x953   : > { %v1701_v31 = vpop.f32.mrb[4].mxu1 }
 0x954   : > { %v1702_v26 = vadd.f32 %v5955_v37, %v1701_v31  ;;  %v4519_v63 = vpop.f32.mrb[5].mxu1 }
 0x956   : > { %v1706_v29 = vcombine.high %v1702_v26, %v1702_v26  ;;  %v1713_v47 = vrot.slane %v1702_v26, %v5958_v38 }
 0x958   : > { %v1720_v35 = vrot.slane %v1706_v29, %v5958_v38  ;;  %v1721_v43 = vcombine.high %v1713_v47, %v1713_v47  ;;  %v1729_v50 = vrot.slane %v1713_v47, %v5958_v38 }
 0x95a   : > { %v1722_v21 = vcombine.high %v1720_v35, %v1720_v35  ;;  %v1736_v25 = vrot.slane %v1720_v35, %v5958_v38  ;;  %v1743_v53 = vrot.slane %v1721_v43, %v5958_v38  ;;  %v1751_v15 = vcombine.high %v1729_v50, %v1729_v50 }
 0x95b   : > { %v1758_v7 = vrot.slane %v1729_v50, %v5963_v44  ;;  %v6255_v17 = vpop.f32.mrb[6].mxu1 }
 0x95c   : > { %v1750_v37 = vrot.slane %v1722_v21, %v5958_v38  ;;  %v1753_v32 = vcombine.high %v1743_v53, %v1743_v53  ;;  %v1762_v42 = vrot.slane %v1743_v53, %v5963_v44  ;;  %v4548_v10 = vpop.f32.mrb[7].mxu1  ;;  %v1752_v28 = vcombine.high %v1736_v25, %v1736_v25 }
 0x95d   : > { %v1766_v34 = vrot.slane %v1751_v15, %v5963_v44  ;;  %v1774_v11 = vrot.slane %v1736_v25, %v5963_v44  ;;  %v1795_v62 = vadd.f32 %v1758_v7, %v5967_v48 }
 0x95e   : > { %v1754_v33 = vcombine.high %v1750_v37, %v1750_v37  ;;  %v1770_v39 = vrot.slane %v1753_v32, %v5963_v44  ;;  %v1778_v45 = vrot.slane %v1750_v37, %v5963_v44  ;;  %v1796_v9 = vadd.f32 %v1762_v42, %v5972_v54 }
 0x95f   : > { %v1797_v18 = vadd.f32 %v1766_v34, %v5974_v55  ;;  %4936 = vtanh.f32 %v1795_v62  ;;  %v1799_v0 = vadd.f32 %v1774_v11, %v5980_v61  ;;  %v1782_v12 = vrot.slane %v1752_v28, %v5963_v44 }
 0x960   : > { %v1786_v41 = vrot.slane %v1754_v33, %v5963_v44  ;;  %v1798_v5 = vadd.f32 %v1770_v39, %v5978_v60  ;;  %v1800_v48 = vadd.f32 %v1778_v45, %v5987_v4  ;;  %4938 = vtanh.f32 %v1796_v9 }
 0x961   : > { %4940 = vtanh.f32 %v1797_v18  ;;  %v1801_v54 = vadd.f32 %v1782_v12, %v5992_v8 }
 0x962   : > { %4942 = vtanh.f32 %v1798_v5  ;;  %v1802_v31 = vadd.f32 %v1786_v41, %v5999_v14 }
 0x963   : > { %4944 = vtanh.f32 %v1799_v0 }
 0x964   : > { %4946 = vtanh.f32 %v1800_v48 }
 0x965   : > { %4948 = vtanh.f32 %v1802_v31 }
 0x966   : > { %4950 = vtanh.f32 %v1801_v54 }
 0x969   : > { %v4937_v55 = vpop.eup %4936 }
 0x96a   : > { %v1811_v60 = vmul.f32 %v4937_v55, %v6005_v16  ;;  %v4939_v26 = vpop.eup %4938 }
 0x96b   : > { %v4941_v61 = vpop.eup %4940  ;;  %v1812_v4 = vmul.f32 %v4939_v26, %v6005_v16 }
 0x96c   : > { %v1819_v63 = vsel %vm773_vm2, %v1811_v60, 0.0  ;;  %v4943_v29 = vpop.eup %4942  ;;  %v1813_v8 = vmul.f32 %v4941_v61, %v6005_v16 }
 0x96d   : > { %1820 = vadd.xlane.f32.xlu1 %v1819_v63  ;;  %v4945_v47 = vpop.eup %4944  ;;  %v1822_v14 = vsel %vm773_vm2, %v1812_v4, 0.0  ;;  %v1814_v35 = vmul.f32 %v4943_v29, %v6005_v16 }
 0x96e   : > { %v4947_v43 = vpop.eup %4946  ;;  %1823 = vadd.xlane.f32.xlu0 %v1822_v14  ;;  %v1825_v53 = vsel %vm773_vm2, %v1813_v8, 0.0  ;;  %v1815_v15 = vmul.f32 %v4945_v47, %v6005_v16 }
 0x96f   : > { %v1828_v50 = vsel %vm773_vm2, %v1814_v35, 0.0  ;;  %v1816_v21 = vmul.f32 %v4947_v43, %v6005_v16  ;;  %v4949_v25 = vpop.eup %4948 }
 0x970   : > { %v4951_v7 = vpop.eup %4950  ;;  %v1818_v32 = vmul.f32 %v4949_v25, %v6005_v16  ;;  %v1831_v42 = vsel %vm773_vm2, %v1815_v15, 0.0 }
 0x971   : > { %1829 = vadd.xlane.f32.xlu1 %v1828_v50  ;;  %v1834_v37 = vsel %vm773_vm2, %v1816_v21, 0.0  ;;  %v1817_v10 = vmul.f32 %v4951_v7, %v6005_v16 }
 0x972   : > { %1826 = vadd.xlane.f32.xlu0 %v1825_v53  ;;  %v1840_v28 = vsel %vm773_vm2, %v1818_v32, 0.0 }
 0x973   : > { %v1837_v34 = vsel %vm773_vm2, %v1817_v10, 0.0 }
 0x975   : > { %1835 = vadd.xlane.f32.xlu1 %v1834_v37 }
 0x976   : > { %1832 = vadd.xlane.f32.xlu0 %v1831_v42 }
 0x979   : > { %1841 = vadd.xlane.f32.xlu1 %v1840_v28 }
 0x97a   : > { %1838 = vadd.xlane.f32.xlu0 %v1837_v34 }
 0x9fa   : > { %v1821_v11 = vpop.xlane.xlu1 %1820 }
 0x9fb   : > { %v1824_v62 = vpop.xlane.xlu0 %1823  ;;  %v1854_v45 = vrot.slane %v1821_v11, %v6025_v56 }
 0x9fc   : > { %v1858_v33 = vrot.slane %v1824_v62, %v6025_v56 }
 0x9fe   : > { %v1830_v39 = vpop.xlane.xlu1 %1829  ;;  %v1883_v41 = vsel %vm1033_vm3, %v1858_v33, %v1854_v45 }
 0x9ff   : > { %v1827_v9 = vpop.xlane.xlu0 %1826  ;;  %v1866_v0 = vrot.slane %v1830_v39, %v6025_v56 }
 0xa00   : > { %v1862_v18 = vrot.slane %v1827_v9, %v6025_v56 }
 0xa02   : > { %v1836_v16 = vpop.xlane.xlu1 %1835  ;;  %v1884_v5 = vsel %vm1035_vm4, %v1862_v18, %v1883_v41 }
 0xa03   : > { %v1833_v12 = vpop.xlane.xlu0 %1832  ;;  %v1885_v31 = vsel %vm1037_vm5, %v1866_v0, %v1884_v5  ;;  %v1874_v60 = vrot.slane %v1836_v16, %v6025_v56 }
 0xa04   : > { %v1870_v48 = vrot.slane %v1833_v12, %v6025_v56 }
 0xa06   : > { %v1886_v54 = vsel %vm1039_vm6, %v1870_v48, %v1885_v31  ;;  %v1842_v55 = vpop.xlane.xlu1 %1841 }
 0xa07   : > { %v1839_v26 = vpop.xlane.xlu0 %1838  ;;  %v1882_v63 = vrot.slane %v1842_v55, %v6025_v56  ;;  %v1887_v4 = vsel %vm1041_vm7, %v1874_v60, %v1886_v54 }
 0xa08   : > { %v1878_v61 = vrot.slane %v1839_v26, %v6025_v56 }
 0xa0a   : > { %v1888_v29 = vsel %vm1043_vm8, %v1878_v61, %v1887_v4 }
 0xa0b   : > { %v1889_v47 = vsel %vm1045_vm9, %v1882_v63, %v1888_v29 }
 0xa0c   : > { %v1891_v14 = vsel %vm1048_vm10, %v1889_v47, -inf }
 0xa0d   : > { %1892 = vmax.xlane.f32.xlu0 %v1891_v14 }
 0xa9a   : > { %v1893_v35 = vpop.xlane.xlu0 %1892 }
 0xa9b   : > { %v1898_v8 = vrot.slane %v1893_v35, %v5963_v44  ;;  %v1902_v43 = vrot.slane %v1893_v35, %v6044_v22  ;;  %v1906_v50 = vrot.slane %v1893_v35, %v6047_v23  ;;  %v1914_v21 = vrot.slane %v1893_v35, %v6056_v40 }
 0xa9c   : > { %v1910_v25 = vrot.slane %v1893_v35, %v6050_v24  ;;  %v1922_v37 = vrot.slane %v1893_v35, %v6064_v51  ;;  %v1918_v28 = vrot.slane %v1893_v35, %v6060_v46  ;;  %v1926_v41 = vrot.slane %v1893_v35, %v6068_v57 }
 0xa9d   : > { %v1935_v53 = vsub.f32 %v1821_v11, %v1898_v8  ;;  %v1936_v15 = vsub.f32 %v1824_v62, %v1902_v43  ;;  %v1937_v7 = vsub.f32 %v1827_v9, %v1906_v50  ;;  %v1939_v32 = vsub.f32 %v1833_v12, %v1914_v21 }
 0xa9e   : > { %v1938_v34 = vsub.f32 %v1830_v39, %v1910_v25  ;;  %v1941_v45 = vsub.f32 %v1839_v26, %v1922_v37  ;;  %v1940_v5 = vsub.f32 %v1836_v16, %v1918_v28  ;;  %v1942_v9 = vsub.f32 %v1842_v55, %v1926_v41 }
 0xa9f   : > { %v1943_v42 = vmul.f32 1.442695, %v1935_v53  ;;  %v1945_v10 = vmul.f32 1.442695, %v1936_v15  ;;  %v1947_v33 = vmul.f32 1.442695, %v1937_v7  ;;  %v6343_v41 = vadd.f32 %v6170_v2, %v6255_v17 }
 0xaa0   : > { %v1951_v18 = vmul.f32 1.442695, %v1939_v32  ;;  %v1949_v11 = vmul.f32 1.442695, %v1938_v34  ;;  %v1955_v62 = vmul.f32 1.442695, %v1941_v45 }
 0xaa1   : > { %4952 = vpow2.f32 %v1943_v42  ;;  %v1953_v0 = vmul.f32 1.442695, %v1940_v5  ;;  %v1957_v39 = vmul.f32 1.442695, %v1942_v9 }
 0xaa2   : > { %4954 = vpow2.f32 %v1945_v10 }
 0xaa3   : > { %4956 = vpow2.f32 %v1947_v33 }
 0xaa4   : > { %4958 = vpow2.f32 %v1951_v18 }
 0xaa5   : > { %4960 = vpow2.f32 %v1949_v11 }
 0xaa6   : > { %4962 = vpow2.f32 %v1955_v62 }
 0xaa7   : > { %4964 = vpow2.f32 %v1953_v0 }
 0xaa8   : > { %4966 = vpow2.f32 %v1957_v39 }
 0xaab   : > { %v4953_v12 = vpop.eup %4952 }
 0xaac   : > { %v4955_v48 = vpop.eup %4954  ;;  %1968 = vperm.xlu1 %4880, %v4953_v12  }
 0xaad   : > { %1971 = vperm.xlu0 %4881, %v4955_v48   ;;  %v4957_v31 = vpop.eup %4956 }
 0xaae   : > { %v6313_v54 = vpop.eup %4958 }
 0xaaf   : > { %v4961_v16 = vpop.eup %4960 }
 0xab0   : > { %1974 = vperm.xlu1 %4880, %v4957_v31   ;;  %v6316_v60 = vpop.eup %4962 }
 0xab1   : > { %1980 = vperm.xlu0 %4881, %v6313_v54   ;;  %v6319_v55 = vpop.eup %4964 }
 0xab2   : > { %v6322_v26 = vpop.eup %4966 }
 0xab4   : > { %1977 = vperm.xlu1 %4880, %v4961_v16  }
 0xab5   : > { %1986 = vperm.xlu0 %4881, %v6316_v60  }
 0xab8   : > { %1983 = vperm.xlu1 %4880, %v6319_v55  }
 0xabc   : > { %1989 = vperm.xlu1 %4880, %v6322_v26  }
 0xb2b   : > { %v1969_v61 = vpop.permute.xlu1 %1968 }
 0xb2c   : > { %v1972_v63 = vpop.permute.xlu0 %1971  ;;  %v1994_v47 = vrot.slane %v1969_v61, %v6025_v56 }
 0xb2d   : > { %v1998_v29 = vrot.slane %v1972_v63, %v6025_v56 }
 0xb2f   : > { %v1975_v4 = vpop.permute.xlu1 %1974  ;;  %v2023_v43 = vsel %vm1033_vm3, %v1998_v29, %v1994_v47 }
 0xb30   : > { %v2002_v14 = vrot.slane %v1975_v4, %v6025_v56  ;;  %v1981_v35 = vpop.permute.xlu0 %1980 }
 0xb31   : > { %v2010_v53 = vrot.slane %v1981_v35, %v6025_v56 }
 0xb32   : > { %v2024_v21 = vsel %vm1035_vm4, %v2002_v14, %v2023_v43 }
 0xb33   : > { %v1978_v8 = vpop.permute.xlu1 %1977 }
 0xb34   : > { %v2006_v50 = vrot.slane %v1978_v8, %v6025_v56  ;;  %v1987_v7 = vpop.permute.xlu0 %1986 }
 0xb35   : > { %v2018_v10 = vrot.slane %v1987_v7, %v6025_v56  ;;  %v4337_v7 = vld [vmem:[%s5887_s14 + $0x8] sm:$0xff] }
 0xb36   : > { %v2025_v25 = vsel %vm1037_vm5, %v2006_v50, %v2024_v21  ;;  %4525 = vmatmul.mubr.msk.f32.vlgmr.msra.gmra.mrb[4].mxu0 %vm1353_vm11, %v4337_v7 }
 0xb37   : > { %v1984_v15 = vpop.permute.xlu1 %1983  ;;  %v2026_v32 = vsel %vm1039_vm6, %v2010_v53, %v2025_v25  ;;  %4669 = vmatpush3.bf16.msra.mxu0 %v6153_v13  ;;  %4535 = vmatprep.mubr.msk.f32.mxu0 %vm5492_vm1, %v6922_v58 }
 0xb38   : > { %v2014_v37 = vrot.slane %v1984_v15, %v6025_v56  ;;  %4670 = vmatprep.subr.bf16.mxu0 %v6923_v52 }
 0xb3a   : > { %v2027_v42 = vsel %vm1041_vm7, %v2014_v37, %v2026_v32  ;;  %v6924_v37 = vld [vmem:[#allocation29_spill] sm:$0xff] }
 0xb3b   : > { %v1990_v28 = vpop.permute.xlu1 %1989  ;;  %v2028_v33 = vsel %vm1043_vm8, %v2018_v10, %v2027_v42  ;;  %4672 = vmatpush3.bf16.msra.mxu0 %v6163_v1 }
 0xb3c   : > { %v2022_v34 = vrot.slane %v1990_v28, %v6025_v56  ;;  %4679 = vmatprep.subr.bf16.mxu0 %v6923_v52 }
 0xb3e   : > { %v2029_v45 = vsel %vm1045_vm9, %v2022_v34, %v2028_v33  ;;  %v6925_v33 = vld [vmem:[#allocation30_spill] sm:$0xff] }
 0xb3f   : > { %v2031_v18 = vsel %vm1048_vm10, %v2029_v45, 0.0 }
 0xb40   : > { %2032 = vadd.xlane.f32.xlu0 %v2031_v18 }
 0xb56   : > { %2434 = vrot.lane.b32.xlu0 %v6343_v41, %s5496_s9 }
 0xbcd   : > { %v2033_v5 = vpop.xlane.xlu0 %2032 }
 0xbce   : > { %v2038_v11 = vrot.slane %v2033_v5, %v5963_v44  ;;  %v2042_v62 = vrot.slane %v2033_v5, %v6044_v22  ;;  %v2046_v9 = vrot.slane %v2033_v5, %v6047_v23  ;;  %v2050_v0 = vrot.slane %v2033_v5, %v6050_v24 }
 0xbcf   : > { %v2054_v2 = vrot.slane %v2033_v5, %v6056_v40  ;;  %v2058_v63 = vrot.slane %v2033_v5, %v6060_v46  ;;  %v2062_v47 = vrot.slane %v2033_v5, %v6064_v51  ;;  %v2066_v8 = vrot.slane %v2033_v5, %v6068_v57 }
 0xbd0   : > { %4968 = vrcp.f32 %v2038_v11 }
 0xbd1   : > { %4970 = vrcp.f32 %v2042_v62 }
 0xbd2   : > { %4972 = vrcp.f32 %v2046_v9 }
 0xbd3   : > { %4974 = vrcp.f32 %v2050_v0  ;;  %v6926_v0 = vld [vmem:[#allocation31_spill] sm:$0xff] }
 0xbd4   : > { %4976 = vrcp.f32 %v2054_v2 }
 0xbd5   : > { %4978 = vrcp.f32 %v2058_v63 }
 0xbd6   : > { %4980 = vrcp.f32 %v2062_v47  ;;  %v6927_v47 = vld [vmem:[#allocation32_spill] sm:$0xff] }
 0xbd7   : > { %4982 = vrcp.f32 %v2066_v8 }
 0xbda   : > { %v4969_v39 = vpop.eup %4968 }
 0xbdb   : > { %v2076_v17 = vmul.f32 %v4969_v39, %v4953_v12  ;;  %v4971_v61 = vpop.eup %4970 }
 0xbdc   : > { %v2078_v4 = vmul.f32 %v4971_v61, %v4955_v48  ;;  %v4973_v29 = vpop.eup %4972 }
 0xbdd   : > { %2093 = vperm.xlu1 %4880, %v2076_v17   ;;  %v2080_v14 = vmul.f32 %v4973_v29, %v4957_v31  ;;  %v4975_v35 = vpop.eup %4974 }
 0xbde   : > { %v2082_v43 = vmul.f32 %v4975_v35, %v4961_v16  ;;  %v4977_v12 = vpop.eup %4976 }
 0xbdf   : > { %v2084_v50 = vmul.f32 %v4977_v12, %v6313_v54  ;;  %v4979_v21 = vpop.eup %4978 }
 0xbe0   : > { %v2086_v48 = vmul.f32 %v4979_v21, %v6319_v55  ;;  %v4981_v25 = vpop.eup %4980 }
 0xbe1   : > { %2098 = vperm.xlu1 %4880, %v2078_v4   ;;  %v2088_v31 = vmul.f32 %v4981_v25, %v6316_v60  ;;  %v4983_v53 = vpop.eup %4982 }
 0xbe2   : > { %v2090_v15 = vmul.f32 %v4983_v53, %v6322_v26  ;;  %v6928_v53 = vld [vmem:[#allocation33_spill] sm:$0xff] }
 0xbe5   : > { %2103 = vperm.xlu1 %4880, %v2080_v14  }
 0xbe9   : > { %2108 = vperm.xlu1 %4880, %v2082_v43  }
 0xbed   : > { %2113 = vperm.xlu1 %4880, %v2084_v50  }
 0xbf1   : > { %2118 = vperm.xlu1 %4880, %v2086_v48  }
 0xbf5   : > { %2123 = vperm.xlu1 %4880, %v2088_v31  }
 0xbf9   : > { %2128 = vperm.xlu1 %4880, %v2090_v15  }
 0xc5c   : > { %v2094_v54 = vpop.permute.xlu1 %2093 }
 0xc5d   : > { %v2131_v26 = vmul.f32 %v2094_v54, %v6179_v20 }
 0xc5f   : > { %v2139_v34 = vsel %vm773_vm2, %v2131_v26, 0.0 }
 0xc60   : > { %v2099_v16 = vpop.permute.xlu1 %2098  ;;  %v2140_v62 = vrot.slane %v2139_v34, 4 }
 0xc61   : > { %v2132_v60 = vmul.f32 %v2099_v16, %v6177_v19 }
 0xc62   : > { %v2141_v61 = vadd.f32 %v2140_v62, %v2139_v34 }
 0xc63   : > { %v2146_v42 = vsel %vm773_vm2, %v2132_v60, 0.0 }
 0xc64   : > { %v2104_v55 = vpop.permute.xlu1 %2103  ;;  %v2147_v18 = vrot.slane %v2146_v42, 4  ;;  %v2142_v50 = vrot.slane %v2141_v61, 2 }
 0xc65   : > { %v2133_v32 = vmul.f32 %v2104_v55, %v6924_v37 }
 0xc66   : > { %v2148_v39 = vadd.f32 %v2147_v18, %v2146_v42  ;;  %v2143_v55 = vadd.f32 %v2142_v50, %v2141_v61 }
 0xc67   : > { %v2153_v10 = vsel %vm773_vm2, %v2133_v32, 0.0 }
 0xc68   : > { %v2109_v28 = vpop.permute.xlu1 %2108  ;;  %v2154_v5 = vrot.slane %v2153_v10, 4  ;;  %v2149_v35 = vrot.slane %v2148_v39, 2  ;;  %v2144_v62 = vrot.slane %v2143_v55, 1 }
 0xc69   : > { %v2134_v45 = vmul.f32 %v2109_v28, %v6925_v33  ;;  %v6929_v28 = vld [vmem:[#allocation34_spill] sm:$0xff] }
 0xc6a   : > { %v2155_v2 = vadd.f32 %v2154_v5, %v2153_v10  ;;  %v2150_v7 = vadd.f32 %v2149_v35, %v2148_v39 }
 0xc6b   : > { %v2160_v11 = vsel %vm773_vm2, %v2134_v45, 0.0 }
 0xc6c   : > { %v2161_v19 = vrot.slane %v2160_v11, 4  ;;  %v2114_v9 = vpop.permute.xlu1 %2113  ;;  %v2156_v43 = vrot.slane %v2155_v2, 2  ;;  %v2151_v33 = vrot.slane %v2150_v7, 1 }
 0xc6d   : > { %v2135_v20 = vmul.f32 %v2114_v9, %v6926_v0 }
 0xc6e   : > { %v2162_v63 = vadd.f32 %v2161_v19, %v2160_v11  ;;  %v2157_v16 = vadd.f32 %v2156_v43, %v2155_v2  ;;  %v2152_v39 = vadd.f32 %v2151_v33, %v2150_v7 }
 0xc6f   : > { %v2167_v17 = vsel %vm773_vm2, %v2135_v20, 0.0 }
 0xc70   : > { %v2168_v4 = vrot.slane %v2167_v17, 4  ;;  %v2119_v29 = vpop.permute.xlu1 %2118  ;;  %v2163_v21 = vrot.slane %v2162_v63, 2  ;;  %v2158_v5 = vrot.slane %v2157_v16, 1 }
 0xc71   : > { %v2136_v14 = vmul.f32 %v2119_v29, %v6927_v47 }
 0xc72   : > { %v2169_v8 = vadd.f32 %v2168_v4, %v2167_v17  ;;  %v2164_v26 = vadd.f32 %v2163_v21, %v2162_v63  ;;  %v2159_v63 = vadd.f32 %v2158_v5, %v2157_v16  ;;  %v2145_v4 = vadd.f32 %v2144_v62, %v2143_v55  ;;  %v2264_v16 = vpop.f32.mrb[4].mxu0 }
 0xc73   : > { %v2174_v12 = vsel %vm773_vm2, %v2136_v14, 0.0 }
 0xc74   : > { %v2175_v48 = vrot.slane %v2174_v12, 4  ;;  %v2124_v25 = vpop.permute.xlu1 %2123  ;;  %v2170_v31 = vrot.slane %v2169_v8, 2  ;;  %v2165_v19 = vrot.slane %v2164_v26, 1 }
 0xc75   : > { %v2137_v15 = vmul.f32 %v2124_v25, %v6928_v53 }
 0xc76   : > { %v2176_v54 = vadd.f32 %v2175_v48, %v2174_v12  ;;  %v2171_v10 = vadd.f32 %v2170_v31, %v2169_v8  ;;  %v2166_v29 = vadd.f32 %v2165_v19, %v2164_v26  ;;  %v2276_v8 = vsel %vm1033_vm3, %v2152_v39, %v2145_v4  ;;  %v6423_v39 = vld [vmem:[%s6913_s15] ss:$0 sm:$0xff] }
 0xc77   : > { %v2181_v60 = vsel %vm773_vm2, %v2137_v15, 0.0  ;;  %v2277_v50 = vsel %vm1035_vm4, %v2159_v63, %v2276_v8 }
 0xc78   : > { %v2177_v37 = vrot.slane %v2176_v54, 2  ;;  %v2182_v32 = vrot.slane %v2181_v60, 4  ;;  %v2129_v42 = vpop.permute.xlu1 %2128  ;;  %v2172_v20 = vrot.slane %v2171_v10, 1  ;;  %v2278_v48 = vsel %vm1037_vm5, %v2166_v29, %v2277_v50 }
 0xc79   : > { %v2138_v34 = vmul.f32 %v2129_v42, %v6929_v28 }
 0xc7a   : > { %v2178_v45 = vadd.f32 %v2177_v37, %v2176_v54  ;;  %v2183_v18 = vadd.f32 %v2182_v32, %v2181_v60  ;;  %v2173_v35 = vadd.f32 %v2172_v20, %v2171_v10  ;;  %v4526_v60 = vpop.f32.mrb[5].mxu0 }
 0xc7b   : > { %v2188_v11 = vsel %vm773_vm2, %v2138_v34, 0.0 }
 0xc7c   : > { %v2184_v9 = vrot.slane %v2183_v18, 2  ;;  %v2189_v0 = vrot.slane %v2188_v11, 4  ;;  %v2179_v2 = vrot.slane %v2178_v45, 1  ;;  %v2279_v31 = vsel %vm1039_vm6, %v2173_v35, %v2278_v48 }
 0xc7e   : > { %v2185_v17 = vadd.f32 %v2184_v9, %v2183_v18  ;;  %v2190_v61 = vadd.f32 %v2189_v0, %v2188_v11  ;;  %v2180_v43 = vadd.f32 %v2179_v2, %v2178_v45  ;;  %v2435_v45 = vpop.permute.xlu0 %2434 }
 0xc80   : > { %v2186_v47 = vrot.slane %v2185_v17, 1  ;;  %v2191_v14 = vrot.slane %v2190_v61, 2  ;;  %v2280_v15 = vsel %vm1041_vm7, %v2180_v43, %v2279_v31 }
 0xc82   : > { %v2192_v12 = vadd.f32 %v2191_v14, %v2190_v61  ;;  %v2187_v21 = vadd.f32 %v2186_v47, %v2185_v17 }
 0xc84   : > { %v2193_v25 = vrot.slane %v2192_v12, 1  ;;  %v2281_v7 = vsel %vm1043_vm8, %v2187_v21, %v2280_v15 }
 0xc86   : > { %v2194_v53 = vadd.f32 %v2193_v25, %v2192_v12 }
 0xc88   : > { %v2282_v54 = vsel %vm1045_vm9, %v2194_v53, %v2281_v7  ;;  %v6438_v7 = vld [vmem:[#allocation3] sm:$0xff] }
 0xc89   : > { %4536 = vmatmul.mubr.msk.f32.vlgmr.msra.gmra.mrb[6].mxu0 %vm773_vm2, %v2282_v54 }
 0xc8a   : > { %4681 = vmatpush3.bf16.msra.mxu0 %v5930_v27  ;;  %4557 = vmatprep.mubr.msk.f32.mxu0 %vm5492_vm1, %v6922_v58 }
 0xc8b   : > { %4682 = vmatprep.subr.bf16.mxu0 %v6923_v52 }
 0xc8e   : > { %4684 = vmatpush3.bf16.msra.mxu0 %v5938_v30 }
 0xc8f   : > { %4694 = vmatprep.subr.bf16.mxu0 %v6923_v52 }
 0xd5c   : > { %v2351_v55 = vpop.f32.mrb[6].mxu0 }
 0xd5d   : > { %v2352_v26 = vadd.f32 %v2351_v55, %v2264_v16  ;;  %v4537_v37 = vpop.f32.mrb[7].mxu0 }
 0xd5e   : > { %v6444_v37 = vld [vmem:[#allocation3 + $0x8] sm:$0xff] }
 0xd5f   : > { %v2355_v32 = vadd.f32 %v6223_v49, %v2352_v26 }
 0xd61   : > { %v2426_v42 = vadd.f32 %v6343_v41, %v2355_v32 }
 0xd63   : > { %v4342_v10 = vmul.f32 -1.442695, %v2426_v42  ;;  %v6447_v42 = vld [vmem:[#allocation3 + $0x10] sm:$0xff] }
 0xd65   : > { %4984 = vpow2.f32 %v4342_v10 }
 0xd6f   : > { %v4985_v28 = vpop.eup %4984 }
 0xd70   : > { %v2430_v34 = vadd.f32 1.0, %v4985_v28  ;;  %v6450_v28 = vld [vmem:[#allocation3 + $0x18] sm:$0xff] }
 0xd72   : > { %4986 = vrcp.f32 %v2430_v34 }
 0xd7c   : > { %v4987_v33 = vpop.eup %4986 }
 0xd7d   : > { %v2437_v18 = vmul.f32 %v4987_v33, %v2435_v45  ;;  %v2444_v49 = vsub.f32 1.0, %v4987_v33  ;;  %v2450_v41 = vmul.f32 %v4987_v33, %v6230_v36  ;;  %v6453_v33 = vld [vmem:[#allocation3 + $0x20] sm:$0xff] }
 0xd7f   : > { %2439 = vrot.lane.b32.xlu1 %v2437_v18, %s5496_s9 }
 0xdf1   : > { %v2440_v5 = vpop.permute.xlu1 %2439 }
 0xdf2   : > { %v2442_v11 = vadd.f32 %v2440_v5, %v2355_v32  ;;  %v6457_v5 = vld [vmem:[#allocation3 + $0x28] sm:$0xff] }
 0xdf4   : > { %4988 = vtanh.f32 %v2442_v11 }
 0xdfe   : > { %v4989_v62 = vpop.eup %4988 }
 0xdff   : > { %2446 = vrot.lane.b32.xlu1 %v4989_v62, %s5497_s19  ;;  %v6460_v62 = vld [vmem:[#allocation3 + $0x30] sm:$0xff] }
 0xe71   : > { %v2447_v19 = vpop.permute.xlu1 %2446 }
 0xe72   : > { %v2449_v9 = vmul.f32 %v2447_v19, %v2444_v49  ;;  %v6463_v19 = vld [vmem:[#allocation3 + $0x38] sm:$0xff] }
 0xe74   : > { %v6402_v0 = vadd.f32 %v2450_v41, %v2449_v9 }
 0xe76   : > { %2453 = vrot.lane.b32.xlu1 %v6402_v0, %s5497_s19 }
 0xee8   : > { %v2454_v20 = vpop.permute.xlu1 %2453 }
 0xee9   : > { %4343 = vst.msk [vmem:[%s5909_s16 + $0x8] sm:$0xff] %vm773_vm2, %v2454_v20  ;;  %4558 = vmatmul.mubr.msk.f32.vlgmr.msra.gmra.mrb[8].mxu0 %vm773_vm2, %v2454_v20 }
 0xeea   : > { %4696 = vmatpush3.bf16.msra.mxu0 %v6112_v3  ;;  %4586 = vmatprep.mubr.msk.f32.mxu0 %vm5492_vm1, %v6922_v58 }
 0xeeb   : > { %4697 = vmatprep.subr.bf16.mxu0 %v6923_v52 }
 0xeee   : > { %4699 = vmatpush3.bf16.msra.mxu0 %v6115_v6 }
 0xeef   : > { %4706 = vmatprep.subr.bf16.mxu0 %v6923_v52 }
 0xef1   : > { %4587 = vmatmul.mubr.msk.f32.vlgmr.msra.gmra.mrb[10].mxu0 %vm773_vm2, %v2454_v20  ;;  %v6469_v20 = vld [vmem:[%s6914_s20] ss:$0 sm:$0xff] }
 0xef2   : > { %4708 = vmatpush3.bf16.msra.mxu0 %v6140_v59  ;;  %4604 = vmatprep.mubr.msk.f32.mxu0 %vm5492_vm1, %v6922_v58 }
 0xef3   : > { %4709 = vmatprep.subr.bf16.mxu0 %v6923_v52 }
 0xfbc   : > { %v2528_v36 = vpop.f32.mrb[8].mxu0 }
 0xfbd   : > { %v2529_v2 = vadd.f32 %v6423_v39, %v2528_v36  ;;  %v4559_v17 = vpop.f32.mrb[9].mxu0 }
 0xfbf   : > { %v2533_v61 = vcombine.high %v2529_v2, %v2529_v2  ;;  %v2540_v63 = vrot.slane %v2529_v2, %v5958_v38 }
 0xfc1   : > { %v2547_v4 = vrot.slane %v2533_v61, %v5958_v38  ;;  %v2548_v59 = vcombine.high %v2540_v63, %v2540_v63  ;;  %v2556_v29 = vrot.slane %v2540_v63, %v5958_v38 }
 0xfc3   : > { %v2549_v47 = vcombine.high %v2547_v4, %v2547_v4  ;;  %v2563_v14 = vrot.slane %v2547_v4, %v5958_v38  ;;  %v2570_v35 = vrot.slane %v2548_v59, %v5958_v38  ;;  %v2578_v8 = vcombine.high %v2556_v29, %v2556_v29 }
 0xfc4   : > { %v2585_v43 = vrot.slane %v2556_v29, %v5963_v44  ;;  %v6432_v12 = vpop.f32.mrb[10].mxu0 }
 0xfc5   : > { %v2577_v50 = vrot.slane %v2549_v47, %v5958_v38  ;;  %v2579_v21 = vcombine.high %v2563_v14, %v2563_v14  ;;  %v2580_v48 = vcombine.high %v2570_v35, %v2570_v35  ;;  %v2589_v25 = vrot.slane %v2570_v35, %v5963_v44  ;;  %v4588_v31 = vpop.f32.mrb[11].mxu0 }
 0xfc6   : > { %v2593_v53 = vrot.slane %v2578_v8, %v5963_v44  ;;  %v2601_v15 = vrot.slane %v2563_v14, %v5963_v44  ;;  %v2622_v54 = vadd.f32 %v6438_v7, %v2585_v43 }
 0xfc7   : > { %v2581_v16 = vcombine.high %v2577_v50, %v2577_v50  ;;  %v2597_v60 = vrot.slane %v2580_v48, %v5963_v44  ;;  %v2605_v55 = vrot.slane %v2577_v50, %v5963_v44  ;;  %v2609_v26 = vrot.slane %v2579_v21, %v5963_v44 }
 0xfc8   : > { %v2623_v32 = vadd.f32 %v6444_v37, %v2589_v25  ;;  %v2624_v10 = vadd.f32 %v6447_v42, %v2593_v53  ;;  %4990 = vtanh.f32 %v2622_v54  ;;  %v2626_v45 = vadd.f32 %v6453_v33, %v2601_v15 }
 0xfc9   : > { %v2625_v34 = vadd.f32 %v6450_v28, %v2597_v60  ;;  %v2613_v18 = vrot.slane %v2581_v16, %v5963_v44  ;;  %v2627_v11 = vadd.f32 %v6457_v5, %v2605_v55  ;;  %v2628_v49 = vadd.f32 %v6460_v62, %v2609_v26 }
 0xfca   : > { %4992 = vtanh.f32 %v2623_v32 }
 0xfcb   : > { %4994 = vtanh.f32 %v2624_v10  ;;  %v2629_v41 = vadd.f32 %v6463_v19, %v2613_v18 }
 0xfcc   : > { %4996 = vtanh.f32 %v2625_v34 }
 0xfcd   : > { %4998 = vtanh.f32 %v2626_v45 }
 0xfce   : > { %5000 = vtanh.f32 %v2627_v11 }
 0xfcf   : > { %5002 = vtanh.f32 %v2628_v49 }
 0xfd0   : > { %5004 = vtanh.f32 %v2629_v41 }
 0xfd2   : > { %v4991_v9 = vpop.eup %4990 }
 0xfd3   : > { %v2638_v36 = vmul.f32 %v6469_v20, %v4991_v9 }
 0xfd4   : > { %v4993_v2 = vpop.eup %4992 }
 0xfd5   : > { %v4995_v17 = vpop.eup %4994  ;;  %v2646_v61 = vsel %vm773_vm2, %v2638_v36, 0.0  ;;  %v2639_v63 = vmul.f32 %v6469_v20, %v4993_v2 }
 0xfd6   : > { %v4997_v4 = vpop.eup %4996  ;;  %2647 = vadd.xlane.f32.xlu1 %v2646_v61  ;;  %v2640_v59 = vmul.f32 %v6469_v20, %v4995_v17 }
 0xfd7   : > { %v4999_v29 = vpop.eup %4998  ;;  %v2649_v47 = vsel %vm773_vm2, %v2639_v63, 0.0  ;;  %v2641_v14 = vmul.f32 %v6469_v20, %v4997_v4 }
 0xfd8   : > { %v5001_v35 = vpop.eup %5000  ;;  %2650 = vadd.xlane.f32.xlu0 %v2649_v47  ;;  %v2652_v8 = vsel %vm773_vm2, %v2640_v59, 0.0  ;;  %v2642_v43 = vmul.f32 %v6469_v20, %v4999_v29 }
 0xfd9   : > { %v5003_v50 = vpop.eup %5002  ;;  %v2655_v21 = vsel %vm773_vm2, %v2641_v14, 0.0  ;;  %v2643_v48 = vmul.f32 %v6469_v20, %v5001_v35 }
 0xfda   : > { %2653 = vadd.xlane.f32.xlu1 %v2652_v8  ;;  %v5005_v25 = vpop.eup %5004  ;;  %v2658_v31 = vsel %vm773_vm2, %v2642_v43, 0.0  ;;  %v2644_v53 = vmul.f32 %v6469_v20, %v5003_v50 }
 0xfdb   : > { %v2661_v15 = vsel %vm773_vm2, %v2643_v48, 0.0  ;;  %v2645_v54 = vmul.f32 %v6469_v20, %v5005_v25 }
 0xfdc   : > { %2656 = vadd.xlane.f32.xlu0 %v2655_v21  ;;  %v2664_v16 = vsel %vm773_vm2, %v2644_v53, 0.0 }
 0xfdd   : > { %v2667_v60 = vsel %vm773_vm2, %v2645_v54, 0.0 }
 0xfde   : > { %2659 = vadd.xlane.f32.xlu1 %v2658_v31 }
 0xfe0   : > { %2662 = vadd.xlane.f32.xlu0 %v2661_v15 }
 0xfe2   : > { %2665 = vadd.xlane.f32.xlu1 %v2664_v16 }
 0xfe4   : > { %2668 = vadd.xlane.f32.xlu0 %v2667_v60 }
0x1063   : > { %v2648_v55 = vpop.xlane.xlu1 %2647 }
0x1064   : > { %v2681_v32 = vrot.slane %v2648_v55, %v6025_v56 }
0x1065   : > { %v2651_v26 = vpop.xlane.xlu0 %2650 }
0x1066   : > { %v2685_v10 = vrot.slane %v2651_v26, %v6025_v56 }
0x1067   : > { %v2654_v34 = vpop.xlane.xlu1 %2653 }
0x1068   : > { %v2710_v45 = vsel %vm1033_vm3, %v2685_v10, %v2681_v32  ;;  %v2689_v18 = vrot.slane %v2654_v34, %v6025_v56 }
0x1069   : > { %v2657_v11 = vpop.xlane.xlu0 %2656 }
0x106a   : > { %v2711_v49 = vsel %vm1035_vm4, %v2689_v18, %v2710_v45  ;;  %v2693_v41 = vrot.slane %v2657_v11, %v6025_v56 }
0x106b   : > { %v2660_v9 = vpop.xlane.xlu1 %2659 }
0x106c   : > { %v2712_v36 = vsel %vm1037_vm5, %v2693_v41, %v2711_v49  ;;  %v2697_v2 = vrot.slane %v2660_v9, %v6025_v56 }
0x106d   : > { %v2663_v17 = vpop.xlane.xlu0 %2662 }
0x106e   : > { %v2713_v61 = vsel %vm1039_vm6, %v2697_v2, %v2712_v36  ;;  %v2701_v63 = vrot.slane %v2663_v17, %v6025_v56 }
0x106f   : > { %v2666_v4 = vpop.xlane.xlu1 %2665 }
0x1070   : > { %v2705_v59 = vrot.slane %v2666_v4, %v6025_v56  ;;  %v2714_v29 = vsel %vm1041_vm7, %v2701_v63, %v2713_v61 }
0x1071   : > { %v2669_v47 = vpop.xlane.xlu0 %2668 }
0x1072   : > { %v2709_v14 = vrot.slane %v2669_v47, %v6025_v56  ;;  %v2715_v35 = vsel %vm1043_vm8, %v2705_v59, %v2714_v29 }
0x1074   : > { %v2716_v8 = vsel %vm1045_vm9, %v2709_v14, %v2715_v35 }
0x1075   : > { %v2718_v43 = vsel %vm1048_vm10, %v2716_v8, -inf }
0x1076   : > { %2719 = vmax.xlane.f32.xlu1 %v2718_v43 }
0x1103   : > { %v2720_v50 = vpop.xlane.xlu1 %2719 }
0x1104   : > { %v2725_v21 = vrot.slane %v2720_v50, %v5963_v44  ;;  %v2729_v48 = vrot.slane %v2720_v50, %v6044_v22  ;;  %v2733_v25 = vrot.slane %v2720_v50, %v6047_v23  ;;  %v2737_v31 = vrot.slane %v2720_v50, %v6050_v24 }
0x1105   : > { %v2745_v53 = vrot.slane %v2720_v50, %v6060_v46  ;;  %v2741_v60 = vrot.slane %v2720_v50, %v6056_v40  ;;  %v2753_v18 = vrot.slane %v2720_v50, %v6068_v57  ;;  %v2749_v36 = vrot.slane %v2720_v50, %v6064_v51 }
0x1106   : > { %v2762_v15 = vsub.f32 %v2648_v55, %v2725_v21  ;;  %v2763_v54 = vsub.f32 %v2651_v26, %v2729_v48  ;;  %v2765_v16 = vsub.f32 %v2657_v11, %v2737_v31  ;;  %v2764_v32 = vsub.f32 %v2654_v34, %v2733_v25 }
0x1107   : > { %v2767_v49 = vsub.f32 %v2663_v17, %v2745_v53  ;;  %v2766_v2 = vsub.f32 %v2660_v9, %v2741_v60  ;;  %v2769_v63 = vsub.f32 %v2669_v47, %v2753_v18  ;;  %v2768_v26 = vsub.f32 %v2666_v4, %v2749_v36 }
0x1108   : > { %v2770_v10 = vmul.f32 1.442695, %v2762_v15  ;;  %v2772_v45 = vmul.f32 1.442695, %v2763_v54  ;;  %v2776_v41 = vmul.f32 1.442695, %v2765_v16 }
0x1109   : > { %v2774_v61 = vmul.f32 1.442695, %v2764_v32  ;;  %v2780_v55 = vmul.f32 1.442695, %v2767_v49  ;;  %v2778_v11 = vmul.f32 1.442695, %v2766_v2 }
0x110a   : > { %5006 = vpow2.f32 %v2770_v10  ;;  %v2784_v34 = vmul.f32 1.442695, %v2769_v63  ;;  %v2782_v59 = vmul.f32 1.442695, %v2768_v26 }
0x110b   : > { %5008 = vpow2.f32 %v2772_v45 }
0x110c   : > { %5010 = vpow2.f32 %v2776_v41 }
0x110d   : > { %5012 = vpow2.f32 %v2774_v61 }
0x110e   : > { %5014 = vpow2.f32 %v2780_v55 }
0x110f   : > { %5016 = vpow2.f32 %v2778_v11 }
0x1110   : > { %5018 = vpow2.f32 %v2784_v34 }
0x1111   : > { %5020 = vpow2.f32 %v2782_v59 }
0x1114   : > { %v5007_v29 = vpop.eup %5006 }
0x1115   : > { %v5009_v14 = vpop.eup %5008  ;;  %2795 = vperm.xlu0 %4881, %v5007_v29  }
0x1116   : > { %2798 = vperm.xlu1 %4880, %v5009_v14   ;;  %v6511_v17 = vpop.eup %5010 }
0x1117   : > { %v5013_v9 = vpop.eup %5012 }
0x1118   : > { %v6514_v47 = vpop.eup %5014 }
0x1119   : > { %2804 = vperm.xlu0 %4881, %v6511_v17   ;;  %v5017_v4 = vpop.eup %5016 }
0x111a   : > { %2801 = vperm.xlu1 %4880, %v5013_v9   ;;  %v6517_v35 = vpop.eup %5018 }
0x111b   : > { %v6519_v8 = vpop.eup %5020 }
0x111d   : > { %2810 = vperm.xlu0 %4881, %v6514_v47  }
0x111e   : > { %2807 = vperm.xlu1 %4880, %v5017_v4  }
0x1121   : > { %2816 = vperm.xlu0 %4881, %v6517_v35  }
0x1122   : > { %2813 = vperm.xlu1 %4880, %v6519_v8  }
0x1194   : > { %v2796_v43 = vpop.permute.xlu0 %2795 }
0x1195   : > { %v2799_v50 = vpop.permute.xlu1 %2798  ;;  %v2821_v48 = vrot.slane %v2796_v43, %v6025_v56 }
0x1196   : > { %v2825_v21 = vrot.slane %v2799_v50, %v6025_v56 }
0x1198   : > { %v2805_v25 = vpop.permute.xlu0 %2804  ;;  %v2850_v15 = vsel %vm1033_vm3, %v2825_v21, %v2821_v48 }
0x1199   : > { %v2802_v31 = vpop.permute.xlu1 %2801  ;;  %v2833_v54 = vrot.slane %v2805_v25, %v6025_v56 }
0x119a   : > { %v2829_v53 = vrot.slane %v2802_v31, %v6025_v56 }
0x119c   : > { %v2851_v16 = vsel %vm1035_vm4, %v2829_v53, %v2850_v15  ;;  %v2811_v60 = vpop.permute.xlu0 %2810 }
0x119d   : > { %v2808_v32 = vpop.permute.xlu1 %2807  ;;  %v2852_v45 = vsel %vm1037_vm5, %v2833_v54, %v2851_v16  ;;  %v2841_v18 = vrot.slane %v2811_v60, %v6025_v56 }
0x119e   : > { %v2837_v10 = vrot.slane %v2808_v32, %v6025_v56 }
0x11a0   : > { %v2853_v49 = vsel %vm1039_vm6, %v2837_v10, %v2852_v45  ;;  %v2817_v41 = vpop.permute.xlu0 %2816 }
0x11a1   : > { %v2814_v36 = vpop.permute.xlu1 %2813  ;;  %v2849_v2 = vrot.slane %v2817_v41, %v6025_v56  ;;  %v2854_v63 = vsel %vm1041_vm7, %v2841_v18, %v2853_v49 }
0x11a2   : > { %v2845_v61 = vrot.slane %v2814_v36, %v6025_v56 }
0x11a4   : > { %v2855_v55 = vsel %vm1043_vm8, %v2845_v61, %v2854_v63  ;;  %v6551_v63 = vld [vmem:[#allocation14] ss:$0 sm:$0xff] }
0x11a5   : > { %v2856_v26 = vsel %vm1045_vm9, %v2849_v2, %v2855_v55 }
0x11a6   : > { %v2858_v11 = vsel %vm1048_vm10, %v2856_v26, 0.0  ;;  %v6570_v26 = vld [vmem:[#allocation7] sm:$0xff] }
0x11a7   : > { %2859 = vadd.xlane.f32.xlu1 %v2858_v11  ;;  %6930 = vst [vmem:[#allocation29_spill] sm:$0xff] %v6570_v26 }
0x1234   : > { %v2860_v34 = vpop.xlane.xlu1 %2859 }
0x1235   : > { %v2865_v59 = vrot.slane %v2860_v34, %v5963_v44  ;;  %v2869_v43 = vrot.slane %v2860_v34, %v6044_v22  ;;  %v2873_v50 = vrot.slane %v2860_v34, %v6047_v23  ;;  %v2877_v21 = vrot.slane %v2860_v34, %v6050_v24 }
0x1236   : > { %v2881_v25 = vrot.slane %v2860_v34, %v6056_v40  ;;  %v2885_v15 = vrot.slane %v2860_v34, %v6060_v46  ;;  %v2889_v60 = vrot.slane %v2860_v34, %v6064_v51  ;;  %v2893_v45 = vrot.slane %v2860_v34, %v6068_v57  ;;  %v6573_v34 = vld [vmem:[#allocation7 + $0x10] sm:$0xff] }
0x1237   : > { %5022 = vrcp.f32 %v2865_v59  ;;  %6931 = vst [vmem:[#allocation30_spill] sm:$0xff] %v6573_v34 }
0x1238   : > { %5024 = vrcp.f32 %v2869_v43 }
0x1239   : > { %5026 = vrcp.f32 %v2873_v50 }
0x123a   : > { %5028 = vrcp.f32 %v2877_v21 }
0x123b   : > { %5030 = vrcp.f32 %v2881_v25  ;;  %v6579_v25 = vld [vmem:[#allocation7 + $0x18] sm:$0xff] }
0x123c   : > { %5032 = vrcp.f32 %v2885_v15  ;;  %6932 = vst [vmem:[#allocation31_spill] sm:$0xff] %v6579_v25 }
0x123d   : > { %5034 = vrcp.f32 %v2889_v60 }
0x123e   : > { %5036 = vrcp.f32 %v2893_v45 }
0x1241   : > { %v5023_v48 = vpop.eup %5022 }
0x1242   : > { %v2903_v31 = vmul.f32 %v5023_v48, %v5007_v29  ;;  %v5025_v53 = vpop.eup %5024 }
0x1243   : > { %v2905_v54 = vmul.f32 %v5025_v53, %v5009_v14  ;;  %v5027_v16 = vpop.eup %5026 }
0x1244   : > { %2920 = vperm.xlu0 %4881, %v2903_v31   ;;  %v2907_v32 = vmul.f32 %v5027_v16, %v5013_v9  ;;  %v5029_v10 = vpop.eup %5028 }
0x1245   : > { %v2909_v18 = vmul.f32 %v5029_v10, %v6511_v17  ;;  %v5031_v29 = vpop.eup %5030  ;;  %v6555_v17 = vadd.f32 %v6551_v63, %v6432_v12  ;;  %v6583_v10 = vld [vmem:[#allocation7 + $0x20] sm:$0xff] }
0x1246   : > { %v2911_v49 = vmul.f32 %v5031_v29, %v5017_v4  ;;  %v5033_v41 = vpop.eup %5032  ;;  %v4344_v4 = vld [vmem:[%s5887_s14 + $0x10] sm:$0xff]  ;;  %6933 = vst [vmem:[#allocation32_spill] sm:$0xff] %v6583_v10 }
0x1247   : > { %v2913_v14 = vmul.f32 %v5033_v41, %v6514_v47  ;;  %v5035_v36 = vpop.eup %5034  ;;  %4565 = vmatmul.mubr.msk.f32.vlgmr.msra.gmra.mrb[8].mxu1 %vm1353_vm11, %v4344_v4 }
0x1248   : > { %2925 = vperm.xlu0 %4881, %v2905_v54   ;;  %v2915_v9 = vmul.f32 %v5035_v36, %v6519_v8  ;;  %v5037_v2 = vpop.eup %5036  ;;  %4690 = vmatpush3.bf16.msra.mxu1 %v6153_v13 }
0x1249   : > { %v2917_v61 = vmul.f32 %v5037_v2, %v6517_v35  ;;  %4575 = vmatprep.mubr.msk.f32.mxu1 %vm5492_vm1, %v6922_v58  ;;  %4691 = vmatprep.subr.bf16.mxu1 %v6923_v52  ;;  %v6567_v35 = vld [vmem:[#allocation7 + $0x8] sm:$0xff] }
0x124a   : > { %v6587_v2 = vld [vmem:[#allocation7 + $0x28] sm:$0xff] }
0x124b   : > { %6934 = vst [vmem:[#allocation33_spill] sm:$0xff] %v6587_v2 }
0x124c   : > { %2930 = vperm.xlu0 %4881, %v2907_v32   ;;  %4693 = vmatpush3.bf16.msra.mxu1 %v6163_v1 }
0x124d   : > { %4700 = vmatprep.subr.bf16.mxu1 %v6923_v52 }
0x1250   : > { %2935 = vperm.xlu0 %4881, %v2909_v18  }
0x1254   : > { %2940 = vperm.xlu0 %4881, %v2911_v49  }
0x1258   : > { %2945 = vperm.xlu0 %4881, %v2913_v14  }
0x125c   : > { %2950 = vperm.xlu0 %4881, %v2915_v9  }
0x1260   : > { %2955 = vperm.xlu0 %4881, %v2917_v61  }
0x1264   : > { %3261 = vrot.lane.b32.xlu0 %v6555_v17, %s5496_s9 }
0x12c3   : > { %v2921_v47 = vpop.permute.xlu0 %2920 }
0x12c4   : > { %v2958_v11 = vmul.f32 %v6570_v26, %v2921_v47 }
0x12c6   : > { %v2966_v48 = vsel %vm773_vm2, %v2958_v11, 0.0 }
0x12c7   : > { %v2926_v12 = vpop.permute.xlu0 %2925  ;;  %v2967_v16 = vrot.slane %v2966_v48, 4 }
0x12c8   : > { %v2959_v8 = vmul.f32 %v6567_v35, %v2926_v12 }
0x12c9   : > { %v2968_v41 = vadd.f32 %v2967_v16, %v2966_v48 }
0x12ca   : > { %v2973_v43 = vsel %vm773_vm2, %v2959_v8, 0.0 }
0x12cb   : > { %v2931_v55 = vpop.permute.xlu0 %2930  ;;  %v2974_v53 = vrot.slane %v2973_v43, 4 }
0x12cc   : > { %v2960_v59 = vmul.f32 %v6573_v34, %v2931_v55  ;;  %v2969_v55 = vrot.slane %v2968_v41, 2 }
0x12cd   : > { %v2975_v18 = vadd.f32 %v2974_v53, %v2973_v43 }
0x12ce   : > { %v2980_v50 = vsel %vm773_vm2, %v2960_v59, 0.0  ;;  %v2970_v16 = vadd.f32 %v2969_v55, %v2968_v41 }
0x12cf   : > { %v2936_v21 = vpop.permute.xlu0 %2935  ;;  %v2981_v15 = vrot.slane %v2980_v50, 4  ;;  %v2976_v4 = vrot.slane %v2975_v18, 2 }
0x12d0   : > { %v2961_v31 = vmul.f32 %v6579_v25, %v2936_v21  ;;  %v6591_v21 = vld [vmem:[#allocation7 + $0x30] sm:$0xff] }
0x12d1   : > { %v2982_v29 = vadd.f32 %v2981_v15, %v2980_v50  ;;  %6935 = vst [vmem:[#allocation34_spill] sm:$0xff] %v6591_v21 }
0x12d2   : > { %v2987_v54 = vsel %vm773_vm2, %v2961_v31, 0.0  ;;  %v2977_v31 = vadd.f32 %v2976_v4, %v2975_v18  ;;  %v2971_v4 = vrot.slane %v2970_v16, 1 }
0x12d3   : > { %v2988_v60 = vrot.slane %v2987_v54, 4  ;;  %v2941_v32 = vpop.permute.xlu0 %2940  ;;  %v2983_v12 = vrot.slane %v2982_v29, 2 }
0x12d4   : > { %v2962_v45 = vmul.f32 %v6583_v10, %v2941_v32 }
0x12d5   : > { %v2989_v14 = vadd.f32 %v2988_v60, %v2987_v54  ;;  %v2984_v15 = vadd.f32 %v2983_v12, %v2982_v29 }
0x12d6   : > { %v2994_v49 = vsel %vm773_vm2, %v2962_v45, 0.0 }
0x12d7   : > { %v2995_v36 = vrot.slane %v2994_v49, 4  ;;  %v2946_v9 = vpop.permute.xlu0 %2945  ;;  %v2990_v11 = vrot.slane %v2989_v14, 2  ;;  %v2985_v34 = vrot.slane %v2984_v15, 1 }
0x12d8   : > { %v2963_v61 = vmul.f32 %v6587_v2, %v2946_v9  ;;  %v6595_v9 = vld [vmem:[#allocation7 + $0x38] sm:$0xff]  ;;  %v2978_v2 = vrot.slane %v2977_v31, 1 }
0x12d9   : > { %v2996_v47 = vadd.f32 %v2995_v36, %v2994_v49  ;;  %v2991_v60 = vadd.f32 %v2990_v11, %v2989_v14  ;;  %6936 = vst [vmem:[#allocation35_spill] sm:$0xff] %v6595_v9 }
0x12da   : > { %v3001_v8 = vsel %vm773_vm2, %v2963_v61, 0.0  ;;  %v2979_v14 = vadd.f32 %v2978_v2, %v2977_v31 }
0x12db   : > { %v3002_v59 = vrot.slane %v3001_v8, 4  ;;  %v2951_v43 = vpop.permute.xlu0 %2950  ;;  %v2997_v50 = vrot.slane %v2996_v47, 2  ;;  %v2992_v29 = vrot.slane %v2991_v60, 1 }
0x12dc   : > { %v2964_v48 = vmul.f32 %v6591_v21, %v2951_v43  ;;  %v2972_v43 = vadd.f32 %v2971_v4, %v2970_v16 }
0x12dd   : > { %v3003_v53 = vadd.f32 %v3002_v59, %v3001_v8  ;;  %v2998_v36 = vadd.f32 %v2997_v50, %v2996_v47  ;;  %v2986_v47 = vadd.f32 %v2985_v34, %v2984_v15  ;;  %v2993_v50 = vadd.f32 %v2992_v29, %v2991_v60 }
0x12de   : > { %v3008_v54 = vsel %vm773_vm2, %v2964_v48, 0.0 }
0x12df   : > { %v3004_v32 = vrot.slane %v3003_v53, 2  ;;  %v3009_v45 = vrot.slane %v3008_v54, 4  ;;  %v2956_v49 = vpop.permute.xlu0 %2955  ;;  %v2999_v41 = vrot.slane %v2998_v36, 1 }
0x12e0   : > { %v2965_v61 = vmul.f32 %v6595_v9, %v2956_v49 }
0x12e1   : > { %v3005_v10 = vadd.f32 %v3004_v32, %v3003_v53  ;;  %v3010_v25 = vadd.f32 %v3009_v45, %v3008_v54  ;;  %v3000_v9 = vadd.f32 %v2999_v41, %v2998_v36  ;;  %v3103_v53 = vsel %vm1033_vm3, %v2979_v14, %v2972_v43  ;;  %v6613_v36 = vld [vmem:[#allocation13] ss:$0 sm:$0xff] }
0x12e2   : > { %v3015_v18 = vsel %vm773_vm2, %v2965_v61, 0.0  ;;  %v3104_v45 = vsel %vm1035_vm4, %v2986_v47, %v3103_v53 }
0x12e3   : > { %v3011_v12 = vrot.slane %v3010_v25, 2  ;;  %v3016_v8 = vrot.slane %v3015_v18, 4  ;;  %v3006_v55 = vrot.slane %v3005_v10, 1  ;;  %v3105_v21 = vsel %vm1037_vm5, %v2993_v50, %v3104_v45 }
0x12e4   : > { %v3106_v2 = vsel %vm1039_vm6, %v3000_v9, %v3105_v21 }
0x12e5   : > { %v3012_v11 = vadd.f32 %v3011_v12, %v3010_v25  ;;  %v3017_v59 = vadd.f32 %v3016_v8, %v3015_v18  ;;  %v3007_v54 = vadd.f32 %v3006_v55, %v3005_v10 }
0x12e7   : > { %v3013_v48 = vrot.slane %v3012_v11, 1  ;;  %v3018_v49 = vrot.slane %v3017_v59, 2  ;;  %v3107_v34 = vsel %vm1041_vm7, %v3007_v54, %v3106_v2 }
0x12e9   : > { %v3019_v32 = vadd.f32 %v3018_v49, %v3017_v59  ;;  %v3014_v61 = vadd.f32 %v3013_v48, %v3012_v11 }
0x12eb   : > { %v3020_v26 = vrot.slane %v3019_v32, 1  ;;  %v3108_v31 = vsel %vm1043_vm8, %v3014_v61, %v3107_v34 }
0x12ed   : > { %v3021_v25 = vadd.f32 %v3020_v26, %v3019_v32 }
0x12ef   : > { %v3109_v15 = vsel %vm1045_vm9, %v3021_v25, %v3108_v31 }
0x12f0   : > { %4576 = vmatmul.mubr.msk.f32.vlgmr.msra.gmra.mrb[10].mxu1 %vm773_vm2, %v3109_v15 }
0x12f1   : > { %4702 = vmatpush3.bf16.msra.mxu1 %v5930_v27  ;;  %4597 = vmatprep.mubr.msk.f32.mxu1 %vm5492_vm1, %v6922_v58 }
0x12f2   : > { %4703 = vmatprep.subr.bf16.mxu1 %v6923_v52 }
0x12f5   : > { %4705 = vmatpush3.bf16.msra.mxu1 %v5938_v30  ;;  %v3262_v30 = vpop.permute.xlu0 %3261 }
0x12f6   : > { %4715 = vmatprep.subr.bf16.mxu1 %v6923_v52 }
0x131a   : > { %v3091_v26 = vpop.f32.mrb[8].mxu1 }
0x131b   : > { %v4566_v10 = vpop.f32.mrb[9].mxu1 }
0x13c3   : > { %v3178_v21 = vpop.f32.mrb[10].mxu1 }
0x13c4   : > { %v3179_v16 = vadd.f32 %v3178_v21, %v3091_v26  ;;  %v4577_v60 = vpop.f32.mrb[11].mxu1 }
0x13c6   : > { %v3182_v9 = vadd.f32 %v6613_v36, %v3179_v16 }
0x13c8   : > { %v3253_v27 = vadd.f32 %v6555_v17, %v3182_v9 }
0x13ca   : > { %v4349_v18 = vmul.f32 -1.442695, %v3253_v27 }
0x13cc   : > { %5038 = vpow2.f32 %v4349_v18 }
0x13d6   : > { %v5039_v4 = vpop.eup %5038 }
0x13d7   : > { %v3257_v29 = vadd.f32 1.0, %v5039_v4 }
0x13d9   : > { %5040 = vrcp.f32 %v3257_v29 }
0x13e3   : > { %v5041_v12 = vpop.eup %5040 }
0x13e4   : > { %v3264_v8 = vmul.f32 %v5041_v12, %v3262_v30  ;;  %v3271_v11 = vsub.f32 1.0, %v5041_v12  ;;  %v3277_v17 = vmul.f32 %v5041_v12, %v6402_v0 }
0x13e6   : > { %3266 = vrot.lane.b32.xlu1 %v3264_v8, %s5496_s9 }
0x1458   : > { %v3267_v41 = vpop.permute.xlu1 %3266 }
0x1459   : > { %v3269_v14 = vadd.f32 %v3267_v41, %v3182_v9 }
0x145b   : > { %5042 = vtanh.f32 %v3269_v14 }
0x1465   : > { %v5043_v55 = vpop.eup %5042 }
0x1466   : > { %3273 = vrot.lane.b32.xlu0 %v5043_v55, %s5497_s19 }
0x14d8   : > { %v3274_v59 = vpop.permute.xlu0 %3273 }
0x14d9   : > { %v3276_v47 = vmul.f32 %v3274_v59, %v3271_v11 }
0x14db   : > { %v6620_v43 = vadd.f32 %v3277_v17, %v3276_v47 }
0x14dd   : > { %3280 = vrot.lane.b32.xlu0 %v6620_v43, %s5497_s19 }
0x154f   : > { %v3281_v50 = vpop.permute.xlu0 %3280 }
0x1550   : > { %4350 = vst.msk [vmem:[%s5909_s16 + $0x10] sm:$0xff] %vm773_vm2, %v3281_v50  ;;  %4598 = vmatmul.mubr.msk.f32.vlgmr.msra.gmra.mrb[12].mxu1 %vm773_vm2, %v3281_v50 }
0x1551   : > { %4717 = vmatpush3.bf16.msra.mxu1 %v6112_v3  ;;  %4626 = vmatprep.mubr.msk.f32.mxu1 %vm5492_vm1, %v6922_v58 }
0x1552   : > { %4718 = vmatprep.subr.bf16.mxu1 %v6923_v52 }
0x1555   : > { %4720 = vmatpush3.bf16.msra.mxu1 %v6115_v6 }
0x1558   : > { %4627 = vmatmul.mubr.msk.f32.vlgmr.msra.gmra.mrb[14].mxu1 %vm773_vm2, %v3281_v50 }
0x1623   : > { %v3355_v0 = vpop.f32.mrb[12].mxu1 }
0x1624   : > { %v3356_v48 = vadd.f32 %v6423_v39, %v3355_v0  ;;  %v4599_v49 = vpop.f32.mrb[13].mxu1 }
0x1626   : > { %v3360_v53 = vcombine.high %v3356_v48, %v3356_v48  ;;  %v3367_v54 = vrot.slane %v3356_v48, %v5958_v38 }
0x1628   : > { %v3374_v32 = vrot.slane %v3360_v53, %v5958_v38  ;;  %v3375_v45 = vcombine.high %v3367_v54, %v3367_v54  ;;  %v3383_v3 = vrot.slane %v3367_v54, %v5958_v38 }
0x162a   : > { %v3376_v61 = vcombine.high %v3374_v32, %v3374_v32  ;;  %v3390_v2 = vrot.slane %v3374_v32, %v5958_v38  ;;  %v3397_v25 = vrot.slane %v3375_v45, %v5958_v38  ;;  %v3405_v6 = vcombine.high %v3383_v3, %v3383_v3 }
0x162b   : > { %v3412_v34 = vrot.slane %v3383_v3, %v5963_v44  ;;  %v6640_v31 = vpop.f32.mrb[14].mxu1 }
0x162c   : > { %v3404_v39 = vrot.slane %v3376_v61, %v5958_v38  ;;  %v3407_v15 = vcombine.high %v3397_v25, %v3397_v25  ;;  %v3416_v26 = vrot.slane %v3397_v25, %v5963_v44  ;;  %v4628_v10 = vpop.f32.mrb[15].mxu1  ;;  %v3420_v21 = vrot.slane %v3405_v6, %v5963_v44 }
0x162d   : > { %v3428_v16 = vrot.slane %v3390_v2, %v5963_v44  ;;  %v3449_v60 = vadd.f32 %v6438_v7, %v3412_v34  ;;  %v3406_v4 = vcombine.high %v3390_v2, %v3390_v2 }
0x162e   : > { %v3408_v9 = vcombine.high %v3404_v39, %v3404_v39  ;;  %v3424_v27 = vrot.slane %v3407_v15, %v5963_v44  ;;  %v3432_v18 = vrot.slane %v3404_v39, %v5963_v44  ;;  %v3450_v29 = vadd.f32 %v6444_v37, %v3416_v26 }
0x162f   : > { %v3451_v38 = vadd.f32 %v6447_v42, %v3420_v21  ;;  %5044 = vtanh.f32 %v3449_v60  ;;  %v3453_v30 = vadd.f32 %v6453_v33, %v3428_v16  ;;  %v3436_v41 = vrot.slane %v3406_v4, %v5963_v44 }
0x1630   : > { %v3440_v12 = vrot.slane %v3408_v9, %v5963_v44  ;;  %v3454_v8 = vadd.f32 %v6457_v5, %v3432_v18  ;;  %5046 = vtanh.f32 %v3450_v29  ;;  %v3452_v7 = vadd.f32 %v6450_v28, %v3424_v27 }
0x1631   : > { %5048 = vtanh.f32 %v3451_v38  ;;  %v3455_v37 = vadd.f32 %v6460_v62, %v3436_v41 }
0x1632   : > { %v3456_v14 = vadd.f32 %v6463_v19, %v3440_v12  ;;  %5050 = vtanh.f32 %v3453_v30 }
0x1633   : > { %5052 = vtanh.f32 %v3454_v8 }
0x1634   : > { %5054 = vtanh.f32 %v3452_v7 }
0x1635   : > { %5056 = vtanh.f32 %v3456_v14 }
0x1636   : > { %5058 = vtanh.f32 %v3455_v37 }
0x1639   : > { %v5045_v42 = vpop.eup %5044 }
0x163a   : > { %v3465_v55 = vmul.f32 %v6469_v20, %v5045_v42  ;;  %v5047_v33 = vpop.eup %5046 }
0x163b   : > { %v5049_v5 = vpop.eup %5048  ;;  %v3466_v28 = vmul.f32 %v6469_v20, %v5047_v33 }
0x163c   : > { %v3473_v11 = vsel %vm773_vm2, %v3465_v55, 0.0  ;;  %v3467_v59 = vmul.f32 %v6469_v20, %v5049_v5  ;;  %v5051_v19 = vpop.eup %5050 }
0x163d   : > { %3474 = vadd.xlane.f32.xlu0 %v3473_v11  ;;  %v3476_v17 = vsel %vm773_vm2, %v3466_v28, 0.0  ;;  %v5053_v47 = vpop.eup %5052  ;;  %v3469_v48 = vmul.f32 %v6469_v20, %v5051_v19 }
0x163e   : > { %3477 = vadd.xlane.f32.xlu1 %v3476_v17  ;;  %v5055_v62 = vpop.eup %5054  ;;  %v3479_v50 = vsel %vm773_vm2, %v3467_v59, 0.0  ;;  %v3470_v0 = vmul.f32 %v6469_v20, %v5053_v47 }
0x163f   : > { %v5057_v49 = vpop.eup %5056  ;;  %v3485_v32 = vsel %vm773_vm2, %v3469_v48, 0.0  ;;  %v3468_v45 = vmul.f32 %v6469_v20, %v5055_v62 }
0x1640   : > { %v3488_v53 = vsel %vm773_vm2, %v3470_v0, 0.0  ;;  %v3472_v54 = vmul.f32 %v6469_v20, %v5057_v49  ;;  %v5059_v3 = vpop.eup %5058 }
0x1641   : > { %3480 = vadd.xlane.f32.xlu0 %v3479_v50  ;;  %v3482_v2 = vsel %vm773_vm2, %v3468_v45, 0.0  ;;  %v3471_v25 = vmul.f32 %v6469_v20, %v5059_v3 }
0x1642   : > { %3489 = vadd.xlane.f32.xlu1 %v3488_v53  ;;  %v3494_v61 = vsel %vm773_vm2, %v3472_v54, 0.0 }
0x1643   : > { %v3491_v6 = vsel %vm773_vm2, %v3471_v25, 0.0 }
0x1645   : > { %3486 = vadd.xlane.f32.xlu0 %v3485_v32 }
0x1646   : > { %3495 = vadd.xlane.f32.xlu1 %v3494_v61 }
0x1649   : > { %3483 = vadd.xlane.f32.xlu0 %v3482_v2 }
0x164d   : > { %3492 = vadd.xlane.f32.xlu0 %v3491_v6 }
0x16ca   : > { %v3475_v34 = vpop.xlane.xlu0 %3474 }
0x16cb   : > { %v3478_v39 = vpop.xlane.xlu1 %3477  ;;  %v3508_v21 = vrot.slane %v3475_v34, %v6025_v56 }
0x16cc   : > { %v3512_v26 = vrot.slane %v3478_v39, %v6025_v56 }
0x16ce   : > { %v3481_v15 = vpop.xlane.xlu0 %3480  ;;  %v3537_v9 = vsel %vm1033_vm3, %v3512_v26, %v3508_v21 }
0x16cf   : > { %v3490_v16 = vpop.xlane.xlu1 %3489  ;;  %v3516_v60 = vrot.slane %v3481_v15, %v6025_v56 }
0x16d0   : > { %v3528_v29 = vrot.slane %v3490_v16, %v6025_v56 }
0x16d1   : > { %v3538_v18 = vsel %vm1035_vm4, %v3516_v60, %v3537_v9 }
0x16d2   : > { %v3487_v10 = vpop.xlane.xlu0 %3486 }
0x16d3   : > { %v3524_v4 = vrot.slane %v3487_v10, %v6025_v56  ;;  %v3496_v38 = vpop.xlane.xlu1 %3495 }
0x16d4   : > { %v3536_v14 = vrot.slane %v3496_v38, %v6025_v56 }
0x16d6   : > { %v3484_v27 = vpop.xlane.xlu0 %3483 }
0x16d7   : > { %v3520_v20 = vrot.slane %v3484_v27, %v6025_v56 }
0x16d9   : > { %v3539_v12 = vsel %vm1037_vm5, %v3520_v20, %v3538_v18 }
0x16da   : > { %v3540_v30 = vsel %vm1039_vm6, %v3524_v4, %v3539_v12  ;;  %v3493_v8 = vpop.xlane.xlu0 %3492 }
0x16db   : > { %v3532_v7 = vrot.slane %v3493_v8, %v6025_v56  ;;  %v3541_v41 = vsel %vm1041_vm7, %v3528_v29, %v3540_v30 }
0x16dd   : > { %v3542_v37 = vsel %vm1043_vm8, %v3532_v7, %v3541_v41 }
0x16de   : > { %v3543_v42 = vsel %vm1045_vm9, %v3536_v14, %v3542_v37 }
0x16df   : > { %v3545_v55 = vsel %vm1048_vm10, %v3543_v42, -inf }
0x16e0   : > { %3546 = vmax.xlane.f32.xlu0 %v3545_v55 }
0x176d   : > { %v3547_v33 = vpop.xlane.xlu0 %3546 }
0x176e   : > { %v3552_v5 = vrot.slane %v3547_v33, %v5963_v44  ;;  %v3556_v11 = vrot.slane %v3547_v33, %v6044_v22  ;;  %v3560_v28 = vrot.slane %v3547_v33, %v6047_v23  ;;  %v3568_v59 = vrot.slane %v3547_v33, %v6056_v40 }
0x176f   : > { %v3564_v19 = vrot.slane %v3547_v33, %v6050_v24  ;;  %v3576_v50 = vrot.slane %v3547_v33, %v6064_v51  ;;  %v3572_v53 = vrot.slane %v3547_v33, %v6060_v46  ;;  %v3580_v61 = vrot.slane %v3547_v33, %v6068_v57 }
0x1770   : > { %v3589_v17 = vsub.f32 %v3475_v34, %v3552_v5  ;;  %v3590_v47 = vsub.f32 %v3478_v39, %v3556_v11  ;;  %v3591_v62 = vsub.f32 %v3481_v15, %v3560_v28  ;;  %v3593_v0 = vsub.f32 %v3487_v10, %v3568_v59 }
0x1771   : > { %v3592_v54 = vsub.f32 %v3484_v27, %v3564_v19  ;;  %v3595_v45 = vsub.f32 %v3493_v8, %v3576_v50  ;;  %v3594_v2 = vsub.f32 %v3490_v16, %v3572_v53  ;;  %v3596_v34 = vsub.f32 %v3496_v38, %v3580_v61 }
0x1772   : > { %v3597_v48 = vmul.f32 1.442695, %v3589_v17  ;;  %v3599_v49 = vmul.f32 1.442695, %v3590_v47  ;;  %v3601_v32 = vmul.f32 1.442695, %v3591_v62 }
0x1773   : > { %v3605_v3 = vmul.f32 1.442695, %v3593_v0  ;;  %v3603_v25 = vmul.f32 1.442695, %v3592_v54  ;;  %v3609_v6 = vmul.f32 1.442695, %v3595_v45 }
0x1774   : > { %5060 = vpow2.f32 %v3597_v48  ;;  %v3607_v39 = vmul.f32 1.442695, %v3594_v2  ;;  %v3611_v10 = vmul.f32 1.442695, %v3596_v34  ;;  %v6728_v48 = vadd.f32 %v6551_v63, %v6640_v31 }
0x1775   : > { %5062 = vpow2.f32 %v3599_v49 }
0x1776   : > { %5064 = vpow2.f32 %v3601_v32 }
0x1777   : > { %5066 = vpow2.f32 %v3605_v3 }
0x1778   : > { %5068 = vpow2.f32 %v3603_v25 }
0x1779   : > { %5070 = vpow2.f32 %v3609_v6 }
0x177a   : > { %5072 = vpow2.f32 %v3607_v39 }
0x177b   : > { %5074 = vpow2.f32 %v3611_v10 }
0x177e   : > { %v5061_v15 = vpop.eup %5060 }
0x177f   : > { %v5063_v26 = vpop.eup %5062  ;;  %3622 = vperm.xlu1 %4880, %v5061_v15  }
0x1780   : > { %3625 = vperm.xlu0 %4881, %v5063_v26   ;;  %v5065_v21 = vpop.eup %5064 }
0x1781   : > { %v6698_v60 = vpop.eup %5066 }
0x1782   : > { %v5069_v16 = vpop.eup %5068 }
0x1783   : > { %3628 = vperm.xlu1 %4880, %v5065_v21   ;;  %v6701_v9 = vpop.eup %5070 }
0x1784   : > { %3634 = vperm.xlu0 %4881, %v6698_v60   ;;  %v6704_v27 = vpop.eup %5072 }
0x1785   : > { %v6707_v20 = vpop.eup %5074 }
0x1787   : > { %3631 = vperm.xlu1 %4880, %v5069_v16  }
0x1788   : > { %3640 = vperm.xlu0 %4881, %v6701_v9  }
0x178b   : > { %3637 = vperm.xlu1 %4880, %v6704_v27  }
0x178f   : > { %3643 = vperm.xlu1 %4880, %v6707_v20  }
0x17fe   : > { %v3623_v18 = vpop.permute.xlu1 %3622 }
0x17ff   : > { %v3626_v4 = vpop.permute.xlu0 %3625  ;;  %v3648_v12 = vrot.slane %v3623_v18, %v6025_v56  ;;  %v6938_v18 = vld [vmem:[#allocation30_spill] sm:$0xff] }
0x1800   : > { %v3652_v38 = vrot.slane %v3626_v4, %v6025_v56 }
0x1802   : > { %v3629_v29 = vpop.permute.xlu1 %3628  ;;  %v3677_v41 = vsel %vm1033_vm3, %v3652_v38, %v3648_v12  ;;  %v6939_v12 = vld [vmem:[#allocation31_spill] sm:$0xff] }
0x1803   : > { %v3656_v30 = vrot.slane %v3629_v29, %v6025_v56  ;;  %v3635_v8 = vpop.permute.xlu0 %3634 }
0x1804   : > { %v3664_v55 = vrot.slane %v3635_v8, %v6025_v56 }
0x1805   : > { %v3678_v37 = vsel %vm1035_vm4, %v3656_v30, %v3677_v41 }
0x1806   : > { %v3632_v7 = vpop.permute.xlu1 %3631 }
0x1807   : > { %v3660_v14 = vrot.slane %v3632_v7, %v6025_v56  ;;  %v3641_v5 = vpop.permute.xlu0 %3640 }
0x1808   : > { %v3672_v19 = vrot.slane %v3641_v5, %v6025_v56 }
0x1809   : > { %v3679_v42 = vsel %vm1037_vm5, %v3660_v14, %v3678_v37  ;;  %v6940_v14 = vld [vmem:[#allocation32_spill] sm:$0xff] }
0x180a   : > { %v3638_v33 = vpop.permute.xlu1 %3637  ;;  %v3680_v28 = vsel %vm1039_vm6, %v3664_v55, %v3679_v42 }
0x180b   : > { %v3668_v11 = vrot.slane %v3638_v33, %v6025_v56 }
0x180d   : > { %v3681_v59 = vsel %vm1041_vm7, %v3668_v11, %v3680_v28 }
0x180e   : > { %v3644_v17 = vpop.permute.xlu1 %3643  ;;  %v3682_v62 = vsel %vm1043_vm8, %v3672_v19, %v3681_v59  ;;  %v6941_v19 = vld [vmem:[#allocation33_spill] sm:$0xff] }
0x180f   : > { %v3676_v47 = vrot.slane %v3644_v17, %v6025_v56 }
0x1811   : > { %v3683_v50 = vsel %vm1045_vm9, %v3676_v47, %v3682_v62 }
0x1812   : > { %v3685_v0 = vsel %vm1048_vm10, %v3683_v50, 0.0 }
0x1813   : > { %3686 = vadd.xlane.f32.xlu0 %v3685_v0 }
0x1829   : > { %4088 = vrot.lane.b32.xlu0 %v6728_v48, %s5496_s9 }
0x18a0   : > { %v3687_v49 = vpop.xlane.xlu0 %3686 }
0x18a1   : > { %v3692_v53 = vrot.slane %v3687_v49, %v5963_v44  ;;  %v3696_v54 = vrot.slane %v3687_v49, %v6044_v22  ;;  %v3700_v56 = vrot.slane %v3687_v49, %v6047_v23  ;;  %v3704_v32 = vrot.slane %v3687_v49, %v6050_v24 }
0x18a2   : > { %v3708_v63 = vrot.slane %v3687_v49, %v6056_v40  ;;  %v3712_v61 = vrot.slane %v3687_v49, %v6060_v46  ;;  %v3716_v22 = vrot.slane %v3687_v49, %v6064_v51  ;;  %v3720_v24 = vrot.slane %v3687_v49, %v6068_v57  ;;  %v4351_v57 = vld [vmem:[%s5887_s14 + $0x18] sm:$0xff]  ;;  %s6944_s14 = sld [smem:[#allocation28_spill]] }
0x18a3   : > { %5076 = vrcp.f32 %v3692_v53  ;;  %4605 = vmatmul.mubr.msk.f32.vlgmr.msra.gmra.mrb[12].mxu0 %vm1353_vm11, %v4351_v57 }
0x18a4   : > { %5078 = vrcp.f32 %v3696_v54  ;;  %4711 = vmatpush3.bf16.msra.mxu0 %v6153_v13  ;;  %4615 = vmatprep.mubr.msk.f32.mxu0 %vm5492_vm1, %v6922_v58 }
0x18a5   : > { %5080 = vrcp.f32 %v3700_v56  ;;  %4712 = vmatprep.subr.bf16.mxu0 %v6923_v52 }
0x18a6   : > { %5082 = vrcp.f32 %v3704_v32 }
0x18a7   : > { %5084 = vrcp.f32 %v3708_v63 }
0x18a8   : > { %5086 = vrcp.f32 %v3712_v61  ;;  %4714 = vmatpush3.bf16.msra.mxu0 %v6163_v1  ;;  %s4364_s1 = sshll.u32 %s6944_s14, 9  ;;  %s5376_s14 = sshll.u32 %s5499_s27, 4  ;;  %s5377_s14 = int_to_ptr.vmem [resolvable:$false] %s5376_s14 }
0x18a9   : > { %5088 = vrcp.f32 %v3716_v22  ;;  %s6786_s24 = scalar_lea.hbm %s6945_s28, %s4364_s1  ;;  %s5378_s1 = scalar_lea.vmem %s5377_s14, 1024 }
0x18aa   : > { %5090 = vrcp.f32 %v3720_v24  ;;  %p5379_p0 = scmp.lt.s32.totalorder %s6788_s0, %s5377_s14 }
0x18ad   : > { %v5077_v45 = vpop.eup %5076 }
0x18ae   : > { %v3730_v31 = vmul.f32 %v5077_v45, %v5061_v15  ;;  %v5079_v3 = vpop.eup %5078  ;;  %v6942_v45 = vld [vmem:[#allocation34_spill] sm:$0xff] }
0x18af   : > { %v3732_v44 = vmul.f32 %v5079_v3, %v5063_v26  ;;  %v5081_v2 = vpop.eup %5080 }
0x18b0   : > { %3747 = vperm.xlu1 %4880, %v3730_v31   ;;  %v3734_v23 = vmul.f32 %v5081_v2, %v5065_v21  ;;  %v5083_v25 = vpop.eup %5082 }
0x18b1   : > { %v3736_v40 = vmul.f32 %v5083_v25, %v5069_v16  ;;  %v5085_v6 = vpop.eup %5084 }
0x18b2   : > { %v3738_v34 = vmul.f32 %v5085_v6, %v6698_v60  ;;  %v5087_v46 = vpop.eup %5086  ;;  %v6943_v6 = vld [vmem:[#allocation35_spill] sm:$0xff] }
0x18b3   : > { %v3740_v39 = vmul.f32 %v5087_v46, %v6704_v27  ;;  %v5089_v15 = vpop.eup %5088  ;;  %v6937_v27 = vld [vmem:[#allocation29_spill] sm:$0xff] }
0x18b4   : > { %3752 = vperm.xlu1 %4880, %v3732_v44   ;;  %v3742_v51 = vmul.f32 %v5089_v15, %v6701_v9  ;;  %v5091_v26 = vpop.eup %5090 }
0x18b5   : > { %v3744_v10 = vmul.f32 %v5091_v26, %v6707_v20 }
0x18b8   : > { %3757 = vperm.xlu1 %4880, %v3734_v23  }
0x18bc   : > { %3762 = vperm.xlu1 %4880, %v3736_v40  }
0x18c0   : > { %3767 = vperm.xlu1 %4880, %v3738_v34  }
0x18c4   : > { %3772 = vperm.xlu1 %4880, %v3740_v39  }
0x18c8   : > { %3777 = vperm.xlu1 %4880, %v3742_v51  }
0x18cc   : > { %3782 = vperm.xlu1 %4880, %v3744_v10  }
0x192f   : > { %v3748_v21 = vpop.permute.xlu1 %3747 }
0x1930   : > { %v3785_v20 = vmul.f32 %v6937_v27, %v3748_v21 }
0x1932   : > { %v3793_v58 = vsel %vm773_vm2, %v3785_v20, 0.0 }
0x1933   : > { %v3753_v60 = vpop.permute.xlu1 %3752  ;;  %v3794_v7 = vrot.slane %v3793_v58, 4 }
0x1934   : > { %v3786_v16 = vmul.f32 %v6567_v35, %v3753_v60 }
0x1935   : > { %v3795_v5 = vadd.f32 %v3794_v7, %v3793_v58 }
0x1936   : > { %v3800_v29 = vsel %vm773_vm2, %v3786_v16, 0.0 }
0x1937   : > { %v3758_v9 = vpop.permute.xlu1 %3757  ;;  %v3801_v30 = vrot.slane %v3800_v29, 4  ;;  %v3796_v49 = vrot.slane %v3795_v5, 2 }
0x1938   : > { %v3787_v4 = vmul.f32 %v6938_v18, %v3758_v9 }
0x1939   : > { %v3802_v42 = vadd.f32 %v3801_v30, %v3800_v29  ;;  %v3797_v2 = vadd.f32 %v3796_v49, %v3795_v5 }
0x193a   : > { %v3807_v13 = vsel %vm773_vm2, %v3787_v4, 0.0 }
0x193b   : > { %v3763_v38 = vpop.permute.xlu1 %3762  ;;  %v3808_v1 = vrot.slane %v3807_v13, 4  ;;  %v3803_v47 = vrot.slane %v3802_v42, 2  ;;  %v3798_v10 = vrot.slane %v3797_v2, 1 }
0x193c   : > { %v3788_v52 = vmul.f32 %v6939_v12, %v3763_v38 }
0x193d   : > { %v3809_v55 = vadd.f32 %v3808_v1, %v3807_v13  ;;  %v3804_v31 = vadd.f32 %v3803_v47, %v3802_v42  ;;  %v3799_v29 = vadd.f32 %v3798_v10, %v3797_v2 }
0x193e   : > { %v3814_v8 = vsel %vm773_vm2, %v3788_v52, 0.0 }
0x193f   : > { %v3815_v35 = vrot.slane %v3814_v8, 4  ;;  %v3768_v41 = vpop.permute.xlu1 %3767  ;;  %v3810_v50 = vrot.slane %v3809_v55, 2  ;;  %v3805_v46 = vrot.slane %v3804_v31, 1 }
0x1940   : > { %v3789_v37 = vmul.f32 %v6940_v14, %v3768_v41 }
0x1941   : > { %v3816_v11 = vadd.f32 %v3815_v35, %v3814_v8  ;;  %v3811_v61 = vadd.f32 %v3810_v50, %v3809_v55  ;;  %v3806_v9 = vadd.f32 %v3805_v46, %v3804_v31 }
0x1942   : > { %v3821_v33 = vsel %vm773_vm2, %v3789_v37, 0.0 }
0x1943   : > { %v3822_v28 = vrot.slane %v3821_v33, 4  ;;  %v3773_v59 = vpop.permute.xlu1 %3772  ;;  %v3817_v53 = vrot.slane %v3816_v11, 2  ;;  %v3812_v51 = vrot.slane %v3811_v61, 1  ;;  %v3930_v52 = vsel %vm1033_vm3, %v3806_v9, %v3799_v29 }
0x1944   : > { %v3790_v17 = vmul.f32 %v6941_v19, %v3773_v59 }
0x1945   : > { %v3823_v62 = vadd.f32 %v3822_v28, %v3821_v33  ;;  %v3818_v22 = vadd.f32 %v3817_v53, %v3816_v11  ;;  %v3813_v4 = vadd.f32 %v3812_v51, %v3811_v61  ;;  %v4089_v53 = vpop.permute.xlu0 %4088 }
0x1946   : > { %v3828_v0 = vsel %vm773_vm2, %v3790_v17, 0.0 }
0x1947   : > { %v3829_v54 = vrot.slane %v3828_v0, 4  ;;  %v3778_v56 = vpop.permute.xlu1 %3777  ;;  %v3824_v32 = vrot.slane %v3823_v62, 2  ;;  %v3819_v57 = vrot.slane %v3818_v22, 1  ;;  %v3931_v8 = vsel %vm1035_vm4, %v3813_v4, %v3930_v52 }
0x1948   : > { %v3791_v63 = vmul.f32 %v6942_v45, %v3778_v56 }
0x1949   : > { %v3830_v3 = vadd.f32 %v3829_v54, %v3828_v0  ;;  %v3825_v40 = vadd.f32 %v3824_v32, %v3823_v62  ;;  %v3820_v13 = vadd.f32 %v3819_v57, %v3818_v22 }
0x194a   : > { %v3835_v44 = vsel %vm773_vm2, %v3791_v63, 0.0 }
0x194b   : > { %v3831_v23 = vrot.slane %v3830_v3, 2  ;;  %v3836_v25 = vrot.slane %v3835_v44, 4  ;;  %v3783_v24 = vpop.permute.xlu1 %3782  ;;  %v3826_v16 = vrot.slane %v3825_v40, 1  ;;  %v3932_v35 = vsel %vm1037_vm5, %v3820_v13, %v3931_v8 }
0x194c   : > { %v3792_v34 = vmul.f32 %v6943_v6, %v3783_v24 }
0x194d   : > { %v3832_v39 = vadd.f32 %v3831_v23, %v3830_v3  ;;  %v3837_v15 = vadd.f32 %v3836_v25, %v3835_v44  ;;  %v3827_v12 = vadd.f32 %v3826_v16, %v3825_v40 }
0x194e   : > { %v3842_v26 = vsel %vm773_vm2, %v3792_v34, 0.0 }
0x194f   : > { %v3838_v21 = vrot.slane %v3837_v15, 2  ;;  %v3843_v60 = vrot.slane %v3842_v26, 4  ;;  %v3833_v27 = vrot.slane %v3832_v39, 1  ;;  %v3933_v14 = vsel %vm1039_vm6, %v3827_v12, %v3932_v35 }
0x1951   : > { %v3839_v20 = vadd.f32 %v3838_v21, %v3837_v15  ;;  %v3844_v18 = vadd.f32 %v3843_v60, %v3842_v26  ;;  %v3834_v30 = vadd.f32 %v3833_v27, %v3832_v39 }
0x1953   : > { %v3840_v38 = vrot.slane %v3839_v20, 1  ;;  %v3845_v58 = vrot.slane %v3844_v18, 2  ;;  %v3934_v42 = vsel %vm1041_vm7, %v3834_v30, %v3933_v14 }
0x1955   : > { %v3846_v1 = vadd.f32 %v3845_v58, %v3844_v18  ;;  %v3841_v7 = vadd.f32 %v3840_v38, %v3839_v20 }
0x1957   : > { %v3847_v41 = vrot.slane %v3846_v1, 1  ;;  %v3935_v55 = vsel %vm1043_vm8, %v3841_v7, %v3934_v42 }
0x1959   : > { %v3848_v37 = vadd.f32 %v3847_v41, %v3846_v1 }
0x195b   : > { %v3936_v33 = vsel %vm1045_vm9, %v3848_v37, %v3935_v55 }
0x195c   : > { %4616 = vmatmul.mubr.msk.f32.vlgmr.msra.gmra.mrb[14].mxu0 %vm773_vm2, %v3936_v33 }
0x1976   : > { %v3918_v5 = vpop.f32.mrb[12].mxu0 }
0x1977   : > { %v4606_v11 = vpop.f32.mrb[13].mxu0 }
0x1a2f   : > { %v4005_v28 = vpop.f32.mrb[14].mxu0 }
0x1a30   : > { %v4006_v59 = vadd.f32 %v4005_v28, %v3918_v5  ;;  %v4617_v19 = vpop.f32.mrb[15].mxu0 }
0x1a32   : > { %v4009_v17 = vadd.f32 %v6613_v36, %v4006_v59 }
0x1a34   : > { %v4080_v47 = vadd.f32 %v6728_v48, %v4009_v17 }
0x1a36   : > { %v4356_v62 = vmul.f32 -1.442695, %v4080_v47 }
0x1a38   : > { %5092 = vpow2.f32 %v4356_v62 }
0x1a42   : > { %v5093_v50 = vpop.eup %5092 }
0x1a43   : > { %v4084_v0 = vadd.f32 1.0, %v5093_v50 }
0x1a45   : > { %5094 = vrcp.f32 %v4084_v0 }
0x1a4f   : > { %v5095_v49 = vpop.eup %5094 }
0x1a50   : > { %v4091_v54 = vmul.f32 %v5095_v49, %v4089_v53  ;;  %v4098_v48 = vsub.f32 1.0, %v5095_v49  ;;  %v4104_v63 = vmul.f32 %v5095_v49, %v6620_v43 }
0x1a52   : > { %4093 = vrot.lane.b32.xlu1 %v4091_v54, %s5496_s9 }
0x1ac4   : > { %v4094_v56 = vpop.permute.xlu1 %4093 }
0x1ac5   : > { %v4096_v32 = vadd.f32 %v4094_v56, %v4009_v17 }
0x1ac7   : > { %5096 = vtanh.f32 %v4096_v32 }
0x1ad1   : > { %v5097_v36 = vpop.eup %5096 }
0x1ad2   : > { %4100 = vrot.lane.b32.xlu1 %v5097_v36, %s5497_s19 }
0x1b44   : > { %v4101_v45 = vpop.permute.xlu1 %4100 }
0x1b45   : > { %v4103_v31 = vmul.f32 %v4101_v45, %v4098_v48 }
0x1b47   : > { %v4105_v3 = vadd.f32 %v4104_v63, %v4103_v31 }
0x1b49   : > { %4107 = vrot.lane.b32.xlu1 %v4105_v3, %s5497_s19  ;;  %s5372_s19 = scalar_lea.vmem %s6788_s0, 512 }
0x1b4a   : > { %p5373_p7 = scmp.ne.s32.totalorder %s6788_s0, %s5372_s19  ;;  %p5380_p5 = scmp.lt.s32.totalorder %s5378_s1, %s5372_s19 }
0x1b4c   : > { %p5374_p10 = pnand %p5373_p7, %p6946_p1  ;;  %p5381_p13 = por %p5380_p5, %p5379_p0 }
0x1b4e   : > { %p5375_p12 = pneg %p5374_p10 }
0x1b50   : > { %p5382_p2 = pnand %p5381_p13, %p5375_p12 }
0x1bbb   : > { %v4108_v61 = vpop.permute.xlu1 %4107 }
0x1bbc   : > { %4357 = vst.msk [vmem:[%s5909_s16 + $0x18] sm:$0xff] %vm773_vm2, %v4108_v61  ;;  %4112 = vst.msk [vmem:[#allocation2] sm:$0xff] %vm773_vm2, %v4108_v61 }
0x1bbd   : > { %5385 = shalt.err (!%p5382_p2)
}
0x1bbe   : > { %s5386_s6 = scalar_lea.hbm %s6786_s24, 512  ;;  %s5390_s29 = scalar_lea.hbm %s6945_s28, 1024 }
0x1bbf   : > { %p5387_p8 = scmp.ne.s32.totalorder %s6786_s24, %s5386_s6  ;;  %p5391_p11 = scmp.lt.u32.totalorder %s6786_s24, %s6945_s28 }
0x1bc0   : > { %p5392_p6 = scmp.lt.u32.totalorder %s5390_s29, %s5386_s6  ;;  %p5394_p7 = scmp.lt.u32.totalorder %s5386_s6, %s6786_s24 }
0x1bc1   : > { %p5388_p9 = pnand %p5387_p8, %p6946_p1 }
0x1bc2   : > { %p5393_p3 = por %p5392_p6, %p5391_p11 }
0x1bc3   : > { %p5389_p4 = pneg %p5388_p9 }
0x1bc4   : > { %p5395_p10 = por %p5394_p7, %p5393_p3 }
0x1bc6   : > { %p5396_p12 = pnand %p5395_p10, %p5389_p4 }
0x1bc8   : > { %5399 = shalt.err (!%p5396_p12)
}
0x1bc9   : > { %s5500_s19 = smov 128   ;;  %s5501_s1 = smov 8  }
0x1bca   : > { %4759 = dma.vmem_to_hbm [thread:$0]  (%p6946_p1), %s6788_s0, 512, %s6786_s24, %s6795_s17, %s5500_s19, %s5500_s19, %s5501_s1  }
0x1bcb PF: > { %s4143_s16 = sand.u32 1, %s5458_s21   ;;  %p6947_p0 = scmp.ne.s32.totalorder %s6896_s12, 0 }
0x1bcc   : > { %p6948_p5 = scmp.ge.s32.totalorder %s5478_s26, 2  ;;  %s4144_s6 = scalar_lea.sflag [#allocation6], %s4143_s16 }
0x1bce   : > { %p4791_p13 = pnand %p6948_p5, %p6947_p0 }
0x1bd0   : > { %5453 = dma.done.wait (!%p4791_p13), %s4144_s6, 512  }
0x1bd1   : > { %5455 = vsyncadd (!%p4791_p13), %s4144_s6, 4294966784  ;;  %s30_s26 = sadd.s32 1, %s5478_s26   ;;  %s6949_s21 = smov %s5462_s22 }
0x1bd2   : > { %p27_p2 = scmp.ge.s32.totalorder %s30_s26, 4   ;;  %s6950_s22 = smov %s5466_s23 }
0x1bd3   : > { %s6951_s23 = smov %s5819_s30  ;;  %s6952_s24 = smov %s5474_s25 }
0x1bd4   : > { %s6953_s25 = smov %s6955_s13  ;;  %29 = sbr.rel (!%p27_p2) target bundleno = 16 (0x10), region = 156 }
0x1bdb   :  { %4149 = vsyncpa [#allocation5], 1 }
0x1bdc   :  { %4151 = vsyncpa [#allocation5 + $0x1], 1 }
0x1bdd   :  { %4152 = vsyncpa [#allocation8], 1 }
0x1bde   :  { %4153 = vsyncpa [#allocation12], 1 }
0x1bdf   :  { %4154 = vsyncpa [#allocation15], 1 }
0x1be0   :  { %4155 = vsyncpa [#allocation18], 1 }
0x1be1   :  { %4156 = vsyncpa [#allocation6], 1 }
0x1be2   :  { %4158 = vsyncpa [#allocation6 + $0x1], 1 }

</bundles_post_ra>
